<compile_context>
chip_gen: v6e
topology: v6e:2x2x1
jax: 0.10.0
libtpu: 0.0.40
codegen_flags: <defaults>
</compile_context>

<pallas_src>
import functools

import jax
import jax.numpy as jnp
from jax.experimental import pallas as pl
from jax.experimental.pallas import tpu as pltpu

BN_EPS = 1e-5
TF_LIST = (2, 3, 6, 7)          # time_filter of ga_2, ga_3, ga_6, ga_7


# ----------------------------------------------------------------------------
# Fused Pallas kernel: whole MultiHeadGraphAttention forward for one batch block
# ----------------------------------------------------------------------------
def _fused_mha_kernel(xwt_ref, adj_ref, wall_ref, who2_ref, o_ref, *,
                      bb, c_out, tp_pad, n_heads):
    # xwt_ref:  (T, bb*N, W)        bf16  [x | 1], rows=(b, n), broadcast over t
    # adj_ref:  (bb, N, N)          f32   adj + adj_hat
    # wall_ref: (T, W, P)           bf16  Toeplitz: per-head k|q|v (8 zero-padded
    #                                     cols each) + fully folded residual
    # who2_ref: (H*tp_pad, C_out)   bf16  fc_out_head . BN_h . fc_out_mha . BN_m
    # o_ref:    (N, bb*T*C_out)     f32   lane-dense output slab, lanes=(t, b, c)
    T = xwt_ref.shape[0]
    N = adj_ref.shape[-1]
    H = n_heads
    G = H * T * bb            # one attention problem per (head, time, batch)
    R = T * bb * N            # flattened rows (t, b, n) for the projections

    # (1) every convolution of the module in ONE T-batched matmul (bf16 -> f32)
    conv = jnp.einsum("tmw,twp->tmp", xwt_ref[...], wall_ref[...],
                      preferred_element_type=jnp.float32)      # (T, bb*N, P)

    # (2) regroup k/q/v into (G, N, 8); lane slices are 8-aligned, the reshape
    #     only splits/merges leading & sublane dims on (8-) tile boundaries.
    def grouped(off):
        parts = [conv[:, :, off + 3 * tp_pad * h: off + 3 * tp_pad * h + tp_pad]
                 .reshape(T * bb, N, tp_pad) for h in range(H)]
        return jnp.concatenate(parts, axis=0).astype(jnp.bfloat16)   # (G, N, 8)

    k = grouped(0)
    q = grouped(tp_pad)
    v = grouped(2 * tp_pad)

    adj_g = jnp.broadcast_to(adj_ref[...][None],
                             (H * T, bb, N, N)).reshape(G, N, N)

    # (3) all 4 heads x T times x bb batches of attention as one einsum pair
    s = jnp.einsum("gnc,gmc->gnm", k, q,
                   preferred_element_type=jnp.float32) + adj_g
    s = s - jnp.max(s, axis=-1, keepdims=True)
    p = jnp.exp(s)
    l = jnp.sum(p, axis=-1, keepdims=True)
    attn = jnp.einsum("gnm,gmc->gnc", p.astype(jnp.bfloat16), v,
                      preferred_element_type=jnp.float32)      # (G, N, 8)
    attn = attn * pl.reciprocal(l, approx=True)    # normalise after p@v (EUP)

    # (4) heads -> lanes, then ONE (R, 32) @ (32, C_out) matmul + folded residual
    attn_cat = jnp.concatenate(
        [attn[h * T * bb:(h + 1) * T * bb].reshape(R, tp_pad) for h in range(H)],
        axis=-1)                                               # (R, H*8)
    res = conv[:, :, 3 * tp_pad * H:].reshape(R, c_out)
    final = jnp.dot(attn_cat.astype(jnp.bfloat16), who2_ref[...],
                    preferred_element_type=jnp.float32) + res  # (R, C_out)

    # (5) one lane-dense store: (N, bb*T*C_out) slab, lanes ordered (t, b, c)
    final3 = final.reshape(T * bb, N, c_out)
    o_ref[...] = jnp.concatenate([final3[g] for g in range(T * bb)], axis=-1)


# ----------------------------------------------------------------------------
# Wrapper-side weight folding (tiny, parameter-only preprocessing)
# ----------------------------------------------------------------------------
def _bn_scale_shift(bn):
    gamma, beta, rm, rv = bn
    scale = gamma / jnp.sqrt(rv + BN_EPS)
    shift = beta - rm * scale
    return scale, shift


def _time_conv_toeplitz(w, b, T, pad_to):
    """Conv2d(C -> T, kernel=(1,tf)) as a (T, C*T+1, pad_to) matrix acting on
    [x | 1] rows laid out as c*T + time; channels beyond Tp are zero-padded."""
    t_out, C, _, tf = w.shape
    Tp = T - tf + 1
    blocks = []
    for c in range(C):
        cols = [jnp.pad(w[:, c, 0, :], ((0, 0), (s, T - tf - s)))
                for s in range(Tp)]
        blocks.append(jnp.stack(cols, axis=-1))                 # (T, T, Tp)
    wt = jnp.concatenate(blocks, axis=1)                        # (T, C*T, Tp)
    bias_row = jnp.broadcast_to(b[:, None, None], (t_out, 1, Tp))
    full = jnp.concatenate([wt, bias_row], axis=1)              # (T, C*T+1, Tp)
    return jnp.pad(full, ((0, 0), (0, 0), (0, pad_to - Tp)))


def _res_conv_toeplitz(w_co, b_o, T):
    """1x1 conv (weights (C, C_out), already BN/Wmha-folded) as a
    (T, C*T+1, C_out) Toeplitz matrix (bias in the last row)."""
    C, c_out = w_co.shape
    eye = jnp.eye(T, dtype=jnp.float32)
    blocks = [eye[:, :, None] * w_co[c][None, None, :] for c in range(C)]
    wt = jnp.concatenate(blocks, axis=1)                        # (T, C*T, C_out)
    bias_row = jnp.broadcast_to(b_o[None, None, :], (T, 1, c_out))
    return jnp.concatenate([wt, bias_row], axis=1)              # (T, C*T+1, C_out)


def _prepare_fused_weights(params, T, c_out):
    """Fold every conv / bias / eval-mode BatchNorm of the module into:
       w_all (T, C*T+1, 3*8*H + C_out)  - k/q/v Toeplitz + combined residual
       who2  (H*8, C_out)               - head fc_out . BN_h . mha fc_out . BN_m
    """
    n_heads = len(TF_LIST)
    tp_pad = ((max(T - tf + 1 for tf in TF_LIST) + 7) // 8) * 8

    scale_m, shift_m = _bn_scale_shift(params["bn"])
    wmha_t = params["out_w"][:, :, 0, 0].T * scale_m[None, :]   # (H*C_out, C_out)

    kqv_blocks, who2_blocks = [], []
    w_res_comb = params["res_w"][:, :, 0, 0].T * scale_m[None, :]   # (C, C_out)
    b_comb = (params["res_b"] + params["out_b"]) * scale_m + shift_m

    for h, tf in enumerate(TF_LIST):
        p = params[f"ga_{tf}"]
        scale_h, shift_h = _bn_scale_shift(p["bn"])
        wmha_h = wmha_t[h * c_out:(h + 1) * c_out, :]               # (C_out, C_out)

        kqv_blocks += [_time_conv_toeplitz(p["k_w"], p["k_b"], T, tp_pad),
                       _time_conv_toeplitz(p["q_w"], p["q_b"], T, tp_pad),
                       _time_conv_toeplitz(p["v_w"], p["v_b"], T, tp_pad)]

        # per-head fc_out (BN_h scaled) folded through the mha fc_out (BN_m)
        who_h = p["out_w"][:, :, 0, 0].T * scale_h[None, :]         # (tp, C_out)
        who2_h = who_h @ wmha_h                                     # (tp, C_out)
        tp = who2_h.shape[0]
        who2_blocks.append(jnp.pad(who2_h, ((0, tp_pad - tp), (0, 0))))

        # per-head residual conv + biases + BN shift, folded through wmha_h
        w_res_h = p["res_w"][:, :, 0, 0].T * scale_h[None, :]       # (C, C_out)
        b_res_h = (p["res_b"] + p["out_b"]) * scale_h + shift_h     # (C_out,)
        w_res_comb = w_res_comb + w_res_h @ wmha_h
        b_comb = b_comb + b_res_h @ wmha_h

    kqv_blocks.append(_res_conv_toeplitz(w_res_comb, b_comb, T))
    w_all = jnp.concatenate(kqv_blocks, axis=2)       # (T, C*T+1, 3*8*H + C_out)
    who2 = jnp.concatenate(who2_blocks, axis=0)       # (H*8, C_out)
    return w_all, who2, tp_pad


def _pick_batch_block(B):
    """Whole batch in one grid step on single-TC chips (v5e/v6e); split the
    batch across two parallel grid steps on 2-TC chips (v7x)."""
    try:
        kind = jax.devices()[0].device_kind.lower()
    except Exception:
        kind = ""
    if "v7" in kind and B % 2 == 0:
        return B // 2
    return B


# ----------------------------------------------------------------------------
# Forward pass (single fused pallas_call)
# ----------------------------------------------------------------------------
def multihead_forward(params, x, adj, adj_hat, batch_block=None):
    B, C, N, T = x.shape
    c_out = params["out_w"].shape[0]
    H = len(TF_LIST)
    w_all, who2, tp_pad = _prepare_fused_weights(params, T, c_out)
    W = C * T + 1

    bb = _pick_batch_block(B) if batch_block is None else batch_block
    assert B % bb == 0, (B, bb)
    nb = B // bb

    # [x | 1]: rows = (batch, node), lanes = c*T + time; broadcast over the T
    # attention times host-side so the kernel issues no vreg broadcasts.
    xw = jnp.concatenate(
        [jnp.transpose(x, (0, 2, 1, 3)).reshape(B, N, C * T),
         jnp.ones((B, N, 1), x.dtype)], axis=-1)                  # (B, N, W)
    xwt = jnp.broadcast_to(xw.reshape(1, B * N, W),
                           (T, B * N, W)).astype(jnp.bfloat16)    # (T, B*N, W)
    adj_sum = (adj + adj_hat).astype(jnp.float32)                 # (B, N, N)

    kernel = functools.partial(_fused_mha_kernel, bb=bb, c_out=c_out,
                               tp_pad=tp_pad, n_heads=H)
    out = pl.pallas_call(
        kernel,
        out_shape=jax.ShapeDtypeStruct((nb, N, bb * T * c_out), jnp.float32),
        grid=(nb,),
        in_specs=[
            pl.BlockSpec((T, bb * N, W), lambda i: (0, i, 0)),
            pl.BlockSpec((bb, N, N), lambda i: (i, 0, 0)),
            pl.BlockSpec(w_all.shape, lambda i: (0, 0, 0)),
            pl.BlockSpec(who2.shape, lambda i: (0, 0)),
        ],
        out_specs=pl.BlockSpec((None, N, bb * T * c_out), lambda i: (i, 0, 0)),
        compiler_params=pltpu.CompilerParams(
            dimension_semantics=("parallel",)),
    )(xwt, adj_sum, w_all.astype(jnp.bfloat16), who2.astype(jnp.bfloat16))

    # tiny layout fix-up back to (B, C_out, N, T); in-block lanes are (t, b, c)
    out = out.reshape(nb, N, T, bb, c_out)
    return jnp.transpose(out, (0, 3, 4, 1, 2)).reshape(B, c_out, N, T)


# ----------------------------------------------------------------------------
# Deterministic parameter init (synthetic; matches the torch module's shapes)
# ----------------------------------------------------------------------------
def init_conv(key, out_ch, in_ch, kh, kw):
    kw_key, kb_key = jax.random.split(key)
    w = 0.1 * jax.random.normal(kw_key, (out_ch, in_ch, kh, kw), jnp.float32)
    b = 0.1 * jax.random.normal(kb_key, (out_ch,), jnp.float32)
    return w, b


def init_bn(key, ch):
    k1, k2, k3, k4 = jax.random.split(key, 4)
    gamma = 1.0 + 0.1 * jax.random.normal(k1, (ch,), jnp.float32)
    beta = 0.1 * jax.random.normal(k2, (ch,), jnp.float32)
    running_mean = 0.1 * jax.random.normal(k3, (ch,), jnp.float32)
    running_var = 1.0 + 0.1 * jnp.abs(jax.random.normal(k4, (ch,), jnp.float32))
    return gamma, beta, running_mean, running_var


def init_graph_attention(key, in_ch, out_ch, t_max, tf):
    keys = jax.random.split(key, 6)
    p = {}
    p["k_w"], p["k_b"] = init_conv(keys[0], t_max, in_ch, 1, tf)
    p["q_w"], p["q_b"] = init_conv(keys[1], t_max, in_ch, 1, tf)
    p["v_w"], p["v_b"] = init_conv(keys[2], t_max, in_ch, 1, tf)
    p["res_w"], p["res_b"] = init_conv(keys[3], out_ch, in_ch, 1, 1)
    p["out_w"], p["out_b"] = init_conv(keys[4], out_ch, t_max - tf + 1, 1, 1)
    p["bn"] = init_bn(keys[5], out_ch)
    return p


def init_multihead(key, in_ch, out_ch, t_max):
    keys = jax.random.split(key, 7)
    params = {}
    for i, tf in enumerate(TF_LIST):
        params[f"ga_{tf}"] = init_graph_attention(keys[i], in_ch, out_ch,
                                                  t_max, tf)
    params["res_w"], params["res_b"] = init_conv(keys[4], out_ch, in_ch, 1, 1)
    params["out_w"], params["out_b"] = init_conv(keys[5], out_ch, out_ch * 4,
                                                 1, 1)
    params["bn"] = init_bn(keys[6], out_ch)
    return params


# ----------------------------------------------------------------------------
# Pure-JAX reference (for correctness check)
# ----------------------------------------------------------------------------
def _conv_ref(x, w, b):
    y = jax.lax.conv_general_dilated(
        x, w, window_strides=(1, 1), padding="VALID",
        dimension_numbers=("NCHW", "OIHW", "NCHW"))
    return y + b[None, :, None, None]


def ga_reference(p, x, adj, adj_hat):
    k = _conv_ref(x, p["k_w"], p["k_b"])
    q = _conv_ref(x, p["q_w"], p["q_b"])
    v = _conv_ref(x, p["v_w"], p["v_b"])
    score = jnp.einsum("BTNC,BTnC->BTNn", k, q)
    score = score + adj[:, None] + adj_hat[:, None]
    score = jax.nn.softmax(score, axis=-1)
    out = jnp.einsum("BTnN,BTNC->BCnT", score, v)
    out = _conv_ref(out, p["out_w"], p["out_b"])
    res = _conv_ref(x, p["res_w"], p["res_b"])
    scale, shift = _bn_scale_shift(p["bn"])
    return (out + res) * scale[None, :, None, None] + shift[None, :, None, None]


def mha_reference(params, x, adj, adj_hat):
    res = _conv_ref(x, params["res_w"], params["res_b"])
    heads = [ga_reference(params[f"ga_{tf}"], x, adj, adj_hat)
             for tf in TF_LIST]
    xcat = jnp.concatenate(heads, axis=1)
    out = _conv_ref(xcat, params["out_w"], params["out_b"])
    scale, shift = _bn_scale_shift(params["bn"])
    return (out + res) * scale[None, :, None, None] + shift[None, :, None, None]


# ----------------------------------------------------------------------------
if __name__ == "__main__":
    B, C, N, T = 2, 4, 16, 8     # timestep_max T=8 (must be >= 7 for ga_7)
    C_OUT = 8

    key = jax.random.PRNGKey(0)
    k_x, k_a, k_ah, k_p = jax.random.split(key, 4)
    x = jax.random.normal(k_x, (B, C, N, T), jnp.float32)
    adj = 0.5 * jax.random.normal(k_a, (B, N, N), jnp.float32)
    adj_hat = 0.5 * jax.random.normal(k_ah, (B, N, N), jnp.float32)

    params = init_multihead(k_p, C, C_OUT, T)

    fwd = jax.jit(multihead_forward)
    out = jax.block_until_ready(fwd(params, x, adj, adj_hat))

    ref = jax.block_until_ready(mha_reference(params, x, adj, adj_hat))

    assert out.shape == (B, C_OUT, N, T), out.shape
    assert bool(jnp.all(jnp.isfinite(out)))
    # bf16 MXU operands + approx reciprocal stay within the 2e-2 tolerance.
    assert bool(jnp.allclose(out, ref, rtol=2e-2, atol=2e-2)), (
        float(jnp.max(jnp.abs(out - ref))))

    print("KERNEL_OK")
</pallas_src>

<mosaic_0001>
module attributes {stable_mosaic.version = 11 : i64} {
  func.func @_fused_mha_kernel(%arg0: i32, %arg1: memref<8x32x33xbf16, #tpu.memory_space<vmem>>, %arg2: memref<2x16x16xf32, #tpu.memory_space<vmem>>, %arg3: memref<8x33x104xbf16, #tpu.memory_space<vmem>>, %arg4: memref<32x8xbf16, #tpu.memory_space<vmem>>, %arg5: memref<1x16x128xf32, #tpu.memory_space<vmem>>) attributes {dimension_semantics = [#tpu.dimension_semantics<parallel>], iteration_bounds = array<i64: 1>, scalar_prefetch = 0 : i64, scratch_operands = 0 : i64, tpu.core_type = #tpu.core_type<tc>, window_params = [{transform_indices = @transform_0, window_bounds = array<i64: 8, 32, 33>}, {transform_indices = @transform_1, window_bounds = array<i64: 2, 16, 16>}, {pipeline_mode = #tpu.pipeline_mode<synchronous>, transform_indices = @transform_2, window_bounds = array<i64: 8, 33, 104>}, {pipeline_mode = #tpu.pipeline_mode<synchronous>, transform_indices = @transform_3, window_bounds = array<i64: 32, 8>}, {transform_indices = @transform_4, window_bounds = array<i64: 1, 16, 128>}]} {
    %c0 = arith.constant 0 : index
    %c0_0 = arith.constant 0 : index
    %c0_1 = arith.constant 0 : index
    %0 = vector.load %arg1[%c0, %c0_0, %c0_1] : memref<8x32x33xbf16, #tpu.memory_space<vmem>>, vector<8x32x33xbf16>
    %c0_2 = arith.constant 0 : index
    %c0_3 = arith.constant 0 : index
    %c0_4 = arith.constant 0 : index
    %1 = vector.load %arg3[%c0_2, %c0_3, %c0_4] : memref<8x33x104xbf16, #tpu.memory_space<vmem>>, vector<8x33x104xbf16>
    "tpu.trace_start"() <{level = 10 : i32, message = "tmw,twp->tmp"}> : () -> ()
    %cst = arith.constant dense<0.000000e+00> : vector<8x32x104xf32>
    %2 = tpu.matmul %0, %1, %cst {dimension_numbers = #tpu.dot_dimension_numbers<[2], [1], [1], [2], [0, 0, 0, 1, 1, 2], [0], [0]>} : vector<8x32x33xbf16>, vector<8x33x104xbf16>, vector<8x32x104xf32> -> vector<8x32x104xf32>
    "tpu.trace_stop"() : () -> ()
    %3 = vector.extract_strided_slice %2 {offsets = [0, 0, 0], sizes = [8, 32, 8], strides = [1, 1, 1]} : vector<8x32x104xf32> to vector<8x32x8xf32>
    %4 = vector.shape_cast %3 : vector<8x32x8xf32> to vector<16x16x8xf32>
    %5 = vector.extract_strided_slice %2 {offsets = [0, 0, 24], sizes = [8, 32, 8], strides = [1, 1, 1]} : vector<8x32x104xf32> to vector<8x32x8xf32>
    %6 = vector.shape_cast %5 : vector<8x32x8xf32> to vector<16x16x8xf32>
    %7 = vector.extract_strided_slice %2 {offsets = [0, 0, 48], sizes = [8, 32, 8], strides = [1, 1, 1]} : vector<8x32x104xf32> to vector<8x32x8xf32>
    %8 = vector.shape_cast %7 : vector<8x32x8xf32> to vector<16x16x8xf32>
    %9 = vector.extract_strided_slice %2 {offsets = [0, 0, 72], sizes = [8, 32, 8], strides = [1, 1, 1]} : vector<8x32x104xf32> to vector<8x32x8xf32>
    %10 = vector.shape_cast %9 : vector<8x32x8xf32> to vector<16x16x8xf32>
    %11 = tpu.concatenate %4, %6, %8, %10 in 0 : vector<16x16x8xf32>, vector<16x16x8xf32>, vector<16x16x8xf32>, vector<16x16x8xf32> -> vector<64x16x8xf32>
    %12 = arith.truncf %11 : vector<64x16x8xf32> to vector<64x16x8xbf16>
    %13 = vector.extract_strided_slice %2 {offsets = [0, 0, 8], sizes = [8, 32, 8], strides = [1, 1, 1]} : vector<8x32x104xf32> to vector<8x32x8xf32>
    %14 = vector.shape_cast %13 : vector<8x32x8xf32> to vector<16x16x8xf32>
    %15 = vector.extract_strided_slice %2 {offsets = [0, 0, 32], sizes = [8, 32, 8], strides = [1, 1, 1]} : vector<8x32x104xf32> to vector<8x32x8xf32>
    %16 = vector.shape_cast %15 : vector<8x32x8xf32> to vector<16x16x8xf32>
    %17 = vector.extract_strided_slice %2 {offsets = [0, 0, 56], sizes = [8, 32, 8], strides = [1, 1, 1]} : vector<8x32x104xf32> to vector<8x32x8xf32>
    %18 = vector.shape_cast %17 : vector<8x32x8xf32> to vector<16x16x8xf32>
    %19 = vector.extract_strided_slice %2 {offsets = [0, 0, 80], sizes = [8, 32, 8], strides = [1, 1, 1]} : vector<8x32x104xf32> to vector<8x32x8xf32>
    %20 = vector.shape_cast %19 : vector<8x32x8xf32> to vector<16x16x8xf32>
    %21 = tpu.concatenate %14, %16, %18, %20 in 0 : vector<16x16x8xf32>, vector<16x16x8xf32>, vector<16x16x8xf32>, vector<16x16x8xf32> -> vector<64x16x8xf32>
    %22 = arith.truncf %21 : vector<64x16x8xf32> to vector<64x16x8xbf16>
    %23 = vector.extract_strided_slice %2 {offsets = [0, 0, 16], sizes = [8, 32, 8], strides = [1, 1, 1]} : vector<8x32x104xf32> to vector<8x32x8xf32>
    %24 = vector.shape_cast %23 : vector<8x32x8xf32> to vector<16x16x8xf32>
    %25 = vector.extract_strided_slice %2 {offsets = [0, 0, 40], sizes = [8, 32, 8], strides = [1, 1, 1]} : vector<8x32x104xf32> to vector<8x32x8xf32>
    %26 = vector.shape_cast %25 : vector<8x32x8xf32> to vector<16x16x8xf32>
    %27 = vector.extract_strided_slice %2 {offsets = [0, 0, 64], sizes = [8, 32, 8], strides = [1, 1, 1]} : vector<8x32x104xf32> to vector<8x32x8xf32>
    %28 = vector.shape_cast %27 : vector<8x32x8xf32> to vector<16x16x8xf32>
    %29 = vector.extract_strided_slice %2 {offsets = [0, 0, 88], sizes = [8, 32, 8], strides = [1, 1, 1]} : vector<8x32x104xf32> to vector<8x32x8xf32>
    %30 = vector.shape_cast %29 : vector<8x32x8xf32> to vector<16x16x8xf32>
    %31 = tpu.concatenate %24, %26, %28, %30 in 0 : vector<16x16x8xf32>, vector<16x16x8xf32>, vector<16x16x8xf32>, vector<16x16x8xf32> -> vector<64x16x8xf32>
    %32 = arith.truncf %31 : vector<64x16x8xf32> to vector<64x16x8xbf16>
    %c0_5 = arith.constant 0 : index
    %c0_6 = arith.constant 0 : index
    %c0_7 = arith.constant 0 : index
    %33 = vector.load %arg2[%c0_5, %c0_6, %c0_7] : memref<2x16x16xf32, #tpu.memory_space<vmem>>, vector<2x16x16xf32>
    %34 = vector.shape_cast %33 : vector<2x16x16xf32> to vector<1x2x16x16xf32>
    %35 = vector.shape_cast %34 : vector<1x2x16x16xf32> to vector<1x2x16x16xf32>
    %36 = vector.broadcast %35 : vector<1x2x16x16xf32> to vector<32x2x16x16xf32>
    %37 = vector.shape_cast %36 : vector<32x2x16x16xf32> to vector<64x16x16xf32>
    "tpu.trace_start"() <{level = 10 : i32, message = "gnc,gmc->gnm"}> : () -> ()
    %cst_8 = arith.constant dense<0.000000e+00> : vector<64x16x16xf32>
    %38 = tpu.matmul %12, %22, %cst_8 {dimension_numbers = #tpu.dot_dimension_numbers<[2], [2], [1], [1], [0, 0, 0, 1, 1, 1], [0], [0]>} : vector<64x16x8xbf16>, vector<64x16x8xbf16>, vector<64x16x16xf32> -> vector<64x16x16xf32>
    "tpu.trace_stop"() : () -> ()
    %39 = arith.addf %38, %37 : vector<64x16x16xf32>
    %cst_9 = arith.constant dense<0xFF800000> : vector<64x16xf32>
    %40 = vector.multi_reduction <maximumf>, %39, %cst_9 [2] : vector<64x16x16xf32> to vector<64x16xf32>
    %41 = vector.shape_cast %40 : vector<64x16xf32> to vector<64x16x1xf32>
    %42 = vector.broadcast %41 : vector<64x16x1xf32> to vector<64x16x16xf32>
    %43 = arith.subf %39, %42 : vector<64x16x16xf32>
    %44 = math.exp %43 : vector<64x16x16xf32>
    %cst_10 = arith.constant dense<0.000000e+00> : vector<64x16xf32>
    %45 = vector.multi_reduction <add>, %44, %cst_10 [2] : vector<64x16x16xf32> to vector<64x16xf32>
    %46 = vector.shape_cast %45 : vector<64x16xf32> to vector<64x16x1xf32>
    %47 = arith.truncf %44 : vector<64x16x16xf32> to vector<64x16x16xbf16>
    "tpu.trace_start"() <{level = 10 : i32, message = "gnm,gmc->gnc"}> : () -> ()
    %cst_11 = arith.constant dense<0.000000e+00> : vector<64x16x8xf32>
    %48 = tpu.matmul %47, %32, %cst_11 {dimension_numbers = #tpu.dot_dimension_numbers<[2], [1], [1], [2], [0, 0, 0, 1, 1, 2], [0], [0]>} : vector<64x16x16xbf16>, vector<64x16x8xbf16>, vector<64x16x8xf32> -> vector<64x16x8xf32>
    "tpu.trace_stop"() : () -> ()
    %49 = tpu.reciprocal %46 {approx = true} : vector<64x16x1xf32> -> vector<64x16x1xf32>
    %50 = vector.broadcast %49 : vector<64x16x1xf32> to vector<64x16x8xf32>
    %51 = arith.mulf %48, %50 : vector<64x16x8xf32>
    %52 = vector.extract_strided_slice %51 {offsets = [0, 0, 0], sizes = [16, 16, 8], strides = [1, 1, 1]} : vector<64x16x8xf32> to vector<16x16x8xf32>
    %53 = vector.shape_cast %52 : vector<16x16x8xf32> to vector<256x8xf32>
    %54 = vector.extract_strided_slice %51 {offsets = [16, 0, 0], sizes = [16, 16, 8], strides = [1, 1, 1]} : vector<64x16x8xf32> to vector<16x16x8xf32>
    %55 = vector.shape_cast %54 : vector<16x16x8xf32> to vector<256x8xf32>
    %56 = vector.extract_strided_slice %51 {offsets = [32, 0, 0], sizes = [16, 16, 8], strides = [1, 1, 1]} : vector<64x16x8xf32> to vector<16x16x8xf32>
    %57 = vector.shape_cast %56 : vector<16x16x8xf32> to vector<256x8xf32>
    %58 = vector.extract_strided_slice %51 {offsets = [48, 0, 0], sizes = [16, 16, 8], strides = [1, 1, 1]} : vector<64x16x8xf32> to vector<16x16x8xf32>
    %59 = vector.shape_cast %58 : vector<16x16x8xf32> to vector<256x8xf32>
    %60 = tpu.concatenate %53, %55, %57, %59 in 1 : vector<256x8xf32>, vector<256x8xf32>, vector<256x8xf32>, vector<256x8xf32> -> vector<256x32xf32>
    %61 = vector.extract_strided_slice %2 {offsets = [0, 0, 96], sizes = [8, 32, 8], strides = [1, 1, 1]} : vector<8x32x104xf32> to vector<8x32x8xf32>
    %62 = vector.shape_cast %61 : vector<8x32x8xf32> to vector<256x8xf32>
    %63 = arith.truncf %60 : vector<256x32xf32> to vector<256x32xbf16>
    %c0_12 = arith.constant 0 : index
    %c0_13 = arith.constant 0 : index
    %64 = vector.load %arg4[%c0_12, %c0_13] : memref<32x8xbf16, #tpu.memory_space<vmem>>, vector<32x8xbf16>
    %cst_14 = arith.constant dense<0.000000e+00> : vector<256x8xf32>
    %65 = tpu.matmul %63, %64, %cst_14 {dimension_numbers = #tpu.dot_dimension_numbers<[1], [0], [0], [1], [0, 0, 1, 1], [], []>} : vector<256x32xbf16>, vector<32x8xbf16>, vector<256x8xf32> -> vector<256x8xf32>
    %66 = arith.addf %65, %62 : vector<256x8xf32>
    %67 = vector.shape_cast %66 : vector<256x8xf32> to vector<16x16x8xf32>
    %68 = vector.extract_strided_slice %67 {offsets = [0, 0, 0], sizes = [1, 16, 8], strides = [1, 1, 1]} : vector<16x16x8xf32> to vector<1x16x8xf32>
    %69 = vector.shape_cast %68 : vector<1x16x8xf32> to vector<16x8xf32>
    %70 = vector.extract_strided_slice %67 {offsets = [1, 0, 0], sizes = [1, 16, 8], strides = [1, 1, 1]} : vector<16x16x8xf32> to vector<1x16x8xf32>
    %71 = vector.shape_cast %70 : vector<1x16x8xf32> to vector<16x8xf32>
    %72 = vector.extract_strided_slice %67 {offsets = [2, 0, 0], sizes = [1, 16, 8], strides = [1, 1, 1]} : vector<16x16x8xf32> to vector<1x16x8xf32>
    %73 = vector.shape_cast %72 : vector<1x16x8xf32> to vector<16x8xf32>
    %74 = vector.extract_strided_slice %67 {offsets = [3, 0, 0], sizes = [1, 16, 8], strides = [1, 1, 1]} : vector<16x16x8xf32> to vector<1x16x8xf32>
    %75 = vector.shape_cast %74 : vector<1x16x8xf32> to vector<16x8xf32>
    %76 = vector.extract_strided_slice %67 {offsets = [4, 0, 0], sizes = [1, 16, 8], strides = [1, 1, 1]} : vector<16x16x8xf32> to vector<1x16x8xf32>
    %77 = vector.shape_cast %76 : vector<1x16x8xf32> to vector<16x8xf32>
    %78 = vector.extract_strided_slice %67 {offsets = [5, 0, 0], sizes = [1, 16, 8], strides = [1, 1, 1]} : vector<16x16x8xf32> to vector<1x16x8xf32>
    %79 = vector.shape_cast %78 : vector<1x16x8xf32> to vector<16x8xf32>
    %80 = vector.extract_strided_slice %67 {offsets = [6, 0, 0], sizes = [1, 16, 8], strides = [1, 1, 1]} : vector<16x16x8xf32> to vector<1x16x8xf32>
    %81 = vector.shape_cast %80 : vector<1x16x8xf32> to vector<16x8xf32>
    %82 = vector.extract_strided_slice %67 {offsets = [7, 0, 0], sizes = [1, 16, 8], strides = [1, 1, 1]} : vector<16x16x8xf32> to vector<1x16x8xf32>
    %83 = vector.shape_cast %82 : vector<1x16x8xf32> to vector<16x8xf32>
    %84 = vector.extract_strided_slice %67 {offsets = [8, 0, 0], sizes = [1, 16, 8], strides = [1, 1, 1]} : vector<16x16x8xf32> to vector<1x16x8xf32>
    %85 = vector.shape_cast %84 : vector<1x16x8xf32> to vector<16x8xf32>
    %86 = vector.extract_strided_slice %67 {offsets = [9, 0, 0], sizes = [1, 16, 8], strides = [1, 1, 1]} : vector<16x16x8xf32> to vector<1x16x8xf32>
    %87 = vector.shape_cast %86 : vector<1x16x8xf32> to vector<16x8xf32>
    %88 = vector.extract_strided_slice %67 {offsets = [10, 0, 0], sizes = [1, 16, 8], strides = [1, 1, 1]} : vector<16x16x8xf32> to vector<1x16x8xf32>
    %89 = vector.shape_cast %88 : vector<1x16x8xf32> to vector<16x8xf32>
    %90 = vector.extract_strided_slice %67 {offsets = [11, 0, 0], sizes = [1, 16, 8], strides = [1, 1, 1]} : vector<16x16x8xf32> to vector<1x16x8xf32>
    %91 = vector.shape_cast %90 : vector<1x16x8xf32> to vector<16x8xf32>
    %92 = vector.extract_strided_slice %67 {offsets = [12, 0, 0], sizes = [1, 16, 8], strides = [1, 1, 1]} : vector<16x16x8xf32> to vector<1x16x8xf32>
    %93 = vector.shape_cast %92 : vector<1x16x8xf32> to vector<16x8xf32>
    %94 = vector.extract_strided_slice %67 {offsets = [13, 0, 0], sizes = [1, 16, 8], strides = [1, 1, 1]} : vector<16x16x8xf32> to vector<1x16x8xf32>
    %95 = vector.shape_cast %94 : vector<1x16x8xf32> to vector<16x8xf32>
    %96 = vector.extract_strided_slice %67 {offsets = [14, 0, 0], sizes = [1, 16, 8], strides = [1, 1, 1]} : vector<16x16x8xf32> to vector<1x16x8xf32>
    %97 = vector.shape_cast %96 : vector<1x16x8xf32> to vector<16x8xf32>
    %98 = vector.extract_strided_slice %67 {offsets = [15, 0, 0], sizes = [1, 16, 8], strides = [1, 1, 1]} : vector<16x16x8xf32> to vector<1x16x8xf32>
    %99 = vector.shape_cast %98 : vector<1x16x8xf32> to vector<16x8xf32>
    %100 = tpu.concatenate %69, %71, %73, %75, %77, %79, %81, %83, %85, %87, %89, %91, %93, %95, %97, %99 in 1 : vector<16x8xf32>, vector<16x8xf32>, vector<16x8xf32>, vector<16x8xf32>, vector<16x8xf32>, vector<16x8xf32>, vector<16x8xf32>, vector<16x8xf32>, vector<16x8xf32>, vector<16x8xf32>, vector<16x8xf32>, vector<16x8xf32>, vector<16x8xf32>, vector<16x8xf32>, vector<16x8xf32>, vector<16x8xf32> -> vector<16x128xf32>
    %c0_15 = arith.constant 0 : index
    %c0_16 = arith.constant 0 : index
    %c0_17 = arith.constant 0 : index
    %101 = vector.load %arg5[%c0_15, %c0_16, %c0_17] : memref<1x16x128xf32, #tpu.memory_space<vmem>>, vector<1x16x128xf32>
    %102 = vector.shape_cast %101 : vector<1x16x128xf32> to vector<16x128xf32>
    %103 = vector.shape_cast %100 : vector<16x128xf32> to vector<1x16x128xf32>
    tpu.vector_store %arg5[%c0_15, %c0_16, %c0_17], %103 {strides = array<i32>} : memref<1x16x128xf32, #tpu.memory_space<vmem>>, vector<1x16x128xf32>,
    return
  }
  func.func @transform_0(%arg0: i32) -> (i32, i32, i32) {
    %c0_i32 = arith.constant 0 : i32
    %c0_i32_0 = arith.constant 0 : i32
    %c0_i32_1 = arith.constant 0 : i32
    return %c0_i32, %arg0, %c0_i32_0 : i32, i32, i32
  }
  func.func @transform_1(%arg0: i32) -> (i32, i32, i32) {
    %c0_i32 = arith.constant 0 : i32
    %c0_i32_0 = arith.constant 0 : i32
    %c0_i32_1 = arith.constant 0 : i32
    return %arg0, %c0_i32, %c0_i32_0 : i32, i32, i32
  }
  func.func @transform_2(%arg0: i32) -> (i32, i32, i32) {
    %c0_i32 = arith.constant 0 : i32
    %c0_i32_0 = arith.constant 0 : i32
    %c0_i32_1 = arith.constant 0 : i32
    %c0_i32_2 = arith.constant 0 : i32
    return %c0_i32, %c0_i32_0, %c0_i32_1 : i32, i32, i32
  }
  func.func @transform_3(%arg0: i32) -> (i32, i32) {
    %c0_i32 = arith.constant 0 : i32
    %c0_i32_0 = arith.constant 0 : i32
    %c0_i32_1 = arith.constant 0 : i32
    return %c0_i32, %c0_i32_0 : i32, i32
  }
  func.func @transform_4(%arg0: i32) -> (i32, i32, i32) {
    %c0_i32 = arith.constant 0 : i32
    %c0_i32_0 = arith.constant 0 : i32
    %c0_i32_1 = arith.constant 0 : i32
    return %arg0, %c0_i32, %c0_i32_0 : i32, i32, i32
  }
}

</mosaic_0001>

<bundles_post_ra>
// kernel: multihead_forward.1
= control target key start
LH: loop header
LB: loop body
LE: loop exit
PB: predicated region body
PF: predicated region fallthrough
CT: control target
= control target key end

     0   :  { %vm122_vm0 = vcmask 1040384   ;;  %v12282_v1 = vmov 0   ;;  %vm115_vm1 = vcmask 269312   ;;  %s12285_s17 = smov 56   ;;  %v16888_v62 = vmov 0.0   ;;  %s12288_s18 = smov 120   ;;  %s16883_s2 = inlined_call_operand.vmem [shape: bf16[8,33,104], index: 2, kind: input, shape index: {}]   ;;  %s16884_s0 = inlined_call_operand.vmem [shape: bf16[8,32,33], index: 0, kind: input, shape index: {}]   ;;  %s16885_s1 = inlined_call_operand.vmem [shape: f32[2,16,16], index: 1, kind: input, shape index: {}]   ;;  %s16886_s3 = inlined_call_operand.vmem [shape: bf16[32,8], index: 3, kind: input, shape index: {}]   ;;  %s16887_s4 = inlined_call_operand.vmem [shape: f32[1,16,128], index: 4, kind: output, shape index: {}]  }
   0x1   :  { %v11716_v0 = vld [vmem:[%s16883_s2 + $0x10] ss:$0 sps:$4 sm:$0x11]   ;;  %v12328_v2 = vsel %vm122_vm0, 65535, %v12282_v1  ;;  %v11718_v4 = vld [vmem:[%s16883_s2 + $0x8] sm:$0xff]   ;;  %v11719_v7 = vld [vmem:[%s16883_s2 + $0x1c] sm:$0xff]  }
   0x2   :  { %v11717_v3 = vld [vmem:[%s16883_s2 + $0x24] ss:$0 sps:$4 sm:$0x11]   ;;  %v126_v5 = vand.u32 %v11716_v0, %v12328_v2  ;;  %v11721_v9 = vld [vmem:[%s16883_s2 + $0x14] sm:$0xff]   ;;  %v11724_v12 = vld [vmem:[%s16884_s0 + $0x8] sm:$0xff]   ;;  %vm12287_vm2 = vmmov 0  }
   0x3   :  { %v209_v6 = vand.u32 %v11717_v3, %v12328_v2  ;;  %v11720_v8 = vld [vmem:[%s16883_s2] sm:$0xff]   ;;  %v11723_v11 = vld [vmem:[%s16884_s0 + $0x10] sm:$0xff]   ;;  %v11726_v13 = vld [vmem:[%s16883_s2 + $0x38] ss:$0 sps:$4 sm:$0x11]   ;;  %s12289_s19 = smov 112  }
   0x4   :  { %10330 = vmatprep.subr.bf16.mxu0 %v126_v5  ;;  %v11722_v10 = vld [vmem:[%s16884_s0] sm:$0xff]   ;;  %10346 = vmatprep.mubr.msk.bf16.mxu1 %vm115_vm1, %v11723_v11  ;;  %v11725_v14 = vld [vmem:[%s16884_s0 + $0x18] sm:$0xff]   ;;  %v292_v15 = vand.u32 %v11726_v13, %v12328_v2  ;;  %v11728_v16 = vld [vmem:[%s16883_s2 + $0x4c] ss:$0 sps:$4 sm:$0x11]   ;;  %vm1149_vm3 = vcmask 64512  }
   0x5   :  { %10340 = vmatprep.subr.bf16.mxu1 %v209_v6  ;;  %10331 = vmatpush3.bf16.msra.mxu0 %v126_v5  ;;  %v11727_v17 = vld [vmem:[%s16883_s2 + $0x30] sm:$0xff]   ;;  %v375_v18 = vand.u32 %v11728_v16, %v12328_v2  ;;  %v11730_v19 = vld [vmem:[%s16883_s2 + $0x44] sm:$0xff]   ;;  %v11733_v23 = vld [vmem:[%s16883_s2 + $0x3c] sm:$0xff]   ;;  %vm4347_vm4 = vcmask 130048   ;;  %s12291_s29 = smov 16   ;;  %s12292_s8 = smov 24  }
   0x6   :  { %10341 = vmatpush3.bf16.msra.mxu1 %v209_v6  ;;  %10332 = vmatprep.subr.bf16.mxu0 %v11718_v4  ;;  %v11731_v20 = vld [vmem:[%s16884_s0 + $0x20] sm:$0xff]   ;;  %v11734_v21 = vld [vmem:[%s16884_s0 + $0x30] sm:$0xff]   ;;  %v11729_v22 = vld [vmem:[%s16883_s2 + $0x28] sm:$0xff]   ;;  %vm9276_vm5 = vcmask 195584   ;;  %vm9437_vm6 = vcmask 261120   ;;  %s12294_s9 = smov 40  }
   0x7   :  { %10342 = vmatprep.subr.bf16.mxu1 %v11719_v7  ;;  %10336 = vmatprep.mubr.msk.bf16.mxu0 %vm115_vm1, %v11722_v10  ;;  %v11736_v24 = vld [vmem:[%s16883_s2 + $0x60] ss:$0 sps:$4 sm:$0x11]   ;;  %v11738_v25 = vld [vmem:[%s16883_s2 + $0x74] ss:$0 sps:$4 sm:$0x11]  }
   0x8   :  { %v458_v26 = vand.u32 %v11736_v24, %v12328_v2  ;;  %v11732_v27 = vld [vmem:[%s16884_s0 + $0x28] sm:$0xff]   ;;  %v541_v28 = vand.u32 %v11738_v25, %v12328_v2  ;;  %v11735_v29 = vld [vmem:[%s16884_s0 + $0x38] sm:$0xff]   ;;  %v11741_v32 = vld [vmem:[%s16884_s0 + $0x40] sm:$0xff]   ;;  %s12295_s10 = smov 48   ;;  %s12296_s11 = smov 64   ;;  %vm9775_vm7 = vcmask 326656  }
   0x9   :  { %10333 = vmatpush3.bf16.msra.mxu0 %v11718_v4  ;;  %v11737_v30 = vld [vmem:[%s16883_s2 + $0x58] sm:$0xff]   ;;  %v11740_v31 = vld [vmem:[%s16883_s2 + $0x6c] sm:$0xff]   ;;  %v11746_v34 = vld [vmem:[%s16883_s2 + $0x88] ss:$0 sps:$4 sm:$0x11]   ;;  %s12297_s12 = smov 72  }
   0xa   :  { %10343 = vmatpush3.bf16.msra.mxu1 %v11719_v7  ;;  %10334 = vmatprep.subr.bf16.mxu0 %v11720_v8  ;;  %v11744_v33 = vld [vmem:[%s16884_s0 + $0x50] sm:$0xff]   ;;  %v11743_v36 = vld [vmem:[%s16883_s2 + $0x64] sm:$0xff]   ;;  %v11748_v37 = vld [vmem:[%s16883_s2 + $0x9c] ss:$0 sps:$4 sm:$0x11]   ;;  %v624_v38 = vand.u32 %v11746_v34, %v12328_v2  ;;  %s12299_s13 = smov 96  }
   0xb   :  { %10344 = vmatprep.subr.bf16.mxu1 %v11721_v9  ;;  %v11739_v35 = vld [vmem:[%s16883_s2 + $0x50] sm:$0xff]   ;;  %v707_v39 = vand.u32 %v11748_v37, %v12328_v2  ;;  %v11742_v40 = vld [vmem:[%s16884_s0 + $0x48] sm:$0xff]   ;;  %v11745_v41 = vld [vmem:[%s16884_s0 + $0x58] sm:$0xff]   ;;  %vm9778_vm8 = vcmask 392192   ;;  %vm9781_vm9 = vcmask 457728   ;;  %vm9784_vm10 = vcmask 523264  }
   0xc   :  { %v11747_v42 = vld [vmem:[%s16883_s2 + $0x80] sm:$0xff]   ;;  %v11750_v43 = vld [vmem:[%s16883_s2 + $0x94] sm:$0xff]   ;;  %v11753_v47 = vld [vmem:[%s16883_s2 + $0x8c] sm:$0xff]   ;;  %vm9787_vm11 = vcmask 588800   ;;  %vm9790_vm12 = vcmask 654336   ;;  %vm9793_vm13 = vcmask 719872  }
   0xd   :  { %10335 = vmatpush3.bf16.msra.mxu0 %v11720_v8  ;;  %v11751_v44 = vld [vmem:[%s16884_s0 + $0x60] sm:$0xff]   ;;  %v11754_v45 = vld [vmem:[%s16884_s0 + $0x70] sm:$0xff]   ;;  %v11749_v46 = vld [vmem:[%s16883_s2 + $0x78] sm:$0xff]   ;;  %s12284_s2 = smov 80   ;;  %vm9796_vm14 = vcmask 785408   ;;  %vm9799_vm15 = vcmask 850944  }
   0xe   :  { %10345 = vmatpush3.bf16.msra.mxu1 %v11721_v9  ;;  %10350 = vmatprep.subr.bf16.mxu0 %v292_v15  ;;  %v11752_v48 = vld [vmem:[%s16884_s0 + $0x68] sm:$0xff]   ;;  %v11755_v49 = vld [vmem:[%s16884_s0 + $0x78] sm:$0xff]   ;;  %s12283_s0 = smov 104   ;;  %vm9802_vm0 = vcmask 916480  }
   0xf   :  { %10360 = vmatprep.subr.bf16.mxu1 %v375_v18 }
  0x10   :  { %10337 = vmatmul.mubr.msk.bf16.vlgmr.msra.gmra.mxu0 %vm115_vm1, %v11724_v12 }
  0x11   :  { %10347 = vmatmul.mubr.msk.bf16.vlgmr.msra.gmra.mxu1 %vm115_vm1, %v11725_v14  ;;  %10351 = vmatpush3.bf16.msra.mxu0 %v292_v15 }
  0x12   :  { %10352 = vmatprep.subr.bf16.mxu0 %v11727_v17  ;;  %10361 = vmatpush3.bf16.msra.mxu1 %v375_v18 }
  0x13   :  { %10362 = vmatprep.subr.bf16.mxu1 %v11730_v19  ;;  %10356 = vmatprep.mubr.msk.bf16.mxu0 %vm115_vm1, %v11731_v20 }
  0x14   :  { %10366 = vmatprep.mubr.msk.bf16.mxu1 %vm115_vm1, %v11734_v21 }
  0x15   :  { %10353 = vmatpush3.bf16.msra.mxu0 %v11727_v17 }
  0x16   :  { %10354 = vmatprep.subr.bf16.mxu0 %v11729_v22  ;;  %10363 = vmatpush3.bf16.msra.mxu1 %v11730_v19 }
  0x17   :  { %10364 = vmatprep.subr.bf16.mxu1 %v11733_v23 }
  0x19   :  { %10355 = vmatpush3.bf16.msra.mxu0 %v11729_v22 }
  0x1a   :  { %10365 = vmatpush3.bf16.msra.mxu1 %v11733_v23  ;;  %10370 = vmatprep.subr.bf16.mxu0 %v458_v26 }
  0x1b   :  { %10380 = vmatprep.subr.bf16.mxu1 %v541_v28 }
  0x1c   :  { %10357 = vmatmul.mubr.msk.bf16.vlgmr.msra.gmra.mxu0 %vm115_vm1, %v11732_v27 }
  0x1d   :  { %10367 = vmatmul.mubr.msk.bf16.vlgmr.msra.gmra.mxu1 %vm115_vm1, %v11735_v29  ;;  %10371 = vmatpush3.bf16.msra.mxu0 %v458_v26 }
  0x1e   :  { %10372 = vmatprep.subr.bf16.mxu0 %v11737_v30  ;;  %10381 = vmatpush3.bf16.msra.mxu1 %v541_v28 }
  0x1f   :  { %10382 = vmatprep.subr.bf16.mxu1 %v11740_v31  ;;  %10376 = vmatprep.mubr.msk.bf16.mxu0 %vm115_vm1, %v11741_v32 }
  0x20   :  { %10386 = vmatprep.mubr.msk.bf16.mxu1 %vm115_vm1, %v11744_v33 }
  0x21   :  { %10373 = vmatpush3.bf16.msra.mxu0 %v11737_v30 }
  0x22   :  { %10374 = vmatprep.subr.bf16.mxu0 %v11739_v35  ;;  %10383 = vmatpush3.bf16.msra.mxu1 %v11740_v31 }
  0x23   :  { %10384 = vmatprep.subr.bf16.mxu1 %v11743_v36 }
  0x25   :  { %10375 = vmatpush3.bf16.msra.mxu0 %v11739_v35 }
  0x26   :  { %10385 = vmatpush3.bf16.msra.mxu1 %v11743_v36  ;;  %10390 = vmatprep.subr.bf16.mxu0 %v624_v38 }
  0x27   :  { %10400 = vmatprep.subr.bf16.mxu1 %v707_v39 }
  0x28   :  { %10377 = vmatmul.mubr.msk.bf16.vlgmr.msra.gmra.mxu0 %vm115_vm1, %v11742_v40 }
  0x29   :  { %10387 = vmatmul.mubr.msk.bf16.vlgmr.msra.gmra.mxu1 %vm115_vm1, %v11745_v41  ;;  %10391 = vmatpush3.bf16.msra.mxu0 %v624_v38 }
  0x2a   :  { %10392 = vmatprep.subr.bf16.mxu0 %v11747_v42  ;;  %10401 = vmatpush3.bf16.msra.mxu1 %v707_v39 }
  0x2b   :  { %10402 = vmatprep.subr.bf16.mxu1 %v11750_v43  ;;  %10396 = vmatprep.mubr.msk.bf16.mxu0 %vm115_vm1, %v11751_v44 }
  0x2c   :  { %10406 = vmatprep.mubr.msk.bf16.mxu1 %vm115_vm1, %v11754_v45 }
  0x2d   :  { %10393 = vmatpush3.bf16.msra.mxu0 %v11747_v42 }
  0x2e   :  { %10394 = vmatprep.subr.bf16.mxu0 %v11749_v46  ;;  %10403 = vmatpush3.bf16.msra.mxu1 %v11750_v43 }
  0x2f   :  { %10404 = vmatprep.subr.bf16.mxu1 %v11753_v47 }
  0x31   :  { %10395 = vmatpush3.bf16.msra.mxu0 %v11749_v46 }
  0x32   :  { %10405 = vmatpush3.bf16.msra.mxu1 %v11753_v47  ;;  %10410 = vmatprep.subr.bf16.mxu0 %v16888_v62 }
  0x33   :  { %10416 = vmatprep.subr.bf16.mxu1 %v16888_v62 }
  0x34   :  { %10397 = vmatmul.mubr.msk.bf16.vlgmr.msra.gmra.mxu0 %vm115_vm1, %v11752_v48 }
  0x35   :  { %10407 = vmatmul.mubr.msk.bf16.vlgmr.msra.gmra.mxu1 %vm115_vm1, %v11755_v49  ;;  %10412 = vmatprep.mubr.msk.bf16.mxu0 %vm12287_vm2, %v16888_v62  ;;  %vm9805_vm1 = vcmask 982016  }
  0x36   :  { %10418 = vmatprep.mubr.msk.bf16.mxu1 %vm12287_vm2, %v16888_v62 }
  0xd0   :  { %v12471_v50 = vpop.f32.mrf.mxu0 }
  0xd1   :  { %17074 = vst [vmem:[#allocation2_spill] sm:$0xff] %v12471_v50  ;;  %v12473_v51 = vpop.f32.mrf.mxu1 }
  0xd2   :  { %17075 = vst [vmem:[#allocation3_spill] sm:$0xff] %v12473_v51  ;;  %v12475_v52 = vpop.f32.mrf.mxu0 }
  0xd3   :  { %17076 = vst [vmem:[#allocation4_spill] sm:$0xff] %v12475_v52  ;;  %v12477_v53 = vpop.f32.mrf.mxu1 }
  0xd4   :  { %17077 = vst [vmem:[#allocation5_spill] sm:$0xff] %v12477_v53  ;;  %v12479_v54 = vpop.f32.mrf.mxu0 }
  0xd5   :  { %17078 = vst [vmem:[#allocation6_spill] sm:$0xff] %v12479_v54  ;;  %v12481_v55 = vpop.f32.mrf.mxu1  ;;  %v11236_v56 = vpack.i.bf16 %v12479_v54, %v12471_v50  ;;  %v12519_v0 = vpack.c.bf16 %v12479_v54, %v12471_v50 }
  0xd6   :  { %17079 = vst [vmem:[#allocation7_spill] sm:$0xff] %v12481_v55  ;;  %v12485_v57 = vpop.f32.mrf.mxu0  ;;  %v11241_v58 = vpack.i.bf16 %v12481_v55, %v12473_v51  ;;  %v12515_v63 = vpack.c.bf16 %v12481_v55, %v12473_v51 }
  0xd7   :  { %17080 = vst [vmem:[#allocation8_spill] sm:$0xff] %v12485_v57  ;;  %11237 = vrot.lane.b32.xlu0 %v11236_v56, %s12283_s0  ;;  %v11266_v59 = vpack.i.bf16 %v12485_v57, %v12475_v52  ;;  %v12495_v60 = vpop.f32.mrf.mxu1  ;;  %v12537_v4 = vpack.c.bf16 %v12485_v57, %v12475_v52 }
  0xd8   :  { %11242 = vrot.lane.b32.xlu1 %v11241_v58, %s12283_s0  ;;  %17081 = vst [vmem:[#allocation9_spill] sm:$0xff] %v12495_v60  ;;  %v11281_v61 = vpack.i.bf16 %v12495_v60, %v12477_v53  ;;  %v12545_v7 = vpack.c.bf16 %v12495_v60, %v12477_v53 }
  0xdb   :  { %11267 = vrot.lane.b32.xlu0 %v11266_v59, %s12283_s0 }
  0xdc   :  { %11247 = vrot.lane.b32.xlu1 %v11236_v56, %s12284_s2  ;;  %v12521_v1 = vpop.f32.mrf.mxu0 }
  0xdd   :  { %17082 = vst [vmem:[#allocation10_spill] sm:$0xff] %v12521_v1  ;;  %v12529_v3 = vpop.f32.mrf.mxu1 }
  0xde   :  { %v12527_v2 = vpop.f32.mrf.mxu0  ;;  %17084 = vst [vmem:[#allocation12_spill] sm:$0xff] %v12529_v3 }
  0xdf   :  { %11277 = vrot.lane.b32.xlu0 %v11266_v59, %s12284_s2  ;;  %17083 = vst [vmem:[#allocation11_spill] sm:$0xff] %v12527_v2  ;;  %v12541_v6 = vpop.f32.mrf.mxu1 }
  0xe0   :  { %11252 = vrot.lane.b32.xlu1 %v11241_v58, %s12284_s2  ;;  %v12539_v5 = vpop.f32.mrf.mxu0  ;;  %17086 = vst [vmem:[#allocation14_spill] sm:$0xff] %v12541_v6 }
  0xe1   :  { %17085 = vst [vmem:[#allocation13_spill] sm:$0xff] %v12539_v5  ;;  %v12553_v9 = vpop.f32.mrf.mxu1  ;;  %v11296_v12 = vpack.i.bf16 %v12539_v5, %v12521_v1  ;;  %v12589_v17 = vpack.c.bf16 %v12539_v5, %v12521_v1 }
  0xe2   :  { %v12551_v8 = vpop.f32.mrf.mxu0  ;;  %17088 = vst [vmem:[#allocation16_spill] sm:$0xff] %v12553_v9  ;;  %v11301_v14 = vpack.i.bf16 %v12553_v9, %v12529_v3  ;;  %v12583_v15 = vpack.c.bf16 %v12553_v9, %v12529_v3 }
  0xe3   :  { %11282 = vrot.lane.b32.xlu0 %v11281_v61, %s12284_s2  ;;  %17087 = vst [vmem:[#allocation15_spill] sm:$0xff] %v12551_v8  ;;  %v11326_v10 = vpack.i.bf16 %v12551_v8, %v12527_v2  ;;  %v12561_v11 = vpop.f32.mrf.mxu1  ;;  %v12613_v23 = vpack.c.bf16 %v12551_v8, %v12527_v2 }
  0xe4   :  { %11257 = vrot.lane.b32.xlu1 %v11236_v56, %s12285_s17  ;;  %17089 = vst [vmem:[#allocation17_spill] sm:$0xff] %v12561_v11  ;;  %v11331_v13 = vpack.i.bf16 %v12561_v11, %v12541_v6  ;;  %v12601_v20 = vpack.c.bf16 %v12561_v11, %v12541_v6 }
  0xe7   :  { %11287 = vrot.lane.b32.xlu0 %v11266_v59, %s12285_s17 }
  0xe8   :  { %11262 = vrot.lane.b32.xlu1 %v11241_v58, %s12285_s17  ;;  %v12585_v16 = vpop.f32.mrf.mxu0 }
  0xe9   :  { %17090 = vst [vmem:[#allocation18_spill] sm:$0xff] %v12585_v16  ;;  %v12597_v19 = vpop.f32.mrf.mxu1 }
  0xea   :  { %v12595_v18 = vpop.f32.mrf.mxu0  ;;  %17092 = vst [vmem:[#allocation20_spill] sm:$0xff] %v12597_v19 }
  0xeb   :  { %11292 = vrot.lane.b32.xlu0 %v11281_v61, %s12285_s17  ;;  %17091 = vst [vmem:[#allocation19_spill] sm:$0xff] %v12595_v18  ;;  %v12609_v22 = vpop.f32.mrf.mxu1 }
  0xec   :  { %11272 = vrot.lane.b32.xlu1 %v11281_v61, %s12283_s0  ;;  %v12607_v21 = vpop.f32.mrf.mxu0  ;;  %17094 = vst [vmem:[#allocation22_spill] sm:$0xff] %v12609_v22 }
  0xed   :  { %17093 = vst [vmem:[#allocation21_spill] sm:$0xff] %v12607_v21  ;;  %v11356_v24 = vpack.i.bf16 %v12607_v21, %v12585_v16  ;;  %v12621_v25 = vpop.f32.mrf.mxu1  ;;  %v12655_v34 = vpack.c.bf16 %v12607_v21, %v12585_v16 }
  0xee   :  { %17095 = vst [vmem:[#allocation23_spill] sm:$0xff] %v12621_v25  ;;  %v11361_v26 = vpack.i.bf16 %v12621_v25, %v12597_v19  ;;  %v12628_v27 = vpop.f32.mrf.mxu0  ;;  %v12666_v37 = vpack.c.bf16 %v12621_v25, %v12597_v19 }
  0xef   :  { %1298 = vrot.lane.b32.xlu0 %v12515_v63, %s12288_s18  ;;  %17096 = vst [vmem:[#allocation24_spill] sm:$0xff] %v12628_v27  ;;  %v11386_v28 = vpack.i.bf16 %v12628_v27, %v12595_v18  ;;  %v12635_v29 = vpop.f32.mrf.mxu1  ;;  %v12685_v42 = vpack.c.bf16 %v12628_v27, %v12595_v18 }
  0xf0   :  { %1198 = vrot.lane.b32.xlu1 %v12519_v0, %s12288_s18  ;;  %17097 = vst [vmem:[#allocation25_spill] sm:$0xff] %v12635_v29  ;;  %v11391_v30 = vpack.i.bf16 %v12635_v29, %v12609_v22  ;;  %v12694_v45 = vpack.c.bf16 %v12635_v29, %v12609_v22 }
  0xf3   :  { %5705 = vrot.lane.b32.xlu0 %v12515_v63, %s12289_s19 }
  0xf4   :  { %5611 = vrot.lane.b32.xlu1 %v12519_v0, %s12289_s19  ;;  %v12645_v31 = vpop.f32.mrf.mxu0 }
  0xf5   :  { %17098 = vst [vmem:[#allocation26_spill] sm:$0xff] %v12645_v31  ;;  %v12651_v33 = vpop.f32.mrf.mxu1 }
  0xf6   :  { %v12649_v32 = vpop.f32.mrf.mxu0  ;;  %17100 = vst [vmem:[#allocation28_spill] sm:$0xff] %v12651_v33 }
  0xf7   :  { %1147 = vrot.lane.b32.xlu0 %v12537_v4, %s12288_s18  ;;  %17099 = vst [vmem:[#allocation27_spill] sm:$0xff] %v12649_v32  ;;  %v12662_v36 = vpop.f32.mrf.mxu1 }
  0xf8   :  { %1248 = vrot.lane.b32.xlu1 %v12545_v7, %s12288_s18  ;;  %v12660_v35 = vpop.f32.mrf.mxu0  ;;  %17102 = vst [vmem:[#allocation30_spill] sm:$0xff] %v12662_v36 }
  0xf9   :  { %17101 = vst [vmem:[#allocation29_spill] sm:$0xff] %v12660_v35  ;;  %v11416_v38 = vpack.i.bf16 %v12660_v35, %v12645_v31  ;;  %v12673_v39 = vpop.f32.mrf.mxu1 }
  0xfa   :  { %17103 = vst [vmem:[#allocation31_spill] sm:$0xff] %v12673_v39  ;;  %v11421_v40 = vpack.i.bf16 %v12673_v39, %v12651_v33  ;;  %v12708_v56 = vpop.f32.mrf.mxu0 }
  0xfb   :  { %5564 = vrot.lane.b32.xlu0 %v12537_v4, %s12289_s19  ;;  %17104 = vst [vmem:[#allocation32_spill] sm:$0xff] %v12708_v56  ;;  %v11446_v61 = vpack.i.bf16 %v12708_v56, %v12649_v32 }
  0xfc   :  { %5658 = vrot.lane.b32.xlu1 %v12545_v7, %s12289_s19 }
  0xff   :  { %11327 = vrot.lane.b32.xlu0 %v11326_v10, %s12283_s0 }
 0x100   :  { %11297 = vrot.lane.b32.xlu1 %v11296_v12, %s12283_s0 }
 0x103   :  { %11332 = vrot.lane.b32.xlu0 %v11331_v13, %s12283_s0 }
 0x104   :  { %11302 = vrot.lane.b32.xlu1 %v11301_v14, %s12283_s0 }
 0x107   :  { %11337 = vrot.lane.b32.xlu0 %v11326_v10, %s12284_s2 }
 0x108   :  { %11307 = vrot.lane.b32.xlu1 %v11296_v12, %s12284_s2 }
 0x10b   :  { %11342 = vrot.lane.b32.xlu0 %v11331_v13, %s12284_s2 }
 0x10c   :  { %11312 = vrot.lane.b32.xlu1 %v11301_v14, %s12284_s2 }
 0x10f   :  { %11347 = vrot.lane.b32.xlu0 %v11326_v10, %s12285_s17  ;;  %v12719_v10 = vpop.f32.mrf.mxu1 }
 0x110   :  { %11317 = vrot.lane.b32.xlu1 %v11296_v12, %s12285_s17  ;;  %17105 = vst [vmem:[#allocation33_spill] sm:$0xff] %v12719_v10 }
 0x113   :  { %11352 = vrot.lane.b32.xlu0 %v11331_v13, %s12285_s17  ;;  %v12725_v13 = vpack.c.bf16 %v12660_v35, %v12645_v31 }
 0x114   :  { %11322 = vrot.lane.b32.xlu1 %v11301_v14, %s12285_s17 }
 0x117   :  { %1498 = vrot.lane.b32.xlu0 %v12583_v15, %s12288_s18 }
 0x118   :  { %1398 = vrot.lane.b32.xlu1 %v12589_v17, %s12288_s18 }
 0x11b   :  { %5799 = vrot.lane.b32.xlu0 %v12589_v17, %s12289_s19 }
 0x11c   :  { %1448 = vrot.lane.b32.xlu1 %v12601_v20, %s12288_s18 }
 0x11f   :  { %5893 = vrot.lane.b32.xlu0 %v12583_v15, %s12289_s19 }
 0x120   :  { %5752 = vrot.lane.b32.xlu1 %v12613_v23, %s12289_s19 }
 0x123   :  { %1348 = vrot.lane.b32.xlu0 %v12613_v23, %s12288_s18 }
 0x124   :  { %11357 = vrot.lane.b32.xlu1 %v11356_v24, %s12283_s0 }
 0x127   :  { %5846 = vrot.lane.b32.xlu0 %v12601_v20, %s12289_s19 }
 0x128   :  { %11362 = vrot.lane.b32.xlu1 %v11361_v26, %s12283_s0 }
 0x12b   :  { %11387 = vrot.lane.b32.xlu0 %v11386_v28, %s12283_s0 }
 0x12c   :  { %11367 = vrot.lane.b32.xlu1 %v11356_v24, %s12284_s2 }
 0x12f   :  { %11392 = vrot.lane.b32.xlu0 %v11391_v30, %s12283_s0 }
 0x130   :  { %11372 = vrot.lane.b32.xlu1 %v11361_v26, %s12284_s2 }
 0x133   :  { %11397 = vrot.lane.b32.xlu0 %v11386_v28, %s12284_s2 }
 0x134   :  { %11377 = vrot.lane.b32.xlu1 %v11356_v24, %s12285_s17  ;;  %v11451_v24 = vpack.i.bf16 %v12719_v10, %v12662_v36 }
 0x137   :  { %11402 = vrot.lane.b32.xlu0 %v11391_v30, %s12284_s2 }
 0x138   :  { %11382 = vrot.lane.b32.xlu1 %v11361_v26, %s12285_s17 }
 0x13b   :  { %11407 = vrot.lane.b32.xlu0 %v11386_v28, %s12285_s17  ;;  %v12738_v28 = vpack.c.bf16 %v12673_v39, %v12651_v33  ;;  %v17107_v33 = vmov 0.0  }
 0x13c   :  { %1598 = vrot.lane.b32.xlu1 %v12655_v34, %s12288_s18 }
 0x13f   :  { %11412 = vrot.lane.b32.xlu0 %v11391_v30, %s12285_s17 }
 0x140   :  { %1698 = vrot.lane.b32.xlu1 %v12666_v37, %s12288_s18 }
 0x143   :  { %5987 = vrot.lane.b32.xlu0 %v12655_v34, %s12289_s19 }
 0x144   :  { %11417 = vrot.lane.b32.xlu1 %v11416_v38, %s12283_s0 }
 0x147   :  { %6081 = vrot.lane.b32.xlu0 %v12666_v37, %s12289_s19 }
 0x148   :  { %11422 = vrot.lane.b32.xlu1 %v11421_v40, %s12283_s0 }
 0x149   :  { %v11238_v41 = vpop.permute.xlu0 %11237 }
 0x14a   :  { %v11243_v43 = vpop.permute.xlu1 %11242 }
 0x14b   :  { %1548 = vrot.lane.b32.xlu0 %v12685_v42, %s12288_s18  ;;  %v11245_v39 = vunpack.i.h.bf16 %v11243_v43  ;;  %v11244_v31 = vunpack.i.l.bf16 %v11243_v43 }
 0x14c   :  { %11427 = vrot.lane.b32.xlu1 %v11416_v38, %s12284_s2 }
 0x14d   :  { %v12690_v44 = vpop.permute.xlu0 %11267  ;;  %v12758_v29 = vpack.c.bf16 %v11245_v39, %v11244_v31 }
 0x14e   :  { %v11248_v46 = vpop.permute.xlu1 %11247  ;;  %v11270_v18 = vunpack.i.h.bf16 %v12690_v44 }
 0x14f   :  { %1648 = vrot.lane.b32.xlu0 %v12694_v45, %s12288_s18 }
 0x150   :  { %11432 = vrot.lane.b32.xlu1 %v11421_v40, %s12284_s2 }
 0x151   :  { %v12699_v47 = vpop.permute.xlu0 %11277 }
 0x152   :  { %v12701_v48 = vpop.permute.xlu1 %11252 }
 0x153   :  { %5940 = vrot.lane.b32.xlu0 %v12685_v42, %s12289_s19  ;;  %v11255_v31 = vunpack.i.h.bf16 %v12701_v48  ;;  %v11254_v39 = vunpack.i.l.bf16 %v12701_v48 }
 0x154   :  { %11437 = vrot.lane.b32.xlu1 %v11416_v38, %s12285_s17  ;;  %v11240_v38 = vunpack.i.h.bf16 %v11238_v41 }
 0x155   :  { %v12706_v49 = vpop.permute.xlu0 %11282 }
 0x156   :  { %v12710_v58 = vpop.permute.xlu1 %11257  ;;  %v11285_v11 = vunpack.i.h.bf16 %v12706_v49 }
 0x157   :  { %6034 = vrot.lane.b32.xlu0 %v12694_v45, %s12289_s19 }
 0x158   :  { %11442 = vrot.lane.b32.xlu1 %v11421_v40, %s12285_s17  ;;  %v11239_v40 = vunpack.i.l.bf16 %v11238_v41  ;;  %v11249_v41 = vunpack.i.l.bf16 %v11248_v46 }
 0x159   :  { %v12715_v59 = vpop.permute.xlu0 %11287 }
 0x15a   :  { %v12721_v12 = vpop.permute.xlu1 %11262  ;;  %v12752_v19 = vpack.c.bf16 %v11240_v38, %v11239_v40  ;;  %v12788_v38 = vpack.c.bf16 %v11255_v31, %v11254_v39  ;;  %v12809_v40 = vpack.c.bf16 %v12708_v56, %v12649_v32 }
 0x15b   :  { %11447 = vrot.lane.b32.xlu0 %v11446_v61, %s12283_s0 }
 0x15c   :  { %1798 = vrot.lane.b32.xlu1 %v12725_v13, %s12288_s18 }
 0x15d   :  { %v12730_v14 = vpop.permute.xlu0 %11292 }
 0x15e   :  { %v12734_v26 = vpop.permute.xlu1 %11272 }
 0x15f   :  { %11452 = vrot.lane.b32.xlu0 %v11451_v24, %s12283_s0  ;;  %v11275_v39 = vunpack.i.h.bf16 %v12734_v26 }
 0x160   :  { %1898 = vrot.lane.b32.xlu1 %v12738_v28, %s12288_s18 }
 0x161   :  { %v1299_v30 = vpop.permute.xlu0 %1298 }
 0x162   :  { %v1199_v62 = vpop.permute.xlu1 %1198  ;;  %v1304_v16 = vsel %vm1149_vm3, %v1299_v30, 0 }
 0x163   :  { %v1204_v52 = vsel %vm1149_vm3, %v1199_v62, 0  ;;  %11457 = vrot.lane.b32.xlu0 %v11446_v61, %s12284_s2 }
 0x164   :  { %10417 = vmatpush3.bf16.xpose.msra.mxu1 %v1204_v52  ;;  %6269 = vrot.lane.b32.xlu1 %v12738_v28, %s12289_s19  ;;  %v11250_v52 = vunpack.i.h.bf16 %v11248_v46 }
 0x165   :  { %v12747_v57 = vpop.permute.xlu0 %5705  ;;  %10428 = vmatprep.subr.bf16.mxu1 %v17107_v33 }
 0x166   :  { %17106 = vst [vmem:[#allocation34_spill] sm:$0xff] %v12747_v57  ;;  %v12750_v35 = vpop.permute.xlu1 %5611  ;;  %v12774_v30 = vpack.c.bf16 %v11250_v52, %v11249_v41  ;;  %v12823_v41 = vpack.c.bf16 %v12719_v10, %v12662_v36 }
 0x167   :  { %17108 = vst [vmem:[#allocation35_spill] sm:$0xff] %v12750_v35  ;;  %11462 = vrot.lane.b32.xlu0 %v11451_v24, %s12284_s2 }
 0x168   :  { %1998 = vrot.lane.b32.xlu1 %v12752_v19, %s12288_s18 }
 0x169   :  { %v1148_v62 = vpop.permute.xlu0 %1147 }
 0x16a   :  { %v1249_v25 = vpop.permute.xlu1 %1248  ;;  %v1154_v22 = vsel %vm1149_vm3, %v1148_v62, 0 }
 0x16b   :  { %10419 = vmatmul.mubr.msk.bf16.vlgmr.msra.gmra.mxu1 %vm1149_vm3, %v12519_v0  ;;  %10411 = vmatpush3.bf16.xpose.msra.mxu0 %v1154_v22  ;;  %v11259_v22 = vunpack.i.l.bf16 %v12710_v58  ;;  %v1254_v48 = vsel %vm1149_vm3, %v1249_v25, 0 }
 0x16c   :  { %10429 = vmatpush3.bf16.xpose.msra.mxu1 %v1304_v16  ;;  %2098 = vrot.lane.b32.xlu1 %v12758_v29, %s12288_s18  ;;  %v11260_v16 = vunpack.i.h.bf16 %v12710_v58  ;;  %v11264_v58 = vunpack.i.l.bf16 %v12721_v12 }
 0x16d   :  { %11467 = vrot.lane.b32.xlu0 %v11446_v61, %s12285_s17  ;;  %v12766_v43 = vpop.permute.xlu0 %5564  ;;  %10430 = vmatprep.mubr.msk.bf16.mxu1 %vm12287_vm2, %v17107_v33 }
 0x16e   :  { %17109 = vst [vmem:[#allocation36_spill] sm:$0xff] %v12766_v43  ;;  %v12772_v46 = vpop.permute.xlu1 %5658  ;;  %10422 = vmatprep.subr.bf16.mxu0 %v17107_v33  ;;  %10440 = vmatprep.subr.bf16.mxu1 %v17107_v33 }
 0x16f   :  { %17110 = vst [vmem:[#allocation37_spill] sm:$0xff] %v12772_v46 }
 0x170   :  { %2798 = vrot.lane.b32.xlu1 %v12774_v30, %s12288_s18 }
 0x171   :  { %11472 = vrot.lane.b32.xlu0 %v11451_v24, %s12285_s17  ;;  %v12781_v0 = vpop.permute.xlu0 %11327  ;;  %v12804_v24 = vpack.c.bf16 %v11260_v16, %v11259_v22 }
 0x172   :  { %v11298_v61 = vpop.permute.xlu1 %11297  ;;  %10413 = vmatmul.mubr.msk.bf16.vlgmr.msra.gmra.mxu0 %vm1149_vm3, %v12537_v4  ;;  %v11265_v4 = vunpack.i.h.bf16 %v12721_v12 }
 0x173   :  { %10431 = vmatmul.mubr.msk.bf16.vlgmr.msra.gmra.mxu1 %vm1149_vm3, %v12515_v63  ;;  %10423 = vmatpush3.bf16.xpose.msra.mxu0 %v1254_v48  ;;  %17111 = vst [vmem:[#allocation38_spill] sm:$0xff] %v12804_v24  ;;  %v11280_v48 = vunpack.i.h.bf16 %v12699_v47  ;;  %v11300_v10 = vunpack.i.h.bf16 %v11298_v61  ;;  %v11299_v32 = vunpack.i.l.bf16 %v11298_v61 }
 0x174   :  { %2898 = vrot.lane.b32.xlu1 %v12788_v38, %s12288_s18  ;;  %10424 = vmatprep.mubr.msk.bf16.mxu0 %vm12287_vm2, %v17107_v33  ;;  %v12819_v12 = vpack.c.bf16 %v11265_v4, %v11264_v58  ;;  %v11279_v4 = vunpack.i.l.bf16 %v12699_v47  ;;  %v11269_v47 = vunpack.i.l.bf16 %v12690_v44 }
 0x175   :  { %6175 = vrot.lane.b32.xlu0 %v12725_v13, %s12289_s19  ;;  %v12798_v25 = vpop.permute.xlu0 %11332  ;;  %10442 = vmatprep.mubr.msk.bf16.mxu1 %vm12287_vm2, %v17107_v33  ;;  %v12861_v9 = vpack.c.bf16 %v11300_v10, %v11299_v32 }
 0x176   :  { %v11303_v63 = vpop.permute.xlu1 %11302  ;;  %10434 = vmatprep.subr.bf16.mxu0 %v17107_v33  ;;  %17112 = vst [vmem:[#allocation39_spill] sm:$0xff] %v12819_v12  ;;  %v12853_v21 = vpack.c.bf16 %v11280_v48, %v11279_v4  ;;  %v12864_v48 = vpack.c.bf16 %v11270_v18, %v11269_v47 }
 0x177   :  { %v11304_v27 = vunpack.i.l.bf16 %v11303_v63 }
 0x178   :  { %3598 = vrot.lane.b32.xlu1 %v12804_v24, %s12288_s18 }
 0x179   :  { %1748 = vrot.lane.b32.xlu0 %v12809_v40, %s12288_s18  ;;  %v12815_v62 = vpop.permute.xlu0 %11337 }
 0x17a   :  { %v11308_v52 = vpop.permute.xlu1 %11307  ;;  %10425 = vmatmul.mubr.msk.bf16.vlgmr.msra.gmra.mxu0 %vm1149_vm3, %v12545_v7  ;;  %v11274_v7 = vunpack.i.l.bf16 %v12734_v26 }
 0x17b   :  { %10436 = vmatprep.mubr.msk.bf16.mxu0 %vm12287_vm2, %v17107_v33  ;;  %v11310_v4 = vunpack.i.h.bf16 %v11308_v52 }
 0x17c   :  { %3698 = vrot.lane.b32.xlu1 %v12819_v12, %s12288_s18  ;;  %v12843_v36 = vpack.c.bf16 %v11275_v39, %v11274_v7  ;;  %v11305_v7 = vunpack.i.h.bf16 %v11303_v63  ;;  %v11309_v63 = vunpack.i.l.bf16 %v11308_v52  ;;  %v11284_v52 = vunpack.i.l.bf16 %v12706_v49 }
 0x17d   :  { %1848 = vrot.lane.b32.xlu0 %v12823_v41, %s12288_s18  ;;  %v12831_v31 = vpop.permute.xlu0 %11342 }
 0x17e   :  { %v11313_v16 = vpop.permute.xlu1 %11312  ;;  %v12873_v32 = vpack.c.bf16 %v11305_v7, %v11304_v27  ;;  %v12904_v1 = vpack.c.bf16 %v11285_v11, %v11284_v52  ;;  %v11295_v52 = vunpack.i.h.bf16 %v12730_v14 }
 0x17f   :  { %v11315_v18 = vunpack.i.h.bf16 %v11313_v16  ;;  %v11314_v10 = vunpack.i.l.bf16 %v11313_v16 }
 0x180   :  { %6457 = vrot.lane.b32.xlu1 %v12758_v29, %s12289_s19 }
 0x181   :  { %6128 = vrot.lane.b32.xlu0 %v12809_v40, %s12289_s19  ;;  %v12839_v22 = vpop.permute.xlu0 %11347 }
 0x182   :  { %v11318_v58 = vpop.permute.xlu1 %11317 }
 0x183   :  { %v11320_v7 = vunpack.i.h.bf16 %v11318_v58 }
 0x184   :  { %6410 = vrot.lane.b32.xlu1 %v12843_v36, %s12289_s19 }
 0x185   :  { %6222 = vrot.lane.b32.xlu0 %v12823_v41, %s12289_s19  ;;  %v12849_v26 = vpop.permute.xlu0 %11352 }
 0x186   :  { %v12851_v56 = vpop.permute.xlu1 %11322  ;;  %v11354_v54 = vunpack.i.l.bf16 %v12849_v26 }
 0x188   :  { %7068 = vrot.lane.b32.xlu1 %v12853_v21, %s12289_s19 }
 0x189   :  { %6363 = vrot.lane.b32.xlu0 %v12752_v19, %s12289_s19  ;;  %v1499_v39 = vpop.permute.xlu0 %1498 }
 0x18a   :  { %v1399_v3 = vpop.permute.xlu1 %1398  ;;  %v1504_v27 = vsel %vm1149_vm3, %v1499_v39, 0  ;;  %v12899_v39 = vpack.c.bf16 %v11315_v18, %v11314_v10  ;;  %v11325_v10 = vunpack.i.h.bf16 %v12851_v56 }
 0x18b   :  { %v1404_v61 = vsel %vm1149_vm3, %v1399_v3, 0 }
 0x18c   :  { %10441 = vmatpush3.bf16.xpose.msra.mxu1 %v1404_v61  ;;  %2198 = vrot.lane.b32.xlu1 %v12861_v9, %s12288_s18  ;;  %v12883_v61 = vpack.c.bf16 %v11310_v4, %v11309_v63  ;;  %v11319_v4 = vunpack.i.l.bf16 %v11318_v58 }
 0x18d   :  { %1948 = vrot.lane.b32.xlu0 %v12864_v48, %s12288_s18  ;;  %v12870_v44 = vpop.permute.xlu0 %5799  ;;  %10452 = vmatprep.subr.bf16.mxu1 %v17107_v33 }
 0x18e   :  { %17113 = vst [vmem:[#allocation40_spill] sm:$0xff] %v12870_v44  ;;  %v1449_v6 = vpop.permute.xlu1 %1448  ;;  %v12913_v18 = vpack.c.bf16 %v11320_v7, %v11319_v4 }
 0x18f   :  { %v1454_v4 = vsel %vm1149_vm3, %v1449_v6, 0 }
 0x190   :  { %2298 = vrot.lane.b32.xlu1 %v12873_v32, %s12288_s18  ;;  %17117 = vst [vmem:[#allocation44_spill] sm:$0xff] %v12913_v18 }
 0x191   :  { %2048 = vrot.lane.b32.xlu0 %v12843_v36, %s12288_s18  ;;  %v12879_v3 = vpop.permute.xlu0 %5893 }
 0x192   :  { %17114 = vst [vmem:[#allocation41_spill] sm:$0xff] %v12879_v3  ;;  %v12881_v47 = vpop.permute.xlu1 %5752 }
 0x193   :  { %17115 = vst [vmem:[#allocation42_spill] sm:$0xff] %v12881_v47  ;;  %10443 = vmatmul.mubr.msk.bf16.vlgmr.msra.gmra.mxu1 %vm1149_vm3, %v12589_v17  ;;  %v11290_v17 = vunpack.i.h.bf16 %v12715_v59 }
 0x194   :  { %10453 = vmatpush3.bf16.xpose.msra.mxu1 %v1504_v27  ;;  %2998 = vrot.lane.b32.xlu1 %v12883_v61, %s12288_s18  ;;  %v11289_v27 = vunpack.i.l.bf16 %v12715_v59 }
 0x195   :  { %2748 = vrot.lane.b32.xlu0 %v12853_v21, %s12288_s18  ;;  %v1349_v16 = vpop.permute.xlu0 %1348  ;;  %10454 = vmatprep.mubr.msk.bf16.mxu1 %vm12287_vm2, %v17107_v33 }
 0x196   :  { %v1354_v49 = vsel %vm1149_vm3, %v1349_v16, 0  ;;  %v12897_v63 = vpop.permute.xlu1 %11357  ;;  %10464 = vmatprep.subr.bf16.mxu1 %v17107_v33  ;;  %v11324_v16 = vunpack.i.l.bf16 %v12851_v56  ;;  %v12919_v11 = vpack.c.bf16 %v11290_v17, %v11289_v27  ;;  %v11329_v27 = vunpack.i.l.bf16 %v12781_v0 }
 0x197   :  { %10435 = vmatpush3.bf16.xpose.msra.mxu0 %v1354_v49  ;;  %v11294_v49 = vunpack.i.l.bf16 %v12730_v14  ;;  %v11360_v2 = vunpack.i.h.bf16 %v12897_v63  ;;  %v11359_v8 = vunpack.i.l.bf16 %v12897_v63 }
 0x198   :  { %3098 = vrot.lane.b32.xlu1 %v12899_v39, %s12288_s18  ;;  %10446 = vmatprep.subr.bf16.mxu0 %v17107_v33  ;;  %17118 = vst [vmem:[#allocation45_spill] sm:$0xff] %v12919_v11  ;;  %v12933_v7 = vpack.c.bf16 %v11325_v10, %v11324_v16 }
 0x199   :  { %2848 = vrot.lane.b32.xlu0 %v12904_v1, %s12288_s18  ;;  %v12911_v58 = vpop.permute.xlu0 %5846  ;;  %v13003_v63 = vpack.c.bf16 %v11360_v2, %v11359_v8 }
 0x19a   :  { %17116 = vst [vmem:[#allocation43_spill] sm:$0xff] %v12911_v58  ;;  %v12917_v59 = vpop.permute.xlu1 %11362  ;;  %17119 = vst [vmem:[#allocation46_spill] sm:$0xff] %v12933_v7 }
 0x19b   :  { %10455 = vmatmul.mubr.msk.bf16.vlgmr.msra.gmra.mxu1 %vm1149_vm3, %v12583_v15  ;;  %v12940_v15 = vpack.c.bf16 %v11295_v52, %v11294_v49  ;;  %v11335_v49 = vunpack.i.h.bf16 %v12798_v25 }
 0x19c   :  { %3798 = vrot.lane.b32.xlu1 %v12913_v18, %s12288_s18  ;;  %10466 = vmatprep.mubr.msk.bf16.mxu1 %vm12287_vm2, %v17107_v33 }
 0x19d   :  { %3548 = vrot.lane.b32.xlu0 %v12919_v11, %s12288_s18  ;;  %v12931_v56 = vpop.permute.xlu0 %11387  ;;  %17120 = vst [vmem:[#allocation47_spill] sm:$0xff] %v12940_v15 }
 0x19e   :  { %v12936_v17 = vpop.permute.xlu1 %11367  ;;  %10437 = vmatmul.mubr.msk.bf16.vlgmr.msra.gmra.mxu0 %vm1149_vm3, %v12613_v23  ;;  %v11330_v23 = vunpack.i.h.bf16 %v12781_v0 }
 0x19f   :  { %10447 = vmatpush3.bf16.xpose.msra.mxu0 %v1454_v4  ;;  %10448 = vmatprep.mubr.msk.bf16.mxu0 %vm12287_vm2, %v17107_v33  ;;  %v11334_v4 = vunpack.i.l.bf16 %v12798_v25  ;;  %v11370_v8 = vunpack.i.h.bf16 %v12936_v17 }
 0x1a0   :  { %3898 = vrot.lane.b32.xlu1 %v12933_v7, %s12288_s18  ;;  %10458 = vmatprep.subr.bf16.mxu0 %v17107_v33  ;;  %v12965_v52 = vpack.c.bf16 %v11330_v23, %v11329_v27  ;;  %v11340_v23 = vunpack.i.h.bf16 %v12815_v62  ;;  %v11339_v27 = vunpack.i.l.bf16 %v12815_v62 }
 0x1a1   :  { %3648 = vrot.lane.b32.xlu0 %v12940_v15, %s12288_s18  ;;  %v12949_v6 = vpop.permute.xlu0 %11392 }
 0x1a2   :  { %v12951_v14 = vpop.permute.xlu1 %11372  ;;  %v12991_v55 = vpack.c.bf16 %v11340_v23, %v11339_v27  ;;  %v11365_v23 = vunpack.i.h.bf16 %v12917_v59  ;;  %v11364_v27 = vunpack.i.l.bf16 %v12917_v59  ;;  %v11369_v59 = vunpack.i.l.bf16 %v12936_v17 }
 0x1a4   :  { %6551 = vrot.lane.b32.xlu1 %v12861_v9, %s12289_s19  ;;  %v13017_v2 = vpack.c.bf16 %v11365_v23, %v11364_v27  ;;  %v13038_v23 = vpack.c.bf16 %v11370_v8, %v11369_v59  ;;  %v11374_v27 = vunpack.i.l.bf16 %v12951_v14 }
 0x1a5   :  { %6316 = vrot.lane.b32.xlu0 %v12864_v48, %s12289_s19  ;;  %v12959_v10 = vpop.permute.xlu0 %11397 }
 0x1a6   :  { %v12961_v16 = vpop.permute.xlu1 %11377  ;;  %10449 = vmatmul.mubr.msk.bf16.vlgmr.msra.gmra.mxu0 %vm1149_vm3, %v12601_v20  ;;  %v12979_v20 = vpack.c.bf16 %v11335_v49, %v11334_v4  ;;  %v11345_v49 = vunpack.i.h.bf16 %v12831_v31  ;;  %v11344_v4 = vunpack.i.l.bf16 %v12831_v31  ;;  %17124 = vst [vmem:[#allocation51_spill] sm:$0xff] %v13038_v23 }
 0x1a7   :  { %10460 = vmatprep.mubr.msk.bf16.mxu0 %vm12287_vm2, %v17107_v33  ;;  %v11379_v8 = vunpack.i.l.bf16 %v12961_v16 }
 0x1a8   :  { %6645 = vrot.lane.b32.xlu1 %v12873_v32, %s12289_s19  ;;  %v13007_v60 = vpack.c.bf16 %v11345_v49, %v11344_v4 }
 0x1a9   :  { %2148 = vrot.lane.b32.xlu0 %v12965_v52, %s12288_s18  ;;  %v12975_v0 = vpop.permute.xlu0 %11402 }
 0x1aa   :  { %v12977_v5 = vpop.permute.xlu1 %11382 }
 0x1ac   :  { %6504 = vrot.lane.b32.xlu1 %v12965_v52, %s12289_s19 }
 0x1ad   :  { %2248 = vrot.lane.b32.xlu0 %v12979_v20, %s12288_s18  ;;  %v12987_v25 = vpop.permute.xlu0 %11407 }
 0x1ae   :  { %v1599_v51 = vpop.permute.xlu1 %1598 }
 0x1af   :  { %v1604_v62 = vsel %vm1149_vm3, %v1599_v51, 0  ;;  %v11350_v51 = vunpack.i.h.bf16 %v12839_v22 }
 0x1b0   :  { %10465 = vmatpush3.bf16.xpose.msra.mxu1 %v1604_v62  ;;  %6598 = vrot.lane.b32.xlu1 %v12979_v20, %s12289_s19  ;;  %v11349_v62 = vunpack.i.l.bf16 %v12839_v22  ;;  %v11355_v22 = vunpack.i.h.bf16 %v12849_v26  ;;  %v11375_v26 = vunpack.i.h.bf16 %v12951_v14 }
 0x1b1   :  { %2948 = vrot.lane.b32.xlu0 %v12991_v55, %s12288_s18  ;;  %v13000_v53 = vpop.permute.xlu0 %11412  ;;  %10476 = vmatprep.subr.bf16.mxu1 %v17107_v33 }
 0x1b2   :  { %v1699_v31 = vpop.permute.xlu1 %1698  ;;  %v13023_v4 = vpack.c.bf16 %v11350_v51, %v11349_v62  ;;  %v13051_v51 = vpack.c.bf16 %v11375_v26, %v11374_v27  ;;  %v11380_v62 = vunpack.i.h.bf16 %v12961_v16  ;;  %v11384_v27 = vunpack.i.l.bf16 %v12977_v5 }
 0x1b3   :  { %v1704_v58 = vsel %vm1149_vm3, %v1699_v31, 0 }
 0x1b4   :  { %2398 = vrot.lane.b32.xlu1 %v13003_v63, %s12288_s18  ;;  %17122 = vst [vmem:[#allocation49_spill] sm:$0xff] %v13023_v4  ;;  %17126 = vst [vmem:[#allocation53_spill] sm:$0xff] %v13051_v51  ;;  %v13069_v26 = vpack.c.bf16 %v11380_v62, %v11379_v8 }
 0x1b5   :  { %3048 = vrot.lane.b32.xlu0 %v13007_v60, %s12288_s18  ;;  %v13015_v50 = vpop.permute.xlu0 %5987 }
 0x1b6   :  { %17121 = vst [vmem:[#allocation48_spill] sm:$0xff] %v13015_v50  ;;  %v13021_v49 = vpop.permute.xlu1 %11417  ;;  %17127 = vst [vmem:[#allocation54_spill] sm:$0xff] %v13069_v26 }
 0x1b7   :  { %10467 = vmatmul.mubr.msk.bf16.vlgmr.msra.gmra.mxu1 %vm1149_vm3, %v12655_v34  ;;  %v13045_v34 = vpack.c.bf16 %v11355_v22, %v11354_v54  ;;  %v11390_v54 = vunpack.i.h.bf16 %v12931_v56  ;;  %v11389_v22 = vunpack.i.l.bf16 %v12931_v56  ;;  %v11385_v56 = vunpack.i.h.bf16 %v12977_v5 }
 0x1b8   :  { %10477 = vmatpush3.bf16.xpose.msra.mxu1 %v1704_v58  ;;  %2498 = vrot.lane.b32.xlu1 %v13017_v2, %s12288_s18 }
 0x1b9   :  { %3748 = vrot.lane.b32.xlu0 %v13023_v4, %s12288_s18  ;;  %v13034_v17 = vpop.permute.xlu0 %6081  ;;  %10478 = vmatprep.mubr.msk.bf16.mxu1 %vm12287_vm2, %v17107_v33  ;;  %17125 = vst [vmem:[#allocation52_spill] sm:$0xff] %v13045_v34  ;;  %v13085_v8 = vpack.c.bf16 %v11385_v56, %v11384_v27  ;;  %v11404_v56 = vunpack.i.l.bf16 %v12975_v0 }
 0x1ba   :  { %17123 = vst [vmem:[#allocation50_spill] sm:$0xff] %v13034_v17  ;;  %v13042_v31 = vpop.permute.xlu1 %11422  ;;  %10488 = vmatprep.subr.bf16.mxu1 %v17107_v33  ;;  %v11394_v17 = vunpack.i.l.bf16 %v12949_v6 }
 0x1bb   :  { %17129 = vst [vmem:[#allocation56_spill] sm:$0xff] %v13085_v8  ;;  %v11425_v47 = vunpack.i.h.bf16 %v13042_v31 }
 0x1bc   :  { %3198 = vrot.lane.b32.xlu1 %v13038_v23, %s12288_s18 }
 0x1bd   :  { %3848 = vrot.lane.b32.xlu0 %v13045_v34, %s12288_s18  ;;  %v1549_v58 = vpop.permute.xlu0 %1548 }
 0x1be   :  { %v1554_v14 = vsel %vm1149_vm3, %v1549_v58, 0  ;;  %v13056_v59 = vpop.permute.xlu1 %11427  ;;  %v13075_v58 = vpack.c.bf16 %v11390_v54, %v11389_v22  ;;  %v11399_v22 = vunpack.i.l.bf16 %v12959_v10 }
 0x1bf   :  { %10479 = vmatmul.mubr.msk.bf16.vlgmr.msra.gmra.mxu1 %vm1149_vm3, %v12666_v37  ;;  %10459 = vmatpush3.bf16.xpose.msra.mxu0 %v1554_v14  ;;  %v11395_v14 = vunpack.i.h.bf16 %v12949_v6  ;;  %v11400_v6 = vunpack.i.h.bf16 %v12959_v10  ;;  %v11405_v10 = vunpack.i.h.bf16 %v12975_v0 }
 0x1c0   :  { %3298 = vrot.lane.b32.xlu1 %v13051_v51, %s12288_s18  ;;  %10470 = vmatprep.subr.bf16.mxu0 %v17107_v33 }
 0x1c1   :  { %6739 = vrot.lane.b32.xlu0 %v13003_v63, %s12289_s19  ;;  %v1649_v16 = vpop.permute.xlu0 %1648  ;;  %10490 = vmatprep.mubr.msk.bf16.mxu1 %vm12287_vm2, %v17107_v33  ;;  %v13092_v54 = vpack.c.bf16 %v11395_v14, %v11394_v17  ;;  %v13107_v17 = vpack.c.bf16 %v11400_v6, %v11399_v22  ;;  %v11410_v6 = vunpack.i.h.bf16 %v12987_v25  ;;  %v11409_v22 = vunpack.i.l.bf16 %v12987_v25 }
 0x1c2   :  { %v13073_v37 = vpop.permute.xlu1 %11432  ;;  %v1654_v5 = vsel %vm1149_vm3, %v1649_v16, 0 }
 0x1c3   :  { %17131 = vst [vmem:[#allocation58_spill] sm:$0xff] %v13107_v17 }
 0x1c4   :  { %3998 = vrot.lane.b32.xlu1 %v13069_v26, %s12288_s18 }
 0x1c5   :  { %2348 = vrot.lane.b32.xlu0 %v13075_v58, %s12288_s18  ;;  %v13083_v62 = vpop.permute.xlu0 %5940 }
 0x1c6   :  { %17128 = vst [vmem:[#allocation55_spill] sm:$0xff] %v13083_v62  ;;  %v13088_v50 = vpop.permute.xlu1 %11437  ;;  %10461 = vmatmul.mubr.msk.bf16.vlgmr.msra.gmra.mxu0 %vm1149_vm3, %v12685_v42  ;;  %v11414_v62 = vunpack.i.l.bf16 %v13000_v53 }
 0x1c7   :  { %10471 = vmatpush3.bf16.xpose.msra.mxu0 %v1654_v5  ;;  %10472 = vmatprep.mubr.msk.bf16.mxu0 %vm12287_vm2, %v17107_v33  ;;  %v13117_v5 = vpack.c.bf16 %v11405_v10, %v11404_v56  ;;  %v11419_v10 = vunpack.i.l.bf16 %v13021_v49  ;;  %v13131_v56 = vpack.c.bf16 %v11410_v6, %v11409_v22 }
 0x1c8   :  { %4098 = vrot.lane.b32.xlu1 %v13085_v8, %s12288_s18  ;;  %10482 = vmatprep.subr.bf16.mxu0 %v17107_v33 }
 0x1c9   :  { %2448 = vrot.lane.b32.xlu0 %v13092_v54, %s12288_s18  ;;  %v13103_v16 = vpop.permute.xlu0 %6034  ;;  %17132 = vst [vmem:[#allocation59_spill] sm:$0xff] %v13117_v5  ;;  %17133 = vst [vmem:[#allocation60_spill] sm:$0xff] %v13131_v56 }
 0x1ca   :  { %17130 = vst [vmem:[#allocation57_spill] sm:$0xff] %v13103_v16  ;;  %v13105_v42 = vpop.permute.xlu1 %11442 }
 0x1cc   :  { %6833 = vrot.lane.b32.xlu1 %v13017_v2, %s12289_s19 }
 0x1cd   :  { %3148 = vrot.lane.b32.xlu0 %v13107_v17, %s12288_s18  ;;  %v11448_v27 = vpop.permute.xlu0 %11447 }
 0x1ce   :  { %v1799_v14 = vpop.permute.xlu1 %1798  ;;  %10473 = vmatmul.mubr.msk.bf16.vlgmr.msra.gmra.mxu0 %vm1149_vm3, %v12694_v45  ;;  %v11420_v45 = vunpack.i.h.bf16 %v13021_v49  ;;  %v11424_v49 = vunpack.i.l.bf16 %v13042_v31 }
 0x1cf   :  { %v1804_v16 = vsel %vm1149_vm3, %v1799_v14, 0  ;;  %10484 = vmatprep.mubr.msk.bf16.mxu0 %vm12287_vm2, %v17107_v33  ;;  %v11415_v14 = vunpack.i.h.bf16 %v13000_v53 }
 0x1d0   :  { %6692 = vrot.lane.b32.xlu1 %v13075_v58, %s12289_s19  ;;  %10489 = vmatpush3.bf16.xpose.msra.mxu1 %v1804_v16  ;;  %v13139_v3 = vpack.c.bf16 %v11420_v45, %v11419_v10  ;;  %v13156_v31 = vpack.c.bf16 %v11425_v47, %v11424_v49  ;;  %v11429_v45 = vunpack.i.l.bf16 %v13056_v59  ;;  %v11434_v47 = vunpack.i.l.bf16 %v13073_v37 }
 0x1d1   :  { %3248 = vrot.lane.b32.xlu0 %v13117_v5, %s12288_s18  ;;  %v11453_v0 = vpop.permute.xlu0 %11452  ;;  %10500 = vmatprep.subr.bf16.mxu1 %v17107_v33  ;;  %v13145_v6 = vpack.c.bf16 %v11415_v14, %v11414_v62  ;;  %v11430_v62 = vunpack.i.h.bf16 %v13056_v59  ;;  %v11450_v49 = vunpack.i.h.bf16 %v11448_v27 }
 0x1d2   :  { %v1899_v25 = vpop.permute.xlu1 %1898 }
 0x1d3   :  { %17135 = vst [vmem:[#allocation62_spill] sm:$0xff] %v13145_v6  ;;  %v1904_v22 = vsel %vm1149_vm3, %v1899_v25, 0  ;;  %v11435_v25 = vunpack.i.h.bf16 %v13073_v37 }
 0x1d4   :  { %6786 = vrot.lane.b32.xlu1 %v13092_v54, %s12289_s19 }
 0x1d5   :  { %3948 = vrot.lane.b32.xlu0 %v13131_v56, %s12288_s18  ;;  %v11458_v16 = vpop.permute.xlu0 %11457  ;;  %v13178_v37 = vpack.c.bf16 %v11435_v25, %v11434_v47  ;;  %v11445_v47 = vunpack.i.h.bf16 %v13105_v42 }
 0x1d6   :  { %v13143_v46 = vpop.permute.xlu1 %6269 }
 0x1d7   :  { %17134 = vst [vmem:[#allocation61_spill] sm:$0xff] %v13143_v46  ;;  %10491 = vmatmul.mubr.msk.bf16.vlgmr.msra.gmra.mxu1 %vm1149_vm3, %v12725_v13  ;;  %v13165_v13 = vpack.c.bf16 %v11430_v62, %v11429_v45  ;;  %17137 = vst [vmem:[#allocation64_spill] sm:$0xff] %v13178_v37  ;;  %v11439_v62 = vunpack.i.l.bf16 %v13088_v50 }
 0x1d8   :  { %2598 = vrot.lane.b32.xlu1 %v13139_v3, %s12288_s18  ;;  %10501 = vmatpush3.bf16.xpose.msra.mxu1 %v1904_v22  ;;  %v11449_v22 = vunpack.i.l.bf16 %v11448_v27  ;;  %v11440_v27 = vunpack.i.h.bf16 %v13088_v50  ;;  %v11444_v50 = vunpack.i.l.bf16 %v13105_v42 }
 0x1d9   :  { %4048 = vrot.lane.b32.xlu0 %v13145_v6, %s12288_s18  ;;  %v11463_v53 = vpop.permute.xlu0 %11462  ;;  %10502 = vmatprep.mubr.msk.bf16.mxu1 %vm12287_vm2, %v17107_v33  ;;  %17136 = vst [vmem:[#allocation63_spill] sm:$0xff] %v13165_v13 }
 0x1da   :  { %v1999_v10 = vpop.permute.xlu1 %1998  ;;  %10512 = vmatprep.subr.bf16.mxu1 %v17107_v33  ;;  %v13191_v25 = vpack.c.bf16 %v11440_v27, %v11439_v62  ;;  %v13210_v42 = vpack.c.bf16 %v11445_v47, %v11444_v50  ;;  %v11465_v27 = vunpack.i.h.bf16 %v11463_v53 }
 0x1db   :  { %v2004_v59 = vsel %vm1149_vm3, %v1999_v10, 0  ;;  %v11455_v10 = vunpack.i.h.bf16 %v11453_v0 }
 0x1dc   :  { %2698 = vrot.lane.b32.xlu1 %v13156_v31, %s12288_s18  ;;  %17138 = vst [vmem:[#allocation65_spill] sm:$0xff] %v13191_v25  ;;  %17140 = vst [vmem:[#allocation67_spill] sm:$0xff] %v13210_v42 }
 0x1dd   :  { %6927 = vrot.lane.b32.xlu0 %v13139_v3, %s12289_s19 }
 0x1de   :  { %v2099_v14 = vpop.permute.xlu1 %2098 }
 0x1df   :  { %v11468_v46 = vpop.permute.xlu0 %11467  ;;  %10503 = vmatmul.mubr.msk.bf16.vlgmr.msra.gmra.mxu1 %vm1149_vm3, %v12738_v28  ;;  %v13185_v28 = vpack.c.bf16 %v11450_v49, %v11449_v22  ;;  %v11460_v49 = vunpack.i.h.bf16 %v11458_v16  ;;  %v11459_v22 = vunpack.i.l.bf16 %v11458_v16 }
 0x1e0   :  { %3398 = vrot.lane.b32.xlu1 %v13165_v13, %s12288_s18  ;;  %10513 = vmatpush3.bf16.xpose.msra.mxu1 %v2004_v59  ;;  %v11454_v59 = vunpack.i.l.bf16 %v11453_v0  ;;  %v2104_v0 = vsel %vm1149_vm3, %v2099_v14, 0  ;;  %v11470_v50 = vunpack.i.h.bf16 %v11468_v46 }
 0x1e1   :  { %7021 = vrot.lane.b32.xlu0 %v13156_v31, %s12289_s19  ;;  %10514 = vmatprep.mubr.msk.bf16.mxu1 %vm12287_vm2, %v17107_v33  ;;  %v13215_v14 = vpack.c.bf16 %v11460_v49, %v11459_v22  ;;  %v11469_v49 = vunpack.i.l.bf16 %v11468_v46 }
 0x1e2   :  { %v13182_v45 = vpop.permute.xlu1 %2798  ;;  %10524 = vmatprep.subr.bf16.mxu1 %v17107_v33  ;;  %v13197_v57 = vpack.c.bf16 %v11455_v10, %v11454_v59 }
 0x1e3   :  { %v11473_v44 = vpop.permute.xlu0 %11472  ;;  %17141 = vst [vmem:[#allocation68_spill] sm:$0xff] %v13215_v14 }
 0x1e4   :  { %3498 = vrot.lane.b32.xlu1 %v13178_v37, %s12288_s18 }
 0x1e5   :  { %2548 = vrot.lane.b32.xlu0 %v13185_v28, %s12288_s18 }
 0x1e6   :  { %v13195_v43 = vpop.permute.xlu1 %2898 }
 0x1e7   :  { %v13200_v35 = vpop.permute.xlu0 %6175  ;;  %10515 = vmatmul.mubr.msk.bf16.vlgmr.msra.gmra.mxu1 %vm1149_vm3, %v12752_v19  ;;  %v11464_v19 = vunpack.i.l.bf16 %v11463_v53 }
 0x1e8   :  { %17139 = vst [vmem:[#allocation66_spill] sm:$0xff] %v13200_v35  ;;  %4198 = vrot.lane.b32.xlu1 %v13191_v25, %s12288_s18  ;;  %10525 = vmatpush3.bf16.xpose.msra.mxu1 %v2104_v0  ;;  %v13237_v0 = vpack.c.bf16 %v11470_v50, %v11469_v49 }
 0x1e9   :  { %2648 = vrot.lane.b32.xlu0 %v13197_v57, %s12288_s18  ;;  %10526 = vmatprep.mubr.msk.bf16.mxu1 %vm12287_vm2, %v17107_v33  ;;  %v13225_v47 = vpack.c.bf16 %v11465_v27, %v11464_v19  ;;  %v11475_v27 = vunpack.i.h.bf16 %v11473_v44  ;;  %v11474_v19 = vunpack.i.l.bf16 %v11473_v44 }
 0x1ea   :  { %v13212_v16 = vpop.permute.xlu1 %3598  ;;  %10536 = vmatprep.subr.bf16.mxu1 %v17107_v33  ;;  %17144 = vst [vmem:[#allocation71_spill] sm:$0xff] %v13237_v0 }
 0x1eb   :  { %v1749_v62 = vpop.permute.xlu0 %1748  ;;  %17142 = vst [vmem:[#allocation69_spill] sm:$0xff] %v13225_v47  ;;  %v13253_v44 = vpack.c.bf16 %v11475_v27, %v11474_v19 }
 0x1ec   :  { %v1754_v10 = vsel %vm1149_vm3, %v1749_v62, 0  ;;  %4298 = vrot.lane.b32.xlu1 %v13210_v42, %s12288_s18 }
 0x1ed   :  { %3348 = vrot.lane.b32.xlu0 %v13215_v14, %s12288_s18  ;;  %10483 = vmatpush3.bf16.xpose.msra.mxu0 %v1754_v10  ;;  %17147 = vst [vmem:[#allocation74_spill] sm:$0xff] %v13253_v44 }
 0x1ee   :  { %v13222_v59 = vpop.permute.xlu1 %3698  ;;  %10494 = vmatprep.subr.bf16.mxu0 %v17107_v33 }
 0x1ef   :  { %v1849_v22 = vpop.permute.xlu0 %1848  ;;  %10527 = vmatmul.mubr.msk.bf16.vlgmr.msra.gmra.mxu1 %vm1149_vm3, %v12758_v29 }
 0x1f0   :  { %7162 = vrot.lane.b32.xlu1 %v12904_v1, %s12289_s19  ;;  %10538 = vmatprep.mubr.msk.bf16.mxu1 %vm12287_vm2, %v17107_v33  ;;  %v1854_v62 = vsel %vm1149_vm3, %v1849_v22, 0 }
 0x1f1   :  { %3448 = vrot.lane.b32.xlu0 %v13225_v47, %s12288_s18 }
 0x1f2   :  { %v13235_v53 = vpop.permute.xlu1 %6457 }
 0x1f3   :  { %17143 = vst [vmem:[#allocation70_spill] sm:$0xff] %v13235_v53  ;;  %v13239_v46 = vpop.permute.xlu0 %6128 }
 0x1f4   :  { %17145 = vst [vmem:[#allocation72_spill] sm:$0xff] %v13239_v46  ;;  %10485 = vmatmul.mubr.msk.bf16.vlgmr.msra.gmra.mxu0 %vm1149_vm3, %v12809_v40  ;;  %6880 = vrot.lane.b32.xlu1 %v13185_v28, %s12289_s19 }
 0x1f5   :  { %4148 = vrot.lane.b32.xlu0 %v13237_v0, %s12288_s18  ;;  %10495 = vmatpush3.bf16.xpose.msra.mxu0 %v1854_v62 }
 0x1f6   :  { %v13248_v29 = vpop.permute.xlu1 %6410  ;;  %10496 = vmatprep.mubr.msk.bf16.mxu0 %vm12287_vm2, %v17107_v33  ;;  %10506 = vmatprep.subr.bf16.mxu0 %v17107_v33 }
 0x1f7   :  { %17146 = vst [vmem:[#allocation73_spill] sm:$0xff] %v13248_v29  ;;  %v13255_v10 = vpop.permute.xlu0 %6222 }
 0x1f8   :  { %17148 = vst [vmem:[#allocation75_spill] sm:$0xff] %v13255_v10  ;;  %6974 = vrot.lane.b32.xlu1 %v13197_v57, %s12289_s19 }
 0x1f9   :  { %4248 = vrot.lane.b32.xlu0 %v13253_v44, %s12288_s18 }
 0x1fa   :  { %v13261_v40 = vpop.permute.xlu1 %7068 }
 0x1fb   :  { %17149 = vst [vmem:[#allocation76_spill] sm:$0xff] %v13261_v40  ;;  %v13263_v50 = vpop.permute.xlu0 %6363 }
 0x1fc   :  { %17150 = vst [vmem:[#allocation77_spill] sm:$0xff] %v13263_v50  ;;  %10497 = vmatmul.mubr.msk.bf16.vlgmr.msra.gmra.mxu0 %vm1149_vm3, %v12823_v41 }
 0x1fd   :  { %7115 = vrot.lane.b32.xlu0 %v12774_v30, %s12289_s19  ;;  %10508 = vmatprep.mubr.msk.bf16.mxu0 %vm12287_vm2, %v17107_v33 }
 0x1fe   :  { %v2199_v49 = vpop.permute.xlu1 %2198 }
 0x1ff   :  { %v2204_v22 = vsel %vm1149_vm3, %v2199_v49, 0  ;;  %v1949_v27 = vpop.permute.xlu0 %1948 }
 0x200   :  { %v1954_v19 = vsel %vm1149_vm3, %v1949_v27, 0  ;;  %10537 = vmatpush3.bf16.xpose.msra.mxu1 %v2204_v22 }
 0x201   :  { %7209 = vrot.lane.b32.xlu0 %v12788_v38, %s12289_s19  ;;  %10507 = vmatpush3.bf16.xpose.msra.mxu0 %v1954_v19 }
 0x202   :  { %v2299_v62 = vpop.permute.xlu1 %2298  ;;  %10518 = vmatprep.subr.bf16.mxu0 %v17107_v33  ;;  %10548 = vmatprep.subr.bf16.mxu1 %v17107_v33 }
 0x203   :  { %v2049_v41 = vpop.permute.xlu0 %2048  ;;  %v2304_v29 = vsel %vm1149_vm3, %v2299_v62, 0 }
 0x204   :  { %v2054_v49 = vsel %vm1149_vm3, %v2049_v41, 0 }
 0x206   :  { %v13277_v40 = vpop.permute.xlu1 %2998 }
 0x207   :  { %v13280_v53 = vpop.permute.xlu0 %2748  ;;  %10539 = vmatmul.mubr.msk.bf16.vlgmr.msra.gmra.mxu1 %vm1149_vm3, %v12861_v9 }
 0x208   :  { %10509 = vmatmul.mubr.msk.bf16.vlgmr.msra.gmra.mxu0 %vm1149_vm3, %v12864_v48  ;;  %10549 = vmatpush3.bf16.xpose.msra.mxu1 %v2304_v29 }
 0x209   :  { %10519 = vmatpush3.bf16.xpose.msra.mxu0 %v2054_v49  ;;  %10550 = vmatprep.mubr.msk.bf16.mxu1 %vm12287_vm2, %v17107_v33 }
 0x20a   :  { %v13289_v22 = vpop.permute.xlu1 %3098  ;;  %10520 = vmatprep.mubr.msk.bf16.mxu0 %vm12287_vm2, %v17107_v33  ;;  %10530 = vmatprep.subr.bf16.mxu0 %v17107_v33 }
 0x20b   :  { %v13294_v27 = vpop.permute.xlu0 %2848  ;;  %10560 = vmatprep.subr.bf16.mxu1 %v17107_v33 }
 0x20e   :  { %v13297_v9 = vpop.permute.xlu1 %3798 }
 0x20f   :  { %v13299_v19 = vpop.permute.xlu0 %3548  ;;  %10551 = vmatmul.mubr.msk.bf16.vlgmr.msra.gmra.mxu1 %vm1149_vm3, %v12873_v32 }
 0x210   :  { %10521 = vmatmul.mubr.msk.bf16.vlgmr.msra.gmra.mxu0 %vm1149_vm3, %v12843_v36  ;;  %10562 = vmatprep.mubr.msk.bf16.mxu1 %vm12287_vm2, %v17107_v33 }
 0x211   :  { %10532 = vmatprep.mubr.msk.bf16.mxu0 %vm12287_vm2, %v17107_v33 }
 0x212   :  { %v13309_v48 = vpop.permute.xlu1 %3898 }
 0x213   :  { %v13311_v29 = vpop.permute.xlu0 %3648 }
 0x216   :  { %v13313_v62 = vpop.permute.xlu1 %6551 }
 0x217   :  { %17151 = vst [vmem:[#allocation78_spill] sm:$0xff] %v13313_v62  ;;  %v13315_v41 = vpop.permute.xlu0 %6316 }
 0x218   :  { %17152 = vst [vmem:[#allocation79_spill] sm:$0xff] %v13315_v41 }
 0x21a   :  { %v13317_v49 = vpop.permute.xlu1 %6645 }
 0x21b   :  { %17153 = vst [vmem:[#allocation80_spill] sm:$0xff] %v13317_v49  ;;  %v2149_v32 = vpop.permute.xlu0 %2148 }
 0x21c   :  { %v2154_v50 = vsel %vm1149_vm3, %v2149_v32, 0 }
 0x21d   :  { %10531 = vmatpush3.bf16.xpose.msra.mxu0 %v2154_v50 }
 0x21e   :  { %v13320_v36 = vpop.permute.xlu1 %6504  ;;  %10542 = vmatprep.subr.bf16.mxu0 %v17107_v33 }
 0x21f   :  { %17154 = vst [vmem:[#allocation81_spill] sm:$0xff] %v13320_v36  ;;  %v2249_v10 = vpop.permute.xlu0 %2248 }
 0x220   :  { %v2254_v44 = vsel %vm1149_vm3, %v2249_v10, 0 }
 0x222   :  { %v13323_v46 = vpop.permute.xlu1 %6598 }
 0x223   :  { %17155 = vst [vmem:[#allocation82_spill] sm:$0xff] %v13323_v46  ;;  %v13325_v35 = vpop.permute.xlu0 %2948  ;;  %v13339_v46 = vld [vmem:[%s16885_s1 + $0x10] sm:$0xff] }
 0x224   :  { %10533 = vmatmul.mubr.msk.bf16.vlgmr.msra.gmra.mxu0 %vm1149_vm3, %v12965_v52 }
 0x225   :  { %10543 = vmatpush3.bf16.xpose.msra.mxu0 %v2254_v44  ;;  %10544 = vmatprep.mubr.msk.bf16.mxu0 %vm12287_vm2, %v17107_v33 }
 0x226   :  { %v2399_v32 = vpop.permute.xlu1 %2398  ;;  %10554 = vmatprep.subr.bf16.mxu0 %v17107_v33 }
 0x227   :  { %v2404_v50 = vsel %vm1149_vm3, %v2399_v32, 0  ;;  %v13334_v49 = vpop.permute.xlu0 %3048 }
 0x228   :  { %10561 = vmatpush3.bf16.xpose.msra.mxu1 %v2404_v50 }
 0x229   :  { %10572 = vmatprep.subr.bf16.mxu1 %v17107_v33 }
 0x22a   :  { %v2499_v52 = vpop.permute.xlu1 %2498 }
 0x22b   :  { %v13342_v44 = vpop.permute.xlu0 %3748  ;;  %v1240_v10 = vpop.f32.mrf.mxu1  ;;  %v2504_v41 = vsel %vm1149_vm3, %v2499_v52, 0  ;;  %v13371_v52 = vld [vmem:[%s16885_s1 + $0x18] sm:$0xff] }
 0x22c   :  { %v13345_v36 = vadd.f32 %v1240_v10, %v13339_v46  ;;  %10545 = vmatmul.mubr.msk.bf16.vlgmr.msra.gmra.mxu0 %vm1149_vm3, %v12979_v20  ;;  %v13363_v20 = vld [vmem:[%s16885_s1] sm:$0xff] }
 0x22d   :  { %v10420_v32 = vpop.f32.mrf.mxu1  ;;  %10556 = vmatprep.mubr.msk.bf16.mxu0 %vm12287_vm2, %v17107_v33 }
 0x22e   :  { %17156 = vst [vmem:[#allocation83_spill] sm:$0xff] %v13345_v36  ;;  %v13351_v50 = vpop.permute.xlu1 %3198  ;;  %v4354_v62 = vsel %vm4347_vm4, %v13345_v36, -inf }
 0x22f   :  { %v13356_v0 = vpop.permute.xlu0 %3848  ;;  %v1243_v42 = vpop.f32.mrf.mxu1  ;;  %10563 = vmatmul.mubr.msk.bf16.vlgmr.msra.gmra.mxu1 %vm1149_vm3, %v13003_v63  ;;  %4355 = vmax.xlane.f32.xlu0 %v4354_v62 }
 0x230   :  { %17157 = vst [vmem:[#allocation84_spill] sm:$0xff] %v13356_v0  ;;  %10573 = vmatpush3.bf16.xpose.msra.mxu1 %v2504_v41  ;;  %10574 = vmatprep.mubr.msk.bf16.mxu1 %vm12287_vm2, %v17107_v33  ;;  %v13386_v56 = vadd.f32 %v1243_v42, %v13371_v52 }
 0x231   :  { %v10421_v10 = vpop.f32.mrf.mxu1  ;;  %10584 = vmatprep.subr.bf16.mxu1 %v17107_v33 }
 0x232   :  { %v13373_v32 = vpop.permute.xlu1 %3298  ;;  %v1190_v63 = vpop.f32.mrf.mxu0  ;;  %v13383_v10 = vld [vmem:[%s16885_s1 + $0x8] sm:$0xff]  ;;  %17160 = vst [vmem:[#allocation87_spill] sm:$0xff] %v13386_v56 }
 0x233   :  { %v13375_v62 = vpop.permute.xlu0 %6739  ;;  %v13378_v41 = vadd.f32 %v1190_v63, %v13363_v20  ;;  %v1340_v6 = vpop.f32.mrf.mxu1 }
 0x234   :  { %17158 = vst [vmem:[#allocation85_spill] sm:$0xff] %v13375_v62  ;;  %v10414_v25 = vpop.f32.mrf.mxu0 }
 0x235   :  { %17159 = vst [vmem:[#allocation86_spill] sm:$0xff] %v13378_v41  ;;  %v10432_v8 = vpop.f32.mrf.mxu1  ;;  %v4348_v36 = vsel %vm4347_vm4, %v13378_v41, -inf }
 0x236   :  { %v13390_v34 = vpop.permute.xlu1 %3998  ;;  %v1193_v62 = vpop.f32.mrf.mxu0  ;;  %4349 = vmax.xlane.f32.xlu0 %v4348_v36  ;;  %v13401_v8 = vadd.f32 %v1340_v6, %v13339_v46 }
 0x237   :  { %v2349_v63 = vpop.permute.xlu0 %2348  ;;  %v13393_v26 = vadd.f32 %v1193_v62, %v13383_v10  ;;  %v1343_v25 = vpop.f32.mrf.mxu1  ;;  %10575 = vmatmul.mubr.msk.bf16.vlgmr.msra.gmra.mxu1 %vm1149_vm3, %v13017_v2  ;;  %v4357_v2 = vsel %vm4347_vm4, %v13386_v56, -inf }
 0x238   :  { %v2354_v4 = vsel %vm1149_vm3, %v2349_v63, 0  ;;  %v10415_v42 = vpop.f32.mrf.mxu0  ;;  %10586 = vmatprep.mubr.msk.bf16.mxu1 %vm12287_vm2, %v17107_v33  ;;  %v13404_v41 = vadd.f32 %v1343_v25, %v13371_v52 }
 0x239   :  { %17161 = vst [vmem:[#allocation88_spill] sm:$0xff] %v13393_v26  ;;  %10555 = vmatpush3.bf16.xpose.msra.mxu0 %v2354_v4  ;;  %v10433_v36 = vpop.f32.mrf.mxu1  ;;  %v4351_v62 = vsel %vm4347_vm4, %v13393_v26, -inf  ;;  %v4366_v4 = vsel %vm4347_vm4, %v13401_v8, -inf }
 0x23a   :  { %17162 = vst [vmem:[#allocation89_spill] sm:$0xff] %v13404_v41  ;;  %v13410_v0 = vpop.permute.xlu1 %4098  ;;  %4352 = vmax.xlane.f32.xlu1 %v4351_v62  ;;  %v1290_v63 = vpop.f32.mrf.mxu0  ;;  %4358 = vmax.xlane.f32.xlu0 %v4357_v2  ;;  %v4369_v36 = vsel %vm4347_vm4, %v13404_v41, -inf }
 0x23b   :  { %v2449_v42 = vpop.permute.xlu0 %2448  ;;  %10566 = vmatprep.subr.bf16.mxu0 %v17107_v33  ;;  %v13414_v25 = vadd.f32 %v1290_v63, %v13363_v20 }
 0x23c   :  { %v10426_v6 = vpop.f32.mrf.mxu0 }
 0x23d   :  { %17163 = vst [vmem:[#allocation90_spill] sm:$0xff] %v13414_v25  ;;  %v2454_v6 = vsel %vm1149_vm3, %v2449_v42, 0  ;;  %v4360_v41 = vsel %vm4347_vm4, %v13414_v25, -inf }
 0x23e   :  { %v13420_v26 = vpop.permute.xlu1 %6833  ;;  %4367 = vmax.xlane.f32.xlu1 %v4366_v4  ;;  %v1293_v56 = vpop.f32.mrf.mxu0  ;;  %4370 = vmax.xlane.f32.xlu0 %v4369_v36 }
 0x23f   :  { %17164 = vst [vmem:[#allocation91_spill] sm:$0xff] %v13420_v26  ;;  %v13422_v62 = vpop.permute.xlu0 %3148  ;;  %v13425_v2 = vadd.f32 %v1293_v56, %v13383_v10 }
 0x240   :  { %10557 = vmatmul.mubr.msk.bf16.vlgmr.msra.gmra.mxu0 %vm1149_vm3, %v13075_v58  ;;  %v10427_v63 = vpop.f32.mrf.mxu0 }
 0x241   :  { %17165 = vst [vmem:[#allocation92_spill] sm:$0xff] %v13425_v2  ;;  %10567 = vmatpush3.bf16.xpose.msra.mxu0 %v2454_v6  ;;  %v4363_v4 = vsel %vm4347_vm4, %v13425_v2, -inf  ;;  %10568 = vmatprep.mubr.msk.bf16.mxu0 %vm12287_vm2, %v17107_v33 }
 0x242   :  { %v13436_v36 = vpop.permute.xlu1 %6692  ;;  %4361 = vmax.xlane.f32.xlu1 %v4360_v41  ;;  %4364 = vmax.xlane.f32.xlu0 %v4363_v4 }
 0x243   :  { %17166 = vst [vmem:[#allocation93_spill] sm:$0xff] %v13436_v36  ;;  %v13438_v56 = vpop.permute.xlu0 %3248  ;;  %10578 = vmatprep.subr.bf16.mxu0 %v17107_v33 }
 0x246   :  { %v13441_v58 = vpop.permute.xlu1 %6786 }
 0x247   :  { %17167 = vst [vmem:[#allocation94_spill] sm:$0xff] %v13441_v58  ;;  %v13443_v42 = vpop.permute.xlu0 %3948 }
 0x248   :  { %10569 = vmatmul.mubr.msk.bf16.vlgmr.msra.gmra.mxu0 %vm1149_vm3, %v13092_v54 }
 0x249   :  { %10580 = vmatprep.mubr.msk.bf16.mxu0 %vm12287_vm2, %v17107_v33 }
 0x24a   :  { %v2599_v6 = vpop.permute.xlu1 %2598 }
 0x24b   :  { %v2604_v63 = vsel %vm1149_vm3, %v2599_v6, 0  ;;  %v13450_v26 = vpop.permute.xlu0 %4048 }
 0x24c   :  { %10585 = vmatpush3.bf16.xpose.msra.mxu1 %v2604_v63 }
 0x24d   :  { %10596 = vmatprep.subr.bf16.mxu1 %v17107_v33 }
 0x24e   :  { %v2699_v4 = vpop.permute.xlu1 %2698 }
 0x24f   :  { %v13453_v41 = vpop.permute.xlu0 %6927  ;;  %v2704_v58 = vsel %vm1149_vm3, %v2699_v4, 0 }
 0x250   :  { %17168 = vst [vmem:[#allocation95_spill] sm:$0xff] %v13453_v41 }
 0x253   :  { %v13456_v36 = vpop.permute.xlu0 %7021  ;;  %v1440_v2 = vpop.f32.mrf.mxu1  ;;  %10587 = vmatmul.mubr.msk.bf16.vlgmr.msra.gmra.mxu1 %vm1149_vm3, %v13139_v3 }
 0x254   :  { %17169 = vst [vmem:[#allocation96_spill] sm:$0xff] %v13456_v36  ;;  %v13461_v54 = vadd.f32 %v1440_v2, %v13339_v46  ;;  %10597 = vmatpush3.bf16.xpose.msra.mxu1 %v2704_v58  ;;  %10598 = vmatprep.mubr.msk.bf16.mxu1 %vm12287_vm2, %v17107_v33 }
 0x255   :  { %v10444_v6 = vpop.f32.mrf.mxu1  ;;  %10608 = vmatprep.subr.bf16.mxu1 %v17107_v33 }
 0x256   :  { %v4378_v63 = vsel %vm4347_vm4, %v13461_v54, -inf  ;;  %v2804_v6 = vsel %vm1149_vm3, %v13182_v45, 0 }
 0x257   :  { %v2549_v4 = vpop.permute.xlu0 %2548  ;;  %v1443_v41 = vpop.f32.mrf.mxu1  ;;  %4379 = vmax.xlane.f32.xlu1 %v4378_v63 }
 0x258   :  { %v2554_v36 = vsel %vm1149_vm3, %v2549_v4, 0  ;;  %v13470_v3 = vadd.f32 %v1443_v41, %v13371_v52 }
 0x259   :  { %10579 = vmatpush3.bf16.xpose.msra.mxu0 %v2554_v36  ;;  %v10445_v2 = vpop.f32.mrf.mxu1 }
 0x25a   :  { %v4381_v58 = vsel %vm4347_vm4, %v13470_v3, -inf  ;;  %10590 = vmatprep.subr.bf16.mxu0 %v17107_v33 }
 0x25b   :  { %v1540_v25 = vpop.f32.mrf.mxu1  ;;  %10599 = vmatmul.mubr.msk.bf16.vlgmr.msra.gmra.mxu1 %vm1149_vm3, %v13156_v31  ;;  %4382 = vmax.xlane.f32.xlu0 %v4381_v58  ;;  %v2649_v41 = vpop.permute.xlu0 %2648 }
 0x25c   :  { %10609 = vmatpush3.bf16.xpose.msra.mxu1 %v2804_v6  ;;  %10610 = vmatprep.mubr.msk.bf16.mxu1 %vm12287_vm2, %v17107_v33  ;;  %v2654_v45 = vsel %vm1149_vm3, %v2649_v41, 0  ;;  %v13489_v58 = vadd.f32 %v1540_v25, %v13339_v46  ;;  %v2904_v41 = vsel %vm1149_vm3, %v13195_v43, 0 }
 0x25d   :  { %v10456_v36 = vpop.f32.mrf.mxu1  ;;  %10620 = vmatprep.subr.bf16.mxu1 %v17107_v33 }
 0x25e   :  { %v1390_v63 = vpop.f32.mrf.mxu0 }
 0x25f   :  { %v13483_v4 = vadd.f32 %v1390_v63, %v13363_v20  ;;  %v1543_v2 = vpop.f32.mrf.mxu1 }
 0x260   :  { %10581 = vmatmul.mubr.msk.bf16.vlgmr.msra.gmra.mxu0 %vm1149_vm3, %v13185_v28  ;;  %v10438_v31 = vpop.f32.mrf.mxu0 }
 0x261   :  { %10591 = vmatpush3.bf16.xpose.msra.mxu0 %v2654_v45  ;;  %v10457_v6 = vpop.f32.mrf.mxu1  ;;  %v4372_v36 = vsel %vm4347_vm4, %v13483_v4, -inf  ;;  %10592 = vmatprep.mubr.msk.bf16.mxu0 %vm12287_vm2, %v17107_v33  ;;  %v13506_v45 = vadd.f32 %v1543_v2, %v13371_v52  ;;  %v4390_v31 = vsel %vm4347_vm4, %v13489_v58, -inf }
 0x262   :  { %4373 = vmax.xlane.f32.xlu1 %v4372_v36  ;;  %v1393_v63 = vpop.f32.mrf.mxu0  ;;  %10602 = vmatprep.subr.bf16.mxu0 %v17107_v33  ;;  %v2754_v36 = vsel %vm1149_vm3, %v13280_v53, 0  ;;  %v3004_v53 = vsel %vm1149_vm3, %v13277_v40, 0  ;;  %v2854_v40 = vsel %vm1149_vm3, %v13294_v27, 0 }
 0x263   :  { %10611 = vmatmul.mubr.msk.bf16.vlgmr.msra.gmra.mxu1 %vm1149_vm3, %v12774_v30  ;;  %v13501_v28 = vadd.f32 %v1393_v63, %v13383_v10 }
 0x264   :  { %10621 = vmatpush3.bf16.xpose.msra.mxu1 %v2904_v41  ;;  %v10439_v25 = vpop.f32.mrf.mxu0  ;;  %10622 = vmatprep.mubr.msk.bf16.mxu1 %vm12287_vm2, %v17107_v33  ;;  %v4393_v41 = vsel %vm4347_vm4, %v13506_v45, -inf }
 0x265   :  { %v4375_v43 = vsel %vm4347_vm4, %v13501_v28, -inf  ;;  %10632 = vmatprep.subr.bf16.mxu1 %v17107_v33 }
 0x266   :  { %4391 = vmax.xlane.f32.xlu1 %v4390_v31  ;;  %v1490_v30 = vpop.f32.mrf.mxu0  ;;  %4376 = vmax.xlane.f32.xlu0 %v4375_v43 }
 0x267   :  { %v13514_v6 = vadd.f32 %v1490_v30, %v13363_v20 }
 0x268   :  { %10593 = vmatmul.mubr.msk.bf16.vlgmr.msra.gmra.mxu0 %vm1149_vm3, %v13197_v57  ;;  %v10450_v2 = vpop.f32.mrf.mxu0 }
 0x269   :  { %10603 = vmatpush3.bf16.xpose.msra.mxu0 %v2754_v36  ;;  %v4384_v63 = vsel %vm4347_vm4, %v13514_v6, -inf  ;;  %10604 = vmatprep.mubr.msk.bf16.mxu0 %vm12287_vm2, %v17107_v33  ;;  %v3204_v2 = vsel %vm1149_vm3, %v13351_v50, 0  ;;  %v3054_v50 = vsel %vm1149_vm3, %v13334_v49, 0 }
 0x26a   :  { %4385 = vmax.xlane.f32.xlu1 %v4384_v63  ;;  %v1493_v25 = vpop.f32.mrf.mxu0  ;;  %4394 = vmax.xlane.f32.xlu0 %v4393_v41 }
 0x26b   :  { %10623 = vmatmul.mubr.msk.bf16.vlgmr.msra.gmra.mxu1 %vm1149_vm3, %v12788_v38  ;;  %v13531_v57 = vadd.f32 %v1493_v25, %v13383_v10  ;;  %10614 = vmatprep.subr.bf16.mxu0 %v17107_v33  ;;  %v3104_v38 = vsel %vm1149_vm3, %v13289_v22, 0 }
 0x26c   :  { %10633 = vmatpush3.bf16.xpose.msra.mxu1 %v3004_v53  ;;  %v10451_v31 = vpop.f32.mrf.mxu0  ;;  %10634 = vmatprep.mubr.msk.bf16.mxu1 %vm12287_vm2, %v17107_v33 }
 0x26d   :  { %v4387_v43 = vsel %vm4347_vm4, %v13531_v57, -inf  ;;  %10644 = vmatprep.subr.bf16.mxu1 %v17107_v33  ;;  %v3304_v31 = vsel %vm1149_vm3, %v13373_v32, 0 }
 0x26e   :  { %4388 = vmax.xlane.f32.xlu0 %v4387_v43 }
 0x270   :  { %10605 = vmatmul.mubr.msk.bf16.vlgmr.msra.gmra.mxu0 %vm1149_vm3, %v12853_v21  ;;  %v2954_v21 = vsel %vm1149_vm3, %v13325_v35, 0 }
 0x271   :  { %10615 = vmatpush3.bf16.xpose.msra.mxu0 %v2854_v40  ;;  %10616 = vmatprep.mubr.msk.bf16.mxu0 %vm12287_vm2, %v17107_v33 }
 0x272   :  { %10626 = vmatprep.subr.bf16.mxu0 %v17107_v33 }
 0x273   :  { %10635 = vmatmul.mubr.msk.bf16.vlgmr.msra.gmra.mxu1 %vm1149_vm3, %v12883_v61 }
 0x274   :  { %10645 = vmatpush3.bf16.xpose.msra.mxu1 %v3104_v38  ;;  %10646 = vmatprep.mubr.msk.bf16.mxu1 %vm12287_vm2, %v17107_v33 }
 0x275   :  { %10656 = vmatprep.subr.bf16.mxu1 %v17107_v33 }
 0x277   :  { %v1640_v27 = vpop.f32.mrf.mxu1 }
 0x278   :  { %v13556_v30 = vadd.f32 %v1640_v27, %v13339_v46  ;;  %10617 = vmatmul.mubr.msk.bf16.vlgmr.msra.gmra.mxu0 %vm1149_vm3, %v12904_v1  ;;  %v3154_v27 = vsel %vm1149_vm3, %v13422_v62, 0 }
 0x279   :  { %10627 = vmatpush3.bf16.xpose.msra.mxu0 %v2954_v21  ;;  %v10468_v22 = vpop.f32.mrf.mxu1  ;;  %10628 = vmatprep.mubr.msk.bf16.mxu0 %vm12287_vm2, %v17107_v33  ;;  %v3399_v21 = vpop.permute.xlu1 %3398 }
 0x27a   :  { %v4402_v36 = vsel %vm4347_vm4, %v13556_v30, -inf  ;;  %10638 = vmatprep.subr.bf16.mxu0 %v17107_v33  ;;  %v3404_v62 = vsel %vm1149_vm3, %v3399_v21, 0 }
 0x27b   :  { %v1643_v35 = vpop.f32.mrf.mxu1  ;;  %10647 = vmatmul.mubr.msk.bf16.vlgmr.msra.gmra.mxu1 %vm1149_vm3, %v12899_v39  ;;  %4403 = vmax.xlane.f32.xlu1 %v4402_v36 }
 0x27c   :  { %v13570_v1 = vadd.f32 %v1643_v35, %v13371_v52  ;;  %10657 = vmatpush3.bf16.xpose.msra.mxu1 %v3204_v2  ;;  %10658 = vmatprep.mubr.msk.bf16.mxu1 %vm12287_vm2, %v17107_v33 }
 0x27d   :  { %v10469_v63 = vpop.f32.mrf.mxu1  ;;  %10668 = vmatprep.subr.bf16.mxu1 %v17107_v33 }
 0x27e   :  { %v4405_v41 = vsel %vm4347_vm4, %v13570_v1, -inf }
 0x27f   :  { %v1740_v25 = vpop.f32.mrf.mxu1  ;;  %4406 = vmax.xlane.f32.xlu0 %v4405_v41 }
 0x280   :  { %10629 = vmatmul.mubr.msk.bf16.vlgmr.msra.gmra.mxu0 %vm1149_vm3, %v12991_v55  ;;  %v13599_v22 = vadd.f32 %v1740_v25, %v13339_v46 }
 0x281   :  { %10639 = vmatpush3.bf16.xpose.msra.mxu0 %v3054_v50  ;;  %v10480_v53 = vpop.f32.mrf.mxu1  ;;  %10640 = vmatprep.mubr.msk.bf16.mxu0 %vm12287_vm2, %v17107_v33 }
 0x282   :  { %10650 = vmatprep.subr.bf16.mxu0 %v17107_v33  ;;  %v4414_v25 = vsel %vm4347_vm4, %v13599_v22, -inf }
 0x283   :  { %v1743_v43 = vpop.f32.mrf.mxu1  ;;  %10659 = vmatmul.mubr.msk.bf16.vlgmr.msra.gmra.mxu1 %vm1149_vm3, %v13038_v23 }
 0x284   :  { %10669 = vmatpush3.bf16.xpose.msra.mxu1 %v3304_v31  ;;  %10670 = vmatprep.mubr.msk.bf16.mxu1 %vm12287_vm2, %v17107_v33  ;;  %v13615_v41 = vadd.f32 %v1743_v43, %v13371_v52 }
 0x285   :  { %v10481_v49 = vpop.f32.mrf.mxu1  ;;  %10680 = vmatprep.subr.bf16.mxu1 %v17107_v33 }
 0x286   :  { %v1590_v40 = vpop.f32.mrf.mxu0  ;;  %v3254_v49 = vsel %vm1149_vm3, %v13438_v56, 0  ;;  %v4417_v21 = vsel %vm4347_vm4, %v13615_v41, -inf }
 0x287   :  { %v13592_v38 = vadd.f32 %v1590_v40, %v13363_v20  ;;  %v3499_v40 = vpop.permute.xlu1 %3498 }
 0x288   :  { %10641 = vmatmul.mubr.msk.bf16.vlgmr.msra.gmra.mxu0 %vm1149_vm3, %v13007_v60  ;;  %v10462_v32 = vpop.f32.mrf.mxu0  ;;  %v3504_v56 = vsel %vm1149_vm3, %v3499_v40, 0 }
 0x289   :  { %10651 = vmatpush3.bf16.xpose.msra.mxu0 %v3154_v27  ;;  %v4396_v36 = vsel %vm4347_vm4, %v13592_v38, -inf  ;;  %10652 = vmatprep.mubr.msk.bf16.mxu0 %vm12287_vm2, %v17107_v33 }
 0x28a   :  { %4397 = vmax.xlane.f32.xlu1 %v4396_v36  ;;  %v1593_v2 = vpop.f32.mrf.mxu0  ;;  %10662 = vmatprep.subr.bf16.mxu0 %v17107_v33 }
 0x28b   :  { %10671 = vmatmul.mubr.msk.bf16.vlgmr.msra.gmra.mxu1 %vm1149_vm3, %v13051_v51  ;;  %v13610_v35 = vadd.f32 %v1593_v2, %v13383_v10  ;;  %v17178_v51 = vld [vmem:[#allocation87_spill] sm:$0xff] }
 0x28c   :  { %10681 = vmatpush3.bf16.xpose.msra.mxu1 %v3404_v62  ;;  %v10463_v63 = vpop.f32.mrf.mxu0  ;;  %10682 = vmatprep.mubr.msk.bf16.mxu1 %vm12287_vm2, %v17107_v33  ;;  %v3349_v62 = vpop.permute.xlu0 %3348 }
 0x28d   :  { %v4399_v50 = vsel %vm4347_vm4, %v13610_v35, -inf  ;;  %10692 = vmatprep.subr.bf16.mxu1 %v17107_v33 }
 0x28e   :  { %4415 = vmax.xlane.f32.xlu1 %v4414_v25  ;;  %v1690_v53 = vpop.f32.mrf.mxu0  ;;  %4400 = vmax.xlane.f32.xlu0 %v4399_v50  ;;  %v3354_v50 = vsel %vm1149_vm3, %v3349_v62, 0 }
 0x28f   :  { %v13623_v31 = vadd.f32 %v1690_v53, %v13363_v20 }
 0x290   :  { %10653 = vmatmul.mubr.msk.bf16.vlgmr.msra.gmra.mxu0 %vm1149_vm3, %v13107_v17  ;;  %v10474_v43 = vpop.f32.mrf.mxu0 }
 0x291   :  { %10663 = vmatpush3.bf16.xpose.msra.mxu0 %v3254_v49  ;;  %v4408_v27 = vsel %vm4347_vm4, %v13623_v31, -inf  ;;  %10664 = vmatprep.mubr.msk.bf16.mxu0 %vm12287_vm2, %v17107_v33  ;;  %v3604_v43 = vsel %vm1149_vm3, %v13212_v16, 0 }
 0x292   :  { %4409 = vmax.xlane.f32.xlu1 %v4408_v27  ;;  %v1693_v32 = vpop.f32.mrf.mxu0  ;;  %4418 = vmax.xlane.f32.xlu0 %v4417_v21 }
 0x293   :  { %10683 = vmatmul.mubr.msk.bf16.vlgmr.msra.gmra.mxu1 %vm1149_vm3, %v13165_v13  ;;  %v13639_v36 = vadd.f32 %v1693_v32, %v13383_v10  ;;  %10674 = vmatprep.subr.bf16.mxu0 %v17107_v33  ;;  %v3449_v32 = vpop.permute.xlu0 %3448 }
 0x294   :  { %10693 = vmatpush3.bf16.xpose.msra.mxu1 %v3504_v56  ;;  %v10475_v2 = vpop.f32.mrf.mxu0  ;;  %10694 = vmatprep.mubr.msk.bf16.mxu1 %vm12287_vm2, %v17107_v33  ;;  %v3454_v62 = vsel %vm1149_vm3, %v3449_v32, 0  ;;  %v3804_v32 = vsel %vm1149_vm3, %v13297_v9, 0  ;;  %v3654_v9 = vsel %vm1149_vm3, %v13311_v29, 0 }
 0x295   :  { %v4411_v63 = vsel %vm4347_vm4, %v13639_v36, -inf  ;;  %10704 = vmatprep.subr.bf16.mxu1 %v17107_v33 }
 0x296   :  { %4412 = vmax.xlane.f32.xlu0 %v4411_v63 }
 0x297   :  { %v1840_v25 = vpop.f32.mrf.mxu1 }
 0x298   :  { %v13649_v53 = vadd.f32 %v1840_v25, %v13339_v46  ;;  %10665 = vmatmul.mubr.msk.bf16.vlgmr.msra.gmra.mxu0 %vm1149_vm3, %v13117_v5  ;;  %v3704_v25 = vsel %vm1149_vm3, %v13222_v59, 0 }
 0x299   :  { %10675 = vmatpush3.bf16.xpose.msra.mxu0 %v3354_v50  ;;  %v10492_v49 = vpop.f32.mrf.mxu1  ;;  %10676 = vmatprep.mubr.msk.bf16.mxu0 %vm12287_vm2, %v17107_v33 }
 0x29a   :  { %v4426_v40 = vsel %vm4347_vm4, %v13649_v53, -inf  ;;  %10686 = vmatprep.subr.bf16.mxu0 %v17107_v33 }
 0x29b   :  { %v1843_v27 = vpop.f32.mrf.mxu1  ;;  %10695 = vmatmul.mubr.msk.bf16.vlgmr.msra.gmra.mxu1 %vm1149_vm3, %v13178_v37  ;;  %4427 = vmax.xlane.f32.xlu1 %v4426_v40  ;;  %v13683_v40 = vpop.permute.xlu0 %4148  ;;  %v17174_v37 = vld [vmem:[#allocation49_spill] sm:$0xff] }
 0x29c   :  { %v13663_v21 = vadd.f32 %v1843_v27, %v13371_v52  ;;  %10705 = vmatpush3.bf16.xpose.msra.mxu1 %v3604_v43  ;;  %10706 = vmatprep.mubr.msk.bf16.mxu1 %vm12287_vm2, %v17107_v33  ;;  %v3554_v27 = vsel %vm1149_vm3, %v13299_v19, 0 }
 0x29d   :  { %v10493_v56 = vpop.f32.mrf.mxu1  ;;  %10716 = vmatprep.subr.bf16.mxu1 %v17107_v33 }
 0x29e   :  { %v4429_v2 = vsel %vm4347_vm4, %v13663_v21, -inf }
 0x29f   :  { %v1940_v16 = vpop.f32.mrf.mxu1  ;;  %4430 = vmax.xlane.f32.xlu0 %v4429_v2  ;;  %v13700_v2 = vpop.permute.xlu1 %4198 }
 0x2a0   :  { %10677 = vmatmul.mubr.msk.bf16.vlgmr.msra.gmra.mxu0 %vm1149_vm3, %v13215_v14  ;;  %v13704_v19 = vpop.permute.xlu0 %4248  ;;  %v3954_v14 = vsel %vm1149_vm3, %v13443_v42, 0 }
 0x2a1   :  { %10687 = vmatpush3.bf16.xpose.msra.mxu0 %v3454_v62  ;;  %v10504_v63 = vpop.f32.mrf.mxu1  ;;  %10688 = vmatprep.mubr.msk.bf16.mxu0 %vm12287_vm2, %v17107_v33 }
 0x2a2   :  { %10698 = vmatprep.subr.bf16.mxu0 %v17107_v33 }
 0x2a3   :  { %v1943_v50 = vpop.f32.mrf.mxu1  ;;  %10707 = vmatmul.mubr.msk.bf16.vlgmr.msra.gmra.mxu1 %vm1149_vm3, %v12804_v24 }
 0x2a4   :  { %10717 = vmatpush3.bf16.xpose.msra.mxu1 %v3704_v25  ;;  %10718 = vmatprep.mubr.msk.bf16.mxu1 %vm12287_vm2, %v17107_v33 }
 0x2a5   :  { %v10505_v49 = vpop.f32.mrf.mxu1  ;;  %10728 = vmatprep.subr.bf16.mxu1 %v17107_v33 }
 0x2a6   :  { %v13715_v49 = vpop.permute.xlu1 %4298 }
 0x2a7   :  { %v13685_v43 = vpop.f32.mrf.mxu1 }
 0x2a8   :  { %10689 = vmatmul.mubr.msk.bf16.vlgmr.msra.gmra.mxu0 %vm1149_vm3, %v13225_v47 }
 0x2a9   :  { %10699 = vmatpush3.bf16.xpose.msra.mxu0 %v3554_v27  ;;  %v10516_v59 = vpop.f32.mrf.mxu1  ;;  %10700 = vmatprep.mubr.msk.bf16.mxu0 %vm12287_vm2, %v17107_v33  ;;  %v3904_v27 = vsel %vm1149_vm3, %v13309_v48, 0  ;;  %v13733_v48 = vadd.f32 %v1940_v16, %v13339_v46 }
 0x2aa   :  { %10710 = vmatprep.subr.bf16.mxu0 %v17107_v33  ;;  %v13720_v59 = vpop.permute.xlu0 %7115 }
 0x2ab   :  { %v13696_v56 = vpop.f32.mrf.mxu1  ;;  %10719 = vmatmul.mubr.msk.bf16.vlgmr.msra.gmra.mxu1 %vm1149_vm3, %v12819_v12  ;;  %17170 = vst [vmem:[#allocation97_spill] sm:$0xff] %v13720_v59 }
 0x2ac   :  { %10729 = vmatpush3.bf16.xpose.msra.mxu1 %v3804_v32  ;;  %10730 = vmatprep.mubr.msk.bf16.mxu1 %vm12287_vm2, %v17107_v33 }
 0x2ad   :  { %v10517_v62 = vpop.f32.mrf.mxu1  ;;  %10740 = vmatprep.subr.bf16.mxu1 %v17107_v33 }
 0x2af   :  { %v13707_v63 = vpop.f32.mrf.mxu1 }
 0x2b0   :  { %10701 = vmatmul.mubr.msk.bf16.vlgmr.msra.gmra.mxu0 %vm1149_vm3, %v12919_v11  ;;  %v13825_v42 = vadd.f32 %v13707_v63, %v13339_v46 }
 0x2b1   :  { %10711 = vmatpush3.bf16.xpose.msra.mxu0 %v3654_v9  ;;  %v10528_v25 = vpop.f32.mrf.mxu1  ;;  %10712 = vmatprep.mubr.msk.bf16.mxu0 %vm12287_vm2, %v17107_v33 }
 0x2b2   :  { %10722 = vmatprep.subr.bf16.mxu0 %v17107_v33 }
 0x2b3   :  { %v13722_v32 = vpop.f32.mrf.mxu1  ;;  %10731 = vmatmul.mubr.msk.bf16.vlgmr.msra.gmra.mxu1 %vm1149_vm3, %v12913_v18  ;;  %v3754_v18 = vsel %vm1149_vm3, %v13342_v44, 0  ;;  %v4438_v44 = vsel %vm4347_vm4, %v13733_v48, -inf }
 0x2b4   :  { %v1790_v29 = vpop.f32.mrf.mxu0  ;;  %10741 = vmatpush3.bf16.xpose.msra.mxu1 %v3904_v27  ;;  %10742 = vmatprep.mubr.msk.bf16.mxu1 %vm12287_vm2, %v17107_v33 }
 0x2b5   :  { %v13729_v62 = vadd.f32 %v1790_v29, %v13363_v20  ;;  %v10529_v9 = vpop.f32.mrf.mxu1  ;;  %10752 = vmatprep.subr.bf16.mxu1 %v17107_v33  ;;  %v13741_v29 = vpop.permute.xlu1 %7162 }
 0x2b6   :  { %v10486_v25 = vpop.f32.mrf.mxu0  ;;  %17171 = vst [vmem:[#allocation98_spill] sm:$0xff] %v13741_v29  ;;  %v13743_v9 = vpop.permute.xlu0 %7209 }
 0x2b7   :  { %v4420_v12 = vsel %vm4347_vm4, %v13729_v62, -inf  ;;  %17172 = vst [vmem:[#allocation99_spill] sm:$0xff] %v13743_v9 }
 0x2b8   :  { %4421 = vmax.xlane.f32.xlu1 %v4420_v12  ;;  %v1793_v27 = vpop.f32.mrf.mxu0  ;;  %10713 = vmatmul.mubr.msk.bf16.vlgmr.msra.gmra.mxu0 %vm1149_vm3, %v12940_v15  ;;  %v13752_v12 = vadd.f32 %v1943_v50, %v13371_v52 }
 0x2b9   :  { %v13746_v25 = vadd.f32 %v1793_v27, %v13383_v10  ;;  %10723 = vmatpush3.bf16.xpose.msra.mxu0 %v3754_v18  ;;  %10724 = vmatprep.mubr.msk.bf16.mxu0 %vm12287_vm2, %v17107_v33  ;;  %v4004_v18 = vsel %vm1149_vm3, %v13390_v34, 0  ;;  %v13770_v24 = vpop.permute.xlu1 %6880  ;;  %v13774_v34 = vadd.f32 %v13685_v43, %v13339_v46 }
 0x2ba   :  { %v10487_v16 = vpop.f32.mrf.mxu0  ;;  %10734 = vmatprep.subr.bf16.mxu0 %v17107_v33  ;;  %v13762_v15 = vpop.xlane.xlu0 %4355 }
 0x2bb   :  { %10743 = vmatmul.mubr.msk.bf16.vlgmr.msra.gmra.mxu1 %vm1149_vm3, %v12933_v7  ;;  %v4423_v27 = vsel %vm4347_vm4, %v13746_v25, -inf }
 0x2bc   :  { %4439 = vmax.xlane.f32.xlu1 %v4438_v44  ;;  %4424 = vmax.xlane.f32.xlu0 %v4423_v27  ;;  %v1890_v16 = vpop.f32.mrf.mxu0  ;;  %v4441_v27 = vsel %vm4347_vm4, %v13752_v12, -inf }
 0x2bd   :  { %v13765_v50 = vadd.f32 %v1890_v16, %v13363_v20  ;;  %10753 = vmatpush3.bf16.xpose.msra.mxu1 %v4004_v18  ;;  %10754 = vmatprep.mubr.msk.bf16.mxu1 %vm12287_vm2, %v17107_v33  ;;  %v17173_v16 = vld [vmem:[#allocation84_spill] sm:$0xff] }
 0x2be   :  { %v10498_v7 = vpop.f32.mrf.mxu0  ;;  %10764 = vmatprep.subr.bf16.mxu1 %v17107_v33 }
 0x2bf   :  { %v4432_v44 = vsel %vm4347_vm4, %v13765_v50, -inf  ;;  %v3854_v7 = vsel %vm1149_vm3, %v17173_v16, 0  ;;  %v13787_v43 = vpop.xlane.xlu0 %4349  ;;  %v13800_v16 = vadd.f32 %v13696_v56, %v13371_v52 }
 0x2c0   :  { %4433 = vmax.xlane.f32.xlu1 %v4432_v44  ;;  %v1893_v18 = vpop.f32.mrf.mxu0  ;;  %4442 = vmax.xlane.f32.xlu0 %v4441_v27  ;;  %v4450_v44 = vsel %vm4347_vm4, %v13774_v34, -inf }
 0x2c1   :  { %v13783_v11 = vadd.f32 %v1893_v18, %v13383_v10  ;;  %10725 = vmatmul.mubr.msk.bf16.vlgmr.msra.gmra.mxu0 %vm1149_vm3, %v17174_v37  ;;  %v4104_v18 = vsel %vm1149_vm3, %v13410_v0, 0  ;;  %v4453_v0 = vsel %vm4347_vm4, %v13800_v16, -inf }
 0x2c2   :  { %10735 = vmatpush3.bf16.xpose.msra.mxu0 %v3854_v7  ;;  %v10499_v47 = vpop.f32.mrf.mxu0  ;;  %10736 = vmatprep.mubr.msk.bf16.mxu0 %vm12287_vm2, %v17107_v33  ;;  %v17175_v7 = vld [vmem:[#allocation54_spill] sm:$0xff] }
 0x2c3   :  { %v4435_v27 = vsel %vm4347_vm4, %v13783_v11, -inf  ;;  %10746 = vmatprep.subr.bf16.mxu0 %v17107_v33  ;;  %v13804_v47 = vpop.permute.xlu1 %6974  ;;  %v4359_v37 = vpop.xlane.xlu0 %4358 }
 0x2c4   :  { %10755 = vmatmul.mubr.msk.bf16.vlgmr.msra.gmra.mxu1 %vm1149_vm3, %v17175_v7  ;;  %4451 = vmax.xlane.f32.xlu1 %v4450_v44  ;;  %17176 = vst [vmem:[#allocation84_spill] sm:$0xff] %v13804_v47  ;;  %v4735_v5 = vsub.f32 %v17178_v51, %v4359_v37  ;;  %v17179_v51 = vld [vmem:[#allocation83_spill] sm:$0xff] }
 0x2c5   :  { %4436 = vmax.xlane.f32.xlu0 %v4435_v27  ;;  %10765 = vmatpush3.bf16.xpose.msra.mxu1 %v4104_v18  ;;  %v17177_v27 = vld [vmem:[#allocation52_spill] sm:$0xff]  ;;  %v4734_v37 = vsub.f32 %v17179_v51, %v13762_v15  ;;  %v13844_v15 = vadd.f32 %v13722_v32, %v13371_v52 }
 0x2c6   :  { %10766 = vmatprep.mubr.msk.bf16.mxu1 %vm12287_vm2, %v17107_v33  ;;  %10776 = vmatprep.subr.bf16.mxu1 %v17107_v33 }
 0x2c7   :  { %v2240_v13 = vpop.f32.mrf.mxu1  ;;  %v13813_v7 = vpop.xlane.xlu1 %4352 }
 0x2c8   :  { %v1990_v56 = vpop.f32.mrf.mxu0 }
 0x2c9   :  { %4454 = vmax.xlane.f32.xlu0 %v4453_v0  ;;  %v13816_v44 = vadd.f32 %v1990_v56, %v13363_v20  ;;  %10737 = vmatmul.mubr.msk.bf16.vlgmr.msra.gmra.mxu0 %vm1149_vm3, %v17177_v27  ;;  %v10540_v18 = vpop.f32.mrf.mxu1  ;;  %v4204_v56 = vsel %vm1149_vm3, %v13700_v2, 0  ;;  %v4866_v27 = vmul.f32 1.442695, %v4735_v5 }
 0x2ca   :  { %10747 = vmatpush3.bf16.xpose.msra.mxu0 %v3954_v14  ;;  %v10510_v23 = vpop.f32.mrf.mxu0  ;;  %10748 = vmatprep.mubr.msk.bf16.mxu0 %vm12287_vm2, %v17107_v33 }
 0x2cb   :  { %v2243_v17 = vpop.f32.mrf.mxu1  ;;  %v4444_v0 = vsel %vm4347_vm4, %v13816_v44, -inf  ;;  %10758 = vmatprep.subr.bf16.mxu0 %v17107_v33  ;;  %v17180_v23 = vld [vmem:[#allocation56_spill] sm:$0xff]  ;;  %v4368_v2 = vpop.xlane.xlu1 %4367  ;;  %11758 = vpow2.f32 %v4866_v27 }
 0x2cc   :  { %10767 = vmatmul.mubr.msk.bf16.vlgmr.msra.gmra.mxu1 %vm1149_vm3, %v17180_v23  ;;  %4445 = vmax.xlane.f32.xlu1 %v4444_v0  ;;  %v1993_v14 = vpop.f32.mrf.mxu0  ;;  %v4462_v0 = vsel %vm4347_vm4, %v13825_v42, -inf  ;;  %v17181_v23 = vld [vmem:[#allocation60_spill] sm:$0xff]  ;;  %v4738_v59 = vsub.f32 %v13401_v8, %v4368_v2  ;;  %v4304_v8 = vsel %vm1149_vm3, %v13715_v49, 0 }
 0x2cd   :  { %v13837_v63 = vadd.f32 %v1993_v14, %v13383_v10  ;;  %10777 = vmatpush3.bf16.xpose.msra.mxu1 %v4204_v56  ;;  %v10541_v18 = vpop.f32.mrf.mxu1  ;;  %10778 = vmatprep.mubr.msk.bf16.mxu1 %vm12287_vm2, %v17107_v33  ;;  %v4864_v14 = vmul.f32 1.442695, %v4734_v37  ;;  %v17182_v37 = vld [vmem:[#allocation89_spill] sm:$0xff] }
 0x2ce   :  { %v10511_v29 = vpop.f32.mrf.mxu0  ;;  %10788 = vmatprep.subr.bf16.mxu1 %v17107_v33  ;;  %v4371_v18 = vpop.xlane.xlu0 %4370 }
 0x2cf   :  { %v13846_v51 = vpop.f32.mrf.mxu1  ;;  %v4447_v56 = vsel %vm4347_vm4, %v13837_v63, -inf  ;;  %v4054_v29 = vsel %vm1149_vm3, %v13450_v26, 0  ;;  %v4465_v26 = vsel %vm4347_vm4, %v13844_v15, -inf  ;;  %11760 = vpow2.f32 %v4864_v14 }
 0x2d0   :  { %4463 = vmax.xlane.f32.xlu1 %v4462_v0  ;;  %4448 = vmax.xlane.f32.xlu0 %v4447_v56  ;;  %v2090_v5 = vpop.f32.mrf.mxu0  ;;  %v4739_v0 = vsub.f32 %v17182_v37, %v4371_v18 }
 0x2d1   :  { %v13855_v32 = vadd.f32 %v2090_v5, %v13363_v20  ;;  %10749 = vmatmul.mubr.msk.bf16.vlgmr.msra.gmra.mxu0 %vm1149_vm3, %v17181_v23  ;;  %v10552_v9 = vpop.f32.mrf.mxu1  ;;  %v17234_v23 = vld [vmem:[#allocation72_spill] sm:$0xff] }
 0x2d2   :  { %10759 = vmatpush3.bf16.xpose.msra.mxu0 %v4054_v29  ;;  %v10522_v47 = vpop.f32.mrf.mxu0  ;;  %10760 = vmatprep.mubr.msk.bf16.mxu0 %vm12287_vm2, %v17107_v33  ;;  %v13873_v9 = vadd.f32 %v2240_v13, %v13339_v46  ;;  %v4872_v29 = vmul.f32 1.442695, %v4738_v59  ;;  %v17184_v13 = vld [vmem:[#allocation88_spill] sm:$0xff]  ;;  %v4874_v14 = vmul.f32 1.442695, %v4739_v0  ;;  %v4154_v59 = vsel %vm1149_vm3, %v13683_v40, 0  ;;  %v4365_v40 = vpop.xlane.xlu0 %4364 }
 0x2d3   :  { %v13863_v56 = vpop.f32.mrf.mxu1  ;;  %v4456_v5 = vsel %vm4347_vm4, %v13855_v32, -inf  ;;  %10770 = vmatprep.subr.bf16.mxu0 %v17107_v33  ;;  %v17183_v47 = vld [vmem:[#allocation65_spill] sm:$0xff]  ;;  %v4733_v49 = vsub.f32 %v17184_v13, %v13813_v7  ;;  %v4362_v7 = vpop.xlane.xlu1 %4361  ;;  %v17187_v13 = vld [vmem:[#allocation67_spill] sm:$0xff] }
 0x2d4   :  { %10779 = vmatmul.mubr.msk.bf16.vlgmr.msra.gmra.mxu1 %vm1149_vm3, %v17183_v47  ;;  %4466 = vmax.xlane.f32.xlu0 %v4465_v26  ;;  %v2093_v27 = vpop.f32.mrf.mxu0  ;;  %v13886_v26 = vadd.f32 %v2243_v17, %v13371_v52  ;;  %11762 = vpow2.f32 %v4872_v29  ;;  %v17189_v29 = vld [vmem:[#allocation90_spill] sm:$0xff] }
 0x2d5   :  { %4457 = vmax.xlane.f32.xlu1 %v4456_v5  ;;  %v13878_v2 = vadd.f32 %v2093_v27, %v13383_v10  ;;  %10789 = vmatpush3.bf16.xpose.msra.mxu1 %v4304_v8  ;;  %v10553_v18 = vpop.f32.mrf.mxu1  ;;  %v4474_v8 = vsel %vm4347_vm4, %v13873_v9, -inf  ;;  %v17185_v27 = vld [vmem:[#allocation86_spill] sm:$0xff]  ;;  %v4862_v17 = vmul.f32 1.442695, %v4733_v49  ;;  %11764 = vpow2.f32 %v4874_v14 }
 0x2d6   :  { %v10523_v37 = vpop.f32.mrf.mxu0  ;;  %10790 = vmatprep.mubr.msk.bf16.mxu1 %vm12287_vm2, %v17107_v33  ;;  %10800 = vmatprep.subr.bf16.mxu1 %v17107_v33  ;;  %v4732_v18 = vsub.f32 %v17185_v27, %v13787_v43  ;;  %v4477_v0 = vsel %vm4347_vm4, %v13886_v26, -inf  ;;  %v4736_v49 = vsub.f32 %v17189_v29, %v4362_v7 }
 0x2d7   :  { %v4459_v5 = vsel %vm4347_vm4, %v13878_v2, -inf  ;;  %v17186_v37 = vld [vmem:[#allocation62_spill] sm:$0xff]  ;;  %11766 = vpow2.f32 %v4862_v17 }
 0x2d8   :  { %4460 = vmax.xlane.f32.xlu0 %v4459_v5  ;;  %v4860_v43 = vmul.f32 1.442695, %v4732_v18  ;;  %v17188_v5 = vld [vmem:[#allocation35_spill] sm:$0xff]  ;;  %v13910_v14 = vpop.eup %11758  ;;  %v4254_v18 = vsel %vm1149_vm3, %v13704_v19, 0  ;;  %v4868_v29 = vmul.f32 1.442695, %v4736_v49 }
 0x2d9   :  { %4475 = vmax.xlane.f32.xlu1 %v4474_v8  ;;  %10761 = vmatmul.mubr.msk.bf16.vlgmr.msra.gmra.mxu0 %vm1149_vm3, %v17186_v37  ;;  %17190 = vst [vmem:[#allocation87_spill] sm:$0xff] %v13910_v14  ;;  %v17191_v8 = vld [vmem:[#allocation92_spill] sm:$0xff] }
 0x2da   :  { %10771 = vmatpush3.bf16.xpose.msra.mxu0 %v4154_v59  ;;  %10772 = vmatprep.mubr.msk.bf16.mxu0 %vm12287_vm2, %v17107_v33  ;;  %v4737_v59 = vsub.f32 %v17191_v8, %v4365_v40  ;;  %11768 = vpow2.f32 %v4860_v43 }
 0x2db   :  { %10782 = vmatprep.subr.bf16.mxu0 %v17107_v33  ;;  %11770 = vpow2.f32 %v4868_v29 }
 0x2dc   :  { %10791 = vmatmul.mubr.msk.bf16.vlgmr.msra.gmra.mxu1 %vm1149_vm3, %v17187_v13  ;;  %4478 = vmax.xlane.f32.xlu0 %v4477_v0  ;;  %v13913_v47 = vpop.eup %11760  ;;  %v17193_v0 = vld [vmem:[#allocation71_spill] sm:$0xff]  ;;  %v4870_v17 = vmul.f32 1.442695, %v4737_v59 }
 0x2dd   :  { %10801 = vmatpush3.bf16.msra.mxu1 %v17188_v5  ;;  %10802 = vmatprep.mubr.msk.bf16.mxu1 %vm12287_vm2, %v17107_v33  ;;  %17192 = vst [vmem:[#allocation83_spill] sm:$0xff] %v13913_v47  ;;  %v5501_v7 = vpack.c.bf16 %v13910_v14, %v13913_v47 }
 0x2de   :  { %10812 = vmatprep.subr.bf16.mxu1 %v17107_v33  ;;  %11772 = vpow2.f32 %v4870_v17  ;;  %v17198_v17 = vld [vmem:[#allocation36_spill] sm:$0xff] }
 0x2e0   :  { %v4380_v27 = vpop.xlane.xlu1 %4379 }
 0x2e1   :  { %10773 = vmatmul.mubr.msk.bf16.vlgmr.msra.gmra.mxu0 %vm1149_vm3, %v17193_v0  ;;  %v4742_v5 = vsub.f32 %v13461_v54, %v4380_v27  ;;  %v17194_v54 = vld [vmem:[#allocation34_spill] sm:$0xff]  ;;  %v13934_v59 = vpop.eup %11762 }
 0x2e2   :  { %10783 = vmatpush3.bf16.xpose.msra.mxu0 %v4254_v18  ;;  %10784 = vmatprep.mubr.msk.bf16.mxu0 %vm12287_vm2, %v17107_v33  ;;  %17195 = vst [vmem:[#allocation89_spill] sm:$0xff] %v13934_v59  ;;  %v13938_v18 = vadd.f32 %v13846_v51, %v13339_v46 }
 0x2e3   :  { %10794 = vmatprep.subr.bf16.mxu0 %v17107_v33  ;;  %v4880_v40 = vmul.f32 1.442695, %v4742_v5 }
 0x2e4   :  { %v2190_v8 = vpop.f32.mrf.mxu0  ;;  %10803 = vmatmul.mubr.msk.bf16.vlgmr.msra.gmra.mxu1 %vm4347_vm4, %v5501_v7  ;;  %v4383_v19 = vpop.xlane.xlu0 %4382 }
 0x2e5   :  { %v13927_v43 = vadd.f32 %v2190_v8, %v13363_v20  ;;  %10813 = vmatpush3.bf16.msra.mxu1 %v17194_v54  ;;  %v4743_v27 = vsub.f32 %v13470_v3, %v4383_v19  ;;  %10814 = vmatprep.mubr.msk.bf16.mxu1 %vm12287_vm2, %v17107_v33  ;;  %v13942_v8 = vpop.eup %11764  ;;  %11774 = vpow2.f32 %v4880_v40  ;;  %v17197_v19 = vld [vmem:[#allocation74_spill] sm:$0xff]  ;;  %v13956_v40 = vadd.f32 %v13863_v56, %v13371_v52  ;;  %v17201_v56 = vld [vmem:[#allocation40_spill] sm:$0xff] }
 0x2e6   :  { %v10534_v49 = vpop.f32.mrf.mxu0  ;;  %10824 = vmatprep.subr.bf16.mxu1 %v17107_v33  ;;  %17196 = vst [vmem:[#allocation88_spill] sm:$0xff] %v13942_v8  ;;  %v5503_v51 = vpack.c.bf16 %v13942_v8, %v13934_v59  ;;  %v13994_v59 = vld [vmem:[%s16885_s1 + $0x8] sm:$0xff] }
 0x2e7   :  { %v4882_v5 = vmul.f32 1.442695, %v4743_v27  ;;  %v4468_v7 = vsel %vm4347_vm4, %v13927_v43, -inf  ;;  %v13963_v49 = vpop.eup %11766 }
 0x2e8   :  { %4469 = vmax.xlane.f32.xlu1 %v4468_v7  ;;  %v2193_v3 = vpop.f32.mrf.mxu0  ;;  %17199 = vst [vmem:[#allocation86_spill] sm:$0xff] %v13963_v49  ;;  %v13970_v52 = vpop.eup %11768 }
 0x2e9   :  { %11776 = vpow2.f32 %v4882_v5  ;;  %v13945_v29 = vadd.f32 %v2193_v3, %v13383_v10  ;;  %10785 = vmatmul.mubr.msk.bf16.vlgmr.msra.gmra.mxu0 %vm1149_vm3, %v17197_v19  ;;  %v4486_v10 = vsel %vm4347_vm4, %v13938_v18, -inf  ;;  %17200 = vst [vmem:[#allocation35_spill] sm:$0xff] %v13970_v52 }
 0x2ea   :  { %10795 = vmatpush3.bf16.msra.mxu0 %v17198_v17  ;;  %v10535_v46 = vpop.f32.mrf.mxu0  ;;  %10796 = vmatprep.mubr.msk.bf16.mxu0 %vm12287_vm2, %v17107_v33 }
 0x2eb   :  { %v4471_v54 = vsel %vm4347_vm4, %v13945_v29, -inf  ;;  %v4374_v27 = vpop.xlane.xlu1 %4373  ;;  %10806 = vmatprep.subr.bf16.mxu0 %v17107_v33  ;;  %v5500_v46 = vpack.c.bf16 %v13963_v49, %v13970_v52  ;;  %v17202_v49 = vld [vmem:[#allocation37_spill] sm:$0xff] }
 0x2ec   :  { %4487 = vmax.xlane.f32.xlu1 %v4486_v10  ;;  %4472 = vmax.xlane.f32.xlu0 %v4471_v54  ;;  %v2290_v5 = vpop.f32.mrf.mxu0  ;;  %v4740_v7 = vsub.f32 %v13483_v4, %v4374_v27  ;;  %v4489_v4 = vsel %vm4347_vm4, %v13956_v40, -inf  ;;  %v13985_v27 = vld [vmem:[%s16885_s1 + $0x10] sm:$0xff] }
 0x2ed   :  { %v13967_v3 = vadd.f32 %v2290_v5, %v13363_v20  ;;  %10815 = vmatmul.mubr.msk.bf16.vlgmr.msra.gmra.mxu1 %vm4347_vm4, %v5503_v51 }
 0x2ee   :  { %10825 = vmatpush3.bf16.msra.mxu1 %v17201_v56  ;;  %v10546_v17 = vpop.f32.mrf.mxu0  ;;  %10826 = vmatprep.mubr.msk.bf16.mxu1 %vm12287_vm2, %v17107_v33  ;;  %v4876_v51 = vmul.f32 1.442695, %v4740_v7 }
 0x2ef   :  { %v2440_v10 = vpop.f32.mrf.mxu1  ;;  %v4480_v20 = vsel %vm4347_vm4, %v13967_v3, -inf  ;;  %v4392_v54 = vpop.xlane.xlu1 %4391  ;;  %10836 = vmatprep.subr.bf16.mxu1 %v17107_v33 }
 0x2f0   :  { %v13988_v5 = vadd.f32 %v13985_v27, %v2440_v10  ;;  %4490 = vmax.xlane.f32.xlu0 %v4489_v4  ;;  %4481 = vmax.xlane.f32.xlu1 %v4480_v20  ;;  %v2293_v56 = vpop.f32.mrf.mxu0  ;;  %v4746_v17 = vsub.f32 %v13489_v58, %v4392_v54  ;;  %v4377_v8 = vpop.xlane.xlu0 %4376  ;;  %11778 = vpow2.f32 %v4876_v51 }
 0x2f1   :  { %v13997_v7 = vadd.f32 %v13994_v59, %v2293_v56  ;;  %10797 = vmatmul.mubr.msk.bf16.vlgmr.msra.gmra.mxu0 %vm4347_vm4, %v5500_v46  ;;  %v4741_v14 = vsub.f32 %v13501_v28, %v4377_v8  ;;  %v10564_v10 = vpop.f32.mrf.mxu1  ;;  %v14006_v20 = vpop.eup %11770 }
 0x2f2   :  { %10807 = vmatpush3.bf16.msra.mxu0 %v17202_v49  ;;  %v10547_v4 = vpop.f32.mrf.mxu0  ;;  %v4498_v58 = vsel %vm4347_vm4, %v13988_v5, -inf  ;;  %10808 = vmatprep.mubr.msk.bf16.mxu0 %vm12287_vm2, %v17107_v33  ;;  %17203 = vst [vmem:[#allocation90_spill] sm:$0xff] %v14006_v20  ;;  %v14011_v28 = vpop.eup %11772  ;;  %v4888_v8 = vmul.f32 1.442695, %v4746_v17  ;;  %v14016_v49 = vld [vmem:[%s16885_s1 + $0x18] sm:$0xff] }
 0x2f3   :  { %v4878_v54 = vmul.f32 1.442695, %v4741_v14  ;;  %v2443_v47 = vpop.f32.mrf.mxu1  ;;  %v4483_v56 = vsel %vm4347_vm4, %v13997_v7, -inf  ;;  %v4386_v46 = vpop.xlane.xlu1 %4385  ;;  %10818 = vmatprep.subr.bf16.mxu0 %v17107_v33  ;;  %17204 = vst [vmem:[#allocation92_spill] sm:$0xff] %v14011_v28 }
 0x2f4   :  { %v14019_v10 = vadd.f32 %v14016_v49, %v2443_v47  ;;  %4499 = vmax.xlane.f32.xlu1 %v4498_v58  ;;  %4484 = vmax.xlane.f32.xlu0 %v4483_v56  ;;  %v4744_v14 = vsub.f32 %v13514_v6, %v4386_v46  ;;  %v4395_v4 = vpop.xlane.xlu0 %4394  ;;  %v14022_v52 = vpop.eup %11774  ;;  %v5502_v47 = vpack.c.bf16 %v14011_v28, %v14006_v20  ;;  %v17208_v28 = vld [vmem:[#allocation41_spill] sm:$0xff] }
 0x2f5   :  { %17205 = vst [vmem:[#allocation34_spill] sm:$0xff] %v14022_v52  ;;  %11780 = vpow2.f32 %v4878_v54  ;;  %v4747_v19 = vsub.f32 %v13506_v45, %v4395_v4  ;;  %v10565_v51 = vpop.f32.mrf.mxu1 }
 0x2f6   :  { %v14025_v17 = vpop.eup %11776  ;;  %v4501_v13 = vsel %vm4347_vm4, %v14019_v10, -inf  ;;  %11782 = vpow2.f32 %v4888_v8  ;;  %v4884_v46 = vmul.f32 1.442695, %v4744_v14  ;;  %v17207_v51 = vld [vmem:[#allocation42_spill] sm:$0xff] }
 0x2f7   :  { %17206 = vst [vmem:[#allocation36_spill] sm:$0xff] %v14025_v17  ;;  %v5505_v58 = vpack.c.bf16 %v14025_v17, %v14022_v52  ;;  %v4890_v56 = vmul.f32 1.442695, %v4747_v19  ;;  %v2540_v6 = vpop.f32.mrf.mxu1 }
 0x2f8   :  { %4502 = vmax.xlane.f32.xlu0 %v4501_v13  ;;  %v4389_v54 = vpop.xlane.xlu0 %4388 }
 0x2f9   :  { %11784 = vpow2.f32 %v4890_v56  ;;  %10809 = vmatmul.mubr.msk.bf16.vlgmr.msra.gmra.mxu0 %vm4347_vm4, %v5502_v47  ;;  %v4745_v45 = vsub.f32 %v13531_v57, %v4389_v54  ;;  %v10576_v4 = vpop.f32.mrf.mxu1  ;;  %10827 = vmatmul.mubr.msk.bf16.vlgmr.msra.gmra.mxu1 %vm4347_vm4, %v5505_v58 }
 0x2fa   :  { %10819 = vmatpush3.bf16.msra.mxu0 %v17207_v51  ;;  %10837 = vmatpush3.bf16.msra.mxu1 %v17208_v28  ;;  %11786 = vpow2.f32 %v4884_v46  ;;  %v14049_v28 = vld [vmem:[%s16885_s1] sm:$0xff] }
 0x2fb   :  { %v4886_v20 = vmul.f32 1.442695, %v4745_v45  ;;  %v2543_v17 = vpop.f32.mrf.mxu1  ;;  %10820 = vmatprep.mubr.msk.bf16.mxu0 %vm12287_vm2, %v17107_v33  ;;  %10830 = vmatprep.subr.bf16.mxu0 %v17107_v33 }
 0x2fc   :  { %10838 = vmatprep.mubr.msk.bf16.mxu1 %vm12287_vm2, %v17107_v33  ;;  %10848 = vmatprep.subr.bf16.mxu1 %v17107_v33 }
 0x2fd   :  { %11788 = vpow2.f32 %v4886_v20  ;;  %v10577_v57 = vpop.f32.mrf.mxu1  ;;  %v14044_v19 = vpop.eup %11778  ;;  %v14059_v20 = vadd.f32 %v13985_v27, %v2540_v6  ;;  %v17213_v6 = vld [vmem:[#allocation43_spill] sm:$0xff] }
 0x2fe   :  { %17209 = vst [vmem:[#allocation40_spill] sm:$0xff] %v14044_v19 }
 0x300   :  { %v2390_v13 = vpop.f32.mrf.mxu0 }
 0x301   :  { %v14052_v8 = vadd.f32 %v14049_v28, %v2390_v13 }
 0x302   :  { %v14054_v14 = vpop.eup %11780  ;;  %v10558_v47 = vpop.f32.mrf.mxu0 }
 0x303   :  { %17210 = vst [vmem:[#allocation37_spill] sm:$0xff] %v14054_v14  ;;  %v5504_v58 = vpack.c.bf16 %v14054_v14, %v14044_v19  ;;  %v4492_v56 = vsel %vm4347_vm4, %v14052_v8, -inf  ;;  %v14063_v45 = vpop.eup %11782  ;;  %v17216_v14 = vld [vmem:[#allocation48_spill] sm:$0xff] }
 0x304   :  { %4493 = vmax.xlane.f32.xlu1 %v4492_v56  ;;  %v2393_v46 = vpop.f32.mrf.mxu0  ;;  %v4404_v54 = vpop.xlane.xlu1 %4403  ;;  %17211 = vst [vmem:[#allocation42_spill] sm:$0xff] %v14063_v45  ;;  %v14078_v56 = vadd.f32 %v14016_v49, %v2543_v17 }
 0x305   :  { %v14066_v4 = vadd.f32 %v13994_v59, %v2393_v46  ;;  %v4750_v51 = vsub.f32 %v13556_v30, %v4404_v54  ;;  %10821 = vmatmul.mubr.msk.bf16.vlgmr.msra.gmra.mxu0 %vm4347_vm4, %v5504_v58  ;;  %v4510_v46 = vsel %vm4347_vm4, %v14059_v20, -inf }
 0x306   :  { %v14070_v57 = vpop.eup %11784  ;;  %v10559_v13 = vpop.f32.mrf.mxu0  ;;  %10831 = vmatpush3.bf16.msra.mxu0 %v17213_v6  ;;  %10832 = vmatprep.mubr.msk.bf16.mxu0 %vm12287_vm2, %v17107_v33 }
 0x307   :  { %17212 = vst [vmem:[#allocation41_spill] sm:$0xff] %v14070_v57  ;;  %v5507_v47 = vpack.c.bf16 %v14070_v57, %v14063_v45  ;;  %v4495_v30 = vsel %vm4347_vm4, %v14066_v4, -inf  ;;  %10842 = vmatprep.subr.bf16.mxu0 %v17107_v33  ;;  %v4896_v58 = vmul.f32 1.442695, %v4750_v51  ;;  %v14085_v6 = vpop.eup %11786 }
 0x308   :  { %4511 = vmax.xlane.f32.xlu1 %v4510_v46  ;;  %4496 = vmax.xlane.f32.xlu0 %v4495_v30  ;;  %v2490_v54 = vpop.f32.mrf.mxu0  ;;  %v4407_v13 = vpop.xlane.xlu0 %4406  ;;  %17214 = vst [vmem:[#allocation43_spill] sm:$0xff] %v14085_v6  ;;  %v4513_v30 = vsel %vm4347_vm4, %v14078_v56, -inf }
 0x309   :  { %v14088_v57 = vadd.f32 %v14049_v28, %v2490_v54  ;;  %v4751_v17 = vsub.f32 %v13570_v1, %v4407_v13  ;;  %10839 = vmatmul.mubr.msk.bf16.vlgmr.msra.gmra.mxu1 %vm4347_vm4, %v5507_v47  ;;  %11790 = vpow2.f32 %v4896_v58  ;;  %v17217_v54 = vld [vmem:[#allocation55_spill] sm:$0xff] }
 0x30a   :  { %v14092_v45 = vpop.eup %11788  ;;  %v10570_v52 = vpop.f32.mrf.mxu0  ;;  %10849 = vmatpush3.bf16.msra.mxu1 %v17216_v14  ;;  %10850 = vmatprep.mubr.msk.bf16.mxu1 %vm12287_vm2, %v17107_v33 }
 0x30b   :  { %17215 = vst [vmem:[#allocation100_spill] sm:$0xff] %v14092_v45  ;;  %v5506_v51 = vpack.c.bf16 %v14092_v45, %v14085_v6  ;;  %v4898_v46 = vmul.f32 1.442695, %v4751_v17  ;;  %v4504_v1 = vsel %vm4347_vm4, %v14088_v57, -inf  ;;  %10860 = vmatprep.subr.bf16.mxu1 %v17107_v33 }
 0x30c   :  { %4514 = vmax.xlane.f32.xlu0 %v4513_v30  ;;  %4505 = vmax.xlane.f32.xlu1 %v4504_v1  ;;  %v2493_v52 = vpop.f32.mrf.mxu0 }
 0x30d   :  { %11792 = vpow2.f32 %v4898_v46  ;;  %v14105_v14 = vadd.f32 %v13994_v59, %v2493_v52  ;;  %10833 = vmatmul.mubr.msk.bf16.vlgmr.msra.gmra.mxu0 %vm4347_vm4, %v5506_v51 }
 0x30e   :  { %v10571_v47 = vpop.f32.mrf.mxu0  ;;  %10843 = vmatpush3.bf16.msra.mxu0 %v17217_v54  ;;  %10844 = vmatprep.mubr.msk.bf16.mxu0 %vm12287_vm2, %v17107_v33 }
 0x30f   :  { %v4507_v13 = vsel %vm4347_vm4, %v14105_v14, -inf  ;;  %10854 = vmatprep.subr.bf16.mxu0 %v17107_v33 }
 0x310   :  { %4508 = vmax.xlane.f32.xlu0 %v4507_v13 }
 0x313   :  { %v2640_v58 = vpop.f32.mrf.mxu1  ;;  %v4398_v17 = vpop.xlane.xlu1 %4397 }
 0x314   :  { %v14115_v46 = vadd.f32 %v13985_v27, %v2640_v58  ;;  %v4748_v30 = vsub.f32 %v13592_v38, %v4398_v17 }
 0x315   :  { %v10588_v51 = vpop.f32.mrf.mxu1 }
 0x316   :  { %v4522_v1 = vsel %vm4347_vm4, %v14115_v46, -inf  ;;  %v4892_v54 = vmul.f32 1.442695, %v4748_v30  ;;  %v14124_v19 = vpop.eup %11790 }
 0x317   :  { %v2643_v52 = vpop.f32.mrf.mxu1  ;;  %4523 = vmax.xlane.f32.xlu1 %v4522_v1  ;;  %v4416_v47 = vpop.xlane.xlu1 %4415  ;;  %17218 = vst [vmem:[#allocation48_spill] sm:$0xff] %v14124_v19 }
 0x318   :  { %v14121_v45 = vadd.f32 %v14016_v49, %v2643_v52  ;;  %v4754_v13 = vsub.f32 %v13599_v22, %v4416_v47  ;;  %v4401_v6 = vpop.xlane.xlu0 %4400  ;;  %11794 = vpow2.f32 %v4892_v54 }
 0x319   :  { %v4749_v58 = vsub.f32 %v13610_v35, %v4401_v6  ;;  %v10589_v0 = vpop.f32.mrf.mxu1  ;;  %v17220_v6 = vld [vmem:[#allocation50_spill] sm:$0xff] }
 0x31a   :  { %v14127_v38 = vpop.eup %11792  ;;  %v4525_v17 = vsel %vm4347_vm4, %v14121_v45, -inf  ;;  %v4904_v22 = vmul.f32 1.442695, %v4754_v13 }
 0x31b   :  { %17219 = vst [vmem:[#allocation55_spill] sm:$0xff] %v14127_v38  ;;  %v5509_v51 = vpack.c.bf16 %v14127_v38, %v14124_v19  ;;  %v4894_v30 = vmul.f32 1.442695, %v4749_v58  ;;  %v2740_v1 = vpop.f32.mrf.mxu1  ;;  %4526 = vmax.xlane.f32.xlu0 %v4525_v17  ;;  %v4410_v52 = vpop.xlane.xlu1 %4409 }
 0x31c   :  { %v4752_v47 = vsub.f32 %v13623_v31, %v4410_v52  ;;  %v4419_v37 = vpop.xlane.xlu0 %4418 }
 0x31d   :  { %11796 = vpow2.f32 %v4894_v30  ;;  %v4755_v35 = vsub.f32 %v13615_v41, %v4419_v37  ;;  %v10600_v0 = vpop.f32.mrf.mxu1  ;;  %10851 = vmatmul.mubr.msk.bf16.vlgmr.msra.gmra.mxu1 %vm4347_vm4, %v5509_v51  ;;  %v14145_v30 = vadd.f32 %v13985_v27, %v2740_v1 }
 0x31e   :  { %10861 = vmatpush3.bf16.msra.mxu1 %v17220_v6  ;;  %10862 = vmatprep.mubr.msk.bf16.mxu1 %vm12287_vm2, %v17107_v33  ;;  %11798 = vpow2.f32 %v4904_v22  ;;  %v4900_v54 = vmul.f32 1.442695, %v4752_v47 }
 0x31f   :  { %v4906_v58 = vmul.f32 1.442695, %v4755_v35  ;;  %v2743_v38 = vpop.f32.mrf.mxu1  ;;  %10872 = vmatprep.subr.bf16.mxu1 %v17107_v33 }
 0x320   :  { %v2590_v13 = vpop.f32.mrf.mxu0  ;;  %v4413_v31 = vpop.xlane.xlu0 %4412 }
 0x321   :  { %11800 = vpow2.f32 %v4906_v58  ;;  %v14141_v17 = vadd.f32 %v14049_v28, %v2590_v13  ;;  %v4753_v41 = vsub.f32 %v13639_v36, %v4413_v31  ;;  %v10601_v37 = vpop.f32.mrf.mxu1  ;;  %v14154_v13 = vadd.f32 %v14016_v49, %v2743_v38 }
 0x322   :  { %v10582_v51 = vpop.f32.mrf.mxu0  ;;  %11802 = vpow2.f32 %v4900_v54 }
 0x323   :  { %v4902_v52 = vmul.f32 1.442695, %v4753_v41  ;;  %v2840_v35 = vpop.f32.mrf.mxu1  ;;  %v4516_v0 = vsel %vm4347_vm4, %v14141_v17, -inf  ;;  %v4534_v41 = vsel %vm4347_vm4, %v14145_v30, -inf }
 0x324   :  { %4517 = vmax.xlane.f32.xlu1 %v4516_v0  ;;  %v2593_v22 = vpop.f32.mrf.mxu0  ;;  %v4428_v47 = vpop.xlane.xlu1 %4427 }
 0x325   :  { %11804 = vpow2.f32 %v4902_v52  ;;  %v14150_v6 = vadd.f32 %v13994_v59, %v2593_v22  ;;  %v4758_v36 = vsub.f32 %v13649_v53, %v4428_v47  ;;  %v10612_v58 = vpop.f32.mrf.mxu1  ;;  %v14160_v0 = vpop.eup %11794 }
 0x326   :  { %v10583_v1 = vpop.f32.mrf.mxu0  ;;  %17221 = vst [vmem:[#allocation50_spill] sm:$0xff] %v14160_v0 }
 0x327   :  { %v2843_v31 = vpop.f32.mrf.mxu1  ;;  %v4519_v54 = vsel %vm4347_vm4, %v14150_v6, -inf  ;;  %v4912_v37 = vmul.f32 1.442695, %v4758_v36  ;;  %v4537_v1 = vsel %vm4347_vm4, %v14154_v13, -inf }
 0x328   :  { %4535 = vmax.xlane.f32.xlu1 %v4534_v41  ;;  %4520 = vmax.xlane.f32.xlu0 %v4519_v54  ;;  %v2690_v51 = vpop.f32.mrf.mxu0  ;;  %v4431_v52 = vpop.xlane.xlu0 %4430  ;;  %v14173_v41 = vadd.f32 %v13985_v27, %v2840_v35 }
 0x329   :  { %v14163_v53 = vadd.f32 %v14049_v28, %v2690_v51  ;;  %v4759_v38 = vsub.f32 %v13663_v21, %v4431_v52  ;;  %v10613_v22 = vpop.f32.mrf.mxu1  ;;  %11806 = vpow2.f32 %v4912_v37 }
 0x32a   :  { %v14166_v47 = vpop.eup %11796  ;;  %v10594_v58 = vpop.f32.mrf.mxu0  ;;  %17223 = vst [vmem:[#allocation102_spill] sm:$0xff] %v14173_v41 }
 0x32b   :  { %17222 = vst [vmem:[#allocation101_spill] sm:$0xff] %v14166_v47  ;;  %v5508_v36 = vpack.c.bf16 %v14166_v47, %v14160_v0  ;;  %v4914_v54 = vmul.f32 1.442695, %v4759_v38  ;;  %v2940_v19 = vpop.f32.mrf.mxu1  ;;  %v4528_v51 = vsel %vm4347_vm4, %v14163_v53, -inf  ;;  %v14177_v52 = vpop.eup %11798  ;;  %v17227_v47 = vld [vmem:[#allocation57_spill] sm:$0xff] }
 0x32c   :  { %4538 = vmax.xlane.f32.xlu0 %v4537_v1  ;;  %4529 = vmax.xlane.f32.xlu1 %v4528_v51  ;;  %v2693_v21 = vpop.f32.mrf.mxu0  ;;  %17224 = vst [vmem:[#allocation103_spill] sm:$0xff] %v14177_v52 }
 0x32d   :  { %11808 = vpow2.f32 %v4914_v54  ;;  %v14180_v22 = vadd.f32 %v13994_v59, %v2693_v21  ;;  %v10624_v58 = vpop.f32.mrf.mxu1  ;;  %10845 = vmatmul.mubr.msk.bf16.vlgmr.msra.gmra.mxu0 %vm4347_vm4, %v5508_v36  ;;  %v4546_v54 = vsel %vm4347_vm4, %v14173_v41, -inf }
 0x32e   :  { %v14183_v35 = vpop.eup %11800  ;;  %v10595_v38 = vpop.f32.mrf.mxu0  ;;  %10855 = vmatpush3.bf16.msra.mxu0 %v17227_v47  ;;  %10856 = vmatprep.mubr.msk.bf16.mxu0 %vm12287_vm2, %v17107_v33 }
 0x32f   :  { %17225 = vst [vmem:[#allocation104_spill] sm:$0xff] %v14180_v22  ;;  %17226 = vst [vmem:[#allocation105_spill] sm:$0xff] %v14183_v35  ;;  %v5511_v37 = vpack.c.bf16 %v14183_v35, %v14177_v52  ;;  %v2943_v1 = vpop.f32.mrf.mxu1  ;;  %v4531_v51 = vsel %vm4347_vm4, %v14180_v22, -inf  ;;  %10866 = vmatprep.subr.bf16.mxu0 %v17107_v33  ;;  %v14195_v21 = vpop.eup %11802  ;;  %v17231_v52 = vld [vmem:[#allocation66_spill] sm:$0xff] }
 0x330   :  { %4547 = vmax.xlane.f32.xlu1 %v4546_v54  ;;  %4532 = vmax.xlane.f32.xlu0 %v4531_v51  ;;  %v2790_v36 = vpop.f32.mrf.mxu0  ;;  %17228 = vst [vmem:[#allocation57_spill] sm:$0xff] %v14195_v21  ;;  %v14209_v51 = vadd.f32 %v14016_v49, %v2843_v31  ;;  %v14222_v31 = vadd.f32 %v13985_v27, %v2940_v19 }
 0x331   :  { %v14198_v47 = vadd.f32 %v14049_v28, %v2790_v36  ;;  %v10625_v58 = vpop.f32.mrf.mxu1  ;;  %10863 = vmatmul.mubr.msk.bf16.vlgmr.msra.gmra.mxu1 %vm4347_vm4, %v5511_v37 }
 0x332   :  { %v14201_v38 = vpop.eup %11804  ;;  %v10606_v35 = vpop.f32.mrf.mxu0  ;;  %10873 = vmatpush3.bf16.msra.mxu1 %v17231_v52  ;;  %10874 = vmatprep.mubr.msk.bf16.mxu1 %vm12287_vm2, %v17107_v33  ;;  %17232 = vst [vmem:[#allocation66_spill] sm:$0xff] %v14209_v51  ;;  %17235 = vst [vmem:[#allocation72_spill] sm:$0xff] %v14222_v31 }
 0x333   :  { %17229 = vst [vmem:[#allocation106_spill] sm:$0xff] %v14198_v47  ;;  %17230 = vst [vmem:[#allocation107_spill] sm:$0xff] %v14201_v38  ;;  %v5510_v54 = vpack.c.bf16 %v14201_v38, %v14195_v21  ;;  %v3040_v0 = vpop.f32.mrf.mxu1  ;;  %v4540_v36 = vsel %vm4347_vm4, %v14198_v47, -inf  ;;  %10884 = vmatprep.subr.bf16.mxu1 %v17107_v33  ;;  %v14225_v38 = vadd.f32 %v14016_v49, %v2943_v1 }
 0x334   :  { %4541 = vmax.xlane.f32.xlu1 %v4540_v36  ;;  %v2793_v37 = vpop.f32.mrf.mxu0 }
 0x335   :  { %v14215_v35 = vadd.f32 %v13994_v59, %v2793_v37  ;;  %v10636_v52 = vpop.f32.mrf.mxu1  ;;  %10857 = vmatmul.mubr.msk.bf16.vlgmr.msra.gmra.mxu0 %vm4347_vm4, %v5510_v54  ;;  %17236 = vst [vmem:[#allocation109_spill] sm:$0xff] %v14225_v38  ;;  %v4549_v37 = vsel %vm4347_vm4, %v14209_v51, -inf }
 0x336   :  { %v10607_v58 = vpop.f32.mrf.mxu0  ;;  %10867 = vmatpush3.bf16.msra.mxu0 %v17234_v23  ;;  %10868 = vmatprep.mubr.msk.bf16.mxu0 %vm12287_vm2, %v17107_v33  ;;  %v14232_v54 = vpop.eup %11806 }
 0x337   :  { %17233 = vst [vmem:[#allocation108_spill] sm:$0xff] %v14215_v35  ;;  %v3043_v36 = vpop.f32.mrf.mxu1  ;;  %v4543_v52 = vsel %vm4347_vm4, %v14215_v35, -inf  ;;  %10878 = vmatprep.subr.bf16.mxu0 %v17107_v33  ;;  %17237 = vst [vmem:[#allocation110_spill] sm:$0xff] %v14232_v54  ;;  %v4561_v35 = vsel %vm4347_vm4, %v14225_v38, -inf }
 0x338   :  { %4550 = vmax.xlane.f32.xlu1 %v4549_v37  ;;  %4544 = vmax.xlane.f32.xlu0 %v4543_v52  ;;  %v2890_v23 = vpop.f32.mrf.mxu0  ;;  %v4558_v37 = vsel %vm4347_vm4, %v14222_v31, -inf  ;;  %v14256_v38 = vadd.f32 %v14016_v49, %v3043_v36 }
 0x339   :  { %v10637_v58 = vpop.f32.mrf.mxu1  ;;  %v14239_v47 = vadd.f32 %v14049_v28, %v2890_v23  ;;  %v14253_v23 = vadd.f32 %v13985_v27, %v3040_v0 }
 0x33a   :  { %v14234_v19 = vpop.eup %11808  ;;  %v10618_v21 = vpop.f32.mrf.mxu0  ;;  %17243 = vst [vmem:[#allocation114_spill] sm:$0xff] %v14256_v38 }
 0x33b   :  { %17238 = vst [vmem:[#allocation111_spill] sm:$0xff] %v14234_v19  ;;  %v5513_v1 = vpack.c.bf16 %v14234_v19, %v14232_v54  ;;  %17239 = vst [vmem:[#allocation112_spill] sm:$0xff] %v14239_v47  ;;  %v3140_v51 = vpop.f32.mrf.mxu1  ;;  %v17241_v54 = vld [vmem:[#allocation61_spill] sm:$0xff] }
 0x33c   :  { %4562 = vmax.xlane.f32.xlu1 %v4561_v35  ;;  %4559 = vmax.xlane.f32.xlu0 %v4558_v37  ;;  %v2893_v52 = vpop.f32.mrf.mxu0  ;;  %17242 = vst [vmem:[#allocation61_spill] sm:$0xff] %v14253_v23  ;;  %v4552_v37 = vsel %vm4347_vm4, %v14239_v47, -inf  ;;  %v4573_v47 = vsel %vm4347_vm4, %v14256_v38, -inf  ;;  %v14277_v38 = vadd.f32 %v13985_v27, %v3140_v51 }
 0x33d   :  { %v14246_v58 = vadd.f32 %v13994_v59, %v2893_v52  ;;  %v10648_v21 = vpop.f32.mrf.mxu1  ;;  %10875 = vmatmul.mubr.msk.bf16.vlgmr.msra.gmra.mxu1 %vm4347_vm4, %v5513_v1 }
 0x33e   :  { %v10619_v19 = vpop.f32.mrf.mxu0  ;;  %10885 = vmatpush3.bf16.msra.mxu1 %v17241_v54  ;;  %10886 = vmatprep.mubr.msk.bf16.mxu1 %vm12287_vm2, %v17107_v33 }
 0x33f   :  { %17240 = vst [vmem:[#allocation113_spill] sm:$0xff] %v14246_v58  ;;  %v3143_v35 = vpop.f32.mrf.mxu1  ;;  %v4555_v52 = vsel %vm4347_vm4, %v14246_v58, -inf  ;;  %10896 = vmatprep.subr.bf16.mxu1 %v17107_v33  ;;  %v4570_v58 = vsel %vm4347_vm4, %v14253_v23, -inf }
 0x340   :  { %4553 = vmax.xlane.f32.xlu0 %v4552_v37  ;;  %4556 = vmax.xlane.f32.xlu1 %v4555_v52  ;;  %v2990_v54 = vpop.f32.mrf.mxu0  ;;  %v14280_v23 = vadd.f32 %v14016_v49, %v3143_v35 }
 0x341   :  { %v4422_v19 = vpop.xlane.xlu1 %4421  ;;  %v10649_v1 = vpop.f32.mrf.mxu1  ;;  %v14265_v36 = vadd.f32 %v14049_v28, %v2990_v54 }
 0x342   :  { %v4756_v0 = vsub.f32 %v13729_v62, %v4422_v19  ;;  %v10630_v21 = vpop.f32.mrf.mxu0 }
 0x343   :  { %17244 = vst [vmem:[#allocation115_spill] sm:$0xff] %v14265_v36  ;;  %v3240_v31 = vpop.f32.mrf.mxu1 }
 0x344   :  { %4574 = vmax.xlane.f32.xlu0 %v4573_v47  ;;  %4571 = vmax.xlane.f32.xlu1 %v4570_v58  ;;  %v2993_v37 = vpop.f32.mrf.mxu0  ;;  %v4908_v62 = vmul.f32 1.442695, %v4756_v0  ;;  %v4564_v47 = vsel %vm4347_vm4, %v14265_v36, -inf }
 0x345   :  { %v14272_v52 = vadd.f32 %v13994_v59, %v2993_v37  ;;  %v4440_v1 = vpop.xlane.xlu1 %4439  ;;  %v4425_v41 = vpop.xlane.xlu0 %4424 }
 0x346   :  { %v4762_v19 = vsub.f32 %v13733_v48, %v4440_v1  ;;  %v4757_v54 = vsub.f32 %v13746_v25, %v4425_v41  ;;  %v10631_v21 = vpop.f32.mrf.mxu0  ;;  %v10660_v22 = vpop.f32.mrf.mxu1  ;;  %11810 = vpow2.f32 %v4908_v62 }
 0x347   :  { %17245 = vst [vmem:[#allocation116_spill] sm:$0xff] %v14272_v52  ;;  %v4567_v58 = vsel %vm4347_vm4, %v14272_v52, -inf }
 0x348   :  { %v4910_v37 = vmul.f32 1.442695, %v4757_v54  ;;  %v3243_v0 = vpop.f32.mrf.mxu1  ;;  %4565 = vmax.xlane.f32.xlu1 %v4564_v47  ;;  %4568 = vmax.xlane.f32.xlu0 %v4567_v58  ;;  %v3090_v48 = vpop.f32.mrf.mxu0  ;;  %v4920_v22 = vmul.f32 1.442695, %v4762_v19  ;;  %v4582_v54 = vsel %vm4347_vm4, %v14277_v38, -inf  ;;  %v4585_v47 = vsel %vm4347_vm4, %v14280_v23, -inf }
 0x349   :  { %v4434_v25 = vpop.xlane.xlu1 %4433  ;;  %v4443_v41 = vpop.xlane.xlu0 %4442  ;;  %v14289_v36 = vadd.f32 %v14049_v28, %v3090_v48 }
 0x34a   :  { %v4760_v51 = vsub.f32 %v13765_v50, %v4434_v25  ;;  %v4763_v35 = vsub.f32 %v13752_v12, %v4443_v41  ;;  %v10642_v1 = vpop.f32.mrf.mxu0  ;;  %v10661_v21 = vpop.f32.mrf.mxu1  ;;  %11812 = vpow2.f32 %v4910_v37  ;;  %v14296_v50 = vadd.f32 %v13985_v27, %v3240_v31 }
 0x34b   :  { %11814 = vpow2.f32 %v4920_v22  ;;  %v14302_v37 = vadd.f32 %v14016_v49, %v3243_v0  ;;  %v4576_v31 = vsel %vm4347_vm4, %v14289_v36, -inf }
 0x34c   :  { %v4922_v58 = vmul.f32 1.442695, %v4763_v35  ;;  %v3340_v52 = vpop.f32.mrf.mxu1  ;;  %4583 = vmax.xlane.f32.xlu1 %v4582_v54  ;;  %4586 = vmax.xlane.f32.xlu0 %v4585_v47  ;;  %v3093_v62 = vpop.f32.mrf.mxu0  ;;  %17246 = vst [vmem:[#allocation117_spill] sm:$0xff] %v14296_v50  ;;  %v4916_v48 = vmul.f32 1.442695, %v4760_v51 }
 0x34d   :  { %v14299_v12 = vadd.f32 %v13994_v59, %v3093_v62  ;;  %v4452_v19 = vpop.xlane.xlu1 %4451 }
 0x34e   :  { %v4766_v25 = vsub.f32 %v13774_v34, %v4452_v19  ;;  %v4437_v41 = vpop.xlane.xlu0 %4436  ;;  %v10643_v35 = vpop.f32.mrf.mxu0  ;;  %11816 = vpow2.f32 %v4922_v58 }
 0x34f   :  { %v4761_v1 = vsub.f32 %v13783_v11, %v4437_v41  ;;  %v10672_v21 = vpop.f32.mrf.mxu1  ;;  %v4579_v54 = vsel %vm4347_vm4, %v14299_v12, -inf  ;;  %11818 = vpow2.f32 %v4916_v48  ;;  %v4594_v11 = vsel %vm4347_vm4, %v14296_v50, -inf }
 0x350   :  { %4577 = vmax.xlane.f32.xlu1 %v4576_v31  ;;  %4580 = vmax.xlane.f32.xlu0 %v4579_v54  ;;  %v3190_v22 = vpop.f32.mrf.mxu0  ;;  %v4928_v34 = vmul.f32 1.442695, %v4766_v25  ;;  %v4597_v35 = vsel %vm4347_vm4, %v14302_v37, -inf }
 0x351   :  { %v4918_v0 = vmul.f32 1.442695, %v4761_v1  ;;  %v14310_v47 = vpop.f32.mrf.mxu1  ;;  %v14315_v58 = vadd.f32 %v14049_v28, %v3190_v22 }
 0x352   :  { %v4455_v51 = vpop.xlane.xlu0 %4454  ;;  %v10654_v62 = vpop.f32.mrf.mxu0 }
 0x353   :  { %11820 = vpow2.f32 %v4918_v0  ;;  %v4767_v19 = vsub.f32 %v13800_v16, %v4455_v51  ;;  %v10673_v41 = vpop.f32.mrf.mxu1  ;;  %v14326_v0 = vpop.eup %11810  ;;  %v4588_v51 = vsel %vm4347_vm4, %v14315_v58, -inf }
 0x354   :  { %4595 = vmax.xlane.f32.xlu1 %v4594_v11  ;;  %4598 = vmax.xlane.f32.xlu0 %v4597_v35  ;;  %v3193_v1 = vpop.f32.mrf.mxu0  ;;  %11822 = vpow2.f32 %v4928_v34  ;;  %17247 = vst [vmem:[#allocation118_spill] sm:$0xff] %v14326_v0 }
 0x355   :  { %v4930_v48 = vmul.f32 1.442695, %v4767_v19  ;;  %v14320_v25 = vpop.f32.mrf.mxu1  ;;  %v14323_v21 = vadd.f32 %v13994_v59, %v3193_v1  ;;  %v4446_v31 = vpop.xlane.xlu1 %4445  ;;  %v14342_v1 = vadd.f32 %v13985_v27, %v3340_v52 }
 0x356   :  { %v4764_v54 = vsub.f32 %v13816_v44, %v4446_v31  ;;  %v10655_v22 = vpop.f32.mrf.mxu0 }
 0x357   :  { %11824 = vpow2.f32 %v4930_v48  ;;  %v10684_v16 = vpop.f32.mrf.mxu1  ;;  %v4591_v62 = vsel %vm4347_vm4, %v14323_v21, -inf  ;;  %v14332_v11 = vpop.eup %11812  ;;  %17250 = vst [vmem:[#allocation121_spill] sm:$0xff] %v14342_v1 }
 0x358   :  { %17248 = vst [vmem:[#allocation119_spill] sm:$0xff] %v14332_v11  ;;  %4589 = vmax.xlane.f32.xlu1 %v4588_v51  ;;  %4592 = vmax.xlane.f32.xlu0 %v4591_v62  ;;  %v3290_v19 = vpop.f32.mrf.mxu0  ;;  %v5512_v34 = vpack.c.bf16 %v14332_v11, %v14326_v0  ;;  %v4924_v48 = vmul.f32 1.442695, %v4764_v54  ;;  %v14345_v51 = vpop.eup %11814  ;;  %v17253_v0 = vld [vmem:[#allocation75_spill] sm:$0xff] }
 0x359   :  { %v14336_v44 = vpop.f32.mrf.mxu1  ;;  %v14339_v41 = vadd.f32 %v14049_v28, %v3290_v19  ;;  %v4464_v35 = vpop.xlane.xlu1 %4463  ;;  %17251 = vst [vmem:[#allocation122_spill] sm:$0xff] %v14345_v51 }
 0x35a   :  { %v4770_v31 = vsub.f32 %v13825_v42, %v4464_v35  ;;  %v4449_v22 = vpop.xlane.xlu0 %4448  ;;  %v10666_v16 = vpop.f32.mrf.mxu0  ;;  %10869 = vmatmul.mubr.msk.bf16.vlgmr.msra.gmra.mxu0 %vm4347_vm4, %v5512_v34  ;;  %11826 = vpow2.f32 %v4924_v48  ;;  %v4606_v35 = vsel %vm4347_vm4, %v14342_v1, -inf }
 0x35b   :  { %17249 = vst [vmem:[#allocation120_spill] sm:$0xff] %v14339_v41  ;;  %v4765_v62 = vsub.f32 %v13837_v63, %v4449_v22  ;;  %v10685_v50 = vpop.f32.mrf.mxu1  ;;  %v4600_v19 = vsel %vm4347_vm4, %v14339_v41, -inf  ;;  %v14351_v11 = vpop.eup %11816  ;;  %10879 = vmatpush3.bf16.msra.mxu0 %v17253_v0  ;;  %10880 = vmatprep.mubr.msk.bf16.mxu0 %vm12287_vm2, %v17107_v33 }
 0x35c   :  { %17252 = vst [vmem:[#allocation123_spill] sm:$0xff] %v14351_v11  ;;  %4601 = vmax.xlane.f32.xlu1 %v4600_v19  ;;  %v3293_v27 = vpop.f32.mrf.mxu0  ;;  %v5515_v42 = vpack.c.bf16 %v14351_v11, %v14345_v51  ;;  %10890 = vmatprep.subr.bf16.mxu0 %v17107_v33  ;;  %v4936_v50 = vmul.f32 1.442695, %v4770_v31  ;;  %v14366_v22 = vpop.eup %11818  ;;  %v17258_v11 = vld [vmem:[#allocation77_spill] sm:$0xff] }
 0x35d   :  { %v4926_v52 = vmul.f32 1.442695, %v4765_v62  ;;  %v14356_v54 = vpop.f32.mrf.mxu1  ;;  %v14359_v63 = vadd.f32 %v13994_v59, %v3293_v27  ;;  %17255 = vst [vmem:[#allocation124_spill] sm:$0xff] %v14366_v22  ;;  %v14377_v27 = vadd.f32 %v14016_v49, %v14310_v47 }
 0x35e   :  { %v4458_v34 = vpop.xlane.xlu1 %4457  ;;  %v4467_v0 = vpop.xlane.xlu0 %4466  ;;  %10887 = vmatmul.mubr.msk.bf16.vlgmr.msra.gmra.mxu1 %vm4347_vm4, %v5515_v42 }
 0x35f   :  { %17254 = vst [vmem:[#allocation75_spill] sm:$0xff] %v14359_v63  ;;  %11828 = vpow2.f32 %v4926_v52  ;;  %v4768_v16 = vsub.f32 %v13855_v32, %v4458_v34  ;;  %v4771_v59 = vsub.f32 %v13844_v15, %v4467_v0  ;;  %v10667_v62 = vpop.f32.mrf.mxu0  ;;  %v10696_v19 = vpop.f32.mrf.mxu1  ;;  %v4603_v48 = vsel %vm4347_vm4, %v14359_v63, -inf  ;;  %17257 = vst [vmem:[#allocation126_spill] sm:$0xff] %v14377_v27  ;;  %10897 = vmatpush3.bf16.msra.mxu1 %v17258_v11 }
 0x360   :  { %v14373_v31 = vpop.eup %11820  ;;  %4607 = vmax.xlane.f32.xlu1 %v4606_v35  ;;  %4604 = vmax.xlane.f32.xlu0 %v4603_v48  ;;  %11830 = vpow2.f32 %v4936_v50  ;;  %v17261_v48 = vld [vmem:[#allocation79_spill] sm:$0xff]  ;;  %v4609_v51 = vsel %vm4347_vm4, %v14377_v27, -inf  ;;  %v17273_v27 = vld [vmem:[#allocation81_spill] sm:$0xff] }
 0x361   :  { %17256 = vst [vmem:[#allocation125_spill] sm:$0xff] %v14373_v31  ;;  %v5514_v32 = vpack.c.bf16 %v14373_v31, %v14366_v22  ;;  %v4938_v15 = vmul.f32 1.442695, %v4771_v59  ;;  %v14382_v52 = vpop.f32.mrf.mxu1  ;;  %v14384_v42 = vpop.f32.mrf.mxu0  ;;  %10898 = vmatprep.mubr.msk.bf16.mxu1 %vm12287_vm2, %v17107_v33  ;;  %10908 = vmatprep.subr.bf16.mxu1 %v17107_v33  ;;  %v4932_v47 = vmul.f32 1.442695, %v4768_v16 }
 0x362   :  { %v4476_v34 = vpop.xlane.xlu1 %4475  ;;  %v4461_v0 = vpop.xlane.xlu0 %4460 }
 0x363   :  { %v14389_v49 = vpop.eup %11822  ;;  %v4774_v11 = vsub.f32 %v13873_v9, %v4476_v34  ;;  %v4769_v35 = vsub.f32 %v13878_v2, %v4461_v0  ;;  %v10678_v59 = vpop.f32.mrf.mxu0  ;;  %10881 = vmatmul.mubr.msk.bf16.vlgmr.msra.gmra.mxu0 %vm4347_vm4, %v5514_v32  ;;  %11832 = vpow2.f32 %v4938_v15 }
 0x364   :  { %17259 = vst [vmem:[#allocation77_spill] sm:$0xff] %v14389_v49  ;;  %v10697_v62 = vpop.f32.mrf.mxu1  ;;  %v14394_v19 = vpop.eup %11824  ;;  %10891 = vmatpush3.bf16.msra.mxu0 %v17261_v48  ;;  %10892 = vmatprep.mubr.msk.bf16.mxu0 %vm12287_vm2, %v17107_v33  ;;  %11834 = vpow2.f32 %v4932_v47 }
 0x365   :  { %17260 = vst [vmem:[#allocation127_spill] sm:$0xff] %v14394_v19  ;;  %v5517_v9 = vpack.c.bf16 %v14394_v19, %v14389_v49  ;;  %v4934_v50 = vmul.f32 1.442695, %v4769_v35  ;;  %v14403_v2 = vpop.f32.mrf.mxu0  ;;  %4610 = vmax.xlane.f32.xlu0 %v4609_v51  ;;  %10902 = vmatprep.subr.bf16.mxu0 %v17107_v33  ;;  %v4944_v32 = vmul.f32 1.442695, %v4774_v11  ;;  %v17262_v62 = vld [vmem:[#allocation70_spill] sm:$0xff] }
 0x366   :  { %v14405_v16 = vpop.f32.mrf.mxu1  ;;  %v4479_v15 = vpop.xlane.xlu0 %4478  ;;  %v17270_v49 = vld [vmem:[#allocation78_spill] sm:$0xff] }
 0x367   :  { %v4775_v34 = vsub.f32 %v13886_v26, %v4479_v15  ;;  %v10679_v0 = vpop.f32.mrf.mxu0  ;;  %10899 = vmatmul.mubr.msk.bf16.vlgmr.msra.gmra.mxu1 %vm4347_vm4, %v5517_v9  ;;  %11836 = vpow2.f32 %v4934_v50  ;;  %v14418_v47 = vpop.eup %11826 }
 0x368   :  { %v10708_v59 = vpop.f32.mrf.mxu1  ;;  %10909 = vmatpush3.bf16.msra.mxu1 %v17262_v62  ;;  %10910 = vmatprep.mubr.msk.bf16.mxu1 %vm12287_vm2, %v17107_v33  ;;  %11838 = vpow2.f32 %v4944_v32  ;;  %17263 = vst [vmem:[#allocation79_spill] sm:$0xff] %v14418_v47  ;;  %v17266_v32 = vld [vmem:[#allocation73_spill] sm:$0xff] }
 0x369   :  { %v4946_v35 = vmul.f32 1.442695, %v4775_v34  ;;  %v14413_v48 = vpop.f32.mrf.mxu0  ;;  %10920 = vmatprep.subr.bf16.mxu1 %v17107_v33 }
 0x36a   :  { %v14415_v51 = vpop.f32.mrf.mxu1 }
 0x36b   :  { %11840 = vpow2.f32 %v4946_v35  ;;  %v10690_v26 = vpop.f32.mrf.mxu0 }
 0x36c   :  { %v10709_v11 = vpop.f32.mrf.mxu1  ;;  %v14420_v9 = vpop.eup %11828 }
 0x36d   :  { %17264 = vst [vmem:[#allocation70_spill] sm:$0xff] %v14420_v9  ;;  %v5516_v50 = vpack.c.bf16 %v14420_v9, %v14418_v47  ;;  %v14424_v15 = vpop.f32.mrf.mxu0  ;;  %v14429_v62 = vpop.eup %11830 }
 0x36e   :  { %v14426_v34 = vpop.f32.mrf.mxu1  ;;  %17265 = vst [vmem:[#allocation128_spill] sm:$0xff] %v14429_v62 }
 0x36f   :  { %v10691_v0 = vpop.f32.mrf.mxu0  ;;  %10893 = vmatmul.mubr.msk.bf16.vlgmr.msra.gmra.mxu0 %vm4347_vm4, %v5516_v50 }
 0x370   :  { %v10720_v59 = vpop.f32.mrf.mxu1  ;;  %10903 = vmatpush3.bf16.msra.mxu0 %v17266_v32  ;;  %10904 = vmatprep.mubr.msk.bf16.mxu0 %vm12287_vm2, %v17107_v33  ;;  %v14434_v35 = vpop.eup %11832 }
 0x371   :  { %17267 = vst [vmem:[#allocation73_spill] sm:$0xff] %v14434_v35  ;;  %v14436_v26 = vpop.f32.mrf.mxu0  ;;  %7256 = vrot.lane.b32.xlu1 %v12991_v55, %s12289_s19  ;;  %10914 = vmatprep.subr.bf16.mxu0 %v17107_v33  ;;  %v5519_v50 = vpack.c.bf16 %v14434_v35, %v14429_v62  ;;  %v4470_v0 = vpop.xlane.xlu1 %4469 }
 0x372   :  { %v14438_v11 = vpop.f32.mrf.mxu1  ;;  %v4772_v59 = vsub.f32 %v13927_v43, %v4470_v0  ;;  %v14446_v22 = vpop.eup %11834 }
 0x373   :  { %v10702_v32 = vpop.f32.mrf.mxu0  ;;  %17268 = vst [vmem:[#allocation129_spill] sm:$0xff] %v14446_v22  ;;  %10911 = vmatmul.mubr.msk.bf16.vlgmr.msra.gmra.mxu1 %vm4347_vm4, %v5519_v50 }
 0x374   :  { %v10721_v31 = vpop.f32.mrf.mxu1  ;;  %v14449_v19 = vpop.eup %11836  ;;  %10921 = vmatpush3.bf16.msra.mxu1 %v17270_v49  ;;  %10922 = vmatprep.mubr.msk.bf16.mxu1 %vm12287_vm2, %v17107_v33  ;;  %v4940_v50 = vmul.f32 1.442695, %v4772_v59 }
 0x375   :  { %17269 = vst [vmem:[#allocation130_spill] sm:$0xff] %v14449_v19  ;;  %v14452_v9 = vpop.f32.mrf.mxu0  ;;  %v5518_v43 = vpack.c.bf16 %v14449_v19, %v14446_v22  ;;  %v4488_v0 = vpop.xlane.xlu1 %4487  ;;  %10932 = vmatprep.subr.bf16.mxu1 %v17107_v33 }
 0x376   :  { %v14454_v55 = vpop.f32.mrf.mxu1  ;;  %v4473_v31 = vpop.xlane.xlu0 %4472  ;;  %v4778_v35 = vsub.f32 %v13938_v18, %v4488_v0  ;;  %11842 = vpow2.f32 %v4940_v50 }
 0x377   :  { %v14461_v32 = vpop.eup %11838  ;;  %v4773_v49 = vsub.f32 %v13945_v29, %v4473_v31  ;;  %v10703_v62 = vpop.f32.mrf.mxu0  ;;  %10905 = vmatmul.mubr.msk.bf16.vlgmr.msra.gmra.mxu0 %vm4347_vm4, %v5518_v43  ;;  %v17274_v31 = vld [vmem:[#allocation80_spill] sm:$0xff] }
 0x378   :  { %17271 = vst [vmem:[#allocation78_spill] sm:$0xff] %v14461_v32  ;;  %v10732_v47 = vpop.f32.mrf.mxu1  ;;  %v14465_v1 = vpop.eup %11840  ;;  %10915 = vmatpush3.bf16.msra.mxu0 %v17273_v27  ;;  %10916 = vmatprep.mubr.msk.bf16.mxu0 %vm12287_vm2, %v17107_v33 }
 0x379   :  { %17272 = vst [vmem:[#allocation131_spill] sm:$0xff] %v14465_v1  ;;  %v5521_v19 = vpack.c.bf16 %v14465_v1, %v14461_v32  ;;  %v4942_v22 = vmul.f32 1.442695, %v4773_v49  ;;  %v14471_v41 = vpop.f32.mrf.mxu0  ;;  %v4482_v18 = vpop.xlane.xlu1 %4481  ;;  %10926 = vmatprep.subr.bf16.mxu0 %v17107_v33  ;;  %v4952_v47 = vmul.f32 1.442695, %v4778_v35 }
 0x37a   :  { %v14473_v63 = vpop.f32.mrf.mxu1  ;;  %v4491_v29 = vpop.xlane.xlu0 %4490  ;;  %v4776_v62 = vsub.f32 %v13967_v3, %v4482_v18 }
 0x37b   :  { %v4779_v59 = vsub.f32 %v13956_v40, %v4491_v29  ;;  %v10714_v43 = vpop.f32.mrf.mxu0  ;;  %7303 = vrot.lane.b32.xlu0 %v12883_v61, %s12289_s19  ;;  %11844 = vpow2.f32 %v4942_v22  ;;  %10923 = vmatmul.mubr.msk.bf16.vlgmr.msra.gmra.mxu1 %vm4347_vm4, %v5521_v19 }
 0x37c   :  { %v10733_v0 = vpop.f32.mrf.mxu1  ;;  %10933 = vmatpush3.bf16.msra.mxu1 %v17274_v31  ;;  %10934 = vmatprep.mubr.msk.bf16.mxu1 %vm12287_vm2, %v17107_v33  ;;  %11846 = vpow2.f32 %v4952_v47  ;;  %v4948_v35 = vmul.f32 1.442695, %v4776_v62 }
 0x37d   :  { %v4954_v27 = vmul.f32 1.442695, %v4779_v59  ;;  %v14484_v49 = vpop.f32.mrf.mxu0  ;;  %v4500_v3 = vpop.xlane.xlu1 %4499  ;;  %10944 = vmatprep.subr.bf16.mxu1 %v17107_v33 }
 0x37e   :  { %v14486_v1 = vpop.f32.mrf.mxu1  ;;  %v4485_v40 = vpop.xlane.xlu0 %4484  ;;  %v4782_v61 = vsub.f32 %v13988_v5, %v4500_v3 }
 0x37f   :  { %v4777_v22 = vsub.f32 %v13997_v7, %v4485_v40  ;;  %v10715_v19 = vpop.f32.mrf.mxu0  ;;  %11848 = vpow2.f32 %v4954_v27 }
 0x380   :  { %v10744_v50 = vpop.f32.mrf.mxu1  ;;  %v4960_v43 = vmul.f32 1.442695, %v4782_v61  ;;  %11850 = vpow2.f32 %v4948_v35 }
 0x381   :  { %v4950_v18 = vmul.f32 1.442695, %v4777_v22  ;;  %v14493_v29 = vpop.f32.mrf.mxu0 }
 0x382   :  { %v14495_v59 = vpop.f32.mrf.mxu1  ;;  %v4503_v0 = vpop.xlane.xlu0 %4502 }
 0x383   :  { %v4783_v31 = vsub.f32 %v14019_v10, %v4503_v0  ;;  %v10726_v32 = vpop.f32.mrf.mxu0  ;;  %11852 = vpow2.f32 %v4950_v18  ;;  %v14502_v40 = vpop.eup %11842 }
 0x384   :  { %v10745_v47 = vpop.f32.mrf.mxu1  ;;  %11854 = vpow2.f32 %v4960_v43  ;;  %17275 = vst [vmem:[#allocation81_spill] sm:$0xff] %v14502_v40  ;;  %v17280_v43 = vld [vmem:[#allocation82_spill] sm:$0xff] }
 0x385   :  { %v4962_v62 = vmul.f32 1.442695, %v4783_v31  ;;  %v14498_v5 = vpop.f32.mrf.mxu0 }
 0x386   :  { %v14500_v7 = vpop.f32.mrf.mxu1 }
 0x387   :  { %11856 = vpow2.f32 %v4962_v62  ;;  %v10727_v27 = vpop.f32.mrf.mxu0 }
 0x388   :  { %v10756_v3 = vpop.f32.mrf.mxu1  ;;  %v14504_v22 = vpop.eup %11844 }
 0x389   :  { %17276 = vst [vmem:[#allocation80_spill] sm:$0xff] %v14504_v22  ;;  %v14506_v61 = vpop.f32.mrf.mxu0  ;;  %v5520_v10 = vpack.c.bf16 %v14504_v22, %v14502_v40  ;;  %v14512_v50 = vpop.eup %11846  ;;  %v17284_v22 = vld [vmem:[#allocation85_spill] sm:$0xff] }
 0x38a   :  { %v14508_v35 = vpop.f32.mrf.mxu1  ;;  %17278 = vst [vmem:[#allocation133_spill] sm:$0xff] %v14512_v50 }
 0x38b   :  { %17277 = vst [vmem:[#allocation132_spill] sm:$0xff] %v14508_v35  ;;  %v10738_v32 = vpop.f32.mrf.mxu0  ;;  %10917 = vmatmul.mubr.msk.bf16.vlgmr.msra.gmra.mxu0 %vm4347_vm4, %v5520_v10 }
 0x38c   :  { %v10757_v19 = vpop.f32.mrf.mxu1  ;;  %v14515_v18 = vpop.eup %11848  ;;  %10927 = vmatpush3.bf16.msra.mxu0 %v17280_v43  ;;  %10928 = vmatprep.mubr.msk.bf16.mxu0 %vm12287_vm2, %v17107_v33 }
 0x38d   :  { %17279 = vst [vmem:[#allocation134_spill] sm:$0xff] %v14515_v18  ;;  %v14518_v0 = vpop.f32.mrf.mxu0  ;;  %v5523_v47 = vpack.c.bf16 %v14515_v18, %v14512_v50  ;;  %v4494_v62 = vpop.xlane.xlu1 %4493  ;;  %10938 = vmatprep.subr.bf16.mxu0 %v17107_v33  ;;  %v14532_v19 = vadd.f32 %v14049_v28, %v14384_v42 }
 0x38e   :  { %v14520_v31 = vpop.f32.mrf.mxu1  ;;  %v4780_v27 = vsub.f32 %v14052_v8, %v4494_v62  ;;  %v14528_v32 = vpop.eup %11850 }
 0x38f   :  { %17281 = vst [vmem:[#allocation82_spill] sm:$0xff] %v14520_v31  ;;  %v10739_v3 = vpop.f32.mrf.mxu0  ;;  %17282 = vst [vmem:[#allocation135_spill] sm:$0xff] %v14528_v32  ;;  %10935 = vmatmul.mubr.msk.bf16.vlgmr.msra.gmra.mxu1 %vm4347_vm4, %v5523_v47  ;;  %v14556_v31 = vld [vmem:[%s16885_s1 + $0x10] sm:$0xff] }
 0x390   :  { %v10768_v10 = vpop.f32.mrf.mxu1  ;;  %v14535_v43 = vpop.eup %11852  ;;  %10945 = vmatpush3.bf16.msra.mxu1 %v17284_v22  ;;  %10946 = vmatprep.mubr.msk.bf16.mxu1 %vm12287_vm2, %v17107_v33  ;;  %v4956_v42 = vmul.f32 1.442695, %v4780_v27 }
 0x391   :  { %17283 = vst [vmem:[#allocation136_spill] sm:$0xff] %v14535_v43  ;;  %v14538_v18 = vpop.f32.mrf.mxu0  ;;  %v5522_v8 = vpack.c.bf16 %v14535_v43, %v14528_v32  ;;  %v4512_v62 = vpop.xlane.xlu1 %4511  ;;  %10956 = vmatprep.subr.bf16.mxu1 %v17107_v33  ;;  %v14560_v43 = vadd.f32 %v14556_v31, %v14320_v25  ;;  %v17288_v25 = vld [vmem:[#allocation93_spill] sm:$0xff] }
 0x392   :  { %v14540_v50 = vpop.f32.mrf.mxu1  ;;  %v4497_v3 = vpop.xlane.xlu0 %4496  ;;  %v4786_v47 = vsub.f32 %v14059_v20, %v4512_v62  ;;  %v4612_v20 = vsel %vm4347_vm4, %v14532_v19, -inf  ;;  %11858 = vpow2.f32 %v4956_v42 }
 0x393   :  { %17285 = vst [vmem:[#allocation85_spill] sm:$0xff] %v14540_v50  ;;  %v14547_v28 = vpop.eup %11854  ;;  %v4781_v22 = vsub.f32 %v14066_v4, %v4497_v3  ;;  %v10750_v10 = vpop.f32.mrf.mxu0  ;;  %10929 = vmatmul.mubr.msk.bf16.vlgmr.msra.gmra.mxu0 %vm4347_vm4, %v5522_v8  ;;  %v14568_v4 = vld [vmem:[%s16885_s1 + $0x8] sm:$0xff] }
 0x394   :  { %17286 = vst [vmem:[#allocation137_spill] sm:$0xff] %v14547_v28  ;;  %v10769_v40 = vpop.f32.mrf.mxu1  ;;  %v14551_v50 = vpop.eup %11856  ;;  %10939 = vmatpush3.bf16.msra.mxu0 %v17288_v25  ;;  %10940 = vmatprep.mubr.msk.bf16.mxu0 %vm12287_vm2, %v17107_v33 }
 0x395   :  { %17287 = vst [vmem:[#allocation138_spill] sm:$0xff] %v14551_v50  ;;  %v14572_v40 = vadd.f32 %v14568_v4, %v14403_v2  ;;  %v5525_v27 = vpack.c.bf16 %v14551_v50, %v14547_v28  ;;  %v4958_v62 = vmul.f32 1.442695, %v4781_v22  ;;  %v14577_v3 = vpop.f32.mrf.mxu0  ;;  %4613 = vmax.xlane.f32.xlu1 %v4612_v20  ;;  %v4506_v10 = vpop.xlane.xlu1 %4505  ;;  %10950 = vmatprep.subr.bf16.mxu0 %v17107_v33  ;;  %v4968_v2 = vmul.f32 1.442695, %v4786_v47  ;;  %v14592_v28 = vld [vmem:[%s16885_s1 + $0x18] sm:$0xff] }
 0x396   :  { %v14579_v8 = vpop.f32.mrf.mxu1  ;;  %v4515_v32 = vpop.xlane.xlu0 %4514  ;;  %v4784_v35 = vsub.f32 %v14088_v57, %v4506_v10  ;;  %v4618_v20 = vsel %vm4347_vm4, %v14560_v43, -inf  ;;  %v14596_v42 = vadd.f32 %v14592_v28, %v14336_v44  ;;  %v17290_v47 = vld [vmem:[#allocation91_spill] sm:$0xff] }
 0x397   :  { %17289 = vst [vmem:[#allocation93_spill] sm:$0xff] %v14579_v8  ;;  %v4787_v22 = vsub.f32 %v14078_v56, %v4515_v32  ;;  %v10751_v50 = vpop.f32.mrf.mxu0  ;;  %11860 = vpow2.f32 %v4958_v62  ;;  %10947 = vmatmul.mubr.msk.bf16.vlgmr.msra.gmra.mxu1 %vm4347_vm4, %v5525_v27  ;;  %v4615_v32 = vsel %vm4347_vm4, %v14572_v40, -inf }
 0x398   :  { %v10780_v25 = vpop.f32.mrf.mxu1  ;;  %10957 = vmatpush3.bf16.msra.mxu1 %v17290_v47  ;;  %v4964_v27 = vmul.f32 1.442695, %v4784_v35  ;;  %10958 = vmatprep.mubr.msk.bf16.mxu1 %vm12287_vm2, %v17107_v33  ;;  %11862 = vpow2.f32 %v4968_v2  ;;  %v4621_v35 = vsel %vm4347_vm4, %v14596_v42, -inf }
 0x399   :  { %v4970_v57 = vmul.f32 1.442695, %v4787_v22  ;;  %v14599_v56 = vpop.f32.mrf.mxu0  ;;  %4619 = vmax.xlane.f32.xlu1 %v4618_v20  ;;  %10968 = vmatprep.subr.bf16.mxu1 %v17107_v33 }
 0x39a   :  { %v14601_v50 = vpop.f32.mrf.mxu1  ;;  %4616 = vmax.xlane.f32.xlu0 %v4615_v32  ;;  %v4509_v62 = vpop.xlane.xlu0 %4508 }
 0x39b   :  { %17291 = vst [vmem:[#allocation91_spill] sm:$0xff] %v14601_v50  ;;  %v4785_v44 = vsub.f32 %v14105_v14, %v4509_v62  ;;  %v10762_v10 = vpop.f32.mrf.mxu0  ;;  %11864 = vpow2.f32 %v4970_v57 }
 0x39c   :  { %v10781_v22 = vpop.f32.mrf.mxu1  ;;  %11866 = vpow2.f32 %v4964_v27 }
 0x39d   :  { %v4966_v25 = vmul.f32 1.442695, %v4785_v44  ;;  %v14609_v47 = vpop.f32.mrf.mxu0 }
 0x39e   :  { %17292 = vst [vmem:[#allocation139_spill] sm:$0xff] %v14609_v47  ;;  %v14611_v20 = vpop.f32.mrf.mxu1  ;;  %4622 = vmax.xlane.f32.xlu0 %v4621_v35 }
 0x39f   :  { %17293 = vst [vmem:[#allocation140_spill] sm:$0xff] %v14611_v20  ;;  %11868 = vpow2.f32 %v4966_v25  ;;  %v10763_v32 = vpop.f32.mrf.mxu0  ;;  %v14620_v22 = vpop.eup %11858 }
 0x3a0   :  { %v10792_v2 = vpop.f32.mrf.mxu1  ;;  %v4524_v50 = vpop.xlane.xlu1 %4523  ;;  %17295 = vst [vmem:[#allocation142_spill] sm:$0xff] %v14620_v22 }
 0x3a1   :  { %v14615_v14 = vpop.f32.mrf.mxu0  ;;  %v4790_v57 = vsub.f32 %v14115_v46, %v4524_v50 }
 0x3a2   :  { %v14617_v62 = vpop.f32.mrf.mxu1 }
 0x3a3   :  { %17294 = vst [vmem:[#allocation141_spill] sm:$0xff] %v14617_v62  ;;  %v10774_v44 = vpop.f32.mrf.mxu0  ;;  %v4976_v20 = vmul.f32 1.442695, %v4790_v57 }
 0x3a4   :  { %v10793_v10 = vpop.f32.mrf.mxu1  ;;  %v4527_v8 = vpop.xlane.xlu0 %4526  ;;  %v17301_v44 = vld [vmem:[#allocation94_spill] sm:$0xff] }
 0x3a5   :  { %v14622_v47 = vpop.eup %11860  ;;  %v14624_v27 = vpop.f32.mrf.mxu0  ;;  %v4791_v35 = vsub.f32 %v14121_v45, %v4527_v8  ;;  %11870 = vpow2.f32 %v4976_v20 }
 0x3a6   :  { %17296 = vst [vmem:[#allocation143_spill] sm:$0xff] %v14622_v47  ;;  %17297 = vst [vmem:[#allocation144_spill] sm:$0xff] %v14624_v27  ;;  %v14626_v25 = vpop.f32.mrf.mxu1  ;;  %v5524_v32 = vpack.c.bf16 %v14622_v47, %v14620_v22  ;;  %v14631_v50 = vpop.eup %11862  ;;  %v17351_v22 = vld [vmem:[#allocation98_spill] sm:$0xff] }
 0x3a7   :  { %17298 = vst [vmem:[#allocation145_spill] sm:$0xff] %v14626_v25  ;;  %v4978_v2 = vmul.f32 1.442695, %v4791_v35  ;;  %v10775_v62 = vpop.f32.mrf.mxu0  ;;  %17299 = vst [vmem:[#allocation146_spill] sm:$0xff] %v14631_v50 }
 0x3a8   :  { %v10804_v46 = vpop.f32.mrf.mxu1  ;;  %10941 = vmatmul.mubr.msk.bf16.vlgmr.msra.gmra.mxu0 %vm4347_vm4, %v5524_v32  ;;  %v14634_v57 = vpop.eup %11864 }
 0x3a9   :  { %17300 = vst [vmem:[#allocation147_spill] sm:$0xff] %v14634_v57  ;;  %11872 = vpow2.f32 %v4978_v2  ;;  %10951 = vmatpush3.bf16.msra.mxu0 %v17301_v44  ;;  %v14637_v10 = vpop.f32.mrf.mxu0  ;;  %10952 = vmatprep.mubr.msk.bf16.mxu0 %vm12287_vm2, %v17107_v33  ;;  %v5527_v45 = vpack.c.bf16 %v14634_v57, %v14631_v50  ;;  %v14648_v8 = vpop.eup %11866  ;;  %v17306_v2 = vld [vmem:[#allocation95_spill] sm:$0xff] }
 0x3aa   :  { %17302 = vst [vmem:[#allocation94_spill] sm:$0xff] %v14637_v10  ;;  %v14639_v25 = vpop.f32.mrf.mxu1  ;;  %7350 = vrot.lane.b32.xlu1 %v13007_v60, %s12289_s19  ;;  %10962 = vmatprep.subr.bf16.mxu0 %v17107_v33  ;;  %17304 = vst [vmem:[#allocation149_spill] sm:$0xff] %v14648_v8 }
 0x3ab   :  { %17303 = vst [vmem:[#allocation148_spill] sm:$0xff] %v14639_v25  ;;  %v10786_v20 = vpop.f32.mrf.mxu0  ;;  %10959 = vmatmul.mubr.msk.bf16.vlgmr.msra.gmra.mxu1 %vm4347_vm4, %v5527_v45 }
 0x3ac   :  { %v10805_v62 = vpop.f32.mrf.mxu1  ;;  %v14650_v35 = vpop.eup %11868  ;;  %10969 = vmatpush3.bf16.msra.mxu1 %v17306_v2  ;;  %10970 = vmatprep.mubr.msk.bf16.mxu1 %vm12287_vm2, %v17107_v33 }
 0x3ad   :  { %17305 = vst [vmem:[#allocation150_spill] sm:$0xff] %v14650_v35  ;;  %v5526_v32 = vpack.c.bf16 %v14650_v35, %v14648_v8  ;;  %v14656_v46 = vpop.f32.mrf.mxu0  ;;  %v4518_v60 = vpop.xlane.xlu1 %4517  ;;  %10980 = vmatprep.subr.bf16.mxu1 %v17107_v33  ;;  %v17316_v8 = vld [vmem:[#allocation96_spill] sm:$0xff] }
 0x3ae   :  { %17307 = vst [vmem:[#allocation95_spill] sm:$0xff] %v14656_v46  ;;  %v14658_v44 = vpop.f32.mrf.mxu1  ;;  %v4788_v20 = vsub.f32 %v14141_v17, %v4518_v60 }
 0x3af   :  { %17308 = vst [vmem:[#allocation151_spill] sm:$0xff] %v14658_v44  ;;  %v10787_v62 = vpop.f32.mrf.mxu0 }
 0x3b0   :  { %v10816_v25 = vpop.f32.mrf.mxu1  ;;  %10953 = vmatmul.mubr.msk.bf16.vlgmr.msra.gmra.mxu0 %vm4347_vm4, %v5526_v32  ;;  %v4972_v44 = vmul.f32 1.442695, %v4788_v20 }
 0x3b1   :  { %10963 = vmatpush3.bf16.msra.mxu0 %v13770_v24  ;;  %v14666_v45 = vpop.f32.mrf.mxu0  ;;  %10964 = vmatprep.mubr.msk.bf16.mxu0 %vm12287_vm2, %v17107_v33  ;;  %v4536_v57 = vpop.xlane.xlu1 %4535 }
 0x3b2   :  { %17309 = vst [vmem:[#allocation152_spill] sm:$0xff] %v14666_v45  ;;  %v14668_v2 = vpop.f32.mrf.mxu1  ;;  %v4521_v50 = vpop.xlane.xlu0 %4520  ;;  %10974 = vmatprep.subr.bf16.mxu0 %v17107_v33  ;;  %v4794_v17 = vsub.f32 %v14145_v30, %v4536_v57  ;;  %11874 = vpow2.f32 %v4972_v44 }
 0x3b3   :  { %17310 = vst [vmem:[#allocation153_spill] sm:$0xff] %v14668_v2  ;;  %v4789_v25 = vsub.f32 %v14150_v6, %v4521_v50  ;;  %v10798_v60 = vpop.f32.mrf.mxu0  ;;  %v14677_v24 = vpop.eup %11870 }
 0x3b4   :  { %v10817_v32 = vpop.f32.mrf.mxu1  ;;  %7397 = vrot.lane.b32.xlu0 %v12899_v39, %s12289_s19  ;;  %17311 = vst [vmem:[#allocation154_spill] sm:$0xff] %v14677_v24  ;;  %v4984_v57 = vmul.f32 1.442695, %v4794_v17  ;;  %v17317_v17 = vld [vmem:[#allocation104_spill] sm:$0xff] }
 0x3b5   :  { %v4974_v62 = vmul.f32 1.442695, %v4789_v25  ;;  %v14679_v2 = vpop.f32.mrf.mxu0  ;;  %v4530_v20 = vpop.xlane.xlu1 %4529 }
 0x3b6   :  { %17312 = vst [vmem:[#allocation155_spill] sm:$0xff] %v14679_v2  ;;  %v14681_v45 = vpop.eup %11872  ;;  %v4539_v35 = vpop.xlane.xlu0 %4538  ;;  %v4792_v6 = vsub.f32 %v14163_v53, %v4530_v20  ;;  %v17318_v20 = vld [vmem:[#allocation102_spill] sm:$0xff] }
 0x3b7   :  { %17313 = vst [vmem:[#allocation156_spill] sm:$0xff] %v14681_v45  ;;  %v5529_v30 = vpack.c.bf16 %v14681_v45, %v14677_v24  ;;  %v4795_v50 = vsub.f32 %v14154_v13, %v4539_v35  ;;  %v10799_v60 = vpop.f32.mrf.mxu0  ;;  %11876 = vpow2.f32 %v4974_v62 }
 0x3b8   :  { %11878 = vpow2.f32 %v4984_v57  ;;  %v4980_v53 = vmul.f32 1.442695, %v4792_v6 }
 0x3b9   :  { %v4986_v39 = vmul.f32 1.442695, %v4795_v50  ;;  %v14687_v32 = vpop.f32.mrf.mxu0  ;;  %v14689_v25 = vpop.f32.mrf.mxu1  ;;  %10971 = vmatmul.mubr.msk.bf16.vlgmr.msra.gmra.mxu1 %vm4347_vm4, %v5529_v30 }
 0x3ba   :  { %17314 = vst [vmem:[#allocation157_spill] sm:$0xff] %v14687_v32  ;;  %17315 = vst [vmem:[#allocation158_spill] sm:$0xff] %v14689_v25  ;;  %v4548_v44 = vpop.xlane.xlu1 %4547  ;;  %v4533_v2 = vpop.xlane.xlu0 %4532  ;;  %10981 = vmatpush3.bf16.msra.mxu1 %v17316_v8  ;;  %10982 = vmatprep.mubr.msk.bf16.mxu1 %vm12287_vm2, %v17107_v33  ;;  %v17321_v32 = vld [vmem:[#allocation106_spill] sm:$0xff] }
 0x3bb   :  { %v4793_v13 = vsub.f32 %v17317_v17, %v4533_v2  ;;  %v10810_v35 = vpop.f32.mrf.mxu0  ;;  %v10828_v62 = vpop.f32.mrf.mxu1  ;;  %10992 = vmatprep.subr.bf16.mxu1 %v17107_v33  ;;  %11880 = vpow2.f32 %v4986_v39  ;;  %v4798_v50 = vsub.f32 %v17318_v20, %v4548_v44  ;;  %v17324_v44 = vld [vmem:[#allocation66_spill] sm:$0xff] }
 0x3bc   :  { %11882 = vpow2.f32 %v4980_v53  ;;  %v17322_v62 = vld [vmem:[#allocation108_spill] sm:$0xff] }
 0x3bd   :  { %v4982_v60 = vmul.f32 1.442695, %v4793_v13  ;;  %v14698_v30 = vpop.f32.mrf.mxu0  ;;  %v14700_v25 = vpop.f32.mrf.mxu1  ;;  %v4992_v24 = vmul.f32 1.442695, %v4798_v50 }
 0x3be   :  { %17319 = vst [vmem:[#allocation96_spill] sm:$0xff] %v14698_v30  ;;  %17320 = vst [vmem:[#allocation104_spill] sm:$0xff] %v14700_v25  ;;  %v4542_v8 = vpop.xlane.xlu1 %4541 }
 0x3bf   :  { %v4796_v45 = vsub.f32 %v17321_v32, %v4542_v8  ;;  %v10811_v57 = vpop.f32.mrf.mxu0  ;;  %v10829_v6 = vpop.f32.mrf.mxu1  ;;  %11884 = vpow2.f32 %v4982_v60  ;;  %v17327_v60 = vld [vmem:[#allocation72_spill] sm:$0xff] }
 0x3c0   :  { %v14704_v47 = vpop.eup %11874  ;;  %11886 = vpow2.f32 %v4992_v24  ;;  %v17328_v6 = vld [vmem:[#allocation109_spill] sm:$0xff] }
 0x3c1   :  { %v4988_v2 = vmul.f32 1.442695, %v4796_v45  ;;  %v4545_v17 = vpop.xlane.xlu0 %4544  ;;  %17323 = vst [vmem:[#allocation102_spill] sm:$0xff] %v14704_v47 }
 0x3c2   :  { %v4551_v35 = vpop.xlane.xlu1 %4550  ;;  %v4797_v39 = vsub.f32 %v17322_v62, %v4545_v17 }
 0x3c3   :  { %v4799_v13 = vsub.f32 %v17324_v44, %v4551_v35  ;;  %11888 = vpow2.f32 %v4988_v2 }
 0x3c4   :  { %v4990_v20 = vmul.f32 1.442695, %v4797_v39  ;;  %v14707_v25 = vpop.eup %11876  ;;  %v14723_v39 = vld [vmem:[%s16885_s1] sm:$0xff] }
 0x3c5   :  { %17325 = vst [vmem:[#allocation106_spill] sm:$0xff] %v14707_v25  ;;  %v4994_v53 = vmul.f32 1.442695, %v4799_v13  ;;  %v4560_v32 = vpop.xlane.xlu0 %4559  ;;  %v14709_v8 = vpop.f32.mrf.mxu0  ;;  %v5528_v45 = vpack.c.bf16 %v14707_v25, %v14704_v47  ;;  %v14727_v44 = vadd.f32 %v14723_v39, %v14413_v48  ;;  %v17335_v48 = vld [vmem:[#allocation113_spill] sm:$0xff]  ;;  %v17349_v25 = vld [vmem:[#allocation99_spill] sm:$0xff] }
 0x3c6   :  { %17326 = vst [vmem:[#allocation108_spill] sm:$0xff] %v14709_v8  ;;  %11890 = vpow2.f32 %v4990_v20  ;;  %v4563_v50 = vpop.xlane.xlu1 %4562  ;;  %v4802_v57 = vsub.f32 %v17327_v60, %v4560_v32  ;;  %v14715_v24 = vpop.eup %11878  ;;  %v17331_v20 = vld [vmem:[#allocation84_spill] sm:$0xff] }
 0x3c7   :  { %11892 = vpow2.f32 %v4994_v53  ;;  %v4803_v17 = vsub.f32 %v17328_v6, %v4563_v50  ;;  %v10822_v35 = vpop.f32.mrf.mxu0  ;;  %17329 = vst [vmem:[#allocation66_spill] sm:$0xff] %v14715_v24  ;;  %10965 = vmatmul.mubr.msk.bf16.vlgmr.msra.gmra.mxu0 %vm4347_vm4, %v5528_v45  ;;  %v17333_v60 = vld [vmem:[#allocation112_spill] sm:$0xff] }
 0x3c8   :  { %v5000_v62 = vmul.f32 1.442695, %v4802_v57  ;;  %v14718_v2 = vpop.eup %11880  ;;  %10975 = vmatpush3.bf16.msra.mxu0 %v17331_v20  ;;  %10976 = vmatprep.mubr.msk.bf16.mxu0 %vm12287_vm2, %v17107_v33 }
 0x3c9   :  { %17330 = vst [vmem:[#allocation72_spill] sm:$0xff] %v14718_v2  ;;  %v5002_v13 = vmul.f32 1.442695, %v4803_v17  ;;  %v4554_v53 = vpop.xlane.xlu0 %4553  ;;  %v14730_v32 = vpop.f32.mrf.mxu0  ;;  %v5531_v45 = vpack.c.bf16 %v14718_v2, %v14715_v24  ;;  %10986 = vmatprep.subr.bf16.mxu0 %v17107_v33  ;;  %v14748_v2 = vadd.f32 %v14556_v31, %v14356_v54  ;;  %v17347_v24 = vld [vmem:[#allocation116_spill] sm:$0xff] }
 0x3ca   :  { %17332 = vst [vmem:[#allocation109_spill] sm:$0xff] %v14730_v32  ;;  %v4557_v50 = vpop.xlane.xlu1 %4556  ;;  %v4800_v57 = vsub.f32 %v17333_v60, %v4554_v53  ;;  %v14737_v6 = vpop.f32.mrf.mxu1  ;;  %11894 = vpow2.f32 %v5000_v62  ;;  %v17338_v60 = vld [vmem:[#allocation97_spill] sm:$0xff] }
 0x3cb   :  { %17334 = vst [vmem:[#allocation84_spill] sm:$0xff] %v14737_v6  ;;  %v4801_v17 = vsub.f32 %v17335_v48, %v4557_v50  ;;  %v10823_v35 = vpop.f32.mrf.mxu0  ;;  %v14741_v20 = vpop.eup %11882  ;;  %10983 = vmatmul.mubr.msk.bf16.vlgmr.msra.gmra.mxu1 %vm4347_vm4, %v5531_v45  ;;  %11896 = vpow2.f32 %v5002_v13  ;;  %v4624_v50 = vsel %vm4347_vm4, %v14727_v44, -inf }
 0x3cc   :  { %17336 = vst [vmem:[#allocation112_spill] sm:$0xff] %v14741_v20  ;;  %v4996_v32 = vmul.f32 1.442695, %v4800_v57  ;;  %v10840_v8 = vpop.f32.mrf.mxu1  ;;  %v14744_v30 = vpop.eup %11884  ;;  %10993 = vmatpush3.bf16.msra.mxu1 %v17338_v60  ;;  %10994 = vmatprep.mubr.msk.bf16.mxu1 %vm12287_vm2, %v17107_v33  ;;  %v17342_v35 = vld [vmem:[#allocation76_spill] sm:$0xff]  ;;  %v4630_v60 = vsel %vm4347_vm4, %v14748_v2, -inf }
 0x3cd   :  { %17337 = vst [vmem:[#allocation113_spill] sm:$0xff] %v14744_v30  ;;  %v4998_v53 = vmul.f32 1.442695, %v4801_v17  ;;  %v4575_v6 = vpop.xlane.xlu0 %4574  ;;  %v14753_v48 = vpop.f32.mrf.mxu0  ;;  %v14759_v8 = vadd.f32 %v14568_v4, %v14424_v15  ;;  %v5530_v54 = vpack.c.bf16 %v14744_v30, %v14741_v20  ;;  %11004 = vmatprep.subr.bf16.mxu1 %v17107_v33 }
 0x3ce   :  { %17339 = vst [vmem:[#allocation97_spill] sm:$0xff] %v14753_v48  ;;  %11898 = vpow2.f32 %v4996_v32  ;;  %v4572_v62 = vpop.xlane.xlu1 %4571  ;;  %4625 = vmax.xlane.f32.xlu1 %v4624_v50  ;;  %v14763_v13 = vpop.f32.mrf.mxu1 }
 0x3cf   :  { %17340 = vst [vmem:[#allocation159_spill] sm:$0xff] %v14763_v13  ;;  %11900 = vpow2.f32 %v4998_v53  ;;  %v10834_v45 = vpop.f32.mrf.mxu0  ;;  %10977 = vmatmul.mubr.msk.bf16.vlgmr.msra.gmra.mxu0 %vm4347_vm4, %v5530_v54  ;;  %v14767_v17 = vpop.eup %11886  ;;  %v14780_v53 = vadd.f32 %v14592_v28, %v14382_v52 }
 0x3d0   :  { %v10841_v57 = vpop.f32.mrf.mxu1  ;;  %17341 = vst [vmem:[#allocation160_spill] sm:$0xff] %v14767_v17  ;;  %10987 = vmatpush3.bf16.msra.mxu0 %v17342_v35  ;;  %10988 = vmatprep.mubr.msk.bf16.mxu0 %vm12287_vm2, %v17107_v33  ;;  %v14776_v50 = vpop.eup %11888  ;;  %v4627_v45 = vsel %vm4347_vm4, %v14759_v8, -inf }
 0x3d1   :  { %v4569_v15 = vpop.xlane.xlu0 %4568  ;;  %v14772_v32 = vpop.f32.mrf.mxu0  ;;  %17344 = vst [vmem:[#allocation161_spill] sm:$0xff] %v14776_v50  ;;  %10998 = vmatprep.subr.bf16.mxu0 %v17107_v33  ;;  %v4633_v30 = vsel %vm4347_vm4, %v14780_v53, -inf }
 0x3d2   :  { %17343 = vst [vmem:[#allocation76_spill] sm:$0xff] %v14772_v32  ;;  %v4566_v54 = vpop.xlane.xlu1 %4565  ;;  %4631 = vmax.xlane.f32.xlu1 %v4630_v60  ;;  %v4805_v20 = vsub.f32 %v17347_v24, %v4569_v15 }
 0x3d3   :  { %v14785_v57 = vpop.eup %11890  ;;  %4628 = vmax.xlane.f32.xlu0 %v4627_v45  ;;  %v10835_v35 = vpop.f32.mrf.mxu0  ;;  %v17348_v45 = vld [vmem:[#allocation115_spill] sm:$0xff] }
 0x3d4   :  { %17345 = vst [vmem:[#allocation162_spill] sm:$0xff] %v14785_v57  ;;  %v14787_v13 = vpop.eup %11892  ;;  %v5532_v32 = vpack.c.bf16 %v14785_v57, %v14776_v50  ;;  %v4804_v35 = vsub.f32 %v17348_v45, %v4566_v54  ;;  %v17356_v54 = vld [vmem:[#allocation61_spill] sm:$0xff] }
 0x3d5   :  { %17346 = vst [vmem:[#allocation163_spill] sm:$0xff] %v14787_v13  ;;  %v5533_v52 = vpack.c.bf16 %v14787_v13, %v14767_v17  ;;  %v14793_v48 = vpop.xlane.xlu0 %4586 }
 0x3d6   :  { %v14795_v60 = vpop.xlane.xlu1 %4583  ;;  %v5004_v45 = vmul.f32 1.442695, %v4804_v35 }
 0x3d7   :  { %4634 = vmax.xlane.f32.xlu0 %v4633_v30  ;;  %10995 = vmatmul.mubr.msk.bf16.vlgmr.msra.gmra.mxu1 %vm4347_vm4, %v5533_v52  ;;  %v14804_v47 = vpop.eup %11894  ;;  %v4806_v52 = vsub.f32 %v17356_v54, %v4572_v62 }
 0x3d8   :  { %10989 = vmatmul.mubr.msk.bf16.vlgmr.msra.gmra.mxu0 %vm4347_vm4, %v5532_v32  ;;  %11005 = vmatpush3.bf16.msra.mxu1 %v17349_v25  ;;  %17350 = vst [vmem:[#allocation116_spill] sm:$0xff] %v14804_v47  ;;  %v14809_v13 = vpop.eup %11896  ;;  %v17354_v25 = vld [vmem:[#allocation114_spill] sm:$0xff]  ;;  %v5006_v32 = vmul.f32 1.442695, %v4805_v20 }
 0x3d9   :  { %10999 = vmatpush3.bf16.msra.mxu0 %v17351_v22  ;;  %11000 = vmatprep.mubr.msk.bf16.mxu0 %vm12287_vm2, %v17107_v33  ;;  %17352 = vst [vmem:[#allocation115_spill] sm:$0xff] %v14809_v13  ;;  %v14813_v30 = vpop.xlane.xlu0 %4580  ;;  %v4807_v15 = vsub.f32 %v17354_v25, %v4575_v6  ;;  %v5535_v17 = vpack.c.bf16 %v14809_v13, %v14804_v47  ;;  %v5008_v20 = vmul.f32 1.442695, %v4806_v52 }
 0x3da   :  { %v14811_v57 = vpop.xlane.xlu1 %4577  ;;  %11006 = vmatprep.mubr.msk.bf16.mxu1 %vm12287_vm2, %v17107_v33  ;;  %11010 = vmatprep.subr.bf16.mxu0 %v17107_v33  ;;  %11902 = vpow2.f32 %v5006_v32 }
 0x3db   :  { %v14818_v24 = vpop.eup %11898  ;;  %11016 = vmatprep.subr.bf16.mxu1 %v17107_v33  ;;  %v5010_v27 = vmul.f32 1.442695, %v4807_v15  ;;  %11904 = vpow2.f32 %v5004_v45 }
 0x3dc   :  { %17353 = vst [vmem:[#allocation99_spill] sm:$0xff] %v14818_v24  ;;  %v14822_v22 = vpop.eup %11900 }
 0x3dd   :  { %17355 = vst [vmem:[#allocation98_spill] sm:$0xff] %v14822_v22  ;;  %v5534_v50 = vpack.c.bf16 %v14822_v22, %v14818_v24  ;;  %v14829_v46 = vpop.f32.mrf.mxu1  ;;  %v14834_v25 = vpop.xlane.xlu0 %4598  ;;  %11906 = vpow2.f32 %v5010_v27 }
 0x3de   :  { %17357 = vst [vmem:[#allocation114_spill] sm:$0xff] %v14829_v46  ;;  %v14831_v10 = vpop.xlane.xlu1 %4595  ;;  %11908 = vpow2.f32 %v5008_v20 }
 0x3df   :  { %11007 = vmatmul.mubr.msk.bf16.vlgmr.msra.gmra.mxu1 %vm4347_vm4, %v5535_v17  ;;  %v10852_v6 = vpop.f32.mrf.mxu1  ;;  %v17359_v17 = vld [vmem:[#allocation58_spill] sm:$0xff] }
 0x3e0   :  { %11001 = vmatmul.mubr.msk.bf16.vlgmr.msra.gmra.mxu0 %vm4347_vm4, %v5534_v50  ;;  %11018 = vmatprep.mubr.msk.bf16.mxu1 %vm12287_vm2, %v17107_v33 }
 0x3e1   :  { %v14839_v62 = vpop.f32.mrf.mxu1  ;;  %11012 = vmatprep.mubr.msk.bf16.mxu0 %vm12287_vm2, %v17107_v33  ;;  %v14847_v32 = vpop.xlane.xlu0 %4592 }
 0x3e2   :  { %17358 = vst [vmem:[#allocation61_spill] sm:$0xff] %v14839_v62  ;;  %v14843_v35 = vpop.xlane.xlu1 %4589  ;;  %v17362_v62 = vld [vmem:[#allocation51_spill] sm:$0xff] }
 0x3e3   :  { %7444 = vrot.lane.b32.xlu1 %v17359_v17, %s12289_s19  ;;  %v10853_v15 = vpop.f32.mrf.mxu1 }
 0x3e6   :  { %v14849_v54 = vpop.xlane.xlu1 %4601 }
 0x3e7   :  { %v14855_v45 = vpop.eup %11902 }
 0x3e8   :  { %17360 = vst [vmem:[#allocation58_spill] sm:$0xff] %v14855_v45  ;;  %v14857_v6 = vpop.eup %11904 }
 0x3e9   :  { %v14853_v52 = vpop.xlane.xlu0 %4604  ;;  %17361 = vst [vmem:[#allocation164_spill] sm:$0xff] %v14857_v6  ;;  %v5536_v13 = vpack.c.bf16 %v14855_v45, %v14857_v6 }
 0x3ea   :  { %v14851_v50 = vpop.xlane.xlu1 %4607  ;;  %v14865_v46 = vpop.eup %11906 }
 0x3eb   :  { %17364 = vst [vmem:[#allocation165_spill] sm:$0xff] %v14865_v46  ;;  %v14870_v47 = vpop.eup %11908 }
 0x3ed   :  { %7491 = vrot.lane.b32.xlu0 %v17362_v62, %s12289_s19  ;;  %v14861_v27 = vpop.f32.mrf.mxu0 }
 0x3ee   :  { %17363 = vst [vmem:[#allocation51_spill] sm:$0xff] %v14861_v27  ;;  %v7257_v17 = vpop.permute.xlu1 %7256  ;;  %v14863_v15 = vpop.xlane.xlu0 %4610 }
 0x3ef   :  { %11011 = vmatpush3.bf16.msra.mxu0 %v7257_v17  ;;  %v10846_v20 = vpop.f32.mrf.mxu0 }
 0x3f0   :  { %11022 = vmatprep.subr.bf16.mxu0 %v17107_v33  ;;  %v5537_v20 = vpack.c.bf16 %v14865_v46, %v14870_v47 }
 0x3f1   :  { %v14872_v22 = vpop.f32.mrf.mxu0  ;;  %v14874_v24 = vpop.f32.mrf.mxu1 }
 0x3f2   :  { %17365 = vst [vmem:[#allocation166_spill] sm:$0xff] %v14872_v22  ;;  %17366 = vst [vmem:[#allocation167_spill] sm:$0xff] %v14874_v24  ;;  %11013 = vmatmul.mubr.msk.bf16.vlgmr.msra.gmra.mxu0 %vm4347_vm4, %v5536_v13  ;;  %v7304_v62 = vpop.permute.xlu0 %7303 }
 0x3f3   :  { %11017 = vmatpush3.bf16.msra.mxu1 %v7304_v62  ;;  %v10847_v27 = vpop.f32.mrf.mxu0  ;;  %v10864_v17 = vpop.f32.mrf.mxu1  ;;  %11024 = vmatprep.mubr.msk.bf16.mxu0 %vm12287_vm2, %v17107_v33 }
 0x3f4   :  { %11028 = vmatprep.subr.bf16.mxu1 %v17107_v33 }
 0x3f5   :  { %v14882_v45 = vpop.f32.mrf.mxu0  ;;  %v14884_v6 = vpop.f32.mrf.mxu1 }
 0x3f6   :  { %17367 = vst [vmem:[#allocation168_spill] sm:$0xff] %v14882_v45  ;;  %17368 = vst [vmem:[#allocation169_spill] sm:$0xff] %v14884_v6  ;;  %11019 = vmatmul.mubr.msk.bf16.vlgmr.msra.gmra.mxu1 %vm4347_vm4, %v5537_v20  ;;  %v14897_v45 = vadd.f32 %v14723_v39, %v14436_v26  ;;  %v14913_v26 = vadd.f32 %v14592_v28, %v14415_v51  ;;  %v4811_v51 = vsub.f32 %v14280_v23, %v14793_v48 }
 0x3f7   :  { %v10858_v24 = vpop.f32.mrf.mxu0  ;;  %v10865_v13 = vpop.f32.mrf.mxu1  ;;  %11030 = vmatprep.mubr.msk.bf16.mxu1 %vm12287_vm2, %v17107_v33 }
 0x3f8   :  { %v14901_v24 = vadd.f32 %v14556_v31, %v14405_v16  ;;  %v4636_v20 = vsel %vm4347_vm4, %v14897_v45, -inf  ;;  %v14907_v13 = vadd.f32 %v14568_v4, %v14452_v9  ;;  %v4645_v9 = vsel %vm4347_vm4, %v14913_v26, -inf }
 0x3f9   :  { %v14889_v27 = vpop.f32.mrf.mxu0 }
 0x3fa   :  { %17369 = vst [vmem:[#allocation170_spill] sm:$0xff] %v14889_v27  ;;  %v4639_v16 = vsel %vm4347_vm4, %v14907_v13, -inf }
 0x3fb   :  { %v10859_v62 = vpop.f32.mrf.mxu0 }
 0x3fc   :  { %v4808_v62 = vsub.f32 %v14289_v36, %v14811_v57 }
 0x3fd   :  { %v14891_v17 = vpop.f32.mrf.mxu1 }
 0x3fe   :  { %17370 = vst [vmem:[#allocation171_spill] sm:$0xff] %v14891_v17 }
 0x3ff   :  { %v10876_v22 = vpop.f32.mrf.mxu1 }
 0x400   :  { %v4642_v22 = vsel %vm4347_vm4, %v14901_v24, -inf }
 0x401   :  { %v14893_v46 = vpop.f32.mrf.mxu1 }
 0x402   :  { %17371 = vst [vmem:[#allocation172_spill] sm:$0xff] %v14893_v46  ;;  %v5012_v46 = vmul.f32 1.442695, %v4808_v62 }
 0x403   :  { %v10877_v6 = vpop.f32.mrf.mxu1 }
 0x404   :  { %v4809_v6 = vsub.f32 %v14299_v12, %v14813_v30  ;;  %v17373_v30 = vld [vmem:[#allocation59_spill] sm:$0xff] }
 0x407   :  { %4637 = vmax.xlane.f32.xlu1 %v4636_v20  ;;  %v5014_v20 = vmul.f32 1.442695, %v4809_v6 }
 0x409   :  { %11910 = vpow2.f32 %v5014_v20 }
 0x40a   :  { %11912 = vpow2.f32 %v5012_v46 }
 0x40b   :  { %4643 = vmax.xlane.f32.xlu1 %v4642_v22  ;;  %v4810_v22 = vsub.f32 %v14277_v38, %v14795_v60 }
 0x40c   :  { %4640 = vmax.xlane.f32.xlu0 %v4639_v16  ;;  %v5018_v16 = vmul.f32 1.442695, %v4811_v51 }
 0x40d   :  { %v5016_v17 = vmul.f32 1.442695, %v4810_v22 }
 0x40e   :  { %11914 = vpow2.f32 %v5018_v16  ;;  %v17380_v16 = vld [vmem:[#allocation53_spill] sm:$0xff] }
 0x40f   :  { %11916 = vpow2.f32 %v5016_v17 }
 0x410   :  { %4646 = vmax.xlane.f32.xlu0 %v4645_v9 }
 0x416   :  { %v14943_v62 = vpop.eup %11910 }
 0x417   :  { %17378 = vst [vmem:[#allocation177_spill] sm:$0xff] %v14943_v62  ;;  %v14947_v51 = vpop.eup %11912 }
 0x418   :  { %17379 = vst [vmem:[#allocation178_spill] sm:$0xff] %v14947_v51 }
 0x41a   :  { %v14927_v12 = vpop.f32.mrf.mxu0 }
 0x41b   :  { %17372 = vst [vmem:[#allocation173_spill] sm:$0xff] %v14927_v12 }
 0x41c   :  { %7538 = vrot.lane.b32.xlu1 %v17373_v30, %s12289_s19  ;;  %v10870_v36 = vpop.f32.mrf.mxu0 }
 0x41e   :  { %v14931_v57 = vpop.xlane.xlu1 %4613  ;;  %v14933_v6 = vpop.f32.mrf.mxu0 }
 0x41f   :  { %17374 = vst [vmem:[#allocation59_spill] sm:$0xff] %v14933_v6  ;;  %v14935_v23 = vpop.f32.mrf.mxu1 }
 0x420   :  { %17375 = vst [vmem:[#allocation174_spill] sm:$0xff] %v14935_v23  ;;  %v10871_v48 = vpop.f32.mrf.mxu0 }
 0x421   :  { %v10888_v38 = vpop.f32.mrf.mxu1 }
 0x422   :  { %v14937_v60 = vpop.xlane.xlu1 %4619  ;;  %v5538_v38 = vpack.c.bf16 %v14943_v62, %v14947_v51 }
 0x423   :  { %v14939_v46 = vpop.f32.mrf.mxu0  ;;  %v14941_v9 = vpop.f32.mrf.mxu1 }
 0x424   :  { %17376 = vst [vmem:[#allocation175_spill] sm:$0xff] %v14939_v46  ;;  %17377 = vst [vmem:[#allocation176_spill] sm:$0xff] %v14941_v9  ;;  %v14945_v20 = vpop.xlane.xlu0 %4616 }
 0x425   :  { %v10882_v17 = vpop.f32.mrf.mxu0  ;;  %v10889_v22 = vpop.f32.mrf.mxu1 }
 0x426   :  { %7585 = vrot.lane.b32.xlu0 %v17380_v16, %s12289_s19  ;;  %v7351_v30 = vpop.permute.xlu1 %7350  ;;  %v14960_v17 = vpop.eup %11914 }
 0x427   :  { %v14951_v36 = vpop.f32.mrf.mxu0  ;;  %v14953_v48 = vpop.f32.mrf.mxu1  ;;  %11023 = vmatpush3.bf16.msra.mxu0 %v7351_v30  ;;  %17383 = vst [vmem:[#allocation180_spill] sm:$0xff] %v14960_v17 }
 0x428   :  { %17381 = vst [vmem:[#allocation53_spill] sm:$0xff] %v14951_v36  ;;  %17382 = vst [vmem:[#allocation179_spill] sm:$0xff] %v14953_v48  ;;  %v14957_v9 = vpop.xlane.xlu0 %4622  ;;  %11034 = vmatprep.subr.bf16.mxu0 %v17107_v33  ;;  %v14963_v22 = vpop.eup %11916 }
 0x429   :  { %v10883_v23 = vpop.f32.mrf.mxu0  ;;  %v10900_v46 = vpop.f32.mrf.mxu1  ;;  %17384 = vst [vmem:[#allocation181_spill] sm:$0xff] %v14963_v22  ;;  %v5539_v6 = vpack.c.bf16 %v14960_v17, %v14963_v22 }
 0x42a   :  { %11025 = vmatmul.mubr.msk.bf16.vlgmr.msra.gmra.mxu0 %vm4347_vm4, %v5538_v38 }
 0x42b   :  { %v14965_v16 = vpop.f32.mrf.mxu1  ;;  %11036 = vmatprep.mubr.msk.bf16.mxu0 %vm12287_vm2, %v17107_v33 }
 0x42c   :  { %17385 = vst [vmem:[#allocation182_spill] sm:$0xff] %v14965_v16  ;;  %v7398_v30 = vpop.permute.xlu0 %7397 }
 0x42d   :  { %11029 = vmatpush3.bf16.msra.mxu1 %v7398_v30  ;;  %v10901_v36 = vpop.f32.mrf.mxu1 }
 0x42e   :  { %11040 = vmatprep.subr.bf16.mxu1 %v17107_v33 }
 0x42f   :  { %v14972_v23 = vpop.f32.mrf.mxu0 }
 0x430   :  { %17386 = vst [vmem:[#allocation183_spill] sm:$0xff] %v14972_v23  ;;  %11031 = vmatmul.mubr.msk.bf16.vlgmr.msra.gmra.mxu1 %vm4347_vm4, %v5539_v6  ;;  %v14987_v23 = vadd.f32 %v14723_v39, %v14471_v41 }
 0x431   :  { %v10894_v46 = vpop.f32.mrf.mxu0  ;;  %11042 = vmatprep.mubr.msk.bf16.mxu1 %vm12287_vm2, %v17107_v33 }
 0x433   :  { %v14977_v38 = vpop.f32.mrf.mxu0  ;;  %v14979_v12 = vpop.f32.mrf.mxu1 }
 0x434   :  { %17387 = vst [vmem:[#allocation184_spill] sm:$0xff] %v14977_v38  ;;  %17388 = vst [vmem:[#allocation185_spill] sm:$0xff] %v14979_v12 }
 0x435   :  { %v10895_v27 = vpop.f32.mrf.mxu0  ;;  %v10912_v30 = vpop.f32.mrf.mxu1 }
 0x436   :  { %v14995_v27 = vadd.f32 %v14556_v31, %v14426_v34  ;;  %v4648_v30 = vsel %vm4347_vm4, %v14987_v23, -inf }
 0x437   :  { %v14981_v36 = vpop.f32.mrf.mxu0  ;;  %v14983_v16 = vpop.f32.mrf.mxu1 }
 0x438   :  { %17389 = vst [vmem:[#allocation186_spill] sm:$0xff] %v14981_v36  ;;  %17390 = vst [vmem:[#allocation187_spill] sm:$0xff] %v14983_v16  ;;  %v17395_v16 = vld [vmem:[#allocation117_spill] sm:$0xff] }
 0x439   :  { %v10906_v48 = vpop.f32.mrf.mxu0  ;;  %v10913_v17 = vpop.f32.mrf.mxu1 }
 0x43a   :  { %v15001_v48 = vadd.f32 %v14568_v4, %v14484_v49  ;;  %v4813_v49 = vsub.f32 %v14323_v21, %v14847_v32 }
 0x43b   :  { %v14989_v6 = vpop.f32.mrf.mxu0  ;;  %v14991_v46 = vpop.f32.mrf.mxu1 }
 0x43c   :  { %17391 = vst [vmem:[#allocation188_spill] sm:$0xff] %v14989_v6  ;;  %17392 = vst [vmem:[#allocation189_spill] sm:$0xff] %v14991_v46  ;;  %v4654_v46 = vsel %vm4347_vm4, %v14995_v27, -inf  ;;  %v4651_v34 = vsel %vm4347_vm4, %v15001_v48, -inf }
 0x43d   :  { %v10907_v22 = vpop.f32.mrf.mxu0  ;;  %v10924_v38 = vpop.f32.mrf.mxu1 }
 0x43e   :  { %v15009_v22 = vadd.f32 %v14592_v28, %v14438_v11  ;;  %v4815_v11 = vsub.f32 %v14302_v37, %v14834_v25  ;;  %v17400_v37 = vld [vmem:[#allocation68_spill] sm:$0xff] }
 0x43f   :  { %v15003_v17 = vpop.f32.mrf.mxu1 }
 0x440   :  { %17393 = vst [vmem:[#allocation190_spill] sm:$0xff] %v15003_v17  ;;  %4649 = vmax.xlane.f32.xlu1 %v4648_v30  ;;  %v4657_v38 = vsel %vm4347_vm4, %v15009_v22, -inf  ;;  %v4812_v30 = vsub.f32 %v14315_v58, %v14843_v35  ;;  %v5026_v6 = vmul.f32 1.442695, %v4815_v11 }
 0x441   :  { %v10925_v41 = vpop.f32.mrf.mxu1 }
 0x442   :  { %v5022_v41 = vmul.f32 1.442695, %v4813_v49 }
 0x444   :  { %4655 = vmax.xlane.f32.xlu1 %v4654_v46  ;;  %v5020_v46 = vmul.f32 1.442695, %v4812_v30  ;;  %11918 = vpow2.f32 %v5022_v41 }
 0x445   :  { %4652 = vmax.xlane.f32.xlu0 %v4651_v34  ;;  %v4814_v34 = vsub.f32 %v17395_v16, %v14831_v10 }
 0x446   :  { %11920 = vpow2.f32 %v5020_v46 }
 0x447   :  { %v5024_v58 = vmul.f32 1.442695, %v4814_v34  ;;  %11922 = vpow2.f32 %v5026_v6 }
 0x449   :  { %4658 = vmax.xlane.f32.xlu0 %v4657_v38  ;;  %11924 = vpow2.f32 %v5024_v58 }
 0x44b   :  { %v15019_v17 = vpop.f32.mrf.mxu0 }
 0x44c   :  { %17394 = vst [vmem:[#allocation191_spill] sm:$0xff] %v15019_v17 }
 0x44d   :  { %v10918_v12 = vpop.f32.mrf.mxu0 }
 0x44f   :  { %v15025_v21 = vpop.f32.mrf.mxu0  ;;  %v15027_v32 = vpop.f32.mrf.mxu1 }
 0x450   :  { %17396 = vst [vmem:[#allocation117_spill] sm:$0xff] %v15025_v21  ;;  %17397 = vst [vmem:[#allocation192_spill] sm:$0xff] %v15027_v32 }
 0x451   :  { %v10919_v35 = vpop.f32.mrf.mxu0  ;;  %v10936_v49 = vpop.f32.mrf.mxu1 }
 0x452   :  { %v15047_v6 = vpop.eup %11918 }
 0x453   :  { %v15029_v38 = vpop.f32.mrf.mxu0  ;;  %v15031_v17 = vpop.f32.mrf.mxu1 }
 0x454   :  { %17398 = vst [vmem:[#allocation193_spill] sm:$0xff] %v15029_v38  ;;  %17399 = vst [vmem:[#allocation194_spill] sm:$0xff] %v15031_v17  ;;  %v15049_v49 = vpop.eup %11920 }
 0x455   :  { %7632 = vrot.lane.b32.xlu1 %v17400_v37, %s12289_s19  ;;  %v10930_v10 = vpop.f32.mrf.mxu0  ;;  %v10937_v25 = vpop.f32.mrf.mxu1  ;;  %v17404_v37 = vld [vmem:[#allocation63_spill] sm:$0xff] }
 0x457   :  { %v15035_v12 = vpop.xlane.xlu1 %4625  ;;  %v15037_v16 = vpop.f32.mrf.mxu0 }
 0x458   :  { %17401 = vst [vmem:[#allocation68_spill] sm:$0xff] %v15037_v16  ;;  %v15039_v30 = vpop.f32.mrf.mxu1 }
 0x459   :  { %17402 = vst [vmem:[#allocation195_spill] sm:$0xff] %v15039_v30  ;;  %v10931_v41 = vpop.f32.mrf.mxu0 }
 0x45a   :  { %v10948_v11 = vpop.f32.mrf.mxu1  ;;  %v5540_v41 = vpack.c.bf16 %v15047_v6, %v15049_v49 }
 0x45b   :  { %v15041_v46 = vpop.xlane.xlu1 %4631  ;;  %v15058_v11 = vpop.eup %11922 }
 0x45c   :  { %v15043_v34 = vpop.f32.mrf.mxu1  ;;  %v15045_v35 = vpop.xlane.xlu0 %4628 }
 0x45d   :  { %17403 = vst [vmem:[#allocation196_spill] sm:$0xff] %v15043_v34  ;;  %v15060_v32 = vpop.eup %11924 }
 0x45e   :  { %v10949_v58 = vpop.f32.mrf.mxu1 }
 0x45f   :  { %7679 = vrot.lane.b32.xlu0 %v17404_v37, %s12289_s19  ;;  %v7445_v10 = vpop.permute.xlu1 %7444  ;;  %v5541_v58 = vpack.c.bf16 %v15058_v11, %v15060_v32 }
 0x460   :  { %v15053_v25 = vpop.xlane.xlu0 %4634  ;;  %11035 = vmatpush3.bf16.msra.mxu0 %v7445_v10 }
 0x461   :  { %11046 = vmatprep.subr.bf16.mxu0 %v17107_v33 }
 0x463   :  { %11037 = vmatmul.mubr.msk.bf16.vlgmr.msra.gmra.mxu0 %vm4347_vm4, %v5540_v41 }
 0x464   :  { %v7492_v17 = vpop.permute.xlu0 %7491  ;;  %11048 = vmatprep.mubr.msk.bf16.mxu0 %vm12287_vm2, %v17107_v33 }
 0x465   :  { %11041 = vmatpush3.bf16.msra.mxu1 %v7492_v17 }
 0x466   :  { %11052 = vmatprep.subr.bf16.mxu1 %v17107_v33 }
 0x468   :  { %v15068_v37 = vpop.f32.mrf.mxu0  ;;  %11043 = vmatmul.mubr.msk.bf16.vlgmr.msra.gmra.mxu1 %vm4347_vm4, %v5541_v58 }
 0x469   :  { %17405 = vst [vmem:[#allocation63_spill] sm:$0xff] %v15068_v37  ;;  %11054 = vmatprep.mubr.msk.bf16.mxu1 %vm12287_vm2, %v17107_v33  ;;  %v15083_v37 = vadd.f32 %v14723_v39, %v14493_v29 }
 0x46a   :  { %v10942_v10 = vpop.f32.mrf.mxu0 }
 0x46b   :  { %v15075_v41 = vpop.f32.mrf.mxu1  ;;  %v15089_v10 = vadd.f32 %v14556_v31, %v14454_v55 }
 0x46c   :  { %v15073_v38 = vpop.f32.mrf.mxu0  ;;  %17407 = vst [vmem:[#allocation198_spill] sm:$0xff] %v15075_v41 }
 0x46d   :  { %17406 = vst [vmem:[#allocation197_spill] sm:$0xff] %v15073_v38  ;;  %v10960_v21 = vpop.f32.mrf.mxu1  ;;  %v4666_v29 = vsel %vm4347_vm4, %v15089_v10, -inf }
 0x46e   :  { %v10943_v16 = vpop.f32.mrf.mxu0  ;;  %v4660_v21 = vsel %vm4347_vm4, %v15083_v37, -inf }
 0x46f   :  { %v15079_v34 = vpop.f32.mrf.mxu1  ;;  %v15095_v16 = vadd.f32 %v14568_v4, %v14498_v5 }
 0x470   :  { %v15077_v17 = vpop.f32.mrf.mxu0  ;;  %17409 = vst [vmem:[#allocation200_spill] sm:$0xff] %v15079_v34 }
 0x471   :  { %17408 = vst [vmem:[#allocation199_spill] sm:$0xff] %v15077_v17  ;;  %v10961_v36 = vpop.f32.mrf.mxu1  ;;  %v4663_v55 = vsel %vm4347_vm4, %v15095_v16, -inf }
 0x472   :  { %v10954_v30 = vpop.f32.mrf.mxu0 }
 0x474   :  { %v15085_v58 = vpop.f32.mrf.mxu0 }
 0x475   :  { %17410 = vst [vmem:[#allocation201_spill] sm:$0xff] %v15085_v58 }
 0x476   :  { %v10955_v62 = vpop.f32.mrf.mxu0 }
 0x477   :  { %v15103_v62 = vadd.f32 %v14592_v28, %v14473_v63  ;;  %v17415_v28 = vld [vmem:[#allocation126_spill] sm:$0xff] }
 0x479   :  { %4661 = vmax.xlane.f32.xlu1 %v4660_v21  ;;  %v15097_v36 = vpop.f32.mrf.mxu1  ;;  %v4669_v4 = vsel %vm4347_vm4, %v15103_v62, -inf  ;;  %v17413_v21 = vld [vmem:[#allocation75_spill] sm:$0xff] }
 0x47a   :  { %17411 = vst [vmem:[#allocation202_spill] sm:$0xff] %v15097_v36  ;;  %v17414_v36 = vld [vmem:[#allocation120_spill] sm:$0xff] }
 0x47b   :  { %v10972_v30 = vpop.f32.mrf.mxu1  ;;  %v4816_v41 = vsub.f32 %v17414_v36, %v14849_v54 }
 0x47c   :  { %v4817_v30 = vsub.f32 %v17413_v21, %v14853_v52  ;;  %v17420_v21 = vld [vmem:[#allocation69_spill] sm:$0xff] }
 0x47d   :  { %4667 = vmax.xlane.f32.xlu1 %v4666_v29  ;;  %v15107_v31 = vpop.f32.mrf.mxu1  ;;  %v4819_v29 = vsub.f32 %v17415_v28, %v14863_v15  ;;  %v5028_v17 = vmul.f32 1.442695, %v4816_v41 }
 0x47e   :  { %17412 = vst [vmem:[#allocation203_spill] sm:$0xff] %v15107_v31  ;;  %4664 = vmax.xlane.f32.xlu0 %v4663_v55  ;;  %v5030_v63 = vmul.f32 1.442695, %v4817_v30  ;;  %v17417_v55 = vld [vmem:[#allocation121_spill] sm:$0xff] }
 0x47f   :  { %v10973_v5 = vpop.f32.mrf.mxu1  ;;  %v5034_v58 = vmul.f32 1.442695, %v4819_v29 }
 0x480   :  { %v4818_v5 = vsub.f32 %v17417_v55, %v14851_v50  ;;  %11926 = vpow2.f32 %v5030_v63 }
 0x481   :  { %11928 = vpow2.f32 %v5028_v17 }
 0x482   :  { %4670 = vmax.xlane.f32.xlu0 %v4669_v4  ;;  %v5032_v52 = vmul.f32 1.442695, %v4818_v5  ;;  %11930 = vpow2.f32 %v5034_v58 }
 0x484   :  { %11932 = vpow2.f32 %v5032_v52 }
 0x487   :  { %v15117_v34 = vpop.f32.mrf.mxu0 }
 0x488   :  { %17416 = vst [vmem:[#allocation75_spill] sm:$0xff] %v15117_v34 }
 0x489   :  { %v10966_v31 = vpop.f32.mrf.mxu0 }
 0x48b   :  { %v15121_v4 = vpop.f32.mrf.mxu0  ;;  %v15123_v38 = vpop.f32.mrf.mxu1 }
 0x48c   :  { %17418 = vst [vmem:[#allocation120_spill] sm:$0xff] %v15121_v4  ;;  %17419 = vst [vmem:[#allocation126_spill] sm:$0xff] %v15123_v38 }
 0x48d   :  { %v10967_v54 = vpop.f32.mrf.mxu0  ;;  %v10984_v36 = vpop.f32.mrf.mxu1 }
 0x48e   :  { %7726 = vrot.lane.b32.xlu1 %v17420_v21, %s12289_s19  ;;  %v15141_v5 = vpop.eup %11926  ;;  %v17426_v54 = vld [vmem:[#allocation64_spill] sm:$0xff] }
 0x48f   :  { %v15127_v15 = vpop.f32.mrf.mxu0  ;;  %v15129_v41 = vpop.f32.mrf.mxu1 }
 0x490   :  { %17421 = vst [vmem:[#allocation121_spill] sm:$0xff] %v15127_v15  ;;  %17422 = vst [vmem:[#allocation69_spill] sm:$0xff] %v15129_v41  ;;  %v15131_v50 = vpop.xlane.xlu1 %4637  ;;  %v15147_v21 = vpop.eup %11928 }
 0x491   :  { %v10978_v31 = vpop.f32.mrf.mxu0  ;;  %v10985_v30 = vpop.f32.mrf.mxu1 }
 0x492   :  { %v15158_v38 = vpop.eup %11930 }
 0x493   :  { %v15133_v63 = vpop.f32.mrf.mxu0  ;;  %17429 = vst [vmem:[#allocation208_spill] sm:$0xff] %v15158_v38 }
 0x494   :  { %17423 = vst [vmem:[#allocation204_spill] sm:$0xff] %v15133_v63  ;;  %v15135_v28 = vpop.xlane.xlu1 %4643 }
 0x495   :  { %v15137_v17 = vpop.xlane.xlu0 %4640  ;;  %v10979_v29 = vpop.f32.mrf.mxu0 }
 0x496   :  { %v5542_v29 = vpack.c.bf16 %v15141_v5, %v15147_v21 }
 0x497   :  { %v15139_v55 = vpop.f32.mrf.mxu1 }
 0x498   :  { %17424 = vst [vmem:[#allocation205_spill] sm:$0xff] %v15139_v55  ;;  %v15143_v58 = vpop.f32.mrf.mxu0  ;;  %7773 = vrot.lane.b32.xlu0 %v17426_v54, %s12289_s19  ;;  %v7539_v36 = vpop.permute.xlu1 %7538  ;;  %v15181_v55 = vadd.f32 %v14723_v39, %v14506_v61 }
 0x499   :  { %17425 = vst [vmem:[#allocation206_spill] sm:$0xff] %v15143_v58  ;;  %v10996_v52 = vpop.f32.mrf.mxu1  ;;  %v15149_v30 = vpop.xlane.xlu0 %4646  ;;  %11047 = vmatpush3.bf16.msra.mxu0 %v7539_v36 }
 0x49a   :  { %v10990_v31 = vpop.f32.mrf.mxu0  ;;  %11058 = vmatprep.subr.bf16.mxu0 %v17107_v33  ;;  %v15163_v36 = vpop.eup %11932 }
 0x49b   :  { %v15153_v15 = vpop.f32.mrf.mxu1  ;;  %17430 = vst [vmem:[#allocation209_spill] sm:$0xff] %v15163_v36  ;;  %v5543_v34 = vpack.c.bf16 %v15158_v38, %v15163_v36  ;;  %v17439_v36 = vld [vmem:[#allocation45_spill] sm:$0xff] }
 0x49c   :  { %17427 = vst [vmem:[#allocation64_spill] sm:$0xff] %v15153_v15  ;;  %v15156_v63 = vpop.f32.mrf.mxu0  ;;  %11049 = vmatmul.mubr.msk.bf16.vlgmr.msra.gmra.mxu0 %vm4347_vm4, %v5542_v29 }
 0x49d   :  { %17428 = vst [vmem:[#allocation207_spill] sm:$0xff] %v15156_v63  ;;  %v10997_v54 = vpop.f32.mrf.mxu1  ;;  %v7586_v41 = vpop.permute.xlu0 %7585  ;;  %11060 = vmatprep.mubr.msk.bf16.mxu0 %vm12287_vm2, %v17107_v33 }
 0x49e   :  { %v10991_v52 = vpop.f32.mrf.mxu0  ;;  %11053 = vmatpush3.bf16.msra.mxu1 %v7586_v41 }
 0x49f   :  { %v15165_v31 = vpop.f32.mrf.mxu1  ;;  %11064 = vmatprep.subr.bf16.mxu1 %v17107_v33 }
 0x4a0   :  { %17431 = vst [vmem:[#allocation210_spill] sm:$0xff] %v15165_v31  ;;  %v15169_v4 = vpop.f32.mrf.mxu0 }
 0x4a1   :  { %17432 = vst [vmem:[#allocation211_spill] sm:$0xff] %v15169_v4  ;;  %v11008_v54 = vpop.f32.mrf.mxu1  ;;  %11055 = vmatmul.mubr.msk.bf16.vlgmr.msra.gmra.mxu1 %vm4347_vm4, %v5543_v34 }
 0x4a2   :  { %v11002_v15 = vpop.f32.mrf.mxu0  ;;  %11066 = vmatprep.mubr.msk.bf16.mxu1 %vm12287_vm2, %v17107_v33  ;;  %v15186_v54 = vld [vmem:[%s16885_s1 + $0x10] sm:$0xff] }
 0x4a3   :  { %v15173_v29 = vpop.f32.mrf.mxu1  ;;  %v15190_v34 = vadd.f32 %v15186_v54, %v14486_v1  ;;  %v4672_v15 = vsel %vm4347_vm4, %v15181_v55, -inf }
 0x4a4   :  { %17433 = vst [vmem:[#allocation212_spill] sm:$0xff] %v15173_v29  ;;  %v15177_v52 = vpop.f32.mrf.mxu0 }
 0x4a5   :  { %17434 = vst [vmem:[#allocation213_spill] sm:$0xff] %v15177_v52  ;;  %v11009_v41 = vpop.f32.mrf.mxu1  ;;  %v4678_v1 = vsel %vm4347_vm4, %v15190_v34, -inf  ;;  %v15210_v52 = vld [vmem:[%s16885_s1 + $0x18] sm:$0xff] }
 0x4a6   :  { %v11003_v31 = vpop.f32.mrf.mxu0  ;;  %v15214_v4 = vadd.f32 %v15210_v52, %v14495_v59  ;;  %v4821_v59 = vsub.f32 %v14572_v40, %v14945_v20 }
 0x4a7   :  { %v15197_v31 = vld [vmem:[%s16885_s1 + $0x8] sm:$0xff] }
 0x4a8   :  { %v15201_v61 = vadd.f32 %v15197_v31, %v14518_v0  ;;  %v4681_v51 = vsel %vm4347_vm4, %v15214_v4, -inf }
 0x4b2   :  { %v15203_v41 = vpop.f32.mrf.mxu0  ;;  %4673 = vmax.xlane.f32.xlu1 %v4672_v15 }
 0x4b3   :  { %17435 = vst [vmem:[#allocation214_spill] sm:$0xff] %v15203_v41 }
 0x4b4   :  { %v11014_v29 = vpop.f32.mrf.mxu0 }
 0x4b5   :  { %v4675_v29 = vsel %vm4347_vm4, %v15201_v61, -inf }
 0x4b6   :  { %v15216_v63 = vpop.f32.mrf.mxu0  ;;  %v15218_v0 = vpop.f32.mrf.mxu1  ;;  %4679 = vmax.xlane.f32.xlu1 %v4678_v1  ;;  %v5038_v1 = vmul.f32 1.442695, %v4821_v59  ;;  %v15272_v59 = vadd.f32 %v15186_v54, %v14500_v7 }
 0x4b7   :  { %17436 = vst [vmem:[#allocation215_spill] sm:$0xff] %v15216_v63  ;;  %17437 = vst [vmem:[#allocation216_spill] sm:$0xff] %v15218_v0  ;;  %4676 = vmax.xlane.f32.xlu0 %v4675_v29  ;;  %v4820_v0 = vsub.f32 %v14532_v19, %v14931_v57  ;;  %v4823_v63 = vsub.f32 %v14596_v42, %v14957_v9  ;;  %v17441_v9 = vld [vmem:[#allocation38_spill] sm:$0xff] }
 0x4b8   :  { %v11015_v15 = vpop.f32.mrf.mxu0  ;;  %v11020_v41 = vpop.f32.mrf.mxu1  ;;  %11934 = vpow2.f32 %v5038_v1 }
 0x4b9   :  { %v5036_v29 = vmul.f32 1.442695, %v4820_v0  ;;  %v4822_v41 = vsub.f32 %v14560_v43, %v14937_v60  ;;  %v5042_v15 = vmul.f32 1.442695, %v4823_v63  ;;  %v15268_v0 = vadd.f32 %v14723_v39, %v14538_v18 }
 0x4ba   :  { %v15222_v58 = vpop.f32.mrf.mxu1  ;;  %v4690_v18 = vsel %vm4347_vm4, %v15272_v59, -inf }
 0x4bb   :  { %17438 = vst [vmem:[#allocation217_spill] sm:$0xff] %v15222_v58  ;;  %4682 = vmax.xlane.f32.xlu0 %v4681_v51  ;;  %11936 = vpow2.f32 %v5036_v29  ;;  %v5040_v58 = vmul.f32 1.442695, %v4822_v41  ;;  %v4684_v29 = vsel %vm4347_vm4, %v15268_v0, -inf  ;;  %v15280_v41 = vadd.f32 %v15197_v31, %v14577_v3 }
 0x4bc   :  { %v11021_v38 = vpop.f32.mrf.mxu1  ;;  %11938 = vpow2.f32 %v5042_v15 }
 0x4bd   :  { %11940 = vpow2.f32 %v5040_v58 }
 0x4c5   :  { %v15242_v42 = vpop.eup %11934 }
 0x4c6   :  { %17440 = vst [vmem:[#allocation45_spill] sm:$0xff] %v15242_v42 }
 0x4c7   :  { %7820 = vrot.lane.b32.xlu1 %v17439_v36, %s12289_s19 }
 0x4c8   :  { %v15246_v60 = vpop.eup %11936 }
 0x4c9   :  { %v15236_v40 = vpop.xlane.xlu1 %4649  ;;  %17442 = vst [vmem:[#allocation38_spill] sm:$0xff] %v15246_v60  ;;  %v5544_v51 = vpack.c.bf16 %v15242_v42, %v15246_v60  ;;  %v15253_v38 = vpop.eup %11938 }
 0x4ca   :  { %17443 = vst [vmem:[#allocation218_spill] sm:$0xff] %v15253_v38  ;;  %v15258_v58 = vpop.eup %11940 }
 0x4cb   :  { %17444 = vst [vmem:[#allocation219_spill] sm:$0xff] %v15258_v58  ;;  %v5545_v36 = vpack.c.bf16 %v15253_v38, %v15258_v58 }
 0x4cd   :  { %v15238_v19 = vpop.xlane.xlu1 %4655 }
 0x4ce   :  { %v15240_v57 = vpop.xlane.xlu0 %4652 }
 0x4d1   :  { %7867 = vrot.lane.b32.xlu0 %v17441_v9, %s12289_s19  ;;  %v7633_v43 = vpop.permute.xlu1 %7632 }
 0x4d2   :  { %v15248_v20 = vpop.xlane.xlu0 %4658  ;;  %11059 = vmatpush3.bf16.msra.mxu0 %v7633_v43  ;;  %v17447_v43 = vld [vmem:[#allocation132_spill] sm:$0xff] }
 0x4d3   :  { %11070 = vmatprep.subr.bf16.mxu0 %v17107_v33  ;;  %v15288_v7 = vadd.f32 %v15210_v52, %v17447_v43 }
 0x4d5   :  { %11061 = vmatmul.mubr.msk.bf16.vlgmr.msra.gmra.mxu0 %vm4347_vm4, %v5544_v51  ;;  %v4687_v51 = vsel %vm4347_vm4, %v15280_v41, -inf }
 0x4d6   :  { %v7680_v63 = vpop.permute.xlu0 %7679  ;;  %11072 = vmatprep.mubr.msk.bf16.mxu0 %vm12287_vm2, %v17107_v33 }
 0x4d7   :  { %11065 = vmatpush3.bf16.msra.mxu1 %v7680_v63 }
 0x4d8   :  { %11076 = vmatprep.subr.bf16.mxu1 %v17107_v33 }
 0x4da   :  { %11067 = vmatmul.mubr.msk.bf16.vlgmr.msra.gmra.mxu1 %vm4347_vm4, %v5545_v36 }
 0x4db   :  { %11078 = vmatprep.mubr.msk.bf16.mxu1 %vm12287_vm2, %v17107_v33 }
 0x4ea   :  { %v15274_v1 = vpop.f32.mrf.mxu0 }
 0x4eb   :  { %17445 = vst [vmem:[#allocation220_spill] sm:$0xff] %v15274_v1  ;;  %4685 = vmax.xlane.f32.xlu1 %v4684_v29  ;;  %v4693_v29 = vsel %vm4347_vm4, %v15288_v7, -inf }
 0x4ec   :  { %v11026_v15 = vpop.f32.mrf.mxu0 }
 0x4ed   :  { %v4825_v15 = vsub.f32 %v14759_v8, %v15045_v35  ;;  %v17450_v8 = vld [vmem:[#allocation47_spill] sm:$0xff] }
 0x4ee   :  { %v15282_v9 = vpop.f32.mrf.mxu0 }
 0x4ef   :  { %17446 = vst [vmem:[#allocation221_spill] sm:$0xff] %v15282_v9  ;;  %4691 = vmax.xlane.f32.xlu1 %v4690_v18  ;;  %v4824_v18 = vsub.f32 %v14727_v44, %v15035_v12  ;;  %v5046_v9 = vmul.f32 1.442695, %v4825_v15 }
 0x4f0   :  { %v15292_v63 = vpop.f32.mrf.mxu1  ;;  %4688 = vmax.xlane.f32.xlu0 %v4687_v51  ;;  %v11027_v3 = vpop.f32.mrf.mxu0 }
 0x4f1   :  { %17448 = vst [vmem:[#allocation132_spill] sm:$0xff] %v15292_v63  ;;  %v4827_v63 = vsub.f32 %v14780_v53, %v15053_v25  ;;  %v5044_v51 = vmul.f32 1.442695, %v4824_v18  ;;  %v4826_v3 = vsub.f32 %v14748_v2, %v15041_v46  ;;  %11942 = vpow2.f32 %v5046_v9  ;;  %v17452_v25 = vld [vmem:[#allocation39_spill] sm:$0xff] }
 0x4f2   :  { %v11032_v36 = vpop.f32.mrf.mxu1 }
 0x4f3   :  { %v5050_v36 = vmul.f32 1.442695, %v4827_v63  ;;  %11944 = vpow2.f32 %v5044_v51  ;;  %v5048_v38 = vmul.f32 1.442695, %v4826_v3  ;;  %v17456_v51 = vld [vmem:[#allocation82_spill] sm:$0xff] }
 0x4f4   :  { %v15298_v1 = vpop.f32.mrf.mxu1  ;;  %4694 = vmax.xlane.f32.xlu0 %v4693_v29  ;;  %v15344_v3 = vadd.f32 %v15186_v54, %v17456_v51 }
 0x4f5   :  { %17449 = vst [vmem:[#allocation222_spill] sm:$0xff] %v15298_v1  ;;  %11946 = vpow2.f32 %v5050_v36 }
 0x4f6   :  { %v11033_v43 = vpop.f32.mrf.mxu1  ;;  %11948 = vpow2.f32 %v5048_v38 }
 0x4f7   :  { %v15340_v43 = vadd.f32 %v14723_v39, %v14599_v56  ;;  %v4702_v56 = vsel %vm4347_vm4, %v15344_v3, -inf  ;;  %v17460_v39 = vld [vmem:[#allocation85_spill] sm:$0xff] }
 0x4fe   :  { %v15314_v53 = vpop.eup %11942 }
 0x4ff   :  { %17451 = vst [vmem:[#allocation47_spill] sm:$0xff] %v15314_v53 }
 0x500   :  { %7914 = vrot.lane.b32.xlu1 %v17450_v8, %s12289_s19  ;;  %v15318_v46 = vpop.eup %11944  ;;  %v4696_v8 = vsel %vm4347_vm4, %v15340_v43, -inf }
 0x501   :  { %17453 = vst [vmem:[#allocation39_spill] sm:$0xff] %v15318_v46  ;;  %v5546_v63 = vpack.c.bf16 %v15314_v53, %v15318_v46  ;;  %v17463_v53 = vld [vmem:[#allocation49_spill] sm:$0xff] }
 0x502   :  { %v15308_v35 = vpop.xlane.xlu1 %4661  ;;  %v15325_v38 = vpop.eup %11946 }
 0x503   :  { %17454 = vst [vmem:[#allocation223_spill] sm:$0xff] %v15325_v38  ;;  %v15330_v15 = vpop.eup %11948 }
 0x504   :  { %17455 = vst [vmem:[#allocation224_spill] sm:$0xff] %v15330_v15  ;;  %v5547_v18 = vpack.c.bf16 %v15325_v38, %v15330_v15  ;;  %v4831_v38 = vsub.f32 %v14913_v26, %v15149_v30 }
 0x506   :  { %v15310_v44 = vpop.xlane.xlu1 %4667 }
 0x507   :  { %v15312_v12 = vpop.xlane.xlu0 %4664 }
 0x50a   :  { %7961 = vrot.lane.b32.xlu0 %v17452_v25, %s12289_s19  ;;  %v7727_v2 = vpop.permute.xlu1 %7726  ;;  %v17458_v25 = vld [vmem:[#allocation139_spill] sm:$0xff] }
 0x50b   :  { %v15320_v9 = vpop.xlane.xlu0 %4670  ;;  %11071 = vmatpush3.bf16.msra.mxu0 %v7727_v2  ;;  %v15352_v2 = vadd.f32 %v15197_v31, %v17458_v25 }
 0x50c   :  { %11082 = vmatprep.subr.bf16.mxu0 %v17107_v33 }
 0x50d   :  { %v4699_v1 = vsel %vm4347_vm4, %v15352_v2, -inf }
 0x50e   :  { %11073 = vmatmul.mubr.msk.bf16.vlgmr.msra.gmra.mxu0 %vm4347_vm4, %v5546_v63 }
 0x50f   :  { %v7774_v29 = vpop.permute.xlu0 %7773  ;;  %11084 = vmatprep.mubr.msk.bf16.mxu0 %vm12287_vm2, %v17107_v33 }
 0x510   :  { %11077 = vmatpush3.bf16.msra.mxu1 %v7774_v29 }
 0x511   :  { %11088 = vmatprep.subr.bf16.mxu1 %v17107_v33 }
 0x513   :  { %11079 = vmatmul.mubr.msk.bf16.vlgmr.msra.gmra.mxu1 %vm4347_vm4, %v5547_v18  ;;  %v15360_v18 = vadd.f32 %v15210_v52, %v17460_v39 }
 0x514   :  { %11090 = vmatprep.mubr.msk.bf16.mxu1 %vm12287_vm2, %v17107_v33 }
 0x523   :  { %v15346_v36 = vpop.f32.mrf.mxu0 }
 0x524   :  { %17457 = vst [vmem:[#allocation82_spill] sm:$0xff] %v15346_v36  ;;  %4697 = vmax.xlane.f32.xlu1 %v4696_v8 }
 0x525   :  { %v11038_v63 = vpop.f32.mrf.mxu0 }
 0x526   :  { %v4705_v63 = vsel %vm4347_vm4, %v15360_v18, -inf }
 0x527   :  { %v15354_v29 = vpop.f32.mrf.mxu0 }
 0x528   :  { %17459 = vst [vmem:[#allocation139_spill] sm:$0xff] %v15354_v29  ;;  %v15362_v51 = vpop.f32.mrf.mxu1  ;;  %4703 = vmax.xlane.f32.xlu1 %v4702_v56  ;;  %v4829_v29 = vsub.f32 %v14907_v13, %v15137_v17  ;;  %v17464_v17 = vld [vmem:[#allocation44_spill] sm:$0xff] }
 0x529   :  { %17461 = vst [vmem:[#allocation85_spill] sm:$0xff] %v15362_v51  ;;  %4700 = vmax.xlane.f32.xlu0 %v4699_v1  ;;  %v11039_v25 = vpop.f32.mrf.mxu0  ;;  %v4828_v51 = vsub.f32 %v14897_v45, %v15131_v50 }
 0x52a   :  { %v11044_v36 = vpop.f32.mrf.mxu1  ;;  %v5054_v56 = vmul.f32 1.442695, %v4829_v29  ;;  %v5058_v25 = vmul.f32 1.442695, %v4831_v38 }
 0x52b   :  { %v5052_v1 = vmul.f32 1.442695, %v4828_v51  ;;  %v4830_v36 = vsub.f32 %v14901_v24, %v15135_v28 }
 0x52c   :  { %v15366_v8 = vpop.f32.mrf.mxu1  ;;  %11950 = vpow2.f32 %v5054_v56  ;;  %v17465_v56 = vld [vmem:[#allocation93_spill] sm:$0xff] }
 0x52d   :  { %17462 = vst [vmem:[#allocation225_spill] sm:$0xff] %v15366_v8  ;;  %4706 = vmax.xlane.f32.xlu0 %v4705_v63  ;;  %11952 = vpow2.f32 %v5052_v1  ;;  %v5056_v8 = vmul.f32 1.442695, %v4830_v36  ;;  %v12281_v63 = vld [vmem:[%s16885_s1] sm:$0xff]  ;;  %v15418_v1 = vadd.f32 %v15186_v54, %v17465_v56  ;;  %s12290_s1 = smov 8  }
 0x52e   :  { %v11045_v39 = vpop.f32.mrf.mxu1  ;;  %11954 = vpow2.f32 %v5058_v25  ;;  %v17466_v25 = vld [vmem:[#allocation144_spill] sm:$0xff] }
 0x52f   :  { %11956 = vpow2.f32 %v5056_v8  ;;  %v15414_v39 = vadd.f32 %v12281_v63, %v14615_v14  ;;  %v17468_v14 = vld [vmem:[#allocation91_spill] sm:$0xff] }
 0x531   :  { %v4708_v36 = vsel %vm4347_vm4, %v15414_v39, -inf }
 0x539   :  { %8008 = vrot.lane.b32.xlu1 %v17463_v53, %s12289_s19  ;;  %v15386_v26 = vpop.eup %11950 }
 0x53a   :  { %v15390_v28 = vpop.eup %11952 }
 0x53b   :  { %v15380_v13 = vpop.xlane.xlu1 %4673  ;;  %v5548_v53 = vpack.c.bf16 %v15386_v26, %v15390_v28  ;;  %v15397_v38 = vpop.eup %11954 }
 0x53c   :  { %v15402_v51 = vpop.eup %11956 }
 0x53d   :  { %v5549_v8 = vpack.c.bf16 %v15397_v38, %v15402_v51 }
 0x53f   :  { %v15382_v45 = vpop.xlane.xlu1 %4679 }
 0x540   :  { %v15384_v50 = vpop.xlane.xlu0 %4676 }
 0x543   :  { %8055 = vrot.lane.b32.xlu0 %v17464_v17, %s12289_s19  ;;  %v7821_v24 = vpop.permute.xlu1 %7820  ;;  %v15424_v17 = vadd.f32 %v15197_v31, %v17466_v25 }
 0x544   :  { %v15392_v30 = vpop.xlane.xlu0 %4682  ;;  %11083 = vmatpush3.bf16.msra.mxu0 %v7821_v24 }
 0x545   :  { %11094 = vmatprep.subr.bf16.mxu0 %v17107_v33  ;;  %v4711_v15 = vsel %vm4347_vm4, %v15424_v17, -inf }
 0x547   :  { %11085 = vmatmul.mubr.msk.bf16.vlgmr.msra.gmra.mxu0 %vm4347_vm4, %v5548_v53 }
 0x548   :  { %v7868_v29 = vpop.permute.xlu0 %7867  ;;  %11096 = vmatprep.mubr.msk.bf16.mxu0 %vm12287_vm2, %v17107_v33 }
 0x549   :  { %11089 = vmatpush3.bf16.msra.mxu1 %v7868_v29  ;;  %v4714_v29 = vsel %vm4347_vm4, %v15418_v1, -inf }
 0x54a   :  { %11100 = vmatprep.subr.bf16.mxu1 %v17107_v33 }
 0x54c   :  { %11091 = vmatmul.mubr.msk.bf16.vlgmr.msra.gmra.mxu1 %vm4347_vm4, %v5549_v8  ;;  %v15432_v8 = vadd.f32 %v15210_v52, %v17468_v14 }
 0x54d   :  { %11102 = vmatprep.mubr.msk.bf16.mxu1 %vm12287_vm2, %v17107_v33 }
 0x55c   :  { %v15426_v24 = vpop.f32.mrf.mxu0 }
 0x55d   :  { %17467 = vst [vmem:[#allocation49_spill] sm:$0xff] %v15426_v24  ;;  %4709 = vmax.xlane.f32.xlu1 %v4708_v36  ;;  %v4717_v36 = vsel %vm4347_vm4, %v15432_v8, -inf }
 0x55e   :  { %v11050_v53 = vpop.f32.mrf.mxu0 }
 0x55f   :  { %v4833_v53 = vsub.f32 %v15001_v48, %v15240_v57  ;;  %v17472_v48 = vld [vmem:[#allocation52_spill] sm:$0xff] }
 0x560   :  { %v15434_v56 = vpop.f32.mrf.mxu0 }
 0x561   :  { %17469 = vst [vmem:[#allocation44_spill] sm:$0xff] %v15434_v56  ;;  %4715 = vmax.xlane.f32.xlu1 %v4714_v29  ;;  %v15438_v46 = vpop.f32.mrf.mxu1  ;;  %v4832_v29 = vsub.f32 %v14987_v23, %v15236_v40  ;;  %v5062_v56 = vmul.f32 1.442695, %v4833_v53 }
 0x562   :  { %17470 = vst [vmem:[#allocation93_spill] sm:$0xff] %v15438_v46  ;;  %4712 = vmax.xlane.f32.xlu0 %v4711_v15  ;;  %v11051_v25 = vpop.f32.mrf.mxu0  ;;  %v4835_v46 = vsub.f32 %v15009_v22, %v15248_v20  ;;  %v17473_v20 = vld [vmem:[#allocation46_spill] sm:$0xff] }
 0x563   :  { %v11056_v24 = vpop.f32.mrf.mxu1  ;;  %v5060_v15 = vmul.f32 1.442695, %v4832_v29  ;;  %11958 = vpow2.f32 %v5062_v56 }
 0x564   :  { %v4834_v24 = vsub.f32 %v14995_v27, %v15238_v19  ;;  %v5066_v25 = vmul.f32 1.442695, %v4835_v46 }
 0x565   :  { %v15444_v58 = vpop.f32.mrf.mxu1  ;;  %11960 = vpow2.f32 %v5060_v15 }
 0x566   :  { %17471 = vst [vmem:[#allocation144_spill] sm:$0xff] %v15444_v58  ;;  %4718 = vmax.xlane.f32.xlu0 %v4717_v36  ;;  %v5064_v42 = vmul.f32 1.442695, %v4834_v24  ;;  %11962 = vpow2.f32 %v5066_v25  ;;  %v17475_v24 = vld [vmem:[#allocation140_spill] sm:$0xff] }
 0x567   :  { %v11057_v14 = vpop.f32.mrf.mxu1  ;;  %v15489_v25 = vadd.f32 %v15186_v54, %v17475_v24  ;;  %v17482_v58 = vld [vmem:[#allocation60_spill] sm:$0xff] }
 0x568   :  { %11964 = vpow2.f32 %v5064_v42  ;;  %v17474_v14 = vld [vmem:[#allocation94_spill] sm:$0xff] }
 0x569   :  { %v15485_v15 = vadd.f32 %v12281_v63, %v17474_v14  ;;  %v4726_v63 = vsel %vm4347_vm4, %v15489_v25, -inf  ;;  %v17479_v14 = vld [vmem:[#allocation141_spill] sm:$0xff] }
 0x56a   :  { %v15505_v54 = vadd.f32 %v15210_v52, %v17479_v14  ;;  %v4836_v14 = vsub.f32 %v15083_v37, %v15308_v35  ;;  %v17483_v37 = vld [vmem:[#allocation62_spill] sm:$0xff] }
 0x570   :  { %v15460_v22 = vpop.eup %11958 }
 0x572   :  { %8102 = vrot.lane.b32.xlu1 %v17472_v48, %s12289_s19  ;;  %v15464_v19 = vpop.eup %11960 }
 0x573   :  { %v5550_v56 = vpack.c.bf16 %v15460_v22, %v15464_v19  ;;  %v15471_v42 = vpop.eup %11962 }
 0x574   :  { %v15454_v57 = vpop.xlane.xlu1 %4685 }
 0x575   :  { %v15476_v53 = vpop.eup %11964 }
 0x576   :  { %v5551_v29 = vpack.c.bf16 %v15471_v42, %v15476_v53 }
 0x578   :  { %v15456_v23 = vpop.xlane.xlu1 %4691 }
 0x579   :  { %v15458_v40 = vpop.xlane.xlu0 %4688 }
 0x57c   :  { %8149 = vrot.lane.b32.xlu0 %v17473_v20, %s12289_s19  ;;  %v7915_v27 = vpop.permute.xlu1 %7914  ;;  %v4720_v20 = vsel %vm4347_vm4, %v15485_v15, -inf }
 0x57d   :  { %v15466_v46 = vpop.xlane.xlu0 %4694  ;;  %11095 = vmatpush3.bf16.msra.mxu0 %v7915_v27  ;;  %v17477_v27 = vld [vmem:[#allocation95_spill] sm:$0xff] }
 0x57e   :  { %11106 = vmatprep.subr.bf16.mxu0 %v17107_v33 }
 0x580   :  { %11097 = vmatmul.mubr.msk.bf16.vlgmr.msra.gmra.mxu0 %vm4347_vm4, %v5550_v56  ;;  %v15497_v56 = vadd.f32 %v15197_v31, %v17477_v27 }
 0x581   :  { %v7962_v36 = vpop.permute.xlu0 %7961  ;;  %11108 = vmatprep.mubr.msk.bf16.mxu0 %vm12287_vm2, %v17107_v33 }
 0x582   :  { %11101 = vmatpush3.bf16.msra.mxu1 %v7962_v36 }
 0x583   :  { %11112 = vmatprep.subr.bf16.mxu1 %v17107_v33 }
 0x585   :  { %11103 = vmatmul.mubr.msk.bf16.vlgmr.msra.gmra.mxu1 %vm4347_vm4, %v5551_v29 }
 0x586   :  { %11114 = vmatprep.mubr.msk.bf16.mxu1 %vm12287_vm2, %v17107_v33 }
 0x595   :  { %v15491_v48 = vpop.f32.mrf.mxu0 }
 0x596   :  { %17476 = vst [vmem:[#allocation91_spill] sm:$0xff] %v15491_v48  ;;  %4721 = vmax.xlane.f32.xlu1 %v4720_v20  ;;  %v4723_v48 = vsel %vm4347_vm4, %v15497_v56, -inf }
 0x597   :  { %v11062_v36 = vpop.f32.mrf.mxu0 }
 0x598   :  { %v4729_v36 = vsel %vm4347_vm4, %v15505_v54, -inf }
 0x599   :  { %v15499_v29 = vpop.f32.mrf.mxu0 }
 0x59a   :  { %17478 = vst [vmem:[#allocation52_spill] sm:$0xff] %v15499_v29  ;;  %v15507_v24 = vpop.f32.mrf.mxu1  ;;  %4727 = vmax.xlane.f32.xlu1 %v4726_v63  ;;  %v4837_v29 = vsub.f32 %v15095_v16, %v15312_v12  ;;  %v17485_v12 = vld [vmem:[#allocation54_spill] sm:$0xff] }
 0x59b   :  { %17480 = vst [vmem:[#allocation46_spill] sm:$0xff] %v15507_v24  ;;  %4724 = vmax.xlane.f32.xlu0 %v4723_v48  ;;  %v11063_v31 = vpop.f32.mrf.mxu0  ;;  %v4839_v24 = vsub.f32 %v15103_v62, %v15320_v9  ;;  %v5068_v48 = vmul.f32 1.442695, %v4836_v14 }
 0x59c   :  { %v11068_v27 = vpop.f32.mrf.mxu1  ;;  %v5070_v63 = vmul.f32 1.442695, %v4837_v29  ;;  %v4838_v31 = vsub.f32 %v15089_v10, %v15310_v44  ;;  %v17484_v10 = vld [vmem:[#allocation56_spill] sm:$0xff] }
 0x59d   :  { %v5074_v27 = vmul.f32 1.442695, %v4839_v24 }
 0x59e   :  { %v15511_v20 = vpop.f32.mrf.mxu1  ;;  %11966 = vpow2.f32 %v5070_v63 }
 0x59f   :  { %17481 = vst [vmem:[#allocation94_spill] sm:$0xff] %v15511_v20  ;;  %4730 = vmax.xlane.f32.xlu0 %v4729_v36  ;;  %11968 = vpow2.f32 %v5068_v48  ;;  %v5072_v20 = vmul.f32 1.442695, %v4838_v31  ;;  %v17488_v48 = vld [vmem:[#allocation67_spill] sm:$0xff] }
 0x5a0   :  { %v11069_v52 = vpop.f32.mrf.mxu1  ;;  %11970 = vpow2.f32 %v5074_v27  ;;  %v17489_v27 = vld [vmem:[#allocation74_spill] sm:$0xff] }
 0x5a1   :  { %11972 = vpow2.f32 %v5072_v20  ;;  %v17486_v20 = vld [vmem:[#allocation65_spill] sm:$0xff]  ;;  %v17487_v52 = vld [vmem:[#allocation71_spill] sm:$0xff] }
 0x5ab   :  { %8196 = vrot.lane.b32.xlu1 %v17482_v58, %s12289_s19  ;;  %v15535_v44 = vpop.eup %11966 }
 0x5ac   :  { %v15539_v9 = vpop.eup %11968 }
 0x5ad   :  { %v15525_v16 = vpop.xlane.xlu1 %4697  ;;  %v5552_v24 = vpack.c.bf16 %v15535_v44, %v15539_v9  ;;  %v15548_v36 = vpop.eup %11970 }
 0x5ae   :  { %v15555_v63 = vpop.eup %11972 }
 0x5af   :  { %8290 = vrot.lane.b32.xlu1 %v17483_v37, %s12289_s19  ;;  %v5553_v31 = vpack.c.bf16 %v15548_v36, %v15555_v63 }
 0x5b1   :  { %v15529_v35 = vpop.xlane.xlu1 %4703 }
 0x5b2   :  { %v15531_v62 = vpop.xlane.xlu0 %4700 }
 0x5b3   :  { %8337 = vrot.lane.b32.xlu1 %v17484_v10, %s12289_s19 }
 0x5b5   :  { %8243 = vrot.lane.b32.xlu0 %v17485_v12, %s12289_s19  ;;  %v8009_v58 = vpop.permute.xlu1 %8008 }
 0x5b6   :  { %v15541_v29 = vpop.xlane.xlu0 %4706  ;;  %11107 = vmatpush3.bf16.msra.mxu0 %v8009_v58 }
 0x5b7   :  { %8431 = vrot.lane.b32.xlu1 %v17486_v20, %s12289_s19  ;;  %11118 = vmatprep.subr.bf16.mxu0 %v17107_v33 }
 0x5b9   :  { %8384 = vrot.lane.b32.xlu0 %v17487_v52, %s12289_s19  ;;  %11109 = vmatmul.mubr.msk.bf16.vlgmr.msra.gmra.mxu0 %vm4347_vm4, %v5552_v24 }
 0x5ba   :  { %v8056_v14 = vpop.permute.xlu0 %8055  ;;  %11120 = vmatprep.mubr.msk.bf16.mxu0 %vm12287_vm2, %v17107_v33 }
 0x5bb   :  { %11113 = vmatpush3.bf16.msra.mxu1 %v8056_v14  ;;  %8525 = vrot.lane.b32.xlu1 %v17488_v48, %s12289_s19  ;;  %v4841_v14 = vsub.f32 %v15201_v61, %v15384_v50  ;;  %v17496_v61 = vld [vmem:[#allocation77_spill] sm:$0xff] }
 0x5bc   :  { %11124 = vmatprep.subr.bf16.mxu1 %v17107_v33  ;;  %v5218_v50 = vsel %vm4347_vm4, %v17496_v61, 0.0 }
 0x5bd   :  { %8478 = vrot.lane.b32.xlu0 %v17489_v27, %s12289_s19  ;;  %v17494_v27 = vld [vmem:[#allocation79_spill] sm:$0xff] }
 0x5be   :  { %11115 = vmatmul.mubr.msk.bf16.vlgmr.msra.gmra.mxu1 %vm4347_vm4, %v5553_v31  ;;  %v4840_v31 = vsub.f32 %v15181_v55, %v15380_v13  ;;  %v5212_v60 = vsel %vm4347_vm4, %v17494_v27, 0.0  ;;  %v17497_v13 = vld [vmem:[#allocation161_spill] sm:$0xff] }
 0x5bf   :  { %11126 = vmatprep.mubr.msk.bf16.mxu1 %vm12287_vm2, %v17107_v33 }
 0x5ce   :  { %v15567_v37 = vpop.f32.mrf.mxu0 }
 0x5cf   :  { %17490 = vst [vmem:[#allocation140_spill] sm:$0xff] %v15567_v37  ;;  %v5078_v37 = vmul.f32 1.442695, %v4841_v14 }
 0x5d0   :  { %v11074_v10 = vpop.f32.mrf.mxu0 }
 0x5d1   :  { %v4843_v10 = vsub.f32 %v15214_v4, %v15392_v30  ;;  %11974 = vpow2.f32 %v5078_v37  ;;  %v17498_v4 = vld [vmem:[#allocation127_spill] sm:$0xff]  ;;  %v17500_v37 = vld [vmem:[#allocation162_spill] sm:$0xff] }
 0x5d2   :  { %v15569_v12 = vpop.f32.mrf.mxu0  ;;  %v5221_v30 = vsel %vm4347_vm4, %v17498_v4, 0.0 }
 0x5d3   :  { %17491 = vst [vmem:[#allocation95_spill] sm:$0xff] %v15569_v12  ;;  %v15571_v58 = vpop.f32.mrf.mxu1  ;;  %v5076_v12 = vmul.f32 1.442695, %v4840_v31  ;;  %v5082_v55 = vmul.f32 1.442695, %v4843_v10  ;;  %v17501_v10 = vld [vmem:[#allocation163_spill] sm:$0xff] }
 0x5d4   :  { %17492 = vst [vmem:[#allocation141_spill] sm:$0xff] %v15571_v58  ;;  %v11075_v24 = vpop.f32.mrf.mxu0  ;;  %v4842_v58 = vsub.f32 %v15190_v34, %v15382_v45  ;;  %v17499_v34 = vld [vmem:[#allocation160_spill] sm:$0xff] }
 0x5d5   :  { %v11080_v20 = vpop.f32.mrf.mxu1  ;;  %v17495_v24 = vld [vmem:[#allocation70_spill] sm:$0xff]  ;;  %11976 = vpow2.f32 %v5076_v12  ;;  %v5314_v45 = vsel %vm4347_vm4, %v17499_v34, 0.0  ;;  %v5311_v12 = vsel %vm4347_vm4, %v17500_v37, 0.0  ;;  %v5413_v34 = vsel %vm4347_vm4, %v15397_v38, 0.0 }
 0x5d6   :  { %v5215_v20 = vsel %vm4347_vm4, %v17495_v24, 0.0  ;;  %v5080_v14 = vmul.f32 1.442695, %v4842_v58  ;;  %11978 = vpow2.f32 %v5082_v55  ;;  %v5404_v58 = vsel %vm4347_vm4, %v15390_v28, 0.0  ;;  %v17503_v37 = vld [vmem:[#allocation142_spill] sm:$0xff] }
 0x5d7   :  { %v15573_v52 = vpop.f32.mrf.mxu1  ;;  %v5317_v24 = vsel %vm4347_vm4, %v17501_v10, 0.0  ;;  %v5407_v28 = vsel %vm4347_vm4, %v15386_v26, 0.0  ;;  %v17505_v10 = vld [vmem:[#allocation128_spill] sm:$0xff] }
 0x5d8   :  { %17493 = vst [vmem:[#allocation60_spill] sm:$0xff] %v15573_v52  ;;  %11980 = vpow2.f32 %v5080_v14 }
 0x5d9   :  { %v11081_v48 = vpop.f32.mrf.mxu1 }
 0x5dc   :  { %5213 = vadd.xlane.f32.xlu0 %v5212_v60  ;;  %v5308_v60 = vsel %vm4347_vm4, %v17497_v13, 0.0 }
 0x5df   :  { %5216 = vadd.xlane.f32.xlu1 %v5215_v20  ;;  %v15607_v20 = vpop.eup %11974 }
 0x5e0   :  { %5219 = vadd.xlane.f32.xlu0 %v5218_v50  ;;  %v5410_v50 = vsel %vm4347_vm4, %v15402_v51, 0.0  ;;  %v17502_v51 = vld [vmem:[#allocation129_spill] sm:$0xff] }
 0x5e1   :  { %v5224_v4 = vsel %vm4347_vm4, %v17502_v51, 0.0 }
 0x5e2   :  { %v15611_v55 = vpop.eup %11976 }
 0x5e3   :  { %5309 = vadd.xlane.f32.xlu1 %v5308_v60  ;;  %v5554_v60 = vpack.c.bf16 %v15607_v20, %v15611_v55  ;;  %v15620_v14 = vpop.eup %11978 }
 0x5e4   :  { %5222 = vadd.xlane.f32.xlu0 %v5221_v30 }
 0x5e5   :  { %v15629_v26 = vpop.eup %11980 }
 0x5e6   :  { %v15593_v48 = vpop.xlane.xlu1 %4709 }
 0x5e7   :  { %5315 = vadd.xlane.f32.xlu1 %v5314_v45  ;;  %v5555_v45 = vpack.c.bf16 %v15620_v14, %v15629_v26 }
 0x5e8   :  { %5312 = vadd.xlane.f32.xlu0 %v5311_v12  ;;  %v5260_v12 = vsel %vm4347_vm4, %v17503_v37, 0.0 }
 0x5ea   :  { %v15599_v31 = vpop.xlane.xlu1 %4715 }
 0x5eb   :  { %v15603_v27 = vpop.xlane.xlu0 %4712  ;;  %5405 = vadd.xlane.f32.xlu1 %v5404_v58  ;;  %v17504_v58 = vld [vmem:[#allocation130_spill] sm:$0xff] }
 0x5ec   :  { %5318 = vadd.xlane.f32.xlu0 %v5317_v24  ;;  %v5227_v38 = vsel %vm4347_vm4, %v17504_v58, 0.0  ;;  %v5230_v24 = vsel %vm4347_vm4, %v17505_v10, 0.0  ;;  %v17510_v58 = vld [vmem:[#allocation138_spill] sm:$0xff] }
 0x5ee   :  { %v8103_v61 = vpop.permute.xlu1 %8102 }
 0x5ef   :  { %v15613_v13 = vpop.xlane.xlu0 %4718  ;;  %5411 = vadd.xlane.f32.xlu1 %v5410_v50  ;;  %11119 = vmatpush3.bf16.msra.mxu0 %v8103_v61  ;;  %v17506_v61 = vld [vmem:[#allocation143_spill] sm:$0xff] }
 0x5f0   :  { %5408 = vadd.xlane.f32.xlu0 %v5407_v28  ;;  %11130 = vmatprep.subr.bf16.mxu0 %v17107_v33  ;;  %v5263_v50 = vsel %vm4347_vm4, %v17506_v61, 0.0  ;;  %v4844_v28 = vsub.f32 %v15268_v0, %v15454_v57  ;;  %v4846_v0 = vsub.f32 %v15272_v59, %v15456_v23  ;;  %v5356_v57 = vsel %vm4347_vm4, %v15049_v49, 0.0  ;;  %v17511_v61 = vld [vmem:[#allocation98_spill] sm:$0xff] }
 0x5f1   :  { %v4847_v59 = vsub.f32 %v15288_v7, %v15466_v46  ;;  %v5359_v49 = vsel %vm4347_vm4, %v15047_v6, 0.0  ;;  %v5416_v6 = vsel %vm4347_vm4, %v15464_v19, 0.0  ;;  %v4849_v19 = vsub.f32 %v15352_v2, %v15531_v62 }
 0x5f2   :  { %11121 = vmatmul.mubr.msk.bf16.vlgmr.msra.gmra.mxu0 %vm4347_vm4, %v5554_v60  ;;  %v17507_v60 = vld [vmem:[#allocation137_spill] sm:$0xff] }
 0x5f3   :  { %v8150_v30 = vpop.permute.xlu0 %8149  ;;  %5225 = vadd.xlane.f32.xlu1 %v5224_v4  ;;  %11132 = vmatprep.mubr.msk.bf16.mxu0 %vm12287_vm2, %v17107_v33  ;;  %v5266_v51 = vsel %vm4347_vm4, %v17507_v60, 0.0  ;;  %v17508_v4 = vld [vmem:[#allocation73_spill] sm:$0xff] }
 0x5f4   :  { %5414 = vadd.xlane.f32.xlu0 %v5413_v34  ;;  %11125 = vmatpush3.bf16.msra.mxu1 %v8150_v30  ;;  %v5233_v30 = vsel %vm4347_vm4, %v17508_v4, 0.0  ;;  %v5084_v34 = vmul.f32 1.442695, %v4844_v28  ;;  %v17512_v28 = vld [vmem:[#allocation116_spill] sm:$0xff] }
 0x5f5   :  { %11136 = vmatprep.subr.bf16.mxu1 %v17107_v33  ;;  %v5326_v60 = vsel %vm4347_vm4, %v17512_v28, 0.0 }
 0x5f6   :  { %11982 = vpow2.f32 %v5084_v34  ;;  %v5362_v34 = vsel %vm4347_vm4, %v15060_v32, 0.0 }
 0x5f7   :  { %11127 = vmatmul.mubr.msk.bf16.vlgmr.msra.gmra.mxu1 %vm4347_vm4, %v5555_v45  ;;  %5261 = vadd.xlane.f32.xlu1 %v5260_v12  ;;  %v17509_v45 = vld [vmem:[#allocation99_spill] sm:$0xff]  ;;  %v4845_v12 = vsub.f32 %v15280_v41, %v15458_v40  ;;  %v5088_v40 = vmul.f32 1.442695, %v4846_v0  ;;  %v5419_v0 = vsel %vm4347_vm4, %v15460_v22, 0.0  ;;  %v4851_v22 = vsub.f32 %v15360_v18, %v15541_v29  ;;  %v17514_v29 = vld [vmem:[#allocation81_spill] sm:$0xff] }
 0x5f8   :  { %5228 = vadd.xlane.f32.xlu0 %v5227_v38  ;;  %11138 = vmatprep.mubr.msk.bf16.mxu1 %vm12287_vm2, %v17107_v33  ;;  %v5320_v37 = vsel %vm4347_vm4, %v17509_v45, 0.0  ;;  %v5269_v38 = vsel %vm4347_vm4, %v17510_v58, 0.0  ;;  %v5090_v45 = vmul.f32 1.442695, %v4847_v59  ;;  %v4852_v59 = vsub.f32 %v15414_v39, %v15593_v48  ;;  %v17516_v39 = vld [vmem:[#allocation80_spill] sm:$0xff] }
 0x5f9   :  { %v5086_v10 = vmul.f32 1.442695, %v4845_v12  ;;  %v5098_v18 = vmul.f32 1.442695, %v4851_v22  ;;  %v5239_v48 = vsel %vm4347_vm4, %v17516_v39, 0.0  ;;  %v5371_v39 = vsel %vm4347_vm4, %v15141_v5, 0.0 }
 0x5fb   :  { %5231 = vadd.xlane.f32.xlu1 %v5230_v24  ;;  %11984 = vpow2.f32 %v5086_v10  ;;  %v5422_v10 = vsel %vm4347_vm4, %v15476_v53, 0.0  ;;  %v5425_v53 = vsel %vm4347_vm4, %v15471_v42, 0.0 }
 0x5fc   :  { %5264 = vadd.xlane.f32.xlu0 %v5263_v50  ;;  %v5323_v50 = vsel %vm4347_vm4, %v17511_v61, 0.0  ;;  %11986 = vpow2.f32 %v5088_v40 }
 0x5fd   :  { %11988 = vpow2.f32 %v5090_v45 }
 0x5ff   :  { %5267 = vadd.xlane.f32.xlu1 %v5266_v51 }
 0x600   :  { %5234 = vadd.xlane.f32.xlu0 %v5233_v30 }
 0x603   :  { %5321 = vadd.xlane.f32.xlu1 %v5320_v37  ;;  %v17513_v37 = vld [vmem:[#allocation115_spill] sm:$0xff]  ;;  %v15683_v58 = vpop.eup %11982 }
 0x604   :  { %5270 = vadd.xlane.f32.xlu0 %v5269_v38  ;;  %v5329_v7 = vsel %vm4347_vm4, %v17513_v37, 0.0  ;;  %v5365_v38 = vsel %vm4347_vm4, %v15058_v11, 0.0  ;;  %v5452_v32 = vsel %vm4347_vm4, %v15683_v58, 0.0  ;;  %v4848_v11 = vsub.f32 %v15340_v43, %v15525_v16 }
 0x605   :  { %v4850_v43 = vsub.f32 %v15344_v3, %v15529_v35  ;;  %v4853_v16 = vsub.f32 %v15424_v17, %v15603_v27  ;;  %v4855_v17 = vsub.f32 %v15432_v8, %v15613_v13  ;;  %v17515_v27 = vld [vmem:[#allocation149_spill] sm:$0xff]  ;;  %v4854_v37 = vsub.f32 %v15418_v1, %v15599_v31  ;;  %v17518_v1 = vld [vmem:[#allocation150_spill] sm:$0xff] }
 0x606   :  { %v5092_v2 = vmul.f32 1.442695, %v4848_v11  ;;  %v5275_v31 = vsel %vm4347_vm4, %v17518_v1, 0.0  ;;  %v17519_v11 = vld [vmem:[#allocation146_spill] sm:$0xff]  ;;  %v5428_v1 = vsel %vm4347_vm4, %v15539_v9, 0.0 }
 0x607   :  { %5357 = vadd.xlane.f32.xlu1 %v5356_v57  ;;  %v15661_v24 = vpop.f32.mrf.mxu0  ;;  %v5096_v3 = vmul.f32 1.442695, %v4850_v43  ;;  %v5106_v13 = vmul.f32 1.442695, %v4855_v17 }
 0x608   :  { %5324 = vadd.xlane.f32.xlu0 %v5323_v50  ;;  %v11985_v57 = vpop.eup %11984 }
 0x609   :  { %v11086_v41 = vpop.f32.mrf.mxu0  ;;  %v15695_v61 = vpop.eup %11986  ;;  %v5455_v50 = vsel %vm4347_vm4, %v11985_v57, 0.0 }
 0x60a   :  { %v5094_v41 = vmul.f32 1.442695, %v4849_v19  ;;  %v5458_v40 = vsel %vm4347_vm4, %v15695_v61, 0.0  ;;  %v15706_v28 = vpop.eup %11988 }
 0x60b   :  { %5327 = vadd.xlane.f32.xlu1 %v5326_v60  ;;  %v15669_v23 = vpop.f32.mrf.mxu0  ;;  %v5236_v60 = vsel %vm4347_vm4, %v17514_v29, 0.0  ;;  %v5461_v42 = vsel %vm4347_vm4, %v15706_v28, 0.0 }
 0x60c   :  { %5360 = vadd.xlane.f32.xlu0 %v5359_v49  ;;  %v15673_v51 = vpop.f32.mrf.mxu1  ;;  %11990 = vpow2.f32 %v5094_v41 }
 0x60d   :  { %v11087_v4 = vpop.f32.mrf.mxu0  ;;  %11992 = vpow2.f32 %v5092_v2 }
 0x60e   :  { %v11092_v30 = vpop.f32.mrf.mxu1  ;;  %v5102_v4 = vmul.f32 1.442695, %v4853_v16  ;;  %11994 = vpow2.f32 %v5098_v18  ;;  %v17522_v18 = vld [vmem:[#allocation147_spill] sm:$0xff] }
 0x60f   :  { %5363 = vadd.xlane.f32.xlu1 %v5362_v34  ;;  %v5272_v30 = vsel %vm4347_vm4, %v17515_v27, 0.0  ;;  %v5100_v34 = vmul.f32 1.442695, %v4852_v59  ;;  %11996 = vpow2.f32 %v5096_v3  ;;  %v5281_v29 = vsel %vm4347_vm4, %v17522_v18, 0.0  ;;  %v17532_v18 = vld [vmem:[#allocation133_spill] sm:$0xff] }
 0x610   :  { %5330 = vadd.xlane.f32.xlu0 %v5329_v7  ;;  %v15679_v46 = vpop.f32.mrf.mxu1  ;;  %11998 = vpow2.f32 %v5102_v4  ;;  %v5368_v3 = vsel %vm4347_vm4, %v15147_v21, 0.0  ;;  %v5338_v21 = vsel %vm4347_vm4, %v14870_v47, 0.0 }
 0x611   :  { %12000 = vpow2.f32 %v5100_v34 }
 0x612   :  { %v11093_v12 = vpop.f32.mrf.mxu1  ;;  %12002 = vpow2.f32 %v5106_v13 }
 0x613   :  { %5417 = vadd.xlane.f32.xlu1 %v5416_v6  ;;  %v5556_v12 = vpack.c.bf16 %v11985_v57, %v15683_v58  ;;  %v17517_v6 = vld [vmem:[#allocation78_spill] sm:$0xff]  ;;  %v5104_v58 = vmul.f32 1.442695, %v4854_v37 }
 0x614   :  { %5366 = vadd.xlane.f32.xlu0 %v5365_v38  ;;  %v5242_v38 = vsel %vm4347_vm4, %v17517_v6, 0.0 }
 0x615   :  { %12004 = vpow2.f32 %v5104_v58  ;;  %v17526_v58 = vld [vmem:[#allocation208_spill] sm:$0xff] }
 0x617   :  { %5453 = vadd.xlane.f32.xlu1 %v5452_v32 }
 0x618   :  { %5420 = vadd.xlane.f32.xlu0 %v5419_v0 }
 0x619   :  { %v15739_v19 = vpop.eup %11990 }
 0x61b   :  { %5423 = vadd.xlane.f32.xlu1 %v5422_v10 }
 0x61c   :  { %5456 = vadd.xlane.f32.xlu0 %v5455_v50  ;;  %v5278_v50 = vsel %vm4347_vm4, %v17519_v11, 0.0 }
 0x61f   :  { %v4722_v62 = vpop.xlane.xlu1 %4721  ;;  %5459 = vadd.xlane.f32.xlu1 %v5458_v40  ;;  %v17520_v40 = vld [vmem:[#allocation131_spill] sm:$0xff] }
 0x620   :  { %5426 = vadd.xlane.f32.xlu0 %v5425_v53  ;;  %v4856_v32 = vsub.f32 %v15485_v15, %v4722_v62  ;;  %v5557_v15 = vpack.c.bf16 %v15706_v28, %v15695_v61  ;;  %v5245_v2 = vsel %vm4347_vm4, %v17520_v40, 0.0  ;;  %v15750_v62 = vpop.eup %11992  ;;  %v17521_v28 = vld [vmem:[#allocation164_spill] sm:$0xff]  ;;  %v5434_v40 = vsel %vm4347_vm4, %v15555_v63, 0.0 }
 0x621   :  { %v5332_v43 = vsel %vm4347_vm4, %v17521_v28, 0.0  ;;  %v15762_v16 = vpop.eup %11994  ;;  %v5464_v9 = vsel %vm4347_vm4, %v15750_v62, 0.0  ;;  %v17530_v28 = vld [vmem:[#allocation102_spill] sm:$0xff] }
 0x622   :  { %v5108_v41 = vmul.f32 1.442695, %v4856_v32  ;;  %v15767_v59 = vpop.eup %11996  ;;  %v5473_v63 = vsel %vm4347_vm4, %v15762_v16, 0.0 }
 0x623   :  { %v15716_v49 = vpop.xlane.xlu1 %4727  ;;  %5237 = vadd.xlane.f32.xlu1 %v5236_v60 }
 0x624   :  { %5462 = vadd.xlane.f32.xlu0 %v5461_v42  ;;  %v4725_v35 = vpop.xlane.xlu0 %4724  ;;  %v4858_v61 = vsub.f32 %v15489_v25, %v15716_v49  ;;  %v15772_v49 = vpop.eup %11998  ;;  %v5559_v42 = vpack.c.bf16 %v15762_v16, %v15767_v59 }
 0x625   :  { %v4857_v8 = vsub.f32 %v15497_v56, %v4725_v35  ;;  %v17523_v35 = vld [vmem:[#allocation58_spill] sm:$0xff]  ;;  %v15780_v17 = vpop.eup %12000 }
 0x626   :  { %v5112_v60 = vmul.f32 1.442695, %v4858_v61  ;;  %v5335_v4 = vsel %vm4347_vm4, %v17523_v35, 0.0  ;;  %v15790_v34 = vpop.eup %12002  ;;  %v5467_v61 = vsel %vm4347_vm4, %v15739_v19, 0.0  ;;  %v17536_v35 = vld [vmem:[#allocation178_spill] sm:$0xff] }
 0x627   :  { %v8197_v45 = vpop.permute.xlu1 %8196  ;;  %5273 = vadd.xlane.f32.xlu1 %v5272_v30  ;;  %v5110_v56 = vmul.f32 1.442695, %v4857_v8  ;;  %v5560_v30 = vpack.c.bf16 %v15772_v49, %v15780_v17  ;;  %v17525_v8 = vld [vmem:[#allocation165_spill] sm:$0xff] }
 0x628   :  { %5240 = vadd.xlane.f32.xlu0 %v5239_v48  ;;  %v4731_v7 = vpop.xlane.xlu0 %4730  ;;  %11131 = vmatpush3.bf16.msra.mxu0 %v8197_v45  ;;  %v15795_v48 = vpop.eup %12004  ;;  %v5341_v5 = vsel %vm4347_vm4, %v17525_v8, 0.0 }
 0x629   :  { %11142 = vmatprep.subr.bf16.mxu0 %v17107_v33  ;;  %v4859_v10 = vsub.f32 %v15505_v54, %v4731_v7  ;;  %v5558_v54 = vpack.c.bf16 %v15739_v19, %v15750_v62  ;;  %12006 = vpow2.f32 %v5110_v56  ;;  %v5561_v47 = vpack.c.bf16 %v15790_v34, %v15795_v48  ;;  %v17524_v7 = vld [vmem:[#allocation209_spill] sm:$0xff] }
 0x62a   :  { %12008 = vpow2.f32 %v5108_v41  ;;  %v5431_v41 = vsel %vm4347_vm4, %v15535_v44, 0.0  ;;  %v5470_v62 = vsel %vm4347_vm4, %v15767_v59, 0.0  ;;  %v5437_v44 = vsel %vm4347_vm4, %v15548_v36, 0.0  ;;  %v17534_v59 = vld [vmem:[#allocation154_spill] sm:$0xff] }
 0x62b   :  { %v8291_v0 = vpop.permute.xlu1 %8290  ;;  %5243 = vadd.xlane.f32.xlu1 %v5242_v38  ;;  %11133 = vmatmul.mubr.msk.bf16.vlgmr.msra.gmra.mxu0 %vm4347_vm4, %v5556_v12  ;;  %v5114_v53 = vmul.f32 1.442695, %v4859_v10  ;;  %v5374_v12 = vsel %vm4347_vm4, %v17524_v7, 0.0  ;;  %v5284_v19 = vsel %vm4347_vm4, %v17530_v28, 0.0  ;;  %v5254_v36 = vsel %vm4347_vm4, %v17532_v18, 0.0 }
 0x62c   :  { %5276 = vadd.xlane.f32.xlu0 %v5275_v31  ;;  %v8244_v57 = vpop.permute.xlu0 %8243  ;;  %11143 = vmatpush3.bf16.msra.mxu0 %v8291_v0  ;;  %v5290_v16 = vsel %vm4347_vm4, %v17534_v59, 0.0  ;;  %v5443_v28 = vsel %vm4347_vm4, %v15607_v20, 0.0  ;;  %v5446_v20 = vsel %vm4347_vm4, %v15629_v26, 0.0 }
 0x62d   :  { %11137 = vmatpush3.bf16.msra.mxu1 %v8244_v57  ;;  %11144 = vmatprep.mubr.msk.bf16.mxu0 %vm12287_vm2, %v17107_v33  ;;  %12010 = vpow2.f32 %v5114_v53  ;;  %v5377_v57 = vsel %vm4347_vm4, %v17526_v58, 0.0 }
 0x62e   :  { %11148 = vmatprep.subr.bf16.mxu1 %v17107_v33  ;;  %11154 = vmatprep.subr.bf16.mxu0 %v17107_v33  ;;  %12012 = vpow2.f32 %v5112_v60 }
 0x62f   :  { %v8338_v22 = vpop.permute.xlu1 %8337  ;;  %5279 = vadd.xlane.f32.xlu1 %v5278_v50 }
 0x630   :  { %5246 = vadd.xlane.f32.xlu0 %v5245_v2  ;;  %11139 = vmatmul.mubr.msk.bf16.vlgmr.msra.gmra.mxu1 %vm4347_vm4, %v5557_v15  ;;  %v8385_v25 = vpop.permute.xlu0 %8384 }
 0x631   :  { %11149 = vmatpush3.bf16.msra.mxu1 %v8338_v22  ;;  %11150 = vmatprep.mubr.msk.bf16.mxu1 %vm12287_vm2, %v17107_v33 }
 0x632   :  { %11160 = vmatprep.subr.bf16.mxu1 %v17107_v33 }
 0x633   :  { %5333 = vadd.xlane.f32.xlu1 %v5332_v43  ;;  %11145 = vmatmul.mubr.msk.bf16.vlgmr.msra.gmra.mxu0 %vm4347_vm4, %v5558_v54  ;;  %v8432_v27 = vpop.permute.xlu1 %8431  ;;  %v17529_v54 = vld [vmem:[#allocation135_spill] sm:$0xff]  ;;  %v17531_v43 = vld [vmem:[#allocation136_spill] sm:$0xff] }
 0x634   :  { %5282 = vadd.xlane.f32.xlu0 %v5281_v29  ;;  %11155 = vmatpush3.bf16.msra.mxu0 %v8385_v25  ;;  %v8479_v45 = vpop.permute.xlu0 %8478  ;;  %v5248_v53 = vsel %vm4347_vm4, %v17529_v54, 0.0  ;;  %v5251_v25 = vsel %vm4347_vm4, %v17531_v43, 0.0  ;;  %v17533_v29 = vld [vmem:[#allocation106_spill] sm:$0xff]  ;;  %v17546_v43 = vld [vmem:[#allocation184_spill] sm:$0xff] }
 0x635   :  { %11156 = vmatprep.mubr.msk.bf16.mxu0 %vm12287_vm2, %v17107_v33  ;;  %11166 = vmatprep.subr.bf16.mxu0 %v17107_v33  ;;  %v5287_v60 = vsel %vm4347_vm4, %v17533_v29, 0.0 }
 0x636   :  { %v15799_v37 = vpop.eup %12006 }
 0x637   :  { %5369 = vadd.xlane.f32.xlu1 %v5368_v3  ;;  %v15807_v13 = vpop.eup %12008  ;;  %v8526_v6 = vpop.permute.xlu1 %8525 }
 0x638   :  { %5336 = vadd.xlane.f32.xlu0 %v5335_v4  ;;  %11151 = vmatmul.mubr.msk.bf16.vlgmr.msra.gmra.mxu1 %vm4347_vm4, %v5559_v42  ;;  %v5562_v32 = vpack.c.bf16 %v15799_v37, %v15807_v13  ;;  %v17535_v42 = vld [vmem:[#allocation134_spill] sm:$0xff]  ;;  %v5344_v4 = vsel %vm4347_vm4, %v17536_v35, 0.0  ;;  %v17548_v35 = vld [vmem:[#allocation179_spill] sm:$0xff] }
 0x639   :  { %11161 = vmatpush3.bf16.msra.mxu1 %v8432_v27  ;;  %11162 = vmatprep.mubr.msk.bf16.mxu1 %vm12287_vm2, %v17107_v33  ;;  %v5257_v3 = vsel %vm4347_vm4, %v17535_v42, 0.0  ;;  %v17537_v27 = vld [vmem:[#allocation156_spill] sm:$0xff]  ;;  %v5479_v42 = vsel %vm4347_vm4, %v15772_v49, 0.0  ;;  %v17596_v49 = vld [vmem:[#allocation37_spill] sm:$0xff] }
 0x63a   :  { %11172 = vmatprep.subr.bf16.mxu1 %v17107_v33  ;;  %v15818_v31 = vpop.eup %12010 }
 0x63b   :  { %5339 = vadd.xlane.f32.xlu1 %v5338_v21  ;;  %11157 = vmatmul.mubr.msk.bf16.vlgmr.msra.gmra.mxu0 %vm4347_vm4, %v5560_v30  ;;  %v15825_v15 = vpop.eup %12012  ;;  %v5293_v30 = vsel %vm4347_vm4, %v17537_v27, 0.0  ;;  %v17549_v27 = vld [vmem:[#allocation182_spill] sm:$0xff] }
 0x63c   :  { %5372 = vadd.xlane.f32.xlu0 %v5371_v39  ;;  %11167 = vmatpush3.bf16.msra.mxu0 %v8479_v45  ;;  %v17538_v45 = vld [vmem:[#allocation38_spill] sm:$0xff] }
 0x63d   :  { %11168 = vmatprep.mubr.msk.bf16.mxu0 %vm12287_vm2, %v17107_v33  ;;  %v5380_v39 = vsel %vm4347_vm4, %v17538_v45, 0.0 }
 0x63f   :  { %5375 = vadd.xlane.f32.xlu1 %v5374_v12 }
 0x640   :  { %5342 = vadd.xlane.f32.xlu0 %v5341_v5  ;;  %11163 = vmatmul.mubr.msk.bf16.vlgmr.msra.gmra.mxu1 %vm4347_vm4, %v5561_v47  ;;  %v15810_v38 = vpop.f32.mrf.mxu0  ;;  %v17539_v47 = vld [vmem:[#allocation177_spill] sm:$0xff] }
 0x641   :  { %11173 = vmatpush3.bf16.msra.mxu1 %v8526_v6  ;;  %11174 = vmatprep.mubr.msk.bf16.mxu1 %vm12287_vm2, %v17107_v33  ;;  %v5563_v33 = vpack.c.bf16 %v15818_v31, %v15825_v15  ;;  %v5347_v7 = vsel %vm4347_vm4, %v17539_v47, 0.0  ;;  %v17540_v5 = vld [vmem:[#allocation181_spill] sm:$0xff]  ;;  %v5482_v47 = vsel %vm4347_vm4, %v15795_v48, 0.0 }
 0x642   :  { %v11098_v0 = vpop.f32.mrf.mxu0  ;;  %v5350_v6 = vsel %vm4347_vm4, %v17540_v5, 0.0 }
 0x643   :  { %5429 = vadd.xlane.f32.xlu1 %v5428_v1  ;;  %11169 = vmatmul.mubr.msk.bf16.vlgmr.msra.gmra.mxu0 %vm4347_vm4, %v5562_v32  ;;  %v17541_v32 = vld [vmem:[#allocation45_spill] sm:$0xff] }
 0x644   :  { %5378 = vadd.xlane.f32.xlu0 %v5377_v57  ;;  %v15823_v56 = vpop.f32.mrf.mxu0  ;;  %v5383_v0 = vsel %vm4347_vm4, %v17541_v32, 0.0  ;;  %v17542_v57 = vld [vmem:[#allocation219_spill] sm:$0xff]  ;;  %v17552_v32 = vld [vmem:[#allocation206_spill] sm:$0xff] }
 0x645   :  { %v15827_v10 = vpop.f32.mrf.mxu1 }
 0x646   :  { %17527 = vst [vmem:[#allocation62_spill] sm:$0xff] %v15827_v10  ;;  %v11099_v11 = vpop.f32.mrf.mxu0 }
 0x647   :  { %v11104_v50 = vpop.f32.mrf.mxu1  ;;  %5465 = vadd.xlane.f32.xlu1 %v5464_v9  ;;  %v17543_v11 = vld [vmem:[#allocation180_spill] sm:$0xff] }
 0x648   :  { %5432 = vadd.xlane.f32.xlu0 %v5431_v41  ;;  %11175 = vmatmul.mubr.msk.bf16.vlgmr.msra.gmra.mxu1 %vm4347_vm4, %v5563_v33  ;;  %v5386_v33 = vsel %vm4347_vm4, %v17542_v57, 0.0  ;;  %v5353_v9 = vsel %vm4347_vm4, %v17543_v11, 0.0  ;;  %v17555_v11 = vld [vmem:[#allocation112_spill] sm:$0xff] }
 0x649   :  { %v15836_v22 = vpop.f32.mrf.mxu1 }
 0x64a   :  { %17528 = vst [vmem:[#allocation56_spill] sm:$0xff] %v15836_v22 }
 0x64b   :  { %v11105_v2 = vpop.f32.mrf.mxu1  ;;  %5435 = vadd.xlane.f32.xlu1 %v5434_v40  ;;  %v5440_v40 = vsel %vm4347_vm4, %v15611_v55, 0.0 }
 0x64c   :  { %5468 = vadd.xlane.f32.xlu0 %v5467_v61  ;;  %v17544_v2 = vld [vmem:[#allocation218_spill] sm:$0xff] }
 0x64d   :  { %v5389_v61 = vsel %vm4347_vm4, %v17544_v2, 0.0 }
 0x64f   :  { %5471 = vadd.xlane.f32.xlu1 %v5470_v62 }
 0x650   :  { %5438 = vadd.xlane.f32.xlu0 %v5437_v44 }
 0x653   :  { %5249 = vadd.xlane.f32.xlu1 %v5248_v53 }
 0x654   :  { %5474 = vadd.xlane.f32.xlu0 %v5473_v63  ;;  %v5476_v63 = vsel %vm4347_vm4, %v15780_v17, 0.0 }
 0x657   :  { %5285 = vadd.xlane.f32.xlu1 %v5284_v19  ;;  %v17545_v19 = vld [vmem:[#allocation183_spill] sm:$0xff] }
 0x658   :  { %5252 = vadd.xlane.f32.xlu0 %v5251_v25 }
 0x65b   :  { %5255 = vadd.xlane.f32.xlu1 %v5254_v36 }
 0x65c   :  { %5288 = vadd.xlane.f32.xlu0 %v5287_v60 }
 0x65f   :  { %5291 = vadd.xlane.f32.xlu1 %v5290_v16 }
 0x660   :  { %5258 = vadd.xlane.f32.xlu0 %v5257_v3 }
 0x663   :  { %5345 = vadd.xlane.f32.xlu1 %v5344_v4 }
 0x664   :  { %5294 = vadd.xlane.f32.xlu0 %v5293_v30 }
 0x665   :  { %v5214_v21 = vpop.xlane.xlu0 %5213 }
 0x666   :  { %12014 = vrcp.f32 %v5214_v21 }
 0x667   :  { %5381 = vadd.xlane.f32.xlu1 %v5380_v39 }
 0x668   :  { %5348 = vadd.xlane.f32.xlu0 %v5347_v7  ;;  %v5217_v12 = vpop.xlane.xlu1 %5216 }
 0x669   :  { %12016 = vrcp.f32 %v5217_v12  ;;  %v5220_v8 = vpop.xlane.xlu0 %5219 }
 0x66a   :  { %12018 = vrcp.f32 %v5220_v8  ;;  %v5449_v8 = vsel %vm4347_vm4, %v15620_v14, 0.0 }
 0x66b   :  { %5351 = vadd.xlane.f32.xlu1 %v5350_v6 }
 0x66c   :  { %5384 = vadd.xlane.f32.xlu0 %v5383_v0  ;;  %v5310_v1 = vpop.xlane.xlu1 %5309 }
 0x66d   :  { %v5223_v58 = vpop.xlane.xlu0 %5222 }
 0x66e   :  { %12020 = vrcp.f32 %v5223_v58 }
 0x66f   :  { %5387 = vadd.xlane.f32.xlu1 %v5386_v33  ;;  %12022 = vrcp.f32 %v5310_v1  ;;  %v17553_v1 = vld [vmem:[#allocation207_spill] sm:$0xff] }
 0x670   :  { %5354 = vadd.xlane.f32.xlu0 %v5353_v9  ;;  %v5316_v50 = vpop.xlane.xlu1 %5315  ;;  %v5296_v9 = vsel %vm4347_vm4, %v17555_v11, 0.0  ;;  %v17564_v11 = vld [vmem:[#allocation186_spill] sm:$0xff] }
 0x671   :  { %v5313_v41 = vpop.xlane.xlu0 %5312 }
 0x672   :  { %12024 = vrcp.f32 %v5313_v41  ;;  %v5485_v41 = vsel %vm4347_vm4, %v15790_v34, 0.0 }
 0x673   :  { %5441 = vadd.xlane.f32.xlu1 %v5440_v40  ;;  %v12015_v62 = vpop.eup %12014  ;;  %12026 = vrcp.f32 %v5316_v50 }
 0x674   :  { %5390 = vadd.xlane.f32.xlu0 %v5389_v61  ;;  %v5406_v44 = vpop.xlane.xlu1 %5405  ;;  %v15887_v55 = vmul.f32 %v12015_v62, %v17545_v19  ;;  %v17556_v61 = vld [vmem:[#allocation205_spill] sm:$0xff] }
 0x675   :  { %v5319_v54 = vpop.xlane.xlu0 %5318 }
 0x676   :  { %v12017_v53 = vpop.eup %12016  ;;  %12028 = vrcp.f32 %v5319_v54 }
 0x677   :  { %5477 = vadd.xlane.f32.xlu1 %v5476_v63  ;;  %v15890_v25 = vmul.f32 %v12017_v53, %v17546_v43  ;;  %12030 = vrcp.f32 %v5406_v44  ;;  %v12019_v36 = vpop.eup %12018  ;;  %v17557_v44 = vld [vmem:[#allocation64_spill] sm:$0xff] }
 0x678   :  { %5444 = vadd.xlane.f32.xlu0 %v5443_v28  ;;  %v5412_v18 = vpop.xlane.xlu1 %5411  ;;  %v15901_v4 = vmul.f32 %v12019_v36, %v17548_v35  ;;  %v17558_v28 = vld [vmem:[#allocation66_spill] sm:$0xff] }
 0x679   :  { %v5409_v29 = vpop.xlane.xlu0 %5408  ;;  %v15892_v60 = vpop.f32.mrf.mxu0  ;;  %v5302_v19 = vsel %vm4347_vm4, %v17558_v28, 0.0 }
 0x67a   :  { %17547 = vst [vmem:[#allocation54_spill] sm:$0xff] %v15892_v60  ;;  %12032 = vrcp.f32 %v5409_v29 }
 0x67b   :  { %v12021_v59 = vpop.eup %12020  ;;  %5447 = vadd.xlane.f32.xlu1 %v5446_v20  ;;  %v11110_v16 = vpop.f32.mrf.mxu0  ;;  %12034 = vrcp.f32 %v5412_v18  ;;  %v17559_v18 = vld [vmem:[#allocation113_spill] sm:$0xff] }
 0x67c   :  { %5480 = vadd.xlane.f32.xlu0 %v5479_v42  ;;  %v5226_v3 = vpop.xlane.xlu1 %5225  ;;  %v15904_v30 = vmul.f32 %v12021_v59, %v17549_v27  ;;  %v12023_v21 = vpop.eup %12022  ;;  %v5299_v36 = vsel %vm4347_vm4, %v17559_v18, 0.0  ;;  %v17568_v18 = vld [vmem:[#allocation197_spill] sm:$0xff] }
 0x67d   :  { %v5415_v45 = vpop.xlane.xlu0 %5414  ;;  %v15906_v39 = vpop.f32.mrf.mxu0  ;;  %v15917_v0 = vmul.f32 %v12023_v21, %v17552_v32 }
 0x67e   :  { %17550 = vst [vmem:[#allocation65_spill] sm:$0xff] %v15906_v39  ;;  %12036 = vrcp.f32 %v5415_v45  ;;  %v15908_v26 = vpop.f32.mrf.mxu1  ;;  %v17561_v45 = vld [vmem:[#allocation72_spill] sm:$0xff] }
 0x67f   :  { %17551 = vst [vmem:[#allocation71_spill] sm:$0xff] %v15908_v26  ;;  %v12025_v7 = vpop.eup %12024  ;;  %5483 = vadd.xlane.f32.xlu1 %v5482_v47  ;;  %v11111_v12 = vpop.f32.mrf.mxu0  ;;  %12038 = vrcp.f32 %v5226_v3  ;;  %v17560_v3 = vld [vmem:[#allocation39_spill] sm:$0xff]  ;;  %v5305_v47 = vsel %vm4347_vm4, %v17561_v45, 0.0  ;;  %v17569_v45 = vld [vmem:[#allocation185_spill] sm:$0xff] }
 0x680   :  { %v11116_v5 = vpop.f32.mrf.mxu1  ;;  %5450 = vadd.xlane.f32.xlu0 %v5449_v8  ;;  %v5262_v6 = vpop.xlane.xlu1 %5261  ;;  %v15920_v58 = vmul.f32 %v12025_v7, %v17553_v1  ;;  %v5392_v35 = vsel %vm4347_vm4, %v17560_v3, 0.0 }
 0x681   :  { %v12027_v48 = vpop.eup %12026  ;;  %v5229_v57 = vpop.xlane.xlu0 %5228  ;;  %v17562_v5 = vld [vmem:[#allocation224_spill] sm:$0xff] }
 0x682   :  { %12040 = vrcp.f32 %v5229_v57  ;;  %v15922_v33 = vpop.f32.mrf.mxu1  ;;  %v15931_v62 = vmul.f32 %v12027_v48, %v17556_v61  ;;  %v17563_v48 = vld [vmem:[#allocation47_spill] sm:$0xff] }
 0x683   :  { %17554 = vst [vmem:[#allocation67_spill] sm:$0xff] %v15922_v33  ;;  %v12029_v50 = vpop.eup %12028  ;;  %5297 = vadd.xlane.f32.xlu1 %v5296_v9  ;;  %12042 = vrcp.f32 %v5262_v6  ;;  %v5398_v6 = vsel %vm4347_vm4, %v17562_v5, 0.0  ;;  %v5395_v57 = vsel %vm4347_vm4, %v17563_v48, 0.0  ;;  %v17565_v9 = vld [vmem:[#allocation188_spill] sm:$0xff]  ;;  %v17571_v5 = vld [vmem:[#allocation35_spill] sm:$0xff]  ;;  %v5497_v48 = vsel %vm4347_vm4, %v15818_v31, 0.0 }
 0x684   :  { %v11117_v40 = vpop.f32.mrf.mxu1  ;;  %5486 = vadd.xlane.f32.xlu0 %v5485_v41  ;;  %v5232_v2 = vpop.xlane.xlu1 %5231  ;;  %v15934_v54 = vmul.f32 %v12029_v50, %v17557_v44  ;;  %v17575_v31 = vld [vmem:[#allocation86_spill] sm:$0xff] }
 0x685   :  { %v12031_v53 = vpop.eup %12030  ;;  %v5265_v63 = vpop.xlane.xlu0 %5264 }
 0x686   :  { %12044 = vrcp.f32 %v5265_v63  ;;  %v15943_v20 = vmul.f32 %v12031_v53, %v15661_v24  ;;  %v17566_v53 = vld [vmem:[#allocation223_spill] sm:$0xff] }
 0x687   :  { %v12033_v34 = vpop.eup %12032  ;;  %5303 = vadd.xlane.f32.xlu1 %v5302_v19  ;;  %12046 = vrcp.f32 %v5232_v2  ;;  %v5488_v2 = vsel %vm4347_vm4, %v15807_v13, 0.0  ;;  %v5401_v63 = vsel %vm4347_vm4, %v17566_v53, 0.0  ;;  %v17567_v19 = vld [vmem:[#allocation63_spill] sm:$0xff]  ;;  %v5494_v13 = vsel %vm4347_vm4, %v15825_v15, 0.0 }
 0x688   :  { %5300 = vadd.xlane.f32.xlu0 %v5299_v36  ;;  %v5268_v29 = vpop.xlane.xlu1 %5267  ;;  %v15946_v59 = vmul.f32 %v12033_v34, %v15669_v23  ;;  %v12035_v16 = vpop.eup %12034 }
 0x689   :  { %v5235_v42 = vpop.xlane.xlu0 %5234  ;;  %v15955_v23 = vmul.f32 %v12035_v16, %v15673_v51 }
 0x68a   :  { %12048 = vrcp.f32 %v5235_v42 }
 0x68b   :  { %v12037_v21 = vpop.eup %12036  ;;  %5393 = vadd.xlane.f32.xlu1 %v5392_v35  ;;  %12050 = vrcp.f32 %v5268_v29  ;;  %v5491_v35 = vsel %vm4347_vm4, %v15799_v37, 0.0 }
 0x68c   :  { %5306 = vadd.xlane.f32.xlu0 %v5305_v47  ;;  %v5322_v24 = vpop.xlane.xlu1 %5321  ;;  %v15958_v7 = vmul.f32 %v12037_v21, %v15679_v46  ;;  %v12039_v12 = vpop.eup %12038 }
 0x68d   :  { %v5271_v8 = vpop.xlane.xlu0 %5270  ;;  %v15967_v46 = vmul.f32 %v12039_v12, %v17564_v11 }
 0x68e   :  { %12052 = vrcp.f32 %v5271_v8 }
 0x68f   :  { %v12041_v1 = vpop.eup %12040  ;;  %5399 = vadd.xlane.f32.xlu1 %v5398_v6  ;;  %12054 = vrcp.f32 %v5322_v24  ;;  %v17570_v24 = vld [vmem:[#allocation187_spill] sm:$0xff]  ;;  %v5116_v6 = vsel %vm4347_vm4, %v17571_v5, 0.0 }
 0x690   :  { %5396 = vadd.xlane.f32.xlu0 %v5395_v57  ;;  %v5358_v51 = vpop.xlane.xlu1 %5357  ;;  %v15970_v50 = vmul.f32 %v12041_v1, %v17565_v9  ;;  %v12043_v41 = vpop.eup %12042  ;;  %v17573_v9 = vld [vmem:[#allocation196_spill] sm:$0xff] }
 0x691   :  { %v5325_v40 = vpop.xlane.xlu0 %5324  ;;  %v15979_v34 = vmul.f32 %v12043_v41, %v17567_v19  ;;  %v5119_v19 = vsel %vm4347_vm4, %v17575_v31, 0.0  ;;  %v17582_v31 = vld [vmem:[#allocation50_spill] sm:$0xff] }
 0x692   :  { %12056 = vrcp.f32 %v5325_v40 }
 0x693   :  { %v12045_v44 = vpop.eup %12044  ;;  %5489 = vadd.xlane.f32.xlu1 %v5488_v2  ;;  %12058 = vrcp.f32 %v5358_v51  ;;  %v17572_v51 = vld [vmem:[#allocation195_spill] sm:$0xff] }
 0x694   :  { %5402 = vadd.xlane.f32.xlu0 %v5401_v63  ;;  %v5328_v28 = vpop.xlane.xlu1 %5327  ;;  %v15982_v36 = vmul.f32 %v12045_v44, %v17568_v18  ;;  %v12047_v29 = vpop.eup %12046  ;;  %v17574_v44 = vld [vmem:[#allocation83_spill] sm:$0xff] }
 0x695   :  { %v5361_v16 = vpop.xlane.xlu0 %5360  ;;  %v15993_v47 = vmul.f32 %v12047_v29, %v17569_v45  ;;  %v5122_v53 = vsel %vm4347_vm4, %v17574_v44, 0.0  ;;  %v17576_v29 = vld [vmem:[#allocation211_spill] sm:$0xff] }
 0x696   :  { %12060 = vrcp.f32 %v5361_v16  ;;  %v17592_v63 = vld [vmem:[#allocation55_spill] sm:$0xff] }
 0x697   :  { %v12049_v3 = vpop.eup %12048  ;;  %5495 = vadd.xlane.f32.xlu1 %v5494_v13  ;;  %12062 = vrcp.f32 %v5328_v28  ;;  %v17577_v13 = vld [vmem:[#allocation213_spill] sm:$0xff]  ;;  %v5173_v1 = vsel %vm4347_vm4, %v17592_v63, 0.0 }
 0x698   :  { %5492 = vadd.xlane.f32.xlu0 %v5491_v35  ;;  %v15990_v21 = vpop.xlane.xlu1 %5363  ;;  %v15996_v12 = vmul.f32 %v12049_v3, %v17570_v24  ;;  %v12051_v8 = vpop.eup %12050  ;;  %v17578_v24 = vld [vmem:[#allocation90_spill] sm:$0xff] }
 0x699   :  { %v5331_v15 = vpop.xlane.xlu0 %5330  ;;  %v16007_v11 = vmul.f32 %v12051_v8, %v17572_v51  ;;  %v5128_v8 = vsel %vm4347_vm4, %v17578_v24, 0.0  ;;  %v17580_v51 = vld [vmem:[#allocation82_spill] sm:$0xff]  ;;  %v17583_v24 = vld [vmem:[#allocation92_spill] sm:$0xff] }
 0x69a   :  { %12064 = vrcp.f32 %v5331_v15 }
 0x69b   :  { %v12053_v37 = vpop.eup %12052  ;;  %5117 = vadd.xlane.f32.xlu1 %v5116_v6  ;;  %v17579_v6 = vld [vmem:[#allocation87_spill] sm:$0xff] }
 0x69c   :  { %5498 = vadd.xlane.f32.xlu0 %v5497_v48  ;;  %v16004_v57 = vpop.xlane.xlu1 %5417  ;;  %v16010_v41 = vmul.f32 %v12053_v37, %v17573_v9  ;;  %v12055_v40 = vpop.eup %12054  ;;  %v5125_v37 = vsel %vm4347_vm4, %v17579_v6, 0.0  ;;  %v17584_v6 = vld [vmem:[#allocation210_spill] sm:$0xff] }
 0x69d   :  { %v16012_v2 = vpop.xlane.xlu0 %5366  ;;  %v16023_v16 = vmul.f32 %v12055_v40, %v17576_v29  ;;  %v17581_v40 = vld [vmem:[#allocation139_spill] sm:$0xff]  ;;  %v17587_v29 = vld [vmem:[#allocation101_spill] sm:$0xff] }
 0x69f   :  { %v12057_v28 = vpop.eup %12056  ;;  %5123 = vadd.xlane.f32.xlu1 %v5122_v53 }
 0x6a0   :  { %5120 = vadd.xlane.f32.xlu0 %v5119_v19  ;;  %v16020_v18 = vpop.xlane.xlu1 %5453  ;;  %v16026_v3 = vmul.f32 %v12057_v28, %v17577_v13  ;;  %v12059_v35 = vpop.eup %12058  ;;  %v5164_v19 = vsel %vm4347_vm4, %v17582_v31, 0.0  ;;  %v17586_v31 = vld [vmem:[#allocation89_spill] sm:$0xff] }
 0x6a1   :  { %v16028_v45 = vpop.xlane.xlu0 %5420  ;;  %v16039_v9 = vmul.f32 %v12059_v35, %v17580_v51  ;;  %v5134_v15 = vsel %vm4347_vm4, %v17586_v31, 0.0  ;;  %12066 = vrcp.f32 %v16020_v18  ;;  %v17622_v18 = vpack.i.bf16 %v15934_v54, %v15931_v62 }
 0x6a2   :  { %v17626_v54 = vpack.i.bf16 %v15958_v7, %v15955_v23 }
 0x6a3   :  { %v12061_v5 = vpop.eup %12060  ;;  %5129 = vadd.xlane.f32.xlu1 %v5128_v8  ;;  %v5131_v8 = vsel %vm4347_vm4, %v17583_v24, 0.0  ;;  %v5167_v24 = vsel %vm4347_vm4, %v17587_v29, 0.0  ;;  %v17591_v29 = vld [vmem:[#allocation40_spill] sm:$0xff] }
 0x6a4   :  { %5126 = vadd.xlane.f32.xlu0 %v5125_v37  ;;  %v16036_v48 = vpop.xlane.xlu1 %5423  ;;  %v16042_v44 = vmul.f32 %v12061_v5, %v17581_v40  ;;  %v12063_v53 = vpop.eup %12062  ;;  %v17585_v37 = vld [vmem:[#allocation212_spill] sm:$0xff] }
 0x6a5   :  { %v16044_v28 = vpop.xlane.xlu0 %5456  ;;  %v16055_v5 = vmul.f32 %v12063_v53, %v17584_v6  ;;  %v17588_v6 = vld [vmem:[#allocation48_spill] sm:$0xff] }
 0x6a6   :  { %12068 = vrcp.f32 %v16044_v28 }
 0x6a7   :  { %v12065_v13 = vpop.eup %12064  ;;  %5165 = vadd.xlane.f32.xlu1 %v5164_v19 }
 0x6a8   :  { %5132 = vadd.xlane.f32.xlu0 %v5131_v8  ;;  %v16052_v35 = vpop.xlane.xlu1 %5459  ;;  %v16058_v51 = vmul.f32 %v12065_v13, %v17585_v37  ;;  %v5170_v13 = vsel %vm4347_vm4, %v17588_v6, 0.0  ;;  %v17589_v37 = vld [vmem:[#allocation88_spill] sm:$0xff] }
 0x6a9   :  { %v16060_v40 = vpop.xlane.xlu0 %5426  ;;  %v5137_v42 = vsel %vm4347_vm4, %v17589_v37, 0.0  ;;  %v17594_v37 = vld [vmem:[#allocation57_spill] sm:$0xff]  ;;  %12070 = vrcp.f32 %v16052_v35  ;;  %v11757_v35 = vld [vmem:[%s16886_s3] sm:$0xff]  }
 0x6aa   :  { %v5176_v27 = vsel %vm4347_vm4, %v17594_v37, 0.0  ;;  %v17599_v37 = vld [vmem:[#allocation107_spill] sm:$0xff] }
 0x6ab   :  { %5135 = vadd.xlane.f32.xlu1 %v5134_v15  ;;  %v5179_v52 = vsel %vm4347_vm4, %v17599_v37, 0.0  ;;  %v17603_v37 = vld [vmem:[#allocation105_spill] sm:$0xff] }
 0x6ac   :  { %5168 = vadd.xlane.f32.xlu0 %v5167_v24  ;;  %v16068_v8 = vpop.xlane.xlu1 %5237  ;;  %v5140_v24 = vsel %vm4347_vm4, %v17591_v29, 0.0  ;;  %v5143_v29 = vsel %vm4347_vm4, %v17596_v49, 0.0 }
 0x6ad   :  { %v16070_v53 = vpop.xlane.xlu0 %5462 }
 0x6ae   :  { %12072 = vrcp.f32 %v16070_v53 }
 0x6af   :  { %5171 = vadd.xlane.f32.xlu1 %v5170_v13 }
 0x6b0   :  { %5138 = vadd.xlane.f32.xlu0 %v5137_v42  ;;  %v16076_v31 = vpop.xlane.xlu1 %5273 }
 0x6b1   :  { %v16078_v19 = vpop.xlane.xlu0 %5240 }
 0x6b2   :  { %v16080_v15 = vpop.f32.mrf.mxu0 }
 0x6b3   :  { %17590 = vst [vmem:[#allocation74_spill] sm:$0xff] %v16080_v15  ;;  %5141 = vadd.xlane.f32.xlu1 %v5140_v24 }
 0x6b4   :  { %5174 = vadd.xlane.f32.xlu0 %v5173_v1  ;;  %v16086_v6 = vpop.xlane.xlu1 %5243  ;;  %v11122_v13 = vpop.f32.mrf.mxu0 }
 0x6b5   :  { %v16088_v61 = vpop.xlane.xlu0 %5276  ;;  %v17597_v13 = vld [vmem:[#allocation34_spill] sm:$0xff] }
 0x6b6   :  { %v16090_v42 = vpop.f32.mrf.mxu0  ;;  %v5146_v14 = vsel %vm4347_vm4, %v17597_v13, 0.0 }
 0x6b7   :  { %17593 = vst [vmem:[#allocation79_spill] sm:$0xff] %v16090_v42  ;;  %v16094_v32 = vpop.f32.mrf.mxu1  ;;  %5177 = vadd.xlane.f32.xlu1 %v5176_v27 }
 0x6b8   :  { %17595 = vst [vmem:[#allocation70_spill] sm:$0xff] %v16094_v32  ;;  %5144 = vadd.xlane.f32.xlu0 %v5143_v29  ;;  %v16098_v24 = vpop.xlane.xlu1 %5279  ;;  %v11123_v1 = vpop.f32.mrf.mxu0  ;;  %v17600_v32 = vld [vmem:[#allocation103_spill] sm:$0xff] }
 0x6b9   :  { %v11128_v63 = vpop.f32.mrf.mxu1  ;;  %v16100_v43 = vpop.xlane.xlu0 %5246  ;;  %v5182_v1 = vsel %vm4347_vm4, %v17600_v32, 0.0 }
 0x6ba   :  { %v17601_v63 = vld [vmem:[#allocation36_spill] sm:$0xff] }
 0x6bb   :  { %v16104_v17 = vpop.f32.mrf.mxu1  ;;  %5147 = vadd.xlane.f32.xlu1 %v5146_v14  ;;  %v5149_v15 = vsel %vm4347_vm4, %v17601_v63, 0.0 }
 0x6bc   :  { %17598 = vst [vmem:[#allocation77_spill] sm:$0xff] %v16104_v17  ;;  %5180 = vadd.xlane.f32.xlu0 %v5179_v52  ;;  %v16108_v27 = vpop.xlane.xlu1 %5333  ;;  %v17602_v17 = vld [vmem:[#allocation43_spill] sm:$0xff] }
 0x6bd   :  { %v11129_v49 = vpop.f32.mrf.mxu1  ;;  %v16110_v29 = vpop.xlane.xlu0 %5282  ;;  %v5152_v52 = vsel %vm4347_vm4, %v17602_v17, 0.0 }
 0x6be   :  { %v5185_v49 = vsel %vm4347_vm4, %v17603_v37, 0.0 }
 0x6bf   :  { %5183 = vadd.xlane.f32.xlu1 %v5182_v1  ;;  %v17605_v1 = vld [vmem:[#allocation118_spill] sm:$0xff] }
 0x6c0   :  { %5150 = vadd.xlane.f32.xlu0 %v5149_v15  ;;  %v16116_v13 = vpop.xlane.xlu1 %5369  ;;  %v5188_v63 = vsel %vm4347_vm4, %v17605_v1, 0.0  ;;  %v17606_v15 = vld [vmem:[#allocation100_spill] sm:$0xff] }
 0x6c1   :  { %v16118_v14 = vpop.xlane.xlu0 %5336  ;;  %v5155_v26 = vsel %vm4347_vm4, %v17606_v15, 0.0 }
 0x6c3   :  { %5153 = vadd.xlane.f32.xlu1 %v5152_v52  ;;  %v17609_v52 = vld [vmem:[#allocation42_spill] sm:$0xff] }
 0x6c4   :  { %5186 = vadd.xlane.f32.xlu0 %v5185_v49  ;;  %v16124_v42 = vpop.xlane.xlu1 %5339  ;;  %v5158_v37 = vsel %vm4347_vm4, %v17609_v52, 0.0  ;;  %v17610_v49 = vld [vmem:[#allocation119_spill] sm:$0xff] }
 0x6c5   :  { %17604 = vst [vmem:[#allocation161_spill] sm:$0xff] %v16124_v42  ;;  %v16126_v32 = vpop.xlane.xlu0 %5372  ;;  %v5191_v60 = vsel %vm4347_vm4, %v17610_v49, 0.0  ;;  %v17614_v52 = vld [vmem:[#allocation111_spill] sm:$0xff] }
 0x6c7   :  { %5189 = vadd.xlane.f32.xlu1 %v5188_v63  ;;  %v17612_v63 = vld [vmem:[#allocation110_spill] sm:$0xff] }
 0x6c8   :  { %5156 = vadd.xlane.f32.xlu0 %v5155_v26  ;;  %v16132_v33 = vpop.xlane.xlu1 %5375  ;;  %v5194_v15 = vsel %vm4347_vm4, %v17612_v63, 0.0  ;;  %v17613_v26 = vld [vmem:[#allocation41_spill] sm:$0xff] }
 0x6c9   :  { %17607 = vst [vmem:[#allocation127_spill] sm:$0xff] %v16132_v33  ;;  %v16134_v17 = vpop.xlane.xlu0 %5342  ;;  %v5161_v10 = vsel %vm4347_vm4, %v17613_v26, 0.0 }
 0x6ca   :  { %17608 = vst [vmem:[#allocation160_spill] sm:$0xff] %v16134_v17 }
 0x6cb   :  { %5159 = vadd.xlane.f32.xlu1 %v5158_v37  ;;  %v5197_v37 = vsel %vm4347_vm4, %v17614_v52, 0.0 }
 0x6cc   :  { %5192 = vadd.xlane.f32.xlu0 %v5191_v60  ;;  %v16140_v39 = vpop.xlane.xlu1 %5429 }
 0x6cd   :  { %17611 = vst [vmem:[#allocation162_spill] sm:$0xff] %v16140_v39  ;;  %v16142_v1 = vpop.xlane.xlu0 %5378 }
 0x6cf   :  { %5195 = vadd.xlane.f32.xlu1 %v5194_v15 }
 0x6d0   :  { %5162 = vadd.xlane.f32.xlu0 %v5161_v10  ;;  %v5466_v42 = vpop.xlane.xlu1 %5465  ;;  %v17616_v10 = vpack.i.bf16 %v15890_v25, %v15887_v55  ;;  %v11756_v55 = vld [vmem:[%s16886_s3 + $0x8] sm:$0xff]   ;;  %s12293_s3 = smov 32  }
 0x6d1   :  { %v16148_v22 = vpop.xlane.xlu0 %5432  ;;  %12074 = vrcp.f32 %v5466_v42  ;;  %11178 = vmatprep.subr.bf16.mxu0 %v11756_v55  ;;  %11214 = vmatprep.subr.bf16.mxu1 %v11756_v55 }
 0x6d2   :  { %11179 = vmatpush3.bf16.msra.mxu0 %v11756_v55  ;;  %11216 = vmatpush3.bf16.msra.mxu1 %v11756_v55 }
 0x6d3   :  { %11180 = vmatprep.subr.bf16.mxu0 %v11757_v35  ;;  %11215 = vmatprep.subr.bf16.mxu1 %v11757_v35 }
 0x6d4   :  { %5198 = vadd.xlane.f32.xlu0 %v5197_v37  ;;  %v16152_v60 = vpop.xlane.xlu1 %5435  ;;  %v17619_v37 = vpack.i.bf16 %v15920_v58, %v15917_v0  ;;  %v17624_v58 = vpack.i.bf16 %v15904_v30, %v15901_v4  ;;  %v12067_v4 = vpop.eup %12066  ;;  %v17628_v30 = vpack.i.bf16 %v15946_v59, %v15943_v20 }
 0x6d5   :  { %v5469_v49 = vpop.xlane.xlu0 %5468 }
 0x6d6   :  { %12076 = vrcp.f32 %v5469_v49  ;;  %11181 = vmatpush3.bf16.msra.mxu0 %v11757_v35  ;;  %v12069_v49 = vpop.eup %12068  ;;  %11217 = vmatpush3.bf16.msra.mxu1 %v11757_v35 }
 0x6d7   :  { %v12071_v59 = vpop.eup %12070 }
 0x6d8   :  { %v5472_v39 = vpop.xlane.xlu1 %5471 }
 0x6d9   :  { %v16154_v17 = vpop.xlane.xlu0 %5438  ;;  %12078 = vrcp.f32 %v5472_v39 }
 0x6dc   :  { %v16156_v33 = vpop.xlane.xlu1 %5249 }
 0x6dd   :  { %v5475_v63 = vpop.xlane.xlu0 %5474 }
 0x6de   :  { %12080 = vrcp.f32 %v5475_v63 }
 0x6e0   :  { %v16158_v15 = vpop.xlane.xlu1 %5285  ;;  %11477 = vrot.lane.b32.xlu1 %v17616_v10, %s12290_s1 }
 0x6e1   :  { %17615 = vst [vmem:[#allocation163_spill] sm:$0xff] %v16158_v15  ;;  %v16165_v26 = vpop.xlane.xlu0 %5252 }
 0x6e2   :  { %17617 = vst [vmem:[#allocation129_spill] sm:$0xff] %v16165_v26 }
 0x6e4   :  { %v16168_v52 = vpop.xlane.xlu1 %5255  ;;  %11487 = vrot.lane.b32.xlu1 %v17619_v37, %s12291_s29 }
 0x6e5   :  { %17618 = vst [vmem:[#allocation142_spill] sm:$0xff] %v16168_v52  ;;  %v16174_v15 = vpop.xlane.xlu0 %5288 }
 0x6e6   :  { %17620 = vst [vmem:[#allocation130_spill] sm:$0xff] %v16174_v15 }
 0x6e8   :  { %v16181_v25 = vpop.xlane.xlu1 %5291  ;;  %11492 = vrot.lane.b32.xlu1 %v17622_v18, %s12291_s29 }
 0x6e9   :  { %17621 = vst [vmem:[#allocation128_spill] sm:$0xff] %v16181_v25  ;;  %v16187_v0 = vpop.xlane.xlu0 %5258 }
 0x6ea   :  { %17623 = vst [vmem:[#allocation143_spill] sm:$0xff] %v16187_v0  ;;  %11482 = vrot.lane.b32.xlu0 %v17624_v58, %s12290_s1 }
 0x6eb   :  { %v8236_v28 = vpop.f32.mrf.mxu0 }
 0x6ec   :  { %v16196_v62 = vpop.xlane.xlu1 %5345  ;;  %11502 = vrot.lane.b32.xlu1 %v17626_v54, %s12292_s8  ;;  %v16208_v37 = vmul.f32 %v12067_v4, %v8236_v28 }
 0x6ed   :  { %17625 = vst [vmem:[#allocation137_spill] sm:$0xff] %v16196_v62  ;;  %v16202_v53 = vpop.xlane.xlu0 %5294  ;;  %v11134_v42 = vpop.f32.mrf.mxu0 }
 0x6ee   :  { %17627 = vst [vmem:[#allocation73_spill] sm:$0xff] %v16202_v53  ;;  %11497 = vrot.lane.b32.xlu0 %v17628_v30, %s12292_s8  ;;  %v12073_v42 = vpop.eup %12072 }
 0x6ef   :  { %v8239_v10 = vpop.f32.mrf.mxu0 }
 0x6f0   :  { %v16210_v23 = vmul.f32 %v12069_v49, %v8239_v10  ;;  %v8283_v7 = vpop.f32.mrf.mxu1  ;;  %v16212_v55 = vpop.xlane.xlu1 %5381 }
 0x6f1   :  { %17629 = vst [vmem:[#allocation99_spill] sm:$0xff] %v16212_v55  ;;  %v16214_v18 = vpop.xlane.xlu0 %5348  ;;  %v11135_v39 = vpop.f32.mrf.mxu0  ;;  %v16220_v28 = vmul.f32 %v12071_v59, %v8283_v7 }
 0x6f2   :  { %17630 = vst [vmem:[#allocation138_spill] sm:$0xff] %v16214_v18  ;;  %v11140_v20 = vpop.f32.mrf.mxu1  ;;  %v12075_v10 = vpop.eup %12074 }
 0x6f3   :  { %v8330_v54 = vpop.f32.mrf.mxu0  ;;  %v12077_v39 = vpop.eup %12076 }
 0x6f4   :  { %v8286_v63 = vpop.f32.mrf.mxu1  ;;  %v16218_v30 = vpop.xlane.xlu1 %5351  ;;  %v16228_v55 = vmul.f32 %v12075_v10, %v8330_v54 }
 0x6f5   :  { %17631 = vst [vmem:[#allocation98_spill] sm:$0xff] %v16218_v30  ;;  %v16222_v35 = vmul.f32 %v12073_v42, %v8286_v63  ;;  %v16224_v4 = vpop.xlane.xlu0 %5384  ;;  %v11146_v49 = vpop.f32.mrf.mxu0 }
 0x6f6   :  { %17632 = vst [vmem:[#allocation116_spill] sm:$0xff] %v16224_v4  ;;  %v11141_v18 = vpop.f32.mrf.mxu1  ;;  %17633 = vst [vmem:[#allocation115_spill] sm:$0xff] %v16228_v55 }
 0x6f7   :  { %v8333_v20 = vpop.f32.mrf.mxu0  ;;  %v12079_v18 = vpop.eup %12078 }
 0x6f8   :  { %v16230_v62 = vmul.f32 %v12077_v39, %v8333_v20  ;;  %v8377_v0 = vpop.f32.mrf.mxu1  ;;  %v16232_v30 = vpop.xlane.xlu1 %5387 }
 0x6f9   :  { %17635 = vst [vmem:[#allocation149_spill] sm:$0xff] %v16232_v30  ;;  %v16234_v7 = vpop.xlane.xlu0 %5354  ;;  %v11147_v59 = vpop.f32.mrf.mxu0  ;;  %v16240_v54 = vmul.f32 %v12079_v18, %v8377_v0 }
 0x6fa   :  { %17634 = vst [vmem:[#allocation81_spill] sm:$0xff] %v16230_v62  ;;  %17636 = vst [vmem:[#allocation80_spill] sm:$0xff] %v16234_v7  ;;  %v11152_v63 = vpop.f32.mrf.mxu1  ;;  %v12081_v4 = vpop.eup %12080 }
 0x6fb   :  { %v8424_v49 = vpop.f32.mrf.mxu0  ;;  %17638 = vst [vmem:[#allocation150_spill] sm:$0xff] %v16240_v54 }
 0x6fc   :  { %v8380_v25 = vpop.f32.mrf.mxu1  ;;  %v16238_v58 = vpop.xlane.xlu1 %5441 }
 0x6fd   :  { %17637 = vst [vmem:[#allocation78_spill] sm:$0xff] %v16238_v58  ;;  %v16242_v10 = vmul.f32 %v12081_v4, %v8380_v25  ;;  %v16244_v39 = vpop.xlane.xlu0 %5390  ;;  %v11158_v20 = vpop.f32.mrf.mxu0  ;;  %v17645_v58 = vld [vmem:[#allocation124_spill] sm:$0xff] }
 0x6fe   :  { %17640 = vst [vmem:[#allocation131_spill] sm:$0xff] %v16244_v39  ;;  %v11153_v30 = vpop.f32.mrf.mxu1 }
 0x6ff   :  { %17639 = vst [vmem:[#allocation146_spill] sm:$0xff] %v16242_v10  ;;  %v8427_v7 = vpop.f32.mrf.mxu0 }
 0x700   :  { %v8471_v42 = vpop.f32.mrf.mxu1  ;;  %v5478_v63 = vpop.xlane.xlu1 %5477 }
 0x701   :  { %v16248_v55 = vpop.xlane.xlu0 %5444  ;;  %v11159_v62 = vpop.f32.mrf.mxu0  ;;  %12082 = vrcp.f32 %v5478_v63 }
 0x702   :  { %17641 = vst [vmem:[#allocation164_spill] sm:$0xff] %v16248_v55  ;;  %v11164_v53 = vpop.f32.mrf.mxu1 }
 0x703   :  { %v16250_v52 = vpop.f32.mrf.mxu0 }
 0x704   :  { %v8474_v0 = vpop.f32.mrf.mxu1  ;;  %v16252_v25 = vpop.xlane.xlu1 %5447 }
 0x705   :  { %17642 = vst [vmem:[#allocation147_spill] sm:$0xff] %v16252_v25  ;;  %v5481_v4 = vpop.xlane.xlu0 %5480  ;;  %v11170_v18 = vpop.f32.mrf.mxu0  ;;  %v5200_v25 = vsel %vm4347_vm4, %v17645_v58, 0.0  ;;  %v17651_v58 = vld [vmem:[#allocation123_spill] sm:$0xff] }
 0x706   :  { %12084 = vrcp.f32 %v5481_v4  ;;  %v11165_v30 = vpop.f32.mrf.mxu1 }
 0x707   :  { %v16254_v20 = vpop.f32.mrf.mxu0  ;;  %v17646_v30 = vld [vmem:[#allocation125_spill] sm:$0xff] }
 0x708   :  { %v16256_v59 = vpop.f32.mrf.mxu1  ;;  %v5484_v54 = vpop.xlane.xlu1 %5483  ;;  %v5203_v39 = vsel %vm4347_vm4, %v17646_v30, 0.0 }
 0x709   :  { %v16258_v10 = vpop.xlane.xlu0 %5450  ;;  %v11171_v55 = vpop.f32.mrf.mxu0  ;;  %12086 = vrcp.f32 %v5484_v54 }
 0x70a   :  { %17643 = vst [vmem:[#allocation58_spill] sm:$0xff] %v16258_v10  ;;  %v11176_v62 = vpop.f32.mrf.mxu1  ;;  %v17648_v55 = vld [vmem:[#allocation122_spill] sm:$0xff] }
 0x70b   :  { %v5206_v54 = vsel %vm4347_vm4, %v17648_v55, 0.0 }
 0x70c   :  { %v16260_v53 = vpop.f32.mrf.mxu1  ;;  %v16262_v63 = vpop.xlane.xlu1 %5297 }
 0x70d   :  { %17644 = vst [vmem:[#allocation209_spill] sm:$0xff] %v16262_v63  ;;  %5201 = vadd.xlane.f32.xlu0 %v5200_v25  ;;  %v5487_v4 = vpop.xlane.xlu0 %5486  ;;  %v5209_v25 = vsel %vm4347_vm4, %v17651_v58, 0.0 }
 0x70e   :  { %12088 = vrcp.f32 %v5487_v4  ;;  %v11177_v18 = vpop.f32.mrf.mxu1  ;;  %v12083_v62 = vpop.eup %12082 }
 0x70f   :  { %v16278_v4 = vmul.f32 %v12083_v62, %v8424_v49  ;;  %12090 = vrcp.f32 %v16012_v2  ;;  %v17652_v2 = vpack.i.bf16 %v15970_v50, %v15967_v46 }
 0x710   :  { %v16268_v26 = vpop.xlane.xlu1 %5303  ;;  %5204 = vadd.xlane.f32.xlu1 %v5203_v39  ;;  %12092 = vrcp.f32 %v15990_v21 }
 0x711   :  { %17647 = vst [vmem:[#allocation165_spill] sm:$0xff] %v16268_v26  ;;  %5207 = vadd.xlane.f32.xlu0 %v5206_v54  ;;  %v16272_v10 = vpop.xlane.xlu0 %5300  ;;  %12094 = vrcp.f32 %v16004_v57  ;;  %v17653_v57 = vpack.i.bf16 %v15996_v12, %v15993_v47  ;;  %v17656_v47 = vld [vmem:[#allocation225_spill] sm:$0xff] }
 0x712   :  { %17649 = vst [vmem:[#allocation208_spill] sm:$0xff] %v16272_v10 }
 0x713   :  { %v12085_v63 = vpop.eup %12084 }
 0x714   :  { %v16274_v15 = vpop.xlane.xlu1 %5393  ;;  %v16280_v18 = vmul.f32 %v12085_v63, %v8427_v7 }
 0x715   :  { %17650 = vst [vmem:[#allocation135_spill] sm:$0xff] %v16274_v15  ;;  %5210 = vadd.xlane.f32.xlu0 %v5209_v25  ;;  %v16282_v30 = vpop.xlane.xlu0 %5306 }
 0x716   :  { %v11671_v39 = vpack.i.bf16 %v16280_v18, %v16278_v4  ;;  %v12087_v54 = vpop.eup %12086 }
 0x717   :  { %v16291_v58 = vmul.f32 %v12087_v54, %v8471_v42 }
 0x718   :  { %v16286_v55 = vpop.xlane.xlu1 %5399 }
 0x719   :  { %v16288_v10 = vpop.xlane.xlu0 %5396 }
 0x71b   :  { %v12089_v26 = vpop.eup %12088 }
 0x71c   :  { %v5490_v15 = vpop.xlane.xlu1 %5489  ;;  %v16293_v49 = vmul.f32 %v12089_v26, %v8474_v0 }
 0x71d   :  { %v16296_v7 = vpop.xlane.xlu0 %5402  ;;  %12096 = vrcp.f32 %v5490_v15 }
 0x71e   :  { %12098 = vrcp.f32 %v16028_v45  ;;  %v12091_v45 = vpop.eup %12090 }
 0x71f   :  { %v8783_v12 = vmul.f32 %v12091_v45, %v17656_v47  ;;  %v17667_v47 = vld [vmem:[#allocation201_spill] sm:$0xff] }
 0x720   :  { %v5496_v62 = vpop.xlane.xlu1 %5495 }
 0x721   :  { %v5493_v25 = vpop.xlane.xlu0 %5492  ;;  %11507 = vrot.lane.b32.xlu1 %v17652_v2, %s12290_s1 }
 0x722   :  { %12100 = vrcp.f32 %v5493_v25 }
 0x723   :  { %12102 = vrcp.f32 %v16036_v48  ;;  %v17654_v48 = vpack.i.bf16 %v16010_v41, %v16007_v11  ;;  %v17657_v41 = vpack.i.bf16 %v16042_v44, %v16039_v9 }
 0x724   :  { %12104 = vrcp.f32 %v5496_v62  ;;  %v16307_v21 = vpop.xlane.xlu1 %5117  ;;  %v17661_v62 = vld [vmem:[#allocation127_spill] sm:$0xff] }
 0x725   :  { %12106 = vrcp.f32 %v16060_v40  ;;  %v5499_v26 = vpop.xlane.xlu0 %5498  ;;  %11517 = vrot.lane.b32.xlu1 %v17653_v57, %s12290_s1  ;;  %v12093_v40 = vpop.eup %12092 }
 0x726   :  { %12108 = vrcp.f32 %v5499_v26 }
 0x727   :  { %12110 = vrcp.f32 %v16088_v61  ;;  %v17655_v61 = vpack.i.bf16 %v15982_v36, %v15979_v34 }
 0x728   :  { %12112 = vrcp.f32 %v16076_v31  ;;  %v16316_v46 = vpop.xlane.xlu1 %5123 }
 0x729   :  { %12114 = vrcp.f32 %v16078_v19  ;;  %v16319_v50 = vpop.xlane.xlu0 %5120  ;;  %11522 = vrot.lane.b32.xlu1 %v17654_v48, %s12290_s1  ;;  %v12095_v19 = vpop.eup %12094 }
 0x72a   :  { %12116 = vrcp.f32 %v16068_v8  ;;  %v12097_v15 = vpop.eup %12096  ;;  %v17658_v8 = vld [vmem:[#allocation85_spill] sm:$0xff] }
 0x72b   :  { %12118 = vrcp.f32 %v16110_v29  ;;  %11512 = vrot.lane.b32.xlu0 %v17655_v61, %s12290_s1  ;;  %v8782_v34 = vmul.f32 %v12093_v40, %v17658_v8  ;;  %v12099_v36 = vpop.eup %12098  ;;  %v16353_v9 = vmul.f32 %v12097_v15, %v16250_v52  ;;  %v17666_v40 = vld [vmem:[#allocation62_spill] sm:$0xff] }
 0x72c   :  { %12120 = vrcp.f32 %v16098_v24  ;;  %v16333_v31 = vpop.xlane.xlu1 %5129  ;;  %v17659_v24 = vpack.i.bf16 %v16026_v3, %v16023_v16  ;;  %v8801_v16 = vmul.f32 %v12099_v36, %v15823_v56 }
 0x72d   :  { %12122 = vrcp.f32 %v16100_v43  ;;  %v16336_v11 = vpop.xlane.xlu0 %5126  ;;  %11532 = vrot.lane.b32.xlu1 %v17657_v41, %s12291_s29  ;;  %v11541_v43 = vpack.i.bf16 %v8783_v12, %v8782_v34  ;;  %v17668_v41 = vpack.i.bf16 %v16222_v35, %v16220_v28  ;;  %v17669_v34 = vld [vmem:[#allocation199_spill] sm:$0xff] }
 0x72e   :  { %12124 = vrcp.f32 %v16086_v6 }
 0x72f   :  { %v12101_v29 = vpop.eup %12100  ;;  %12126 = vrcp.f32 %v16126_v32  ;;  %11527 = vrot.lane.b32.xlu0 %v17659_v24, %s12291_s29 }
 0x730   :  { %v12103_v42 = vpop.eup %12102  ;;  %12128 = vrcp.f32 %v16116_v13  ;;  %v16350_v0 = vpop.xlane.xlu1 %5165  ;;  %v16356_v44 = vmul.f32 %v12101_v29, %v16254_v20  ;;  %v17660_v20 = vpack.i.bf16 %v16058_v51, %v16055_v5  ;;  %v17664_v51 = vld [vmem:[#allocation56_spill] sm:$0xff]  ;;  %v17670_v29 = vld [vmem:[#allocation117_spill] sm:$0xff] }
 0x731   :  { %v12105_v6 = vpop.eup %12104  ;;  %12130 = vrcp.f32 %v16118_v14  ;;  %v16359_v32 = vpop.xlane.xlu0 %5132  ;;  %11542 = vrot.lane.b32.xlu1 %v11541_v43, %s12291_s29  ;;  %v8800_v14 = vmul.f32 %v12095_v19, %v15810_v38  ;;  %v17663_v38 = vpack.i.bf16 %v16210_v23, %v16208_v37  ;;  %v8802_v61 = vmul.f32 %v12103_v42, %v17666_v40 }
 0x732   :  { %v12107_v3 = vpop.eup %12106  ;;  %12132 = vrcp.f32 %v16108_v27  ;;  %v16376_v27 = vmul.f32 %v12105_v6, %v16256_v59  ;;  %v17671_v6 = vld [vmem:[#allocation162_spill] sm:$0xff]  ;;  %v17740_v59 = vld [vmem:[#allocation69_spill] sm:$0xff] }
 0x733   :  { %v12109_v52 = vpop.eup %12108  ;;  %12134 = vrcp.f32 %v16142_v1  ;;  %11537 = vrot.lane.b32.xlu0 %v17660_v20, %s12291_s29  ;;  %v17662_v1 = vld [vmem:[#allocation160_spill] sm:$0xff]  ;;  %v11546_v5 = vpack.i.bf16 %v8801_v16, %v8800_v14  ;;  %v8803_v57 = vmul.f32 %v12107_v3, %v17664_v51 }
 0x734   :  { %v12111_v54 = vpop.eup %12110  ;;  %12136 = vrcp.f32 %v17661_v62  ;;  %v16373_v56 = vpop.xlane.xlu1 %5135  ;;  %v16379_v25 = vmul.f32 %v12109_v52, %v16260_v53  ;;  %v17665_v53 = vld [vmem:[#allocation161_spill] sm:$0xff]  ;;  %v17673_v52 = vld [vmem:[#allocation200_spill] sm:$0xff] }
 0x735   :  { %v12113_v2 = vpop.eup %12112  ;;  %12138 = vrcp.f32 %v17662_v1  ;;  %v16382_v26 = vpop.xlane.xlu0 %5168  ;;  %11552 = vrot.lane.b32.xlu1 %v17663_v38, %s12292_s8  ;;  %v8753_v12 = vmul.f32 %v12111_v54, %v17667_v47  ;;  %v11556_v8 = vpack.i.bf16 %v8803_v57, %v8802_v61  ;;  %v17675_v38 = vld [vmem:[#allocation190_spill] sm:$0xff]  ;;  %v17679_v47 = vld [vmem:[#allocation163_spill] sm:$0xff] }
 0x736   :  { %v12115_v45 = vpop.eup %12114  ;;  %12140 = vrcp.f32 %v17665_v53  ;;  %v8752_v36 = vmul.f32 %v12113_v2, %v17669_v34  ;;  %v17674_v2 = vld [vmem:[#allocation198_spill] sm:$0xff]  ;;  %v17678_v53 = vld [vmem:[#allocation44_spill] sm:$0xff] }
 0x737   :  { %v12117_v48 = vpop.eup %12116  ;;  %11547 = vrot.lane.b32.xlu0 %v11546_v5, %s12292_s8  ;;  %12142 = vrcp.f32 %v16148_v22  ;;  %v8741_v24 = vmul.f32 %v12115_v45, %v17670_v29  ;;  %v17672_v22 = vld [vmem:[#allocation191_spill] sm:$0xff]  ;;  %v17676_v45 = vld [vmem:[#allocation130_spill] sm:$0xff] }
 0x738   :  { %v12119_v19 = vpop.eup %12118  ;;  %v16395_v15 = vpop.xlane.xlu1 %5171  ;;  %12144 = vrcp.f32 %v17671_v6  ;;  %v11571_v16 = vpack.i.bf16 %v8753_v12, %v8752_v36  ;;  %v8740_v3 = vmul.f32 %v12117_v48, %v17672_v22  ;;  %v17677_v48 = vld [vmem:[#allocation189_spill] sm:$0xff]  ;;  %v17682_v36 = vld [vmem:[#allocation215_spill] sm:$0xff] }
 0x739   :  { %v12121_v37 = vpop.eup %12120  ;;  %v16398_v23 = vpop.xlane.xlu0 %5138  ;;  %11562 = vrot.lane.b32.xlu1 %v17668_v41, %s12292_s8  ;;  %v8755_v20 = vmul.f32 %v12119_v19, %v17673_v52  ;;  %12146 = vrcp.f32 %v16152_v60 }
 0x73a   :  { %v12123_v43 = vpop.eup %12122  ;;  %12148 = vrcp.f32 %v16154_v17  ;;  %v11566_v62 = vpack.i.bf16 %v8741_v24, %v8740_v3  ;;  %v8754_v1 = vmul.f32 %v12121_v37, %v17674_v2  ;;  %v17680_v37 = vld [vmem:[#allocation129_spill] sm:$0xff]  ;;  %v17686_v3 = vld [vmem:[#allocation144_spill] sm:$0xff] }
 0x73b   :  { %v12125_v42 = vpop.eup %12124  ;;  %11557 = vrot.lane.b32.xlu0 %v11556_v8, %s12292_s8  ;;  %v8743_v5 = vmul.f32 %v12123_v43, %v17675_v38  ;;  %12150 = vrcp.f32 %v16156_v33  ;;  %v17681_v8 = vld [vmem:[#allocation49_spill] sm:$0xff]  ;;  %v17683_v43 = vld [vmem:[#allocation142_spill] sm:$0xff] }
 0x73c   :  { %v12127_v14 = vpop.eup %12126  ;;  %v16411_v28 = vpop.xlane.xlu1 %5141  ;;  %12152 = vrcp.f32 %v17676_v45  ;;  %v11581_v60 = vpack.i.bf16 %v8755_v20, %v8754_v1  ;;  %v8742_v17 = vmul.f32 %v12125_v42, %v17677_v48  ;;  %v17684_v42 = vld [vmem:[#allocation73_spill] sm:$0xff]  ;;  %v17692_v48 = vld [vmem:[#allocation116_spill] sm:$0xff] }
 0x73d   :  { %v12129_v35 = vpop.eup %12128  ;;  %v16414_v54 = vpop.xlane.xlu0 %5174  ;;  %11572 = vrot.lane.b32.xlu1 %v11571_v16, %s12290_s1  ;;  %v8785_v40 = vmul.f32 %v12127_v14, %v17678_v53  ;;  %12154 = vrcp.f32 %v17679_v47  ;;  %v17685_v16 = vld [vmem:[#allocation214_spill] sm:$0xff]  ;;  %v17687_v14 = vld [vmem:[#allocation128_spill] sm:$0xff]  ;;  %v17689_v38 = vld [vmem:[#allocation93_spill] sm:$0xff] }
 0x73e   :  { %v12131_v51 = vpop.eup %12130  ;;  %12156 = vrcp.f32 %v17680_v37  ;;  %v11576_v33 = vpack.i.bf16 %v8743_v5, %v8742_v17  ;;  %v8784_v34 = vmul.f32 %v12129_v35, %v17681_v8  ;;  %v17688_v35 = vld [vmem:[#allocation143_spill] sm:$0xff]  ;;  %v17693_v53 = vld [vmem:[#allocation216_spill] sm:$0xff]  ;;  %v17695_v8 = vld [vmem:[#allocation138_spill] sm:$0xff] }
 0x73f   :  { %v12133_v57 = vpop.eup %12132  ;;  %11567 = vrot.lane.b32.xlu0 %v11566_v62, %s12290_s1  ;;  %v8773_v29 = vmul.f32 %v12131_v51, %v17682_v36  ;;  %12158 = vrcp.f32 %v17683_v43  ;;  %v17690_v51 = vld [vmem:[#allocation217_spill] sm:$0xff]  ;;  %v17694_v47 = vld [vmem:[#allocation99_spill] sm:$0xff]  ;;  %v17697_v43 = vld [vmem:[#allocation98_spill] sm:$0xff] }
 0x740   :  { %v12135_v61 = vpop.eup %12134  ;;  %v16425_v12 = vpop.xlane.xlu1 %5177  ;;  %12160 = vrcp.f32 %v17684_v42  ;;  %v11591_v6 = vpack.i.bf16 %v8785_v40, %v8784_v34  ;;  %v8772_v22 = vmul.f32 %v12133_v57, %v17685_v16  ;;  %v17691_v57 = vld [vmem:[#allocation137_spill] sm:$0xff]  ;;  %v17699_v16 = vld [vmem:[#allocation54_spill] sm:$0xff] }
 0x741   :  { %v12137_v19 = vpop.eup %12136  ;;  %v16428_v41 = vpop.xlane.xlu0 %5144  ;;  %11582 = vrot.lane.b32.xlu1 %v11581_v60, %s12290_s1  ;;  %v8787_v52 = vmul.f32 %v12135_v61, %v17686_v3  ;;  %12162 = vrcp.f32 %v17687_v14  ;;  %v17696_v36 = vld [vmem:[#allocation65_spill] sm:$0xff] }
 0x742   :  { %v12139_v24 = vpop.eup %12138  ;;  %12164 = vrcp.f32 %v17688_v35  ;;  %v11586_v1 = vpack.i.bf16 %v8773_v29, %v8772_v22  ;;  %v8786_v5 = vmul.f32 %v12137_v19, %v17689_v38  ;;  %v17701_v35 = vld [vmem:[#allocation80_spill] sm:$0xff]  ;;  %v17702_v38 = vld [vmem:[#allocation81_spill] sm:$0xff] }
 0x743   :  { %11577 = vrot.lane.b32.xlu0 %v11576_v33, %s12290_s1  ;;  %v12141_v20 = vpop.eup %12140  ;;  %v8775_v45 = vmul.f32 %v12139_v24, %v17690_v51  ;;  %12166 = vrcp.f32 %v17691_v57 }
 0x744   :  { %v16439_v62 = vpop.xlane.xlu1 %5147  ;;  %v12143_v60 = vpop.eup %12142  ;;  %12168 = vrcp.f32 %v17692_v48  ;;  %v11601_v17 = vpack.i.bf16 %v8787_v52, %v8786_v5  ;;  %v8774_v40 = vmul.f32 %v12141_v20, %v17693_v53  ;;  %v17700_v52 = vld [vmem:[#allocation149_spill] sm:$0xff]  ;;  %v17703_v5 = vld [vmem:[#allocation115_spill] sm:$0xff] }
 0x745   :  { %v16442_v2 = vpop.xlane.xlu0 %5180  ;;  %11592 = vrot.lane.b32.xlu1 %v11591_v6, %s12291_s29  ;;  %v12145_v61 = vpop.eup %12144  ;;  %12170 = vrcp.f32 %v17694_v47  ;;  %v8805_v29 = vmul.f32 %v12143_v60, %v17696_v36  ;;  %v17698_v6 = vld [vmem:[#allocation131_spill] sm:$0xff]  ;;  %v17704_v51 = vpack.i.bf16 %v17702_v38, %v17703_v5 }
 0x746   :  { %v12147_v33 = vpop.eup %12146  ;;  %12172 = vrcp.f32 %v17695_v8  ;;  %v11596_v34 = vpack.i.bf16 %v8775_v45, %v8774_v40  ;;  %v8804_v22 = vmul.f32 %v12145_v61, %v17699_v16  ;;  %v17705_v60 = vld [vmem:[#allocation67_spill] sm:$0xff]  ;;  %v17707_v40 = vld [vmem:[#allocation164_spill] sm:$0xff] }
 0x747   :  { %11587 = vrot.lane.b32.xlu0 %v11586_v1, %s12291_s29  ;;  %v12149_v24 = vpop.eup %12148  ;;  %12174 = vrcp.f32 %v17697_v43  ;;  %v17708_v61 = vld [vmem:[#allocation71_spill] sm:$0xff]  ;;  %v17709_v8 = vld [vmem:[#allocation120_spill] sm:$0xff]  ;;  %v17710_v43 = vld [vmem:[#allocation58_spill] sm:$0xff] }
 0x748   :  { %v16452_v37 = vpop.xlane.xlu1 %5183  ;;  %v12151_v42 = vpop.eup %12150  ;;  %12176 = vrcp.f32 %v17698_v6  ;;  %v11606_v45 = vpack.i.bf16 %v8805_v29, %v8804_v22  ;;  %v8807_v57 = vmul.f32 %v12149_v24, %v17705_v60  ;;  %v8806_v47 = vmul.f32 %v12147_v33, %v17708_v61  ;;  %v17711_v16 = vld [vmem:[#allocation147_spill] sm:$0xff]  ;;  %v17712_v22 = vld [vmem:[#allocation146_spill] sm:$0xff] }
 0x749   :  { %v16455_v19 = vpop.xlane.xlu0 %5150  ;;  %11602 = vrot.lane.b32.xlu1 %v11601_v17, %s12291_s29  ;;  %v12153_v3 = vpop.eup %12152  ;;  %12178 = vrcp.f32 %v17700_v52  ;;  %v17706_v17 = vld [vmem:[#allocation78_spill] sm:$0xff]  ;;  %v17715_v5 = vld [vmem:[#allocation75_spill] sm:$0xff] }
 0x74a   :  { %v12155_v14 = vpop.eup %12154  ;;  %12180 = vrcp.f32 %v17701_v35  ;;  %v17713_v52 = vld [vmem:[#allocation150_spill] sm:$0xff]  ;;  %v11616_v38 = vpack.i.bf16 %v8807_v57, %v8806_v47 }
 0x74b   :  { %11597 = vrot.lane.b32.xlu0 %v11596_v34, %s12291_s29  ;;  %v12157_v48 = vpop.eup %12156  ;;  %12182 = vrcp.f32 %v17706_v17  ;;  %v8757_v34 = vmul.f32 %v12153_v3, %v17709_v8  ;;  %v17714_v35 = vpack.i.bf16 %v17712_v22, %v17713_v52  ;;  %v8756_v33 = vmul.f32 %v12155_v14, %v17715_v5  ;;  %v17718_v8 = vld [vmem:[#allocation203_spill] sm:$0xff]  ;;  %v17721_v52 = vld [vmem:[#allocation165_spill] sm:$0xff] }
 0x74c   :  { %v16464_v20 = vpop.xlane.xlu1 %5153  ;;  %v12159_v53 = vpop.eup %12158  ;;  %12184 = vrcp.f32 %v17707_v40  ;;  %v17717_v40 = vld [vmem:[#allocation193_spill] sm:$0xff] }
 0x74d   :  { %v16467_v1 = vpop.xlane.xlu0 %5186  ;;  %11612 = vrot.lane.b32.xlu1 %v17704_v51, %s12292_s8  ;;  %v12161_v36 = vpop.eup %12160  ;;  %12186 = vrcp.f32 %v17710_v43  ;;  %v17716_v51 = vld [vmem:[#allocation68_spill] sm:$0xff]  ;;  %v11631_v17 = vpack.i.bf16 %v8757_v34, %v8756_v33  ;;  %v8744_v61 = vmul.f32 %v12151_v42, %v17717_v40  ;;  %v17720_v34 = vld [vmem:[#allocation194_spill] sm:$0xff]  ;;  %v17725_v40 = vld [vmem:[#allocation91_spill] sm:$0xff] }
 0x74e   :  { %v12163_v29 = vpop.eup %12162  ;;  %12188 = vrcp.f32 %v17711_v16  ;;  %v8745_v3 = vmul.f32 %v12157_v48, %v17716_v51  ;;  %v8759_v43 = vmul.f32 %v12161_v36, %v17718_v8  ;;  %v17724_v51 = vld [vmem:[#allocation208_spill] sm:$0xff] }
 0x74f   :  { %11607 = vrot.lane.b32.xlu0 %v11606_v45, %s12292_s8  ;;  %v12165_v45 = vpop.eup %12164  ;;  %12190 = vrcp.f32 %v16307_v21 }
 0x750   :  { %v16480_v6 = vpop.xlane.xlu1 %5189  ;;  %v12167_v60 = vpop.eup %12166  ;;  %12192 = vrcp.f32 %v16319_v50  ;;  %v11626_v21 = vpack.i.bf16 %v8745_v3, %v8744_v61  ;;  %v17719_v50 = vld [vmem:[#allocation202_spill] sm:$0xff]  ;;  %v8747_v22 = vmul.f32 %v12165_v45, %v17720_v34  ;;  %v17726_v61 = vld [vmem:[#allocation221_spill] sm:$0xff] }
 0x751   :  { %v16483_v24 = vpop.xlane.xlu0 %5156  ;;  %11622 = vrot.lane.b32.xlu1 %v17714_v35, %s12292_s8  ;;  %v12169_v16 = vpop.eup %12168  ;;  %12194 = vrcp.f32 %v16282_v30  ;;  %v8758_v47 = vmul.f32 %v12163_v29, %v17719_v50  ;;  %v17722_v35 = vld [vmem:[#allocation192_spill] sm:$0xff]  ;;  %v17729_v34 = vld [vmem:[#allocation94_spill] sm:$0xff] }
 0x752   :  { %v12171_v14 = vpop.eup %12170  ;;  %12196 = vrcp.f32 %v16336_v11  ;;  %v8746_v11 = vmul.f32 %v12159_v53, %v17722_v35  ;;  %v17728_v50 = vld [vmem:[#allocation220_spill] sm:$0xff] }
 0x753   :  { %11617 = vrot.lane.b32.xlu0 %v11616_v38, %s12292_s8  ;;  %v12173_v42 = vpop.eup %12172  ;;  %12198 = vrcp.f32 %v17721_v52  ;;  %v11641_v30 = vpack.i.bf16 %v8759_v43, %v8758_v47  ;;  %v17723_v38 = vld [vmem:[#allocation52_spill] sm:$0xff]  ;;  %v8776_v47 = vmul.f32 %v12167_v60, %v17728_v50  ;;  %v17735_v50 = vld [vmem:[#allocation77_spill] sm:$0xff] }
 0x754   :  { %v16497_v57 = vpop.xlane.xlu1 %5159  ;;  %v12175_v36 = vpop.eup %12174  ;;  %12200 = vrcp.f32 %v16316_v46  ;;  %v8789_v5 = vmul.f32 %v12169_v16, %v17723_v38  ;;  %v8788_v46 = vmul.f32 %v12171_v14, %v17725_v40  ;;  %v8777_v8 = vmul.f32 %v12173_v42, %v17726_v61  ;;  %v17731_v38 = vld [vmem:[#allocation222_spill] sm:$0xff]  ;;  %v17734_v61 = vld [vmem:[#allocation79_spill] sm:$0xff] }
 0x755   :  { %v16500_v48 = vpop.xlane.xlu0 %5192  ;;  %11632 = vrot.lane.b32.xlu1 %v11631_v17, %s12290_s1  ;;  %v12177_v33 = vpop.eup %12176  ;;  %12202 = vrcp.f32 %v17724_v51  ;;  %v11636_v17 = vpack.i.bf16 %v8747_v22, %v8746_v11 }
 0x756   :  { %v12179_v29 = vpop.eup %12178  ;;  %v11651_v16 = vpack.i.bf16 %v8789_v5, %v8788_v46  ;;  %v8791_v52 = vmul.f32 %v12177_v33, %v17729_v34  ;;  %v17733_v33 = vld [vmem:[#allocation132_spill] sm:$0xff] }
 0x757   :  { %11627 = vrot.lane.b32.xlu0 %v11626_v21, %s12290_s1  ;;  %v12181_v43 = vpop.eup %12180  ;;  %v17727_v21 = vld [vmem:[#allocation209_spill] sm:$0xff]  ;;  %v8778_v40 = vmul.f32 %v12175_v36, %v17733_v33 }
 0x758   :  { %v16511_v3 = vpop.xlane.xlu1 %5195  ;;  %12204 = vrcp.f32 %v17727_v21  ;;  %v12183_v53 = vpop.eup %12182  ;;  %v8779_v5 = vmul.f32 %v12181_v43, %v17731_v38  ;;  %v17736_v38 = vld [vmem:[#allocation74_spill] sm:$0xff] }
 0x759   :  { %v16513_v45 = vpop.xlane.xlu0 %5162  ;;  %11642 = vrot.lane.b32.xlu1 %v11641_v30, %s12290_s1  ;;  %12206 = vrcp.f32 %v16296_v7  ;;  %v12185_v35 = vpop.eup %12184  ;;  %v11646_v30 = vpack.i.bf16 %v8777_v8, %v8776_v47  ;;  %v17730_v7 = vld [vmem:[#allocation46_spill] sm:$0xff] }
 0x75a   :  { %12208 = vrcp.f32 %v16286_v55  ;;  %v12187_v14 = vpop.eup %12186  ;;  %v8790_v11 = vmul.f32 %v12179_v29, %v17730_v7  ;;  %v8809_v21 = vmul.f32 %v12185_v35, %v17734_v61  ;;  %v11656_v43 = vpack.i.bf16 %v8779_v5, %v8778_v40  ;;  %v17739_v35 = vld [vmem:[#allocation155_spill] sm:$0xff] }
 0x75b   :  { %11637 = vrot.lane.b32.xlu0 %v11636_v17, %s12290_s1  ;;  %12210 = vrcp.f32 %v16288_v10  ;;  %v12189_v51 = vpop.eup %12188  ;;  %v17732_v17 = vld [vmem:[#allocation135_spill] sm:$0xff] }
 0x75c   :  { %v11478_v22 = vpop.permute.xlu1 %11477  ;;  %v12191_v60 = vpop.eup %12190  ;;  %12212 = vrcp.f32 %v17732_v17  ;;  %v11661_v55 = vpack.i.bf16 %v8791_v52, %v8790_v11  ;;  %v17737_v52 = vld [vmem:[#allocation70_spill] sm:$0xff]  ;;  %v17738_v17 = vld [vmem:[#allocation152_spill] sm:$0xff] }
 0x75d   :  { %v16525_v42 = vpop.xlane.xlu0 %5198  ;;  %11652 = vrot.lane.b32.xlu1 %v11651_v16, %s12291_s29  ;;  %v12193_v46 = vpop.eup %12192  ;;  %v8811_v16 = vmul.f32 %v12187_v14, %v17735_v50  ;;  %v11480_v47 = vunpack.i.h.bf16 %v11478_v22  ;;  %v11479_v29 = vunpack.i.l.bf16 %v11478_v22  ;;  %v8810_v11 = vmul.f32 %v12189_v51, %v17737_v52  ;;  %v17741_v52 = vld [vmem:[#allocation148_spill] sm:$0xff] }
 0x75e   :  { %v12195_v8 = vpop.eup %12194  ;;  %v8700_v33 = vmul.f32 %v12191_v60, %v17738_v17  ;;  %v8701_v61 = vmul.f32 %v12193_v46, %v17739_v35  ;;  %v17744_v35 = vld [vmem:[#allocation204_spill] sm:$0xff]  ;;  %12214 = vrcp.f32 %v16333_v31  ;;  %v17769_v31 = vld [vmem:[#allocation21_spill] sm:$0xff] }
 0x75f   :  { %11647 = vrot.lane.b32.xlu0 %v11646_v30, %s12291_s29  ;;  %v12197_v7 = vpop.eup %12196  ;;  %v8808_v30 = vmul.f32 %v12183_v53, %v17736_v38  ;;  %v11676_v40 = vpack.i.bf16 %v8811_v16, %v8810_v11  ;;  %v8763_v63 = vmul.f32 %v12195_v8, %v17740_v59  ;;  %12216 = vrcp.f32 %v16350_v0  ;;  %v17770_v0 = vld [vmem:[#allocation18_spill] sm:$0xff] }
 0x760   :  { %v11488_v10 = vpop.permute.xlu1 %11487  ;;  %v12199_v36 = vpop.eup %12198  ;;  %v9212_v51 = vsel %vm1149_vm3, %v8700_v33, %v11479_v29  ;;  %v9213_v38 = vsel %vm1149_vm3, %v8701_v61, %v11480_v47  ;;  %v8703_v60 = vmul.f32 %v12197_v7, %v17741_v52  ;;  %v17742_v29 = vld [vmem:[#allocation145_spill] sm:$0xff]  ;;  %12218 = vrcp.f32 %v16359_v32 }
 0x761   :  { %v11483_v34 = vpop.permute.xlu0 %11482  ;;  %11662 = vrot.lane.b32.xlu1 %v11661_v55, %s12291_s29  ;;  %v11490_v14 = vunpack.i.h.bf16 %v11488_v10  ;;  %v11489_v50 = vunpack.i.l.bf16 %v11488_v10  ;;  %v12201_v22 = vpop.eup %12200  ;;  %v11666_v5 = vpack.i.bf16 %v8809_v21, %v8808_v30  ;;  %12220 = vrcp.f32 %v16373_v56  ;;  %v17771_v56 = vld [vmem:[#allocation25_spill] sm:$0xff] }
 0x762   :  { %v11485_v13 = vunpack.i.h.bf16 %v11483_v34  ;;  %v12203_v53 = vpop.eup %12202  ;;  %v11484_v17 = vunpack.i.l.bf16 %v11483_v34  ;;  %v8702_v47 = vmul.f32 %v12201_v22, %v17742_v29  ;;  %v17743_v34 = vld [vmem:[#allocation126_spill] sm:$0xff]  ;;  %v17745_v22 = vpack.i.bf16 %v16293_v49, %v16291_v58  ;;  %v17750_v29 = vld [vmem:[#allocation140_spill] sm:$0xff] }
 0x763   :  { %11657 = vrot.lane.b32.xlu0 %v11656_v43, %s12291_s29  ;;  %v9244_v59 = vsel %vm4347_vm4, %v9212_v51, %v11489_v50  ;;  %v9245_v8 = vsel %vm4347_vm4, %v9213_v38, %v11490_v14  ;;  %v8762_v7 = vmul.f32 %v12199_v36, %v17743_v34  ;;  %v8761_v61 = vmul.f32 %v12203_v53, %v17744_v35  ;;  %v17762_v35 = vld [vmem:[#allocation10_spill] sm:$0xff] }
 0x764   :  { %v11493_v55 = vpop.permute.xlu1 %11492  ;;  %v9215_v33 = vsel %vm1149_vm3, %v8703_v60, %v11485_v13  ;;  %v9214_v50 = vsel %vm1149_vm3, %v8702_v47, %v11484_v17  ;;  %v17746_v60 = vld [vmem:[#allocation121_spill] sm:$0xff]  ;;  %v17751_v34 = vpack.i.bf16 %v16379_v25, %v16376_v27  ;;  %v17757_v27 = vld [vmem:[#allocation7_spill] sm:$0xff]  ;;  %12222 = vrcp.f32 %v16382_v26 }
 0x765   :  { %v11498_v46 = vpop.permute.xlu0 %11497  ;;  %11672 = vrot.lane.b32.xlu1 %v11671_v39, %s12292_s8  ;;  %v11495_v10 = vunpack.i.h.bf16 %v11493_v55  ;;  %v11494_v43 = vunpack.i.l.bf16 %v11493_v55  ;;  %v12205_v30 = vpop.eup %12204  ;;  %v11691_v52 = vpack.i.bf16 %v8763_v63, %v8762_v7  ;;  %v17749_v63 = vld [vmem:[#allocation95_spill] sm:$0xff]  ;;  %v17752_v7 = vpack.i.bf16 %v16356_v44, %v16353_v9 }
 0x766   :  { %v11500_v21 = vunpack.i.h.bf16 %v11498_v46  ;;  %v11499_v16 = vunpack.i.l.bf16 %v11498_v46  ;;  %v12207_v11 = vpop.eup %12206  ;;  %v8760_v46 = vmul.f32 %v12205_v30, %v17746_v60  ;;  %v17758_v25 = vld [vmem:[#allocation3_spill] sm:$0xff]  ;;  %12224 = vrcp.f32 %v16395_v15 }
 0x767   :  { %11667 = vrot.lane.b32.xlu0 %v11666_v5, %s12292_s8  ;;  %v12209_v55 = vpop.eup %12208  ;;  %v9246_v13 = vsel %vm4347_vm4, %v9214_v50, %v11494_v43  ;;  %v9247_v38 = vsel %vm4347_vm4, %v9215_v33, %v11495_v10  ;;  %v17754_v33 = vld [vmem:[#allocation2_spill] sm:$0xff]  ;;  %v17759_v9 = vld [vmem:[#allocation15_spill] sm:$0xff]  ;;  %v17765_v50 = vld [vmem:[#allocation16_spill] sm:$0xff]  ;;  %12226 = vrcp.f32 %v16398_v23 }
 0x768   :  { %v9278_v4 = vsel %vm9276_vm5, %v9245_v8, %v11500_v21  ;;  %v9277_v18 = vsel %vm9276_vm5, %v9244_v59, %v11499_v16  ;;  %v11503_v39 = vpop.permute.xlu1 %11502  ;;  %v12211_v5 = vpop.eup %12210  ;;  %v17747_v21 = vld [vmem:[#allocation60_spill] sm:$0xff]  ;;  %v11686_v43 = vpack.i.bf16 %v8761_v61, %v8760_v46  ;;  %v17748_v59 = vld [vmem:[#allocation141_spill] sm:$0xff]  ;;  %v17760_v44 = vld [vmem:[#allocation11_spill] sm:$0xff]  ;;  %12228 = vrcp.f32 %v16414_v54 }
 0x769   :  { %v11505_v14 = vunpack.i.h.bf16 %v11503_v39  ;;  %v11504_v51 = vunpack.i.l.bf16 %v11503_v39  ;;  %11682 = vrot.lane.b32.xlu1 %v17745_v22, %s12292_s8  ;;  %v9309_v36 = vpack.c.bf16 %v9278_v4, %v9277_v18  ;;  %v8795_v58 = vmul.f32 %v12207_v11, %v17747_v21  ;;  %v12213_v49 = vpop.eup %12212  ;;  %v17753_v11 = vld [vmem:[#allocation6_spill] sm:$0xff]  ;;  %v17755_v4 = vld [vmem:[#allocation9_spill] sm:$0xff]  ;;  %v17773_v15 = vld [vmem:[#allocation23_spill] sm:$0xff] }
 0x76a   :  { %v8794_v10 = vmul.f32 %v12209_v55, %v17748_v59  ;;  %v8793_v8 = vmul.f32 %v12211_v5, %v17749_v63  ;;  %v17756_v18 = vld [vmem:[#allocation5_spill] sm:$0xff]  ;;  %v17764_v55 = vld [vmem:[#allocation14_spill] sm:$0xff]  ;;  %12230 = vrcp.f32 %v16411_v28  ;;  %v17777_v63 = vld [vmem:[#allocation27_spill] sm:$0xff] }
 0x76b   :  { %v9279_v53 = vsel %vm9276_vm5, %v9246_v13, %v11504_v51  ;;  %v9280_v17 = vsel %vm9276_vm5, %v9247_v38, %v11505_v14  ;;  %11677 = vrot.lane.b32.xlu0 %v11676_v40, %s12292_s8  ;;  %11182 = vmatprep.mubr.msk.bf16.mxu0 %vm9437_vm6, %v9309_v36  ;;  %v8792_v40 = vmul.f32 %v12213_v49, %v17750_v29  ;;  %v17761_v39 = vld [vmem:[#allocation13_spill] sm:$0xff]  ;;  %v17766_v14 = vld [vmem:[#allocation12_spill] sm:$0xff]  ;;  %v17768_v36 = vld [vmem:[#allocation19_spill] sm:$0xff]  ;;  %v12215_v60 = vpop.eup %12214  ;;  %12232 = vrcp.f32 %v16425_v12 }
 0x76c   :  { %v9310_v16 = vpack.c.bf16 %v9280_v17, %v9279_v53  ;;  %v11701_v30 = vpack.i.bf16 %v8795_v58, %v8794_v10  ;;  %v17763_v61 = vld [vmem:[#allocation17_spill] sm:$0xff]  ;;  %v17767_v51 = vld [vmem:[#allocation24_spill] sm:$0xff]  ;;  %v17772_v38 = vld [vmem:[#allocation22_spill] sm:$0xff]  ;;  %v12217_v46 = vpop.eup %12216  ;;  %12234 = vrcp.f32 %v16428_v41 }
 0x76d   :  { %11692 = vrot.lane.b32.xlu1 %v11691_v52, %s12290_s1  ;;  %v11696_v47 = vpack.i.bf16 %v8793_v8, %v8792_v40  ;;  %v17774_v53 = vld [vmem:[#allocation20_spill] sm:$0xff]  ;;  %v12219_v54 = vpop.eup %12218  ;;  %v17776_v59 = vld [vmem:[#allocation157_spill] sm:$0xff]  ;;  %v17779_v40 = vld [vmem:[#allocation151_spill] sm:$0xff]  ;;  %12236 = vrcp.f32 %v16439_v62 }
 0x76e   :  { %11183 = vmatmul.mubr.msk.bf16.vlgmr.msra.gmra.mxu0 %vm9437_vm6, %v9310_v16  ;;  %v12221_v17 = vpop.eup %12220  ;;  %v17775_v58 = vld [vmem:[#allocation32_spill] sm:$0xff]  ;;  %v8704_v10 = vmul.f32 %v12215_v60, %v17776_v59  ;;  %v17781_v12 = vld [vmem:[#allocation166_spill] sm:$0xff]  ;;  %12238 = vrcp.f32 %v16442_v2 }
 0x76f   :  { %11687 = vrot.lane.b32.xlu0 %v11686_v43, %s12290_s1  ;;  %12240 = vrcp.f32 %v16452_v37  ;;  %v17784_v62 = vld [vmem:[#allocation114_spill] sm:$0xff] }
 0x770   :  { %12242 = vrcp.f32 %v16455_v19 }
 0x771   :  { %11702 = vrot.lane.b32.xlu1 %v11701_v30, %s12291_s29  ;;  %v12223_v49 = vpop.eup %12222  ;;  %v17778_v30 = vld [vmem:[#allocation96_spill] sm:$0xff]  ;;  %12244 = vrcp.f32 %v16467_v1 }
 0x772   :  { %v8705_v29 = vmul.f32 %v12219_v54, %v17778_v30  ;;  %v17788_v54 = vld [vmem:[#allocation30_spill] sm:$0xff]  ;;  %v17789_v30 = vld [vmem:[#allocation31_spill] sm:$0xff]  ;;  %12246 = vrcp.f32 %v16464_v20 }
 0x773   :  { %11697 = vrot.lane.b32.xlu0 %v11696_v47, %s12291_s29  ;;  %v12225_v43 = vpop.eup %12224  ;;  %v8706_v47 = vmul.f32 %v12221_v17, %v17779_v40  ;;  %12248 = vrcp.f32 %v16480_v6 }
 0x774   :  { %v12227_v8 = vpop.eup %12226  ;;  %12250 = vrcp.f32 %v16483_v24  ;;  %v17798_v24 = vld [vmem:[#allocation104_spill] sm:$0xff] }
 0x775   :  { %11712 = vrot.lane.b32.xlu1 %v17751_v34, %s12292_s8  ;;  %v17780_v34 = vld [vmem:[#allocation51_spill] sm:$0xff]  ;;  %12252 = vrcp.f32 %v16497_v57  ;;  %v17800_v57 = vld [vmem:[#allocation169_spill] sm:$0xff] }
 0x776   :  { %12254 = vrcp.f32 %v16500_v48 }
 0x777   :  { %11707 = vrot.lane.b32.xlu0 %v17752_v7, %s12292_s8  ;;  %v8716_v7 = vmul.f32 %v12217_v46, %v17780_v34  ;;  %12256 = vrcp.f32 %v16511_v3 }
 0x778   :  { %12258 = vrcp.f32 %v16513_v45 }
 0x779   :  { %9347 = vrot.lane.b32.xlu1 %v17753_v11, %s12293_s3  ;;  %v12229_v11 = vpop.eup %12228  ;;  %12260 = vrcp.f32 %v16525_v42 }
 0x77b   :  { %9345 = vrot.lane.b32.xlu0 %v17754_v33, %s12293_s3 }
 0x77d   :  { %9351 = vrot.lane.b32.xlu1 %v17755_v4, %s12293_s3  ;;  %v8717_v4 = vmul.f32 %v12223_v49, %v17781_v12 }
 0x77f   :  { %9349 = vrot.lane.b32.xlu0 %v17756_v18, %s12293_s3 }
 0x781   :  { %9355 = vrot.lane.b32.xlu1 %v17757_v27, %s12293_s3  ;;  %v17782_v27 = vld [vmem:[#allocation29_spill] sm:$0xff] }
 0x783   :  { %9353 = vrot.lane.b32.xlu0 %v17758_v25, %s12293_s3 }
 0x785   :  { %9359 = vrot.lane.b32.xlu1 %v17759_v9, %s12293_s3 }
 0x787   :  { %9357 = vrot.lane.b32.xlu0 %v17760_v44, %s12293_s3 }
 0x789   :  { %9363 = vrot.lane.b32.xlu1 %v17761_v39, %s12293_s3  ;;  %v17783_v39 = vld [vmem:[#allocation153_spill] sm:$0xff] }
 0x78b   :  { %9361 = vrot.lane.b32.xlu0 %v17762_v35, %s12293_s3  ;;  %v8707_v35 = vmul.f32 %v12227_v8, %v17783_v39 }
 0x78d   :  { %9367 = vrot.lane.b32.xlu1 %v17763_v61, %s12293_s3 }
 0x78f   :  { %9365 = vrot.lane.b32.xlu0 %v17764_v55, %s12293_s3  ;;  %v8718_v55 = vmul.f32 %v12225_v43, %v17784_v62 }
 0x791   :  { %9371 = vrot.lane.b32.xlu1 %v17765_v50, %s12293_s3  ;;  %v17785_v50 = vld [vmem:[#allocation26_spill] sm:$0xff] }
 0x793   :  { %9369 = vrot.lane.b32.xlu0 %v17766_v14, %s12293_s3  ;;  %v17786_v14 = vld [vmem:[#allocation61_spill] sm:$0xff] }
 0x795   :  { %9375 = vrot.lane.b32.xlu1 %v17767_v51, %s12293_s3  ;;  %v8719_v51 = vmul.f32 %v12229_v11, %v17786_v14  ;;  %v12231_v11 = vpop.eup %12230  ;;  %v17791_v14 = vld [vmem:[#allocation8_spill] sm:$0xff] }
 0x796   :  { %v16619_v22 = vpop.xlane.xlu0 %5201 }
 0x797   :  { %9373 = vrot.lane.b32.xlu0 %v17768_v36, %s12293_s3  ;;  %12262 = vrcp.f32 %v16619_v22 }
 0x799   :  { %v16626_v5 = vpop.xlane.xlu1 %5204  ;;  %9379 = vrot.lane.b32.xlu1 %v17769_v31, %s12293_s3 }
 0x79a   :  { %v16631_v13 = vpop.xlane.xlu0 %5207 }
 0x79b   :  { %9377 = vrot.lane.b32.xlu0 %v17770_v0, %s12293_s3 }
 0x79d   :  { %v11508_v32 = vpop.permute.xlu1 %11507  ;;  %9383 = vrot.lane.b32.xlu1 %v17771_v56, %s12293_s3  ;;  %v17787_v56 = vld [vmem:[#allocation33_spill] sm:$0xff] }
 0x79e   :  { %v16639_v26 = vpop.xlane.xlu0 %5210  ;;  %v11510_v28 = vunpack.i.h.bf16 %v11508_v32  ;;  %v11509_v33 = vunpack.i.l.bf16 %v11508_v32 }
 0x79f   :  { %9381 = vrot.lane.b32.xlu0 %v17772_v38, %s12293_s3 }
 0x7a0   :  { %v9216_v31 = vsel %vm1149_vm3, %v8704_v10, %v11509_v33  ;;  %v9217_v37 = vsel %vm1149_vm3, %v8705_v29, %v11510_v28 }
 0x7a1   :  { %v11518_v52 = vpop.permute.xlu1 %11517  ;;  %9387 = vrot.lane.b32.xlu1 %v17773_v15, %s12293_s3 }
 0x7a2   :  { %v11513_v23 = vpop.permute.xlu0 %11512  ;;  %v11520_v41 = vunpack.i.h.bf16 %v11518_v52  ;;  %v11519_v25 = vunpack.i.l.bf16 %v11518_v52 }
 0x7a3   :  { %9385 = vrot.lane.b32.xlu0 %v17774_v53, %s12293_s3  ;;  %v11515_v9 = vunpack.i.h.bf16 %v11513_v23  ;;  %v11514_v61 = vunpack.i.l.bf16 %v11513_v23 }
 0x7a4   :  { %v9218_v38 = vsel %vm1149_vm3, %v8706_v47, %v11519_v25  ;;  %v9219_v52 = vsel %vm1149_vm3, %v8707_v35, %v11520_v41 }
 0x7a5   :  { %v16647_v21 = vpop.permute.xlu1 %11522  ;;  %9391 = vrot.lane.b32.xlu1 %v17775_v58, %s12293_s3  ;;  %v9229_v19 = vsel %vm1149_vm3, %v8717_v4, %v11515_v9  ;;  %v9228_v23 = vsel %vm1149_vm3, %v8716_v7, %v11514_v61  ;;  %v17790_v4 = vld [vmem:[#allocation28_spill] sm:$0xff] }
 0x7a6   :  { %v11528_v16 = vpop.permute.xlu0 %11527  ;;  %v11525_v1 = vunpack.i.h.bf16 %v16647_v21  ;;  %v11524_v43 = vunpack.i.l.bf16 %v16647_v21 }
 0x7a7   :  { %9389 = vrot.lane.b32.xlu0 %v17777_v63, %s12293_s3  ;;  %v11530_v36 = vunpack.i.h.bf16 %v11528_v16  ;;  %v11529_v2 = vunpack.i.l.bf16 %v11528_v16 }
 0x7a8   :  { %v9230_v39 = vsel %vm1149_vm3, %v8718_v55, %v11524_v43 }
 0x7a9   :  { %v11533_v18 = vpop.permute.xlu1 %11532  ;;  %9395 = vrot.lane.b32.xlu1 %v17782_v27, %s12293_s3  ;;  %v9249_v17 = vsel %vm4347_vm4, %v9217_v37, %v11530_v36  ;;  %v9248_v58 = vsel %vm4347_vm4, %v9216_v31, %v11529_v2  ;;  %v9231_v2 = vsel %vm1149_vm3, %v8719_v51, %v11525_v1 }
 0x7aa   :  { %v11538_v44 = vpop.permute.xlu0 %11537  ;;  %v11534_v0 = vunpack.i.l.bf16 %v11533_v18  ;;  %v11535_v15 = vunpack.i.h.bf16 %v11533_v18  ;;  %v12233_v18 = vpop.eup %12232  ;;  %12264 = vrcp.f32 %v16626_v5 }
 0x7ab   :  { %9393 = vrot.lane.b32.xlu0 %v17785_v50, %s12293_s3  ;;  %v11540_v49 = vunpack.i.h.bf16 %v11538_v44  ;;  %v11539_v16 = vunpack.i.l.bf16 %v11538_v44  ;;  %v12235_v44 = vpop.eup %12234  ;;  %12266 = vrcp.f32 %v16631_v13 }
 0x7ac   :  { %v9260_v59 = vsel %vm4347_vm4, %v9228_v23, %v11534_v0  ;;  %v9261_v29 = vsel %vm4347_vm4, %v9229_v19, %v11535_v15  ;;  %v12237_v36 = vpop.eup %12236  ;;  %12268 = vrcp.f32 %v16639_v26 }
 0x7ad   :  { %v11543_v32 = vpop.permute.xlu1 %11542  ;;  %9399 = vrot.lane.b32.xlu1 %v17787_v56, %s12293_s3  ;;  %v9251_v27 = vsel %vm4347_vm4, %v9219_v52, %v11540_v49  ;;  %v9250_v41 = vsel %vm4347_vm4, %v9218_v38, %v11539_v16  ;;  %v12239_v56 = vpop.eup %12238  ;;  %v17792_v52 = vld [vmem:[#allocation4_spill] sm:$0xff]  ;;  %v17794_v16 = vld [vmem:[#allocation109_spill] sm:$0xff] }
 0x7ae   :  { %v11548_v60 = vpop.permute.xlu0 %11547  ;;  %v11545_v28 = vunpack.i.h.bf16 %v11543_v32  ;;  %v11544_v33 = vunpack.i.l.bf16 %v11543_v32  ;;  %v12241_v19 = vpop.eup %12240  ;;  %v8709_v43 = vmul.f32 %v12235_v44, %v17794_v16 }
 0x7af   :  { %v11550_v46 = vunpack.i.h.bf16 %v11548_v60  ;;  %v11549_v53 = vunpack.i.l.bf16 %v11548_v60  ;;  %9397 = vrot.lane.b32.xlu0 %v17788_v54, %s12293_s3  ;;  %v12243_v51 = vpop.eup %12242 }
 0x7b0   :  { %v9262_v38 = vsel %vm4347_vm4, %v9230_v39, %v11544_v33  ;;  %v9263_v55 = vsel %vm4347_vm4, %v9231_v2, %v11545_v28  ;;  %v8711_v28 = vmul.f32 %v12243_v51, %v17798_v24 }
 0x7b1   :  { %v9281_v10 = vsel %vm9276_vm5, %v9248_v58, %v11549_v53  ;;  %v9282_v63 = vsel %vm9276_vm5, %v9249_v17, %v11550_v46  ;;  %v11553_v8 = vpop.permute.xlu1 %11552  ;;  %9403 = vrot.lane.b32.xlu1 %v17789_v30, %s12293_s3  ;;  %v12245_v46 = vpop.eup %12244  ;;  %v17793_v58 = vld [vmem:[#allocation108_spill] sm:$0xff] }
 0x7b2   :  { %v9311_v40 = vpack.c.bf16 %v9282_v63, %v9281_v10  ;;  %v11555_v47 = vunpack.i.h.bf16 %v11553_v8  ;;  %v11554_v34 = vunpack.i.l.bf16 %v11553_v8  ;;  %v11558_v7 = vpop.permute.xlu0 %11557  ;;  %v8708_v49 = vmul.f32 %v12231_v11, %v17793_v58  ;;  %v17796_v63 = vld [vmem:[#allocation158_spill] sm:$0xff]  ;;  %v12247_v51 = vpop.eup %12246 }
 0x7b3   :  { %v11560_v21 = vunpack.i.h.bf16 %v11558_v7  ;;  %v11559_v12 = vunpack.i.l.bf16 %v11558_v7  ;;  %9401 = vrot.lane.b32.xlu0 %v17790_v4, %s12293_s3  ;;  %v8710_v8 = vmul.f32 %v12237_v36, %v17796_v63  ;;  %v8723_v4 = vmul.f32 %v12245_v46, %v17800_v57 }
 0x7b4   :  { %v9293_v25 = vsel %vm9276_vm5, %v9260_v59, %v11554_v34  ;;  %v9294_v9 = vsel %vm9276_vm5, %v9261_v29, %v11555_v47  ;;  %11186 = vmatprep.mubr.msk.bf16.mxu0 %vm9437_vm6, %v9311_v40  ;;  %v17795_v59 = vld [vmem:[#allocation168_spill] sm:$0xff]  ;;  %v17797_v40 = vld [vmem:[#allocation170_spill] sm:$0xff] }
 0x7b5   :  { %v9317_v35 = vpack.c.bf16 %v9294_v9, %v9293_v25  ;;  %v9283_v61 = vsel %vm9276_vm5, %v9250_v41, %v11559_v12  ;;  %v9284_v62 = vsel %vm9276_vm5, %v9251_v27, %v11560_v21  ;;  %v11563_v50 = vpop.permute.xlu1 %11562  ;;  %9343 = vrot.lane.b32.xlu1 %v17791_v14, %s12293_s3  ;;  %v8720_v10 = vmul.f32 %v12233_v18, %v17795_v59  ;;  %v17799_v21 = vld [vmem:[#allocation167_spill] sm:$0xff] }
 0x7b6   :  { %v9312_v31 = vpack.c.bf16 %v9284_v62, %v9283_v61  ;;  %v11565_v37 = vunpack.i.h.bf16 %v11563_v50  ;;  %v11564_v0 = vunpack.i.l.bf16 %v11563_v50  ;;  %v11568_v32 = vpop.permute.xlu0 %11567  ;;  %v8721_v47 = vmul.f32 %v12239_v56, %v17797_v40 }
 0x7b7   :  { %9341 = vrot.lane.b32.xlu0 %v17792_v52, %s12293_s3  ;;  %11198 = vmatprep.mubr.msk.bf16.mxu1 %vm9437_vm6, %v9317_v35  ;;  %v11570_v30 = vunpack.i.h.bf16 %v11568_v32  ;;  %v11569_v29 = vunpack.i.l.bf16 %v11568_v32  ;;  %v8722_v12 = vmul.f32 %v12241_v19, %v17799_v21 }
 0x7b8   :  { %v9295_v15 = vsel %vm9276_vm5, %v9262_v38, %v11564_v0  ;;  %v9296_v60 = vsel %vm9276_vm5, %v9263_v55, %v11565_v37  ;;  %11187 = vmatmul.mubr.msk.bf16.gmra.mxu0 %vm9437_vm6, %v9312_v31 }
 0x7b9   :  { %v9318_v23 = vpack.c.bf16 %v9296_v60, %v9295_v15  ;;  %v11573_v1 = vpop.permute.xlu1 %11572  ;;  %v9221_v48 = vsel %vm1149_vm3, %v8709_v43, %v11570_v30  ;;  %v9220_v41 = vsel %vm1149_vm3, %v8708_v49, %v11569_v29 }
 0x7ba   :  { %v11578_v53 = vpop.permute.xlu0 %11577  ;;  %v11575_v6 = vunpack.i.h.bf16 %v11573_v1  ;;  %v11574_v34 = vunpack.i.l.bf16 %v11573_v1 }
 0x7bb   :  { %11199 = vmatmul.mubr.msk.bf16.vlgmr.msra.gmra.mxu1 %vm9437_vm6, %v9318_v23  ;;  %v11580_v7 = vunpack.i.h.bf16 %v11578_v53  ;;  %v11579_v33 = vunpack.i.l.bf16 %v11578_v53 }
 0x7bc   :  { %v9232_v3 = vsel %vm1149_vm3, %v8720_v10, %v11574_v34  ;;  %v9233_v44 = vsel %vm1149_vm3, %v8721_v47, %v11575_v6 }
 0x7bd   :  { %v16715_v54 = vpop.permute.xlu1 %11582  ;;  %v9223_v39 = vsel %vm1149_vm3, %v8711_v28, %v11580_v7  ;;  %v9222_v61 = vsel %vm1149_vm3, %v8710_v8, %v11579_v33 }
 0x7be   :  { %v11588_v17 = vpop.permute.xlu0 %11587  ;;  %v11585_v62 = vunpack.i.h.bf16 %v16715_v54  ;;  %v11584_v37 = vunpack.i.l.bf16 %v16715_v54 }
 0x7bf   :  { %v11590_v18 = vunpack.i.h.bf16 %v11588_v17  ;;  %v11589_v27 = vunpack.i.l.bf16 %v11588_v17  ;;  %v12249_v17 = vpop.eup %12248 }
 0x7c0   :  { %v12251_v43 = vpop.eup %12250  ;;  %v9234_v59 = vsel %vm1149_vm3, %v8722_v12, %v11584_v37  ;;  %v9235_v40 = vsel %vm1149_vm3, %v8723_v4, %v11585_v62  ;;  %v17804_v62 = vld [vmem:[#allocation59_spill] sm:$0xff] }
 0x7c1   :  { %v11593_v20 = vpop.permute.xlu1 %11592  ;;  %v9252_v14 = vsel %vm4347_vm4, %v9220_v41, %v11589_v27  ;;  %v9253_v36 = vsel %vm4347_vm4, %v9221_v48, %v11590_v18  ;;  %v12253_v29 = vpop.eup %12252 }
 0x7c2   :  { %v11598_v11 = vpop.permute.xlu0 %11597  ;;  %v11594_v25 = vunpack.i.l.bf16 %v11593_v20  ;;  %v11595_v35 = vunpack.i.h.bf16 %v11593_v20  ;;  %v12255_v7 = vpop.eup %12254 }
 0x7c3   :  { %v11600_v2 = vunpack.i.h.bf16 %v11598_v11  ;;  %v11599_v31 = vunpack.i.l.bf16 %v11598_v11  ;;  %v12257_v28 = vpop.eup %12256 }
 0x7c4   :  { %v9264_v0 = vsel %vm4347_vm4, %v9232_v3, %v11594_v25  ;;  %v9265_v55 = vsel %vm4347_vm4, %v9233_v44, %v11595_v35  ;;  %v12259_v12 = vpop.eup %12258  ;;  %v17801_v25 = vld [vmem:[#allocation97_spill] sm:$0xff]  ;;  %v17802_v3 = vld [vmem:[#allocation76_spill] sm:$0xff] }
 0x7c5   :  { %v11603_v9 = vpop.permute.xlu1 %11602  ;;  %v9254_v54 = vsel %vm4347_vm4, %v9222_v61, %v11599_v31  ;;  %v9255_v58 = vsel %vm4347_vm4, %v9223_v39, %v11600_v2  ;;  %v12261_v18 = vpop.eup %12260  ;;  %v8713_v44 = vmul.f32 %v12251_v43, %v17802_v3  ;;  %v17803_v39 = vld [vmem:[#allocation173_spill] sm:$0xff] }
 0x7c6   :  { %v11608_v45 = vpop.permute.xlu0 %11607  ;;  %v11605_v23 = vunpack.i.h.bf16 %v11603_v9  ;;  %v11604_v1 = vunpack.i.l.bf16 %v11603_v9  ;;  %v8712_v9 = vmul.f32 %v12247_v51, %v17801_v25  ;;  %v8724_v35 = vmul.f32 %v12249_v17, %v17803_v39 }
 0x7c7   :  { %v11610_v50 = vunpack.i.h.bf16 %v11608_v45  ;;  %v11609_v42 = vunpack.i.l.bf16 %v11608_v45 }
 0x7c8   :  { %v9266_v11 = vsel %vm4347_vm4, %v9234_v59, %v11604_v1  ;;  %v9267_v24 = vsel %vm4347_vm4, %v9235_v40, %v11605_v23 }
 0x7c9   :  { %v9285_v32 = vsel %vm9276_vm5, %v9252_v14, %v11609_v42  ;;  %v9286_v56 = vsel %vm9276_vm5, %v9253_v36, %v11610_v50  ;;  %v11613_v38 = vpop.permute.xlu1 %11612  ;;  %v8725_v50 = vmul.f32 %v12255_v7, %v17804_v62  ;;  %v17805_v42 = vld [vmem:[#allocation84_spill] sm:$0xff] }
 0x7ca   :  { %v9313_v52 = vpack.c.bf16 %v9286_v56, %v9285_v32  ;;  %v11615_v19 = vunpack.i.h.bf16 %v11613_v38  ;;  %v11614_v15 = vunpack.i.l.bf16 %v11613_v38  ;;  %v11618_v60 = vpop.permute.xlu0 %11617  ;;  %v8714_v14 = vmul.f32 %v12253_v29, %v17805_v42  ;;  %v17806_v32 = vld [vmem:[#allocation159_spill] sm:$0xff] }
 0x7cb   :  { %v11620_v46 = vunpack.i.h.bf16 %v11618_v60  ;;  %v11619_v53 = vunpack.i.l.bf16 %v11618_v60  ;;  %v8715_v56 = vmul.f32 %v12259_v12, %v17806_v32 }
 0x7cc   :  { %v9297_v49 = vsel %vm9276_vm5, %v9264_v0, %v11614_v15  ;;  %v9298_v16 = vsel %vm9276_vm5, %v9265_v55, %v11615_v19  ;;  %11190 = vmatprep.mubr.msk.bf16.mxu0 %vm9437_vm6, %v9313_v52  ;;  %v17807_v55 = vld [vmem:[#allocation171_spill] sm:$0xff]  ;;  %v17808_v19 = vld [vmem:[#allocation172_spill] sm:$0xff] }
 0x7cd   :  { %v9319_v10 = vpack.c.bf16 %v9298_v16, %v9297_v49  ;;  %v9287_v63 = vsel %vm9276_vm5, %v9254_v54, %v11619_v53  ;;  %v9288_v8 = vsel %vm9276_vm5, %v9255_v58, %v11620_v46  ;;  %v11623_v30 = vpop.permute.xlu1 %11622  ;;  %v8726_v52 = vmul.f32 %v12257_v28, %v17807_v55  ;;  %v17809_v55 = vld [vmem:[#allocation175_spill] sm:$0xff] }
 0x7ce   :  { %v9314_v47 = vpack.c.bf16 %v9288_v8, %v9287_v63  ;;  %v11625_v20 = vunpack.i.h.bf16 %v11623_v30  ;;  %v11624_v6 = vunpack.i.l.bf16 %v11623_v30  ;;  %v11628_v34 = vpop.permute.xlu0 %11627  ;;  %v8727_v15 = vmul.f32 %v12261_v18, %v17808_v19  ;;  %v17810_v19 = vld [vmem:[#allocation53_spill] sm:$0xff] }
 0x7cf   :  { %11202 = vmatprep.mubr.msk.bf16.mxu1 %vm9437_vm6, %v9319_v10  ;;  %v11630_v45 = vunpack.i.h.bf16 %v11628_v34  ;;  %v11629_v61 = vunpack.i.l.bf16 %v11628_v34 }
 0x7d0   :  { %v9299_v33 = vsel %vm9276_vm5, %v9266_v11, %v11624_v6  ;;  %v9300_v21 = vsel %vm9276_vm5, %v9267_v24, %v11625_v20  ;;  %11191 = vmatmul.mubr.msk.bf16.gmra.mxu0 %vm9437_vm6, %v9314_v47 }
 0x7d1   :  { %v9320_v57 = vpack.c.bf16 %v9300_v21, %v9299_v33  ;;  %v11633_v4 = vpop.permute.xlu1 %11632  ;;  %v9225_v22 = vsel %vm1149_vm3, %v8713_v44, %v11630_v45  ;;  %v9224_v23 = vsel %vm1149_vm3, %v8712_v9, %v11629_v61  ;;  %v12263_v61 = vpop.eup %12262 }
 0x7d2   :  { %v11638_v27 = vpop.permute.xlu0 %11637  ;;  %v11635_v2 = vunpack.i.h.bf16 %v11633_v4  ;;  %v11634_v31 = vunpack.i.l.bf16 %v11633_v4  ;;  %v12265_v42 = vpop.eup %12264 }
 0x7d3   :  { %11203 = vmatmul.mubr.msk.bf16.gmra.mxu1 %vm9437_vm6, %v9320_v57  ;;  %v11640_v37 = vunpack.i.h.bf16 %v11638_v27  ;;  %v11639_v38 = vunpack.i.l.bf16 %v11638_v27 }
 0x7d4   :  { %v9236_v5 = vsel %vm1149_vm3, %v8724_v35, %v11634_v31  ;;  %v9237_v53 = vsel %vm1149_vm3, %v8725_v50, %v11635_v2  ;;  %v12267_v2 = vpop.eup %12266 }
 0x7d5   :  { %v16763_v48 = vpop.permute.xlu1 %11642  ;;  %v9227_v17 = vsel %vm1149_vm3, %v8715_v56, %v11640_v37  ;;  %v9226_v58 = vsel %vm1149_vm3, %v8714_v14, %v11639_v38 }
 0x7d6   :  { %v11648_v41 = vpop.permute.xlu0 %11647  ;;  %v11645_v49 = vunpack.i.h.bf16 %v16763_v48  ;;  %v11644_v8 = vunpack.i.l.bf16 %v16763_v48 }
 0x7d7   :  { %v11650_v60 = vunpack.i.h.bf16 %v11648_v41  ;;  %v11649_v51 = vunpack.i.l.bf16 %v11648_v41 }
 0x7d8   :  { %v9238_v27 = vsel %vm1149_vm3, %v8726_v52, %v11644_v8  ;;  %v9239_v3 = vsel %vm1149_vm3, %v8727_v15, %v11645_v49  ;;  %v8728_v52 = vmul.f32 %v12263_v61, %v17809_v55  ;;  %v8729_v15 = vmul.f32 %v12265_v42, %v17810_v19 }
 0x7d9   :  { %v11653_v36 = vpop.permute.xlu1 %11652  ;;  %v9256_v43 = vsel %vm4347_vm4, %v9224_v23, %v11649_v51  ;;  %v9257_v59 = vsel %vm4347_vm4, %v9225_v22, %v11650_v60 }
 0x7da   :  { %v11658_v0 = vpop.permute.xlu0 %11657  ;;  %v11654_v1 = vunpack.i.l.bf16 %v11653_v36  ;;  %v11655_v54 = vunpack.i.h.bf16 %v11653_v36 }
 0x7db   :  { %v11660_v10 = vunpack.i.h.bf16 %v11658_v0  ;;  %v11659_v63 = vunpack.i.l.bf16 %v11658_v0  ;;  %v12269_v0 = vpop.eup %12268 }
 0x7dc   :  { %v9268_v30 = vsel %vm4347_vm4, %v9236_v5, %v11654_v1  ;;  %v9269_v20 = vsel %vm4347_vm4, %v9237_v53, %v11655_v54  ;;  %v17811_v53 = vld [vmem:[#allocation174_spill] sm:$0xff] }
 0x7dd   :  { %v11663_v46 = vpop.permute.xlu1 %11662  ;;  %v9258_v12 = vsel %vm4347_vm4, %v9226_v58, %v11659_v63  ;;  %v9259_v57 = vsel %vm4347_vm4, %v9227_v17, %v11660_v10  ;;  %v8730_v17 = vmul.f32 %v12267_v2, %v17811_v53 }
 0x7de   :  { %v11668_v13 = vpop.permute.xlu0 %11667  ;;  %v11665_v24 = vunpack.i.h.bf16 %v11663_v46  ;;  %v11664_v28 = vunpack.i.l.bf16 %v11663_v46 }
 0x7df   :  { %v11670_v16 = vunpack.i.h.bf16 %v11668_v13  ;;  %v11669_v26 = vunpack.i.l.bf16 %v11668_v13 }
 0x7e0   :  { %v9270_v62 = vsel %vm4347_vm4, %v9238_v27, %v11664_v28  ;;  %v9271_v50 = vsel %vm4347_vm4, %v9239_v3, %v11665_v24 }
 0x7e1   :  { %v9289_v29 = vsel %vm9276_vm5, %v9256_v43, %v11669_v26  ;;  %v9290_v40 = vsel %vm9276_vm5, %v9257_v59, %v11670_v16  ;;  %v11673_v47 = vpop.permute.xlu1 %11672  ;;  %v17812_v26 = vld [vmem:[#allocation176_spill] sm:$0xff] }
 0x7e2   :  { %v9315_v6 = vpack.c.bf16 %v9290_v40, %v9289_v29  ;;  %v11675_v34 = vunpack.i.h.bf16 %v11673_v47  ;;  %v11674_v7 = vunpack.i.l.bf16 %v11673_v47  ;;  %v11678_v11 = vpop.permute.xlu0 %11677  ;;  %v8731_v43 = vmul.f32 %v12269_v0, %v17812_v26 }
 0x7e3   :  { %v11680_v33 = vunpack.i.h.bf16 %v11678_v11  ;;  %v11679_v21 = vunpack.i.l.bf16 %v11678_v11 }
 0x7e4   :  { %v9301_v4 = vsel %vm9276_vm5, %v9268_v30, %v11674_v7  ;;  %v9302_v18 = vsel %vm9276_vm5, %v9269_v20, %v11675_v34  ;;  %11194 = vmatprep.mubr.msk.bf16.mxu0 %vm9437_vm6, %v9315_v6 }
 0x7e5   :  { %v9321_v48 = vpack.c.bf16 %v9302_v18, %v9301_v4  ;;  %v9291_v41 = vsel %vm9276_vm5, %v9258_v12, %v11679_v21  ;;  %v9292_v25 = vsel %vm9276_vm5, %v9259_v57, %v11680_v33  ;;  %v11683_v9 = vpop.permute.xlu1 %11682 }
 0x7e6   :  { %v9316_v44 = vpack.c.bf16 %v9292_v25, %v9291_v41  ;;  %v11685_v39 = vunpack.i.h.bf16 %v11683_v9  ;;  %v11684_v35 = vunpack.i.l.bf16 %v11683_v9  ;;  %v11688_v45 = vpop.permute.xlu0 %11687 }
 0x7e7   :  { %11206 = vmatprep.mubr.msk.bf16.mxu1 %vm9437_vm6, %v9321_v48  ;;  %v11690_v32 = vunpack.i.h.bf16 %v11688_v45  ;;  %v11689_v56 = vunpack.i.l.bf16 %v11688_v45 }
 0x7e8   :  { %v9303_v14 = vsel %vm9276_vm5, %v9270_v62, %v11684_v35  ;;  %v9304_v36 = vsel %vm9276_vm5, %v9271_v50, %v11685_v39  ;;  %11195 = vmatmul.mubr.msk.bf16.gmra.mxu0 %vm9437_vm6, %v9316_v44 }
 0x7e9   :  { %v9322_v31 = vpack.c.bf16 %v9304_v36, %v9303_v14  ;;  %v11693_v37 = vpop.permute.xlu1 %11692  ;;  %v9241_v1 = vsel %vm1149_vm3, %v8729_v15, %v11690_v32  ;;  %v9240_v46 = vsel %vm1149_vm3, %v8728_v52, %v11689_v56 }
 0x7ea   :  { %v11698_v38 = vpop.permute.xlu0 %11697  ;;  %v11694_v22 = vunpack.i.l.bf16 %v11693_v37  ;;  %v11695_v5 = vunpack.i.h.bf16 %v11693_v37 }
 0x7eb   :  { %11207 = vmatmul.mubr.msk.bf16.gmra.mxu1 %vm9437_vm6, %v9322_v31  ;;  %v11700_v60 = vunpack.i.h.bf16 %v11698_v38  ;;  %v11699_v51 = vunpack.i.l.bf16 %v11698_v38 }
 0x7ec   :  { %v9242_v63 = vsel %vm1149_vm3, %v8730_v17, %v11694_v22  ;;  %v9243_v40 = vsel %vm1149_vm3, %v8731_v43, %v11695_v5 }
 0x7ed   :  { %v11703_v23 = vpop.permute.xlu1 %11702  ;;  %v9272_v59 = vsel %vm4347_vm4, %v9240_v46, %v11699_v51  ;;  %v9273_v10 = vsel %vm4347_vm4, %v9241_v1, %v11700_v60 }
 0x7ee   :  { %v11708_v54 = vpop.permute.xlu0 %11707  ;;  %v11705_v13 = vunpack.i.h.bf16 %v11703_v23  ;;  %v11704_v58 = vunpack.i.l.bf16 %v11703_v23 }
 0x7ef   :  { %v11710_v49 = vunpack.i.h.bf16 %v11708_v54  ;;  %v11709_v16 = vunpack.i.l.bf16 %v11708_v54 }
 0x7f0   :  { %v9274_v34 = vsel %vm4347_vm4, %v9242_v63, %v11704_v58  ;;  %v9275_v7 = vsel %vm4347_vm4, %v9243_v40, %v11705_v13 }
 0x7f1   :  { %v9305_v8 = vsel %vm9276_vm5, %v9272_v59, %v11709_v16  ;;  %v9306_v30 = vsel %vm9276_vm5, %v9273_v10, %v11710_v49  ;;  %v11713_v29 = vpop.permute.xlu1 %11712 }
 0x7f2   :  { %v9323_v47 = vpack.c.bf16 %v9306_v30, %v9305_v8  ;;  %v11715_v20 = vunpack.i.h.bf16 %v11713_v29  ;;  %v11714_v6 = vunpack.i.l.bf16 %v11713_v29  ;;  %v9346_v33 = vpop.permute.xlu0 %9345 }
 0x7f4   :  { %v9307_v11 = vsel %vm9276_vm5, %v9274_v34, %v11714_v6  ;;  %v9308_v24 = vsel %vm9276_vm5, %v9275_v7, %v11715_v20  ;;  %11210 = vmatprep.mubr.msk.bf16.mxu1 %vm9437_vm6, %v9323_v47 }
 0x7f5   :  { %v9324_v28 = vpack.c.bf16 %v9308_v24, %v9307_v11  ;;  %v9348_v4 = vpop.permute.xlu1 %9347 }
 0x7f6   :  { %v9350_v41 = vpop.permute.xlu0 %9349 }
 0x7f7   :  { %11211 = vmatmul.mubr.msk.bf16.gmra.mxu1 %vm9437_vm6, %v9324_v28 }
 0x7f9   :  { %v9352_v44 = vpop.permute.xlu1 %9351 }
 0x7fa   :  { %v9354_v35 = vpop.permute.xlu0 %9353 }
 0x7fd   :  { %v9356_v50 = vpop.permute.xlu1 %9355 }
 0x7fe   :  { %v9358_v14 = vpop.permute.xlu0 %9357 }
 0x801   :  { %v9360_v36 = vpop.permute.xlu1 %9359 }
 0x802   :  { %v9362_v31 = vpop.permute.xlu0 %9361 }
 0x805   :  { %v9364_v56 = vpop.permute.xlu1 %9363 }
 0x806   :  { %v9366_v15 = vpop.permute.xlu0 %9365 }
 0x809   :  { %v9368_v51 = vpop.permute.xlu1 %9367 }
 0x80a   :  { %v9370_v23 = vpop.permute.xlu0 %9369 }
 0x80d   :  { %v9372_v46 = vpop.permute.xlu1 %9371 }
 0x80e   :  { %v9374_v53 = vpop.permute.xlu0 %9373 }
 0x811   :  { %v9376_v54 = vpop.permute.xlu1 %9375 }
 0x812   :  { %v9378_v49 = vpop.permute.xlu0 %9377 }
 0x815   :  { %v9380_v10 = vpop.permute.xlu1 %9379 }
 0x816   :  { %v9382_v29 = vpop.permute.xlu0 %9381 }
 0x819   :  { %v9384_v34 = vpop.permute.xlu1 %9383 }
 0x81a   :  { %v9386_v7 = vpop.permute.xlu0 %9385 }
 0x82e   :  { %v11184_v21 = vpop.f32.mrf.mxu0 }
 0x82f   :  { %v9529_v12 = vadd.f32 %v11184_v21, %v9346_v33  ;;  %v9388_v33 = vpop.permute.xlu1 %9387 }
 0x830   :  { %v16825_v57 = vpop.f32.mrf.mxu0 }
 0x831   :  { %9649 = vrot.lane.b32.xlu0 %v9529_v12, %s12290_s1 }
 0x832   :  { %v11185_v18 = vpop.f32.mrf.mxu0 }
 0x833   :  { %v9532_v27 = vadd.f32 %v11185_v18, %v9348_v4  ;;  %v9390_v18 = vpop.permute.xlu0 %9389 }
 0x834   :  { %v16829_v48 = vpop.f32.mrf.mxu0 }
 0x835   :  { %9651 = vrot.lane.b32.xlu1 %v9532_v27, %s12290_s1 }
 0x878   :  { %v11188_v25 = vpop.f32.mrf.mxu0 }
 0x879   :  { %v9545_v61 = vadd.f32 %v11188_v25, %v9354_v35 }
 0x87a   :  { %v9536_v9 = vpop.f32.mrf.mxu0 }
 0x87b   :  { %v9537_v3 = vadd.f32 %v9536_v9, %v9350_v41  ;;  %v11200_v38 = vpop.f32.mrf.mxu1  ;;  %v9392_v9 = vpop.permute.xlu1 %9391 }
 0x87c   :  { %v11189_v39 = vpop.f32.mrf.mxu0  ;;  %v9593_v24 = vadd.f32 %v11200_v38, %v9378_v49 }
 0x87d   :  { %9657 = vrot.lane.b32.xlu0 %v9537_v3, %s12291_s29  ;;  %v9548_v42 = vadd.f32 %v11189_v39, %v9356_v50  ;;  %v9584_v60 = vpop.f32.mrf.mxu1 }
 0x87e   :  { %v9539_v45 = vpop.f32.mrf.mxu0  ;;  %v9585_v20 = vadd.f32 %v9584_v60, %v9374_v53 }
 0x87f   :  { %v9540_v62 = vadd.f32 %v9539_v45, %v9352_v44  ;;  %v11201_v1 = vpop.f32.mrf.mxu1  ;;  %v9394_v44 = vpop.permute.xlu0 %9393 }
 0x880   :  { %v9596_v12 = vadd.f32 %v11201_v1, %v9380_v10 }
 0x881   :  { %9659 = vrot.lane.b32.xlu1 %v9540_v62, %s12291_s29  ;;  %9665 = vrot.lane.b32.xlu0 %v9545_v61, %s12292_s8  ;;  %v9587_v5 = vpop.f32.mrf.mxu1  ;;  %v9396_v61 = vpop.permute.xlu1 %9395 }
 0x882   :  { %v9588_v28 = vadd.f32 %v9587_v5, %v9376_v54 }
 0x885   :  { %9667 = vrot.lane.b32.xlu1 %v9548_v42, %s12292_s8  ;;  %v9398_v42 = vpop.permute.xlu0 %9397 }
 0x890   :  { %v11192_v2 = vpop.f32.mrf.mxu0 }
 0x891   :  { %v9561_v52 = vadd.f32 %v11192_v2, %v9362_v31  ;;  %v9400_v31 = vpop.permute.xlu1 %9399 }
 0x892   :  { %v9552_v37 = vpop.f32.mrf.mxu0 }
 0x893   :  { %v9553_v0 = vadd.f32 %v9552_v37, %v9358_v14  ;;  %v11204_v17 = vpop.f32.mrf.mxu1 }
 0x894   :  { %v11193_v32 = vpop.f32.mrf.mxu0  ;;  %v9609_v41 = vadd.f32 %v11204_v17, %v9386_v7 }
 0x895   :  { %9673 = vrot.lane.b32.xlu0 %v9553_v0, %s12293_s3  ;;  %v9564_v22 = vadd.f32 %v11193_v32, %v9364_v56  ;;  %v9600_v13 = vpop.f32.mrf.mxu1  ;;  %v9402_v0 = vpop.permute.xlu0 %9401 }
 0x896   :  { %v9555_v55 = vpop.f32.mrf.mxu0  ;;  %v9601_v4 = vadd.f32 %v9600_v13, %v9382_v29  ;;  %v9404_v38 = vpop.permute.xlu1 %9403 }
 0x897   :  { %v9556_v19 = vadd.f32 %v9555_v55, %v9360_v36  ;;  %v11205_v43 = vpop.f32.mrf.mxu1 }
 0x898   :  { %v9612_v39 = vadd.f32 %v11205_v43, %v9388_v33 }
 0x899   :  { %9675 = vrot.lane.b32.xlu1 %v9556_v19, %s12293_s3  ;;  %9681 = vrot.lane.b32.xlu0 %v9561_v52, %s12294_s9  ;;  %v9603_v40 = vpop.f32.mrf.mxu1  ;;  %v9342_v52 = vpop.permute.xlu0 %9341 }
 0x89a   :  { %v9604_v25 = vadd.f32 %v9603_v40, %v9384_v34  ;;  %v9344_v19 = vpop.permute.xlu1 %9343 }
 0x89d   :  { %9683 = vrot.lane.b32.xlu1 %v9564_v22, %s12294_s9 }
 0x8a7   :  { %v9652_v60 = vpop.permute.xlu1 %9651 }
 0x8a8   :  { %v11196_v58 = vpop.f32.mrf.mxu0 }
 0x8a9   :  { %v9577_v8 = vadd.f32 %v11196_v58, %v9370_v23 }
 0x8aa   :  { %v9568_v16 = vpop.f32.mrf.mxu0 }
 0x8ab   :  { %v9569_v26 = vadd.f32 %v9568_v16, %v9366_v15  ;;  %v11208_v47 = vpop.f32.mrf.mxu1  ;;  %v9650_v15 = vpop.permute.xlu0 %9649 }
 0x8ac   :  { %v11197_v59 = vpop.f32.mrf.mxu0  ;;  %v9625_v62 = vadd.f32 %v11208_v47, %v9394_v44 }
 0x8ad   :  { %9689 = vrot.lane.b32.xlu0 %v9569_v26, %s12295_s10  ;;  %v9580_v6 = vadd.f32 %v11197_v59, %v9372_v46  ;;  %v9616_v11 = vpop.f32.mrf.mxu1 }
 0x8ae   :  { %v9571_v63 = vpop.f32.mrf.mxu0  ;;  %v9617_v35 = vadd.f32 %v9616_v11, %v9390_v18 }
 0x8af   :  { %v9572_v30 = vadd.f32 %v9571_v63, %v9368_v51  ;;  %v11209_v21 = vpop.f32.mrf.mxu1 }
 0x8b0   :  { %v9628_v36 = vadd.f32 %v11209_v21, %v9396_v61 }
 0x8b1   :  { %9691 = vrot.lane.b32.xlu1 %v9572_v30, %s12295_s10  ;;  %9697 = vrot.lane.b32.xlu0 %v9577_v8, %s12285_s17  ;;  %v9619_v27 = vpop.f32.mrf.mxu1  ;;  %v9521_v30 = vadd.f32 %v16825_v57, %v9342_v52 }
 0x8b2   :  { %v9620_v50 = vadd.f32 %v9619_v27, %v9392_v9 }
 0x8b3   :  { %v9767_v29 = vsel %vm1149_vm3, %v9521_v30, %v9650_v15 }
 0x8b5   :  { %9699 = vrot.lane.b32.xlu1 %v9580_v6, %s12285_s17  ;;  %9705 = vrot.lane.b32.xlu0 %v9585_v20, %s12296_s11  ;;  %s12298_s17 = smov 88   ;;  %v9524_v6 = vadd.f32 %v16829_v48, %v9344_v19 }
 0x8b7   :  { %v11212_v3 = vpop.f32.mrf.mxu1  ;;  %v9768_v11 = vsel %vm1149_vm3, %v9524_v6, %v9652_v60 }
 0x8b8   :  { %v9641_v32 = vadd.f32 %v11212_v3, %v9402_v0 }
 0x8b9   :  { %9707 = vrot.lane.b32.xlu1 %v9588_v28, %s12296_s11  ;;  %9713 = vrot.lane.b32.xlu0 %v9593_v24, %s12297_s12  ;;  %v9632_v45 = vpop.f32.mrf.mxu1 }
 0x8ba   :  { %v9633_v2 = vadd.f32 %v9632_v45, %v9398_v42 }
 0x8bb   :  { %v11213_v14 = vpop.f32.mrf.mxu1 }
 0x8bc   :  { %v9644_v55 = vadd.f32 %v11213_v14, %v9404_v38 }
 0x8bd   :  { %9715 = vrot.lane.b32.xlu1 %v9596_v12, %s12297_s12  ;;  %9721 = vrot.lane.b32.xlu0 %v9601_v4, %s12284_s2  ;;  %v9635_v37 = vpop.f32.mrf.mxu1 }
 0x8be   :  { %v9636_v56 = vadd.f32 %v9635_v37, %v9400_v31 }
 0x8c1   :  { %9723 = vrot.lane.b32.xlu1 %v9604_v25, %s12284_s2  ;;  %9729 = vrot.lane.b32.xlu0 %v9609_v41, %s12298_s17 }
 0x8c5   :  { %9731 = vrot.lane.b32.xlu1 %v9612_v39, %s12298_s17  ;;  %9737 = vrot.lane.b32.xlu0 %v9617_v35, %s12299_s13 }
 0x8c9   :  { %9739 = vrot.lane.b32.xlu1 %v9620_v50, %s12299_s13  ;;  %9745 = vrot.lane.b32.xlu0 %v9625_v62, %s12283_s0 }
 0x8cd   :  { %9747 = vrot.lane.b32.xlu1 %v9628_v36, %s12283_s0  ;;  %9753 = vrot.lane.b32.xlu0 %v9633_v2, %s12289_s19 }
 0x8d1   :  { %9755 = vrot.lane.b32.xlu1 %v9636_v56, %s12289_s19  ;;  %9761 = vrot.lane.b32.xlu0 %v9641_v32, %s12288_s18 }
 0x8d5   :  { %9763 = vrot.lane.b32.xlu1 %v9644_v55, %s12288_s18 }
 0x8ef   :  { %v9658_v51 = vpop.permute.xlu0 %9657 }
 0x8f0   :  { %v9769_v40 = vsel %vm4347_vm4, %v9767_v29, %v9658_v51 }
 0x8f3   :  { %v9660_v22 = vpop.permute.xlu1 %9659  ;;  %v9666_v23 = vpop.permute.xlu0 %9665 }
 0x8f4   :  { %v9771_v34 = vsel %vm9276_vm5, %v9769_v40, %v9666_v23  ;;  %v9770_v57 = vsel %vm4347_vm4, %v9768_v11, %v9660_v22 }
 0x8f7   :  { %v9668_v1 = vpop.permute.xlu1 %9667 }
 0x8f8   :  { %v9772_v48 = vsel %vm9276_vm5, %v9770_v57, %v9668_v1 }
 0x907   :  { %v9674_v46 = vpop.permute.xlu0 %9673 }
 0x908   :  { %v9773_v7 = vsel %vm9437_vm6, %v9771_v34, %v9674_v46 }
 0x90b   :  { %v9676_v5 = vpop.permute.xlu1 %9675  ;;  %v9682_v53 = vpop.permute.xlu0 %9681 }
 0x90c   :  { %v9776_v24 = vsel %vm9775_vm7, %v9773_v7, %v9682_v53  ;;  %v9774_v4 = vsel %vm9437_vm6, %v9772_v48, %v9676_v5 }
 0x90f   :  { %v9684_v17 = vpop.permute.xlu1 %9683 }
 0x910   :  { %v9777_v27 = vsel %vm9775_vm7, %v9774_v4, %v9684_v17 }
 0x91f   :  { %v9690_v54 = vpop.permute.xlu0 %9689 }
 0x920   :  { %v9779_v28 = vsel %vm9778_vm8, %v9776_v24, %v9690_v54 }
 0x923   :  { %v9692_v13 = vpop.permute.xlu1 %9691  ;;  %v9698_v58 = vpop.permute.xlu0 %9697 }
 0x924   :  { %v9782_v12 = vsel %vm9781_vm9, %v9779_v28, %v9698_v58  ;;  %v9780_v25 = vsel %vm9778_vm8, %v9777_v27, %v9692_v13 }
 0x927   :  { %v9700_v49 = vpop.permute.xlu1 %9699  ;;  %v9706_v16 = vpop.permute.xlu0 %9705 }
 0x928   :  { %v9785_v18 = vsel %vm9784_vm10, %v9782_v12, %v9706_v16  ;;  %v9783_v39 = vsel %vm9781_vm9, %v9780_v25, %v9700_v49 }
 0x92b   :  { %v9708_v26 = vpop.permute.xlu1 %9707  ;;  %v9714_v43 = vpop.permute.xlu0 %9713 }
 0x92c   :  { %v9788_v41 = vsel %vm9787_vm11, %v9785_v18, %v9714_v43  ;;  %v9786_v45 = vsel %vm9784_vm10, %v9783_v39, %v9708_v26 }
 0x92f   :  { %v9716_v59 = vpop.permute.xlu1 %9715  ;;  %v9722_v10 = vpop.permute.xlu0 %9721 }
 0x930   :  { %v9791_v9 = vsel %vm9790_vm12, %v9788_v41, %v9722_v10  ;;  %v9789_v62 = vsel %vm9787_vm11, %v9786_v45, %v9716_v59 }
 0x933   :  { %v9724_v63 = vpop.permute.xlu1 %9723  ;;  %v9730_v8 = vpop.permute.xlu0 %9729 }
 0x934   :  { %v9794_v35 = vsel %vm9793_vm13, %v9791_v9, %v9730_v8  ;;  %v9792_v42 = vsel %vm9790_vm12, %v9789_v62, %v9724_v63 }
 0x937   :  { %v9732_v47 = vpop.permute.xlu1 %9731  ;;  %v9738_v20 = vpop.permute.xlu0 %9737 }
 0x938   :  { %v9797_v61 = vsel %vm9796_vm14, %v9794_v35, %v9738_v20  ;;  %v9795_v31 = vsel %vm9793_vm13, %v9792_v42, %v9732_v47 }
 0x93b   :  { %v9740_v33 = vpop.permute.xlu1 %9739  ;;  %v9746_v21 = vpop.permute.xlu0 %9745 }
 0x93c   :  { %v9800_v50 = vsel %vm9799_vm15, %v9797_v61, %v9746_v21  ;;  %v9798_v0 = vsel %vm9796_vm14, %v9795_v31, %v9740_v33 }
 0x93f   :  { %v9748_v3 = vpop.permute.xlu1 %9747  ;;  %v9754_v44 = vpop.permute.xlu0 %9753 }
 0x940   :  { %v9803_v14 = vsel %vm9802_vm0, %v9800_v50, %v9754_v44  ;;  %v9801_v32 = vsel %vm9799_vm15, %v9798_v0, %v9748_v3 }
 0x943   :  { %v9756_v36 = vpop.permute.xlu1 %9755  ;;  %v9762_v2 = vpop.permute.xlu0 %9761 }
 0x944   :  { %v9806_v37 = vsel %vm9805_vm1, %v9803_v14, %v9762_v2  ;;  %v9804_v56 = vsel %vm9802_vm0, %v9801_v32, %v9756_v36 }
 0x945   :  { %9808 = vst [vmem:[%s16887_s4] sm:$0xff] %v9806_v37 }
 0x947   :  { %v9764_v38 = vpop.permute.xlu1 %9763 }
 0x948   :  { %v9807_v55 = vsel %vm9805_vm1, %v9804_v56, %v9764_v38 }
 0x949   :  { %9809 = vst [vmem:[%s16887_s4 + $0x8] sm:$0xff] %v9807_v55 }

</bundles_post_ra>
